<compile_context>
chip_gen: v7x
topology: tpu7x:2x2x1
jax: 0.10.0
libtpu: 0.0.40
codegen_flags: <defaults>
</compile_context>

<pallas_src>
import functools
import math

import jax
import jax.numpy as jnp
from jax import lax
from jax.experimental import pallas as pl
from jax.experimental.pallas import tpu as pltpu


# ----------------------------------------------------------------------------
# Fused forward kernel (one batch TILE of Bt rows per grid step)
# ----------------------------------------------------------------------------
def _dqn_fused_kernel(
    # ---- inputs ----
    x_ref,                                   # (Bt, S, D)
    c1w_ref, c1b_ref,                        # (3*D, Hc) md, (1, Hc) f32   BN-folded
    c2w_ref, c2b_ref,                        # (5*Hc, H) md, (1, H)  f32   BN-folded
    l1_wih_ref, l1_whh_ref, l1_b_ref,        # (H, 4H) md, (H, 4H) md, (1, 4H)
    l2_wih_ref, l2_whh_ref, l2_b_ref,        # (H, 4H) md, (H, 4H) md, (1, 4H)
    ain_w_ref, ain_b_ref,                    # (H, 3H) md, (1, 3H)
    aout_w_ref, aout_b_ref,                  # (H, H) md, (1, H)
    pool_ref,                                # (H, NH) f32 0/1 head-pooling matrix
    hw1_ref, hb1_ref,                        # (H, 2H) md, (1, 2H)  fused q/pred first linears
    qln_g_ref, qln_b_ref,                    # (1, H)
    qw2_ref, qb2_ref,                        # (H, H//2) md, (1, H//2)
    qw3_ref, qb3_ref,                        # (H//2, Apad) md, (1, Apad)   lane-padded
    pln_g_ref, pln_b_ref,                    # (1, H)
    pw2_ref, pb2_ref,                        # (H, Dpad) md, (1, Dpad)      lane-padded
    # ---- outputs ----
    q_out_ref,                               # (Bt, Apad)
    p_out_ref,                               # (Bt, Dpad)
    # ---- scratch ----
    col1_ref,                                # (Bt, S, 3*D)  f32 im2col for conv1
    col2_ref,                                # (Bt, S, 5*Hc) f32 im2col for conv2
    seq1_ref,                                # (S, Bt, H)    f32 LSTM layer-1 hidden sequence
    seq2_ref,                                # (S, Bt, H)    f32 LSTM layer-2 hidden sequence
    *, S, D, Hc, H, NH, Bt,
):
    f32 = jnp.float32
    md = c1w_ref.dtype       # matmul operand dtype (bf16 by default); accumulation stays f32

    def dot32(a, b_ref_val):
        # MXU matmul: operands in md, accumulate in f32.
        return jnp.dot(a.astype(md), b_ref_val, preferred_element_type=f32)

    # ---------------- Conv1d + folded BN + ReLU, each layer as ONE matmul via im2col --------
    def fill_im2col(col_ref, src, k, C):
        # col[b, s, j*C:(j+1)*C] = src[b, s + j - k//2, :]  (zero outside [0, S))
        # Only the tiny boundary rows are zero-filled; every position is rewritten each grid
        # step, so this is correct with any grid size / megacore partitioning.
        pad = k // 2
        for j in range(k):
            off = j - pad
            lo, hi = max(0, -off), min(S, S - off)
            if lo > 0:
                col_ref[:, 0:lo, j * C:(j + 1) * C] = jnp.zeros((Bt, lo, C), f32)
            if hi < S:
                col_ref[:, hi:S, j * C:(j + 1) * C] = jnp.zeros((Bt, S - hi, C), f32)
            col_ref[:, lo:hi, j * C:(j + 1) * C] = src[:, lo + off:hi + off, :]

    x = x_ref[...].astype(f32)                                            # (Bt, S, D)

    fill_im2col(col1_ref, x, 3, D)
    f1 = jnp.maximum(dot32(col1_ref[...].reshape(Bt * S, 3 * D), c1w_ref[...])
                     + c1b_ref[...], 0.0)                                 # (Bt*S, Hc)

    fill_im2col(col2_ref, f1.reshape(Bt, S, Hc), 5, Hc)
    feat = jnp.maximum(dot32(col2_ref[...].reshape(Bt * S, 5 * Hc), c2w_ref[...])
                       + c2b_ref[...], 0.0)                               # (Bt*S, H)

    # ---------------- 2-layer LSTM (PyTorch i,f,g,o gate order; b = b_ih + b_hh; zero init) --
    def lstm_gates(g, c):
        i_g = jax.nn.sigmoid(g[:, 0 * H:1 * H])
        f_g = jax.nn.sigmoid(g[:, 1 * H:2 * H])
        g_g = jnp.tanh(g[:, 2 * H:3 * H])
        o_g = jax.nn.sigmoid(g[:, 3 * H:4 * H])
        c = f_g * c + i_g * g_g
        return o_g * jnp.tanh(c), c

    # Layer 1: input projection hoisted out of the recurrence (one big matmul).
    gx1 = (dot32(feat, l1_wih_ref[...]) + l1_b_ref[...]).reshape(Bt, S, 4 * H)
    h = jnp.zeros((Bt, H), f32)
    c = jnp.zeros((Bt, H), f32)
    # TODO(synk): for large S convert this static unroll to lax.fori_loop to bound vreg pressure.
    for t in range(S):
        g = gx1[:, t, :] + dot32(h, l1_whh_ref[...])
        h, c = lstm_gates(g, c)
        seq1_ref[t] = h                    # one aligned (Bt, H) tile store per step (time-major)

    # Layer 2: time-major throughout, no relayout needed.
    gx2 = (dot32(seq1_ref[...].reshape(S * Bt, H), l2_wih_ref[...])
           + l2_b_ref[...]).reshape(S, Bt, 4 * H)
    h = jnp.zeros((Bt, H), f32)
    c = jnp.zeros((Bt, H), f32)
    for t in range(S):
        g = gx2[t] + dot32(h, l2_whh_ref[...])
        h, c = lstm_gates(g, c)
        seq2_ref[t] = h

    # ---------------- Multi-head self-attention (last query row only, all heads fused) ------
    qkv = (dot32(seq2_ref[...].reshape(S * Bt, H), ain_w_ref[...])
           + ain_b_ref[...]).reshape(S, Bt, 3 * H)                        # f32
    dh = H // NH
    q_last = qkv[S - 1, :, 0:H]                                           # (Bt, H)
    k_all = qkv[:, :, H:2 * H]                                            # (S, Bt, H)
    v_all = qkv[:, :, 2 * H:3 * H]                                        # (S, Bt, H)
    pool = pool_ref[...]                                                  # (H, NH) 0/1

    # Per-head scores for the last query: elementwise q*k, then one pooling matmul reduces the
    # dh lanes of every head at once (no per-head loop, no tiny dh=4 matmuls).
    prod = (q_last[None, :, :] * k_all).reshape(S * Bt, H)
    scores = (jnp.dot(prod, pool, preferred_element_type=f32)
              * (1.0 / math.sqrt(dh))).reshape(S, Bt, NH)
    scores = scores - jnp.max(scores, axis=0, keepdims=True)
    p = jnp.exp(scores)
    p = p / jnp.sum(p, axis=0, keepdims=True)                             # softmax over S

    # Broadcast per-head weights back to per-lane (p @ pool^T) and weight V; no concatenation.
    p_lanes = lax.dot_general(p.reshape(S * Bt, NH), pool,
                              (((1,), (1,)), ((), ())),
                              preferred_element_type=f32).reshape(S, Bt, H)
    ctx = jnp.sum(p_lanes * v_all, axis=0)                                # (Bt, H)
    final_hidden = dot32(ctx, aout_w_ref[...]) + aout_b_ref[...]          # (Bt, H)

    # ---------------- Output heads (first linears fused into one (H, 2H) matmul) -------------
    def layer_norm(v, g_, b_):
        mu = jnp.mean(v, axis=-1, keepdims=True)
        vc = v - mu
        var = jnp.mean(vc * vc, axis=-1, keepdims=True)
        return vc * lax.rsqrt(var + 1e-5) * g_ + b_

    both = dot32(final_hidden, hw1_ref[...]) + hb1_ref[...]               # (Bt, 2H)

    qt = jnp.maximum(layer_norm(both[:, 0:H], qln_g_ref[...], qln_b_ref[...]), 0.0)
    qt = jnp.maximum(dot32(qt, qw2_ref[...]) + qb2_ref[...], 0.0)         # (Bt, H//2)
    q_out_ref[...] = (dot32(qt, qw3_ref[...]) + qb3_ref[...]).astype(q_out_ref.dtype)

    pt = jnp.maximum(layer_norm(both[:, H:2 * H], pln_g_ref[...], pln_b_ref[...]), 0.0)
    p_out_ref[...] = (dot32(pt, pw2_ref[...]) + pb2_ref[...]).astype(p_out_ref.dtype)


# ----------------------------------------------------------------------------
# Wrapper: BN folding, weight fusion/padding, batch tiling, single pallas_call
# ----------------------------------------------------------------------------
def dqn_forward(x, params, num_heads=8, batch_tile=8, matmul_dtype=jnp.bfloat16):
    """x: [B, S, input_dim] -> (q_values [B, num_actions], next_state_pred [B, input_dim])."""
    B, S, D = x.shape
    H = params["lstm"][0]["w_hh"].shape[0]
    Hc = H // 2
    A = params["q_head"]["w3"].shape[1]
    assert len(params["lstm"]) == 2, "fused kernel is specialized for num_layers=2"
    assert H % num_heads == 0
    f32 = jnp.float32
    md = matmul_dtype

    # --- batch tiling: each grid step processes Bt rows; pad B up to a multiple of Bt. ---
    # For large batches choose batch_tile so the grid has >=2 steps (keeps v7x's 2nd TC busy).
    Bt = max(1, int(batch_tile))
    Bpad = ((B + Bt - 1) // Bt) * Bt
    if Bpad != B:
        x = jnp.concatenate([x, jnp.zeros((Bpad - B, S, D), x.dtype)], axis=0)
    grid = (Bpad // Bt,)

    # Fold eval-mode BatchNorm1d (running stats) into conv weights/bias; flatten (k, Cin, Cout)
    # -> (k*Cin, Cout) so each conv is a single matmul against the im2col scratch.
    def fold_bn(w, b, bn):
        gamma, beta, mean, var = bn
        s = gamma / jnp.sqrt(var + 1e-5)
        w2 = (w * s[None, None, :]).reshape(w.shape[0] * w.shape[1], w.shape[2])
        return w2.astype(md), ((b - mean) * s + beta).astype(f32)

    c1w, c1b = fold_bn(params["conv1_w"], params["conv1_b"], params["bn1"])
    c2w, c2b = fold_bn(params["conv2_w"], params["conv2_b"], params["bn2"])

    a = params["attn"]
    qh = params["q_head"]
    ph = params["pred_head"]
    l1, l2 = params["lstm"]

    # Fuse the two heads' first linears (shared input) into one matmul.
    hw1 = jnp.concatenate([qh["w1"], ph["w1"]], axis=1).astype(md)        # (H, 2H)
    hb1 = jnp.concatenate([qh["b1"], ph["b1"]], axis=0)                   # (2H,)

    # Pad the final linear weights to 128 output lanes -> unmasked lane-dense output stores.
    lane = 128
    Apad = ((A + lane - 1) // lane) * lane
    Dpad = ((D + lane - 1) // lane) * lane
    qw3 = jnp.zeros((H // 2, Apad), md).at[:, :A].set(qh["w3"].astype(md))
    qb3 = jnp.zeros((Apad,), f32).at[:A].set(qh["b3"].astype(f32))
    pw2 = jnp.zeros((H, Dpad), md).at[:, :D].set(ph["w2"].astype(md))
    pb2 = jnp.zeros((Dpad,), f32).at[:D].set(ph["b2"].astype(f32))

    # 0/1 head-pooling matrix: fuses the per-head score reduction / per-head broadcast.
    pool = jnp.repeat(jnp.eye(num_heads, dtype=f32), H // num_heads, axis=0)   # (H, NH)

    row = lambda v: v.reshape(1, -1).astype(f32)
    wcast = lambda v: v.astype(md)

    inputs = [
        x,
        c1w, row(c1b),
        c2w, row(c2b),
        wcast(l1["w_ih"]), wcast(l1["w_hh"]), row(l1["b"]),
        wcast(l2["w_ih"]), wcast(l2["w_hh"]), row(l2["b"]),
        wcast(a["in_w"]), row(a["in_b"]),
        wcast(a["out_w"]), row(a["out_b"]),
        pool,
        hw1, row(hb1),
        row(qh["ln_g"]), row(qh["ln_b"]),
        wcast(qh["w2"]), row(qh["b2"]),
        qw3, row(qb3),
        row(ph["ln_g"]), row(ph["ln_b"]),
        pw2, row(pb2),
    ]

    # Full-array weight blocks with constant index_map -> loaded once, VMEM-resident across the
    # grid.  bf16 storage halves resident-weight VMEM (v7x has only 64 MiB; at production H
    # also cap weight buffering / set vmem_limit_bytes headroom accordingly).
    def resident(arr):
        return pl.BlockSpec(arr.shape, lambda b: (0,) * arr.ndim)

    in_specs = [pl.BlockSpec((Bt, S, D), lambda b: (b, 0, 0))] + [resident(v) for v in inputs[1:]]

    out_shape = (jax.ShapeDtypeStruct((Bpad, Apad), f32),
                 jax.ShapeDtypeStruct((Bpad, Dpad), f32))
    out_specs = [pl.BlockSpec((Bt, Apad), lambda b: (b, 0)),
                 pl.BlockSpec((Bt, Dpad), lambda b: (b, 0))]

    kernel = functools.partial(_dqn_fused_kernel, S=S, D=D, Hc=Hc, H=H,
                               NH=num_heads, Bt=Bt)

    q_pad, p_pad = pl.pallas_call(
        kernel,
        out_shape=out_shape,
        grid=grid,
        in_specs=in_specs,
        out_specs=out_specs,
        scratch_shapes=[
            pltpu.VMEM((Bt, S, 3 * D), f32),     # conv1 im2col
            pltpu.VMEM((Bt, S, 5 * Hc), f32),    # conv2 im2col
            pltpu.VMEM((S, Bt, H), f32),         # LSTM layer-1 hidden sequence (time-major)
            pltpu.VMEM((S, Bt, H), f32),         # LSTM layer-2 hidden sequence (time-major)
        ],
        compiler_params=pltpu.CompilerParams(
            dimension_semantics=("parallel",),
            vmem_limit_bytes=32 * 1024 * 1024,
        ),
    )(*inputs)

    # Slice away batch padding and lane padding.
    return q_pad[:B, :A], p_pad[:B, :D]


# ----------------------------------------------------------------------------
# Deterministic parameter construction (shapes match the PyTorch module)
# ----------------------------------------------------------------------------
def init_params(key, input_dim, hidden_dim, num_layers, num_actions):
    H = hidden_dim
    keys = iter(jax.random.split(key, 32))

    def w(shape, scale=0.1):
        return (scale * jax.random.normal(next(keys), shape)).astype(jnp.float32)

    def zeros(n):
        return jnp.zeros((n,), jnp.float32)

    def bn(c):  # (gamma, beta, running_mean, running_var) — PyTorch eval-mode defaults
        return (jnp.ones((c,), jnp.float32), zeros(c), zeros(c), jnp.ones((c,), jnp.float32))

    params = {
        # conv weights stored as (k, Cin, Cout) == torch_weight.permute(2, 1, 0)
        "conv1_w": w((3, input_dim, H // 2)),
        "conv1_b": zeros(H // 2),
        "bn1": bn(H // 2),
        "conv2_w": w((5, H // 2, H)),
        "conv2_b": zeros(H),
        "bn2": bn(H),
        "lstm": [],
        "attn": {
            "in_w": w((H, 3 * H)), "in_b": zeros(3 * H),     # in_proj_weight.T
            "out_w": w((H, H)), "out_b": zeros(H),           # out_proj.weight.T
        },
        "q_head": {
            "w1": w((H, H)), "b1": zeros(H),
            "ln_g": jnp.ones((H,), jnp.float32), "ln_b": zeros(H),
            "w2": w((H, H // 2)), "b2": zeros(H // 2),
            "w3": w((H // 2, num_actions)), "b3": zeros(num_actions),
        },
        "pred_head": {
            "w1": w((H, H)), "b1": zeros(H),
            "ln_g": jnp.ones((H,), jnp.float32), "ln_b": zeros(H),
            "w2": w((H, input_dim)), "b2": zeros(input_dim),
        },
    }
    in_dim = H
    for _ in range(num_layers):
        params["lstm"].append({
            "w_ih": w((in_dim, 4 * H)),   # torch weight_ih_l{k}.T
            "w_hh": w((H, 4 * H)),        # torch weight_hh_l{k}.T
            "b": zeros(4 * H),            # b_ih + b_hh combined
        })
        in_dim = H
    return params


if __name__ == "__main__":
    # small, consistent shapes: batch=2, seq=8, input_dim=6, hidden=32, 2 LSTM layers,
    # 10 actions, 8 attention heads (32 % 8 == 0)
    B, S, D = 2, 8, 6
    H, L, A, NH = 32, 2, 10, 8

    key = jax.random.PRNGKey(0)
    kx, kp = jax.random.split(key)
    x = jax.random.normal(kx, (B, S, D), jnp.float32)
    params = init_params(kp, input_dim=D, hidden_dim=H, num_layers=L, num_actions=A)

    fwd = jax.jit(functools.partial(dqn_forward, num_heads=NH))
    q_values, next_state_pred = fwd(x, params)
    jax.block_until_ready((q_values, next_state_pred))

    assert q_values.shape == (B, A), q_values.shape
    assert next_state_pred.shape == (B, D), next_state_pred.shape
    assert bool(jnp.all(jnp.isfinite(q_values))) and bool(jnp.all(jnp.isfinite(next_state_pred)))
    print("KERNEL_OK")
</pallas_src>

<mosaic_0001>
module attributes {stable_mosaic.version = 11 : i64} {
  func.func @_dqn_fused_kernel(%arg0: i32, %arg1: memref<8x8x6xf32, #tpu.memory_space<vmem>>, %arg2: memref<18x16xbf16, #tpu.memory_space<vmem>>, %arg3: memref<1x16xf32, #tpu.memory_space<vmem>>, %arg4: memref<80x32xbf16, #tpu.memory_space<vmem>>, %arg5: memref<1x32xf32, #tpu.memory_space<vmem>>, %arg6: memref<32x128xbf16, #tpu.memory_space<vmem>>, %arg7: memref<32x128xbf16, #tpu.memory_space<vmem>>, %arg8: memref<1x128xf32, #tpu.memory_space<vmem>>, %arg9: memref<32x128xbf16, #tpu.memory_space<vmem>>, %arg10: memref<32x128xbf16, #tpu.memory_space<vmem>>, %arg11: memref<1x128xf32, #tpu.memory_space<vmem>>, %arg12: memref<32x96xbf16, #tpu.memory_space<vmem>>, %arg13: memref<1x96xf32, #tpu.memory_space<vmem>>, %arg14: memref<32x32xbf16, #tpu.memory_space<vmem>>, %arg15: memref<1x32xf32, #tpu.memory_space<vmem>>, %arg16: memref<32x8xf32, #tpu.memory_space<vmem>>, %arg17: memref<32x64xbf16, #tpu.memory_space<vmem>>, %arg18: memref<1x64xf32, #tpu.memory_space<vmem>>, %arg19: memref<1x32xf32, #tpu.memory_space<vmem>>, %arg20: memref<1x32xf32, #tpu.memory_space<vmem>>, %arg21: memref<32x16xbf16, #tpu.memory_space<vmem>>, %arg22: memref<1x16xf32, #tpu.memory_space<vmem>>, %arg23: memref<16x128xbf16, #tpu.memory_space<vmem>>, %arg24: memref<1x128xf32, #tpu.memory_space<vmem>>, %arg25: memref<1x32xf32, #tpu.memory_space<vmem>>, %arg26: memref<1x32xf32, #tpu.memory_space<vmem>>, %arg27: memref<32x128xbf16, #tpu.memory_space<vmem>>, %arg28: memref<1x128xf32, #tpu.memory_space<vmem>>, %arg29: memref<8x128xf32, #tpu.memory_space<vmem>>, %arg30: memref<8x128xf32, #tpu.memory_space<vmem>>, %arg31: memref<8x8x18xf32, #tpu.memory_space<vmem>>, %arg32: memref<8x8x80xf32, #tpu.memory_space<vmem>>, %arg33: memref<8x8x32xf32, #tpu.memory_space<vmem>>, %arg34: memref<8x8x32xf32, #tpu.memory_space<vmem>>) attributes {dimension_semantics = [#tpu.dimension_semantics<parallel>], iteration_bounds = array<i64: 1>, scalar_prefetch = 0 : i64, scratch_operands = 4 : i64, tpu.core_type = #tpu.core_type<tc>, window_params = [{transform_indices = @transform_0, window_bounds = array<i64: 8, 8, 6>}, {pipeline_mode = #tpu.pipeline_mode<synchronous>, transform_indices = @transform_1, window_bounds = array<i64: 18, 16>}, {pipeline_mode = #tpu.pipeline_mode<synchronous>, transform_indices = @transform_2, window_bounds = array<i64: 1, 16>}, {pipeline_mode = #tpu.pipeline_mode<synchronous>, transform_indices = @transform_3, window_bounds = array<i64: 80, 32>}, {pipeline_mode = #tpu.pipeline_mode<synchronous>, transform_indices = @transform_4, window_bounds = array<i64: 1, 32>}, {pipeline_mode = #tpu.pipeline_mode<synchronous>, transform_indices = @transform_5, window_bounds = array<i64: 32, 128>}, {pipeline_mode = #tpu.pipeline_mode<synchronous>, transform_indices = @transform_6, window_bounds = array<i64: 32, 128>}, {pipeline_mode = #tpu.pipeline_mode<synchronous>, transform_indices = @transform_7, window_bounds = array<i64: 1, 128>}, {pipeline_mode = #tpu.pipeline_mode<synchronous>, transform_indices = @transform_8, window_bounds = array<i64: 32, 128>}, {pipeline_mode = #tpu.pipeline_mode<synchronous>, transform_indices = @transform_9, window_bounds = array<i64: 32, 128>}, {pipeline_mode = #tpu.pipeline_mode<synchronous>, transform_indices = @transform_10, window_bounds = array<i64: 1, 128>}, {pipeline_mode = #tpu.pipeline_mode<synchronous>, transform_indices = @transform_11, window_bounds = array<i64: 32, 96>}, {pipeline_mode = #tpu.pipeline_mode<synchronous>, transform_indices = @transform_12, window_bounds = array<i64: 1, 96>}, {pipeline_mode = #tpu.pipeline_mode<synchronous>, transform_indices = @transform_13, window_bounds = array<i64: 32, 32>}, {pipeline_mode = #tpu.pipeline_mode<synchronous>, transform_indices = @transform_14, window_bounds = array<i64: 1, 32>}, {pipeline_mode = #tpu.pipeline_mode<synchronous>, transform_indices = @transform_15, window_bounds = array<i64: 32, 8>}, {pipeline_mode = #tpu.pipeline_mode<synchronous>, transform_indices = @transform_16, window_bounds = array<i64: 32, 64>}, {pipeline_mode = #tpu.pipeline_mode<synchronous>, transform_indices = @transform_17, window_bounds = array<i64: 1, 64>}, {pipeline_mode = #tpu.pipeline_mode<synchronous>, transform_indices = @transform_18, window_bounds = array<i64: 1, 32>}, {pipeline_mode = #tpu.pipeline_mode<synchronous>, transform_indices = @transform_19, window_bounds = array<i64: 1, 32>}, {pipeline_mode = #tpu.pipeline_mode<synchronous>, transform_indices = @transform_20, window_bounds = array<i64: 32, 16>}, {pipeline_mode = #tpu.pipeline_mode<synchronous>, transform_indices = @transform_21, window_bounds = array<i64: 1, 16>}, {pipeline_mode = #tpu.pipeline_mode<synchronous>, transform_indices = @transform_22, window_bounds = array<i64: 16, 128>}, {pipeline_mode = #tpu.pipeline_mode<synchronous>, transform_indices = @transform_23, window_bounds = array<i64: 1, 128>}, {pipeline_mode = #tpu.pipeline_mode<synchronous>, transform_indices = @transform_24, window_bounds = array<i64: 1, 32>}, {pipeline_mode = #tpu.pipeline_mode<synchronous>, transform_indices = @transform_25, window_bounds = array<i64: 1, 32>}, {pipeline_mode = #tpu.pipeline_mode<synchronous>, transform_indices = @transform_26, window_bounds = array<i64: 32, 128>}, {pipeline_mode = #tpu.pipeline_mode<synchronous>, transform_indices = @transform_27, window_bounds = array<i64: 1, 128>}, {transform_indices = @transform_28, window_bounds = array<i64: 8, 128>}, {transform_indices = @transform_29, window_bounds = array<i64: 8, 128>}]} {
    %c0 = arith.constant 0 : index
    %c0_0 = arith.constant 0 : index
    %c0_1 = arith.constant 0 : index
    %0 = vector.load %arg1[%c0, %c0_0, %c0_1] : memref<8x8x6xf32, #tpu.memory_space<vmem>>, vector<8x8x6xf32>
    %cst = arith.constant 0.000000e+00 : f32
    %1 = vector.broadcast %cst : f32 to vector<8x1x6xf32>
    %c0_2 = arith.constant 0 : index
    %c0_3 = arith.constant 0 : index
    %c0_4 = arith.constant 0 : index
    %2 = vector.load %arg31[%c0_2, %c0_3, %c0_4] : memref<8x8x18xf32, #tpu.memory_space<vmem>>, vector<8x1x6xf32>
    tpu.vector_store %arg31[%c0_2, %c0_3, %c0_4], %1 {strides = array<i32>} : memref<8x8x18xf32, #tpu.memory_space<vmem>>, vector<8x1x6xf32>,
    %3 = vector.extract_strided_slice %0 {offsets = [0, 0, 0], sizes = [8, 7, 6], strides = [1, 1, 1]} : vector<8x8x6xf32> to vector<8x7x6xf32>
    %c0_5 = arith.constant 0 : index
    %c1 = arith.constant 1 : index
    %c0_6 = arith.constant 0 : index
    %4 = vector.load %arg31[%c0_5, %c1, %c0_6] : memref<8x8x18xf32, #tpu.memory_space<vmem>>, vector<8x7x6xf32>
    tpu.vector_store %arg31[%c0_5, %c1, %c0_6], %3 {strides = array<i32>} : memref<8x8x18xf32, #tpu.memory_space<vmem>>, vector<8x7x6xf32>,
    %c0_7 = arith.constant 0 : index
    %c0_8 = arith.constant 0 : index
    %c6 = arith.constant 6 : index
    %5 = vector.load %arg31[%c0_7, %c0_8, %c6] : memref<8x8x18xf32, #tpu.memory_space<vmem>>, vector<8x8x6xf32>
    tpu.vector_store %arg31[%c0_7, %c0_8, %c6], %0 {strides = array<i32>} : memref<8x8x18xf32, #tpu.memory_space<vmem>>, vector<8x8x6xf32>,
    %cst_9 = arith.constant 0.000000e+00 : f32
    %6 = vector.broadcast %cst_9 : f32 to vector<8x1x6xf32>
    %c0_10 = arith.constant 0 : index
    %c7 = arith.constant 7 : index
    %c12 = arith.constant 12 : index
    %7 = vector.load %arg31[%c0_10, %c7, %c12] : memref<8x8x18xf32, #tpu.memory_space<vmem>>, vector<8x1x6xf32>
    tpu.vector_store %arg31[%c0_10, %c7, %c12], %6 {strides = array<i32>} : memref<8x8x18xf32, #tpu.memory_space<vmem>>, vector<8x1x6xf32>,
    %8 = vector.extract_strided_slice %0 {offsets = [0, 1, 0], sizes = [8, 7, 6], strides = [1, 1, 1]} : vector<8x8x6xf32> to vector<8x7x6xf32>
    %c0_11 = arith.constant 0 : index
    %c0_12 = arith.constant 0 : index
    %c12_13 = arith.constant 12 : index
    %9 = vector.load %arg31[%c0_11, %c0_12, %c12_13] : memref<8x8x18xf32, #tpu.memory_space<vmem>>, vector<8x7x6xf32>
    tpu.vector_store %arg31[%c0_11, %c0_12, %c12_13], %8 {strides = array<i32>} : memref<8x8x18xf32, #tpu.memory_space<vmem>>, vector<8x7x6xf32>,
    %c0_14 = arith.constant 0 : index
    %c0_15 = arith.constant 0 : index
    %c0_16 = arith.constant 0 : index
    %10 = vector.load %arg31[%c0_14, %c0_15, %c0_16] : memref<8x8x18xf32, #tpu.memory_space<vmem>>, vector<8x8x18xf32>
    %11 = vector.shape_cast %10 : vector<8x8x18xf32> to vector<64x18xf32>
    %c0_17 = arith.constant 0 : index
    %c0_18 = arith.constant 0 : index
    %12 = vector.load %arg2[%c0_17, %c0_18] : memref<18x16xbf16, #tpu.memory_space<vmem>>, vector<18x16xbf16>
    %13 = arith.truncf %11 : vector<64x18xf32> to vector<64x18xbf16>
    %cst_19 = arith.constant dense<0.000000e+00> : vector<64x16xf32>
    %14 = tpu.matmul %13, %12, %cst_19 {dimension_numbers = #tpu.dot_dimension_numbers<[1], [0], [0], [1], [0, 0, 1, 1], [], []>} : vector<64x18xbf16>, vector<18x16xbf16>, vector<64x16xf32> -> vector<64x16xf32>
    %c0_20 = arith.constant 0 : index
    %c0_21 = arith.constant 0 : index
    %15 = vector.load %arg3[%c0_20, %c0_21] : memref<1x16xf32, #tpu.memory_space<vmem>>, vector<1x16xf32>
    %16 = vector.broadcast %15 : vector<1x16xf32> to vector<64x16xf32>
    %17 = arith.addf %14, %16 : vector<64x16xf32>
    %cst_22 = arith.constant 0.000000e+00 : f32
    %18 = vector.broadcast %cst_22 : f32 to vector<64x16xf32>
    %19 = arith.maximumf %17, %18 : vector<64x16xf32>
    %20 = vector.shape_cast %19 : vector<64x16xf32> to vector<8x8x16xf32>
    %cst_23 = arith.constant 0.000000e+00 : f32
    %21 = vector.broadcast %cst_23 : f32 to vector<8x2x16xf32>
    %c0_24 = arith.constant 0 : index
    %c0_25 = arith.constant 0 : index
    %c0_26 = arith.constant 0 : index
    %22 = vector.load %arg32[%c0_24, %c0_25, %c0_26] : memref<8x8x80xf32, #tpu.memory_space<vmem>>, vector<8x2x16xf32>
    tpu.vector_store %arg32[%c0_24, %c0_25, %c0_26], %21 {strides = array<i32>} : memref<8x8x80xf32, #tpu.memory_space<vmem>>, vector<8x2x16xf32>,
    %23 = vector.extract_strided_slice %20 {offsets = [0, 0, 0], sizes = [8, 6, 16], strides = [1, 1, 1]} : vector<8x8x16xf32> to vector<8x6x16xf32>
    %c0_27 = arith.constant 0 : index
    %c2 = arith.constant 2 : index
    %c0_28 = arith.constant 0 : index
    %24 = vector.load %arg32[%c0_27, %c2, %c0_28] : memref<8x8x80xf32, #tpu.memory_space<vmem>>, vector<8x6x16xf32>
    tpu.vector_store %arg32[%c0_27, %c2, %c0_28], %23 {strides = array<i32>} : memref<8x8x80xf32, #tpu.memory_space<vmem>>, vector<8x6x16xf32>,
    %cst_29 = arith.constant 0.000000e+00 : f32
    %25 = vector.broadcast %cst_29 : f32 to vector<8x1x16xf32>
    %c0_30 = arith.constant 0 : index
    %c0_31 = arith.constant 0 : index
    %c16 = arith.constant 16 : index
    %26 = vector.load %arg32[%c0_30, %c0_31, %c16] : memref<8x8x80xf32, #tpu.memory_space<vmem>>, vector<8x1x16xf32>
    tpu.vector_store %arg32[%c0_30, %c0_31, %c16], %25 {strides = array<i32>} : memref<8x8x80xf32, #tpu.memory_space<vmem>>, vector<8x1x16xf32>,
    %27 = vector.extract_strided_slice %20 {offsets = [0, 0, 0], sizes = [8, 7, 16], strides = [1, 1, 1]} : vector<8x8x16xf32> to vector<8x7x16xf32>
    %c0_32 = arith.constant 0 : index
    %c1_33 = arith.constant 1 : index
    %c16_34 = arith.constant 16 : index
    %28 = vector.load %arg32[%c0_32, %c1_33, %c16_34] : memref<8x8x80xf32, #tpu.memory_space<vmem>>, vector<8x7x16xf32>
    tpu.vector_store %arg32[%c0_32, %c1_33, %c16_34], %27 {strides = array<i32>} : memref<8x8x80xf32, #tpu.memory_space<vmem>>, vector<8x7x16xf32>,
    %c0_35 = arith.constant 0 : index
    %c0_36 = arith.constant 0 : index
    %c32 = arith.constant 32 : index
    %29 = vector.load %arg32[%c0_35, %c0_36, %c32] : memref<8x8x80xf32, #tpu.memory_space<vmem>>, vector<8x8x16xf32>
    tpu.vector_store %arg32[%c0_35, %c0_36, %c32], %20 {strides = array<i32>} : memref<8x8x80xf32, #tpu.memory_space<vmem>>, vector<8x8x16xf32>,
    %cst_37 = arith.constant 0.000000e+00 : f32
    %30 = vector.broadcast %cst_37 : f32 to vector<8x1x16xf32>
    %c0_38 = arith.constant 0 : index
    %c7_39 = arith.constant 7 : index
    %c48 = arith.constant 48 : index
    %31 = vector.load %arg32[%c0_38, %c7_39, %c48] : memref<8x8x80xf32, #tpu.memory_space<vmem>>, vector<8x1x16xf32>
    tpu.vector_store %arg32[%c0_38, %c7_39, %c48], %30 {strides = array<i32>} : memref<8x8x80xf32, #tpu.memory_space<vmem>>, vector<8x1x16xf32>,
    %32 = vector.extract_strided_slice %20 {offsets = [0, 1, 0], sizes = [8, 7, 16], strides = [1, 1, 1]} : vector<8x8x16xf32> to vector<8x7x16xf32>
    %c0_40 = arith.constant 0 : index
    %c0_41 = arith.constant 0 : index
    %c48_42 = arith.constant 48 : index
    %33 = vector.load %arg32[%c0_40, %c0_41, %c48_42] : memref<8x8x80xf32, #tpu.memory_space<vmem>>, vector<8x7x16xf32>
    tpu.vector_store %arg32[%c0_40, %c0_41, %c48_42], %32 {strides = array<i32>} : memref<8x8x80xf32, #tpu.memory_space<vmem>>, vector<8x7x16xf32>,
    %cst_43 = arith.constant 0.000000e+00 : f32
    %34 = vector.broadcast %cst_43 : f32 to vector<8x2x16xf32>
    %c0_44 = arith.constant 0 : index
    %c6_45 = arith.constant 6 : index
    %c64 = arith.constant 64 : index
    %35 = vector.load %arg32[%c0_44, %c6_45, %c64] : memref<8x8x80xf32, #tpu.memory_space<vmem>>, vector<8x2x16xf32>
    tpu.vector_store %arg32[%c0_44, %c6_45, %c64], %34 {strides = array<i32>} : memref<8x8x80xf32, #tpu.memory_space<vmem>>, vector<8x2x16xf32>,
    %36 = vector.extract_strided_slice %20 {offsets = [0, 2, 0], sizes = [8, 6, 16], strides = [1, 1, 1]} : vector<8x8x16xf32> to vector<8x6x16xf32>
    %c0_46 = arith.constant 0 : index
    %c0_47 = arith.constant 0 : index
    %c64_48 = arith.constant 64 : index
    %37 = vector.load %arg32[%c0_46, %c0_47, %c64_48] : memref<8x8x80xf32, #tpu.memory_space<vmem>>, vector<8x6x16xf32>
    tpu.vector_store %arg32[%c0_46, %c0_47, %c64_48], %36 {strides = array<i32>} : memref<8x8x80xf32, #tpu.memory_space<vmem>>, vector<8x6x16xf32>,
    %c0_49 = arith.constant 0 : index
    %c0_50 = arith.constant 0 : index
    %c0_51 = arith.constant 0 : index
    %38 = vector.load %arg32[%c0_49, %c0_50, %c0_51] : memref<8x8x80xf32, #tpu.memory_space<vmem>>, vector<8x8x80xf32>
    %39 = vector.shape_cast %38 : vector<8x8x80xf32> to vector<64x80xf32>
    %c0_52 = arith.constant 0 : index
    %c0_53 = arith.constant 0 : index
    %40 = vector.load %arg4[%c0_52, %c0_53] : memref<80x32xbf16, #tpu.memory_space<vmem>>, vector<80x32xbf16>
    %41 = arith.truncf %39 : vector<64x80xf32> to vector<64x80xbf16>
    %cst_54 = arith.constant dense<0.000000e+00> : vector<64x32xf32>
    %42 = tpu.matmul %41, %40, %cst_54 {dimension_numbers = #tpu.dot_dimension_numbers<[1], [0], [0], [1], [0, 0, 1, 1], [], []>} : vector<64x80xbf16>, vector<80x32xbf16>, vector<64x32xf32> -> vector<64x32xf32>
    %c0_55 = arith.constant 0 : index
    %c0_56 = arith.constant 0 : index
    %43 = vector.load %arg5[%c0_55, %c0_56] : memref<1x32xf32, #tpu.memory_space<vmem>>, vector<1x32xf32>
    %44 = vector.broadcast %43 : vector<1x32xf32> to vector<64x32xf32>
    %45 = arith.addf %42, %44 : vector<64x32xf32>
    %cst_57 = arith.constant 0.000000e+00 : f32
    %46 = vector.broadcast %cst_57 : f32 to vector<64x32xf32>
    %47 = arith.maximumf %45, %46 : vector<64x32xf32>
    %c0_58 = arith.constant 0 : index
    %c0_59 = arith.constant 0 : index
    %48 = vector.load %arg6[%c0_58, %c0_59] : memref<32x128xbf16, #tpu.memory_space<vmem>>, vector<32x128xbf16>
    %49 = arith.truncf %47 : vector<64x32xf32> to vector<64x32xbf16>
    %cst_60 = arith.constant dense<0.000000e+00> : vector<64x128xf32>
    %50 = tpu.matmul %49, %48, %cst_60 {dimension_numbers = #tpu.dot_dimension_numbers<[1], [0], [0], [1], [0, 0, 1, 1], [], []>} : vector<64x32xbf16>, vector<32x128xbf16>, vector<64x128xf32> -> vector<64x128xf32>
    %c0_61 = arith.constant 0 : index
    %c0_62 = arith.constant 0 : index
    %51 = vector.load %arg8[%c0_61, %c0_62] : memref<1x128xf32, #tpu.memory_space<vmem>>, vector<1x128xf32>
    %52 = vector.broadcast %51 : vector<1x128xf32> to vector<64x128xf32>
    %53 = arith.addf %50, %52 : vector<64x128xf32>
    %54 = vector.shape_cast %53 : vector<64x128xf32> to vector<8x8x128xf32>
    %cst_63 = arith.constant 0.000000e+00 : f32
    %55 = vector.broadcast %cst_63 : f32 to vector<8x32xf32>
    %cst_64 = arith.constant 0.000000e+00 : f32
    %56 = vector.broadcast %cst_64 : f32 to vector<8x32xf32>
    %57 = vector.extract_strided_slice %54 {offsets = [0, 0, 0], sizes = [8, 1, 128], strides = [1, 1, 1]} : vector<8x8x128xf32> to vector<8x1x128xf32>
    %58 = vector.shape_cast %57 : vector<8x1x128xf32> to vector<8x128xf32>
    %c0_65 = arith.constant 0 : index
    %c0_66 = arith.constant 0 : index
    %59 = vector.load %arg7[%c0_65, %c0_66] : memref<32x128xbf16, #tpu.memory_space<vmem>>, vector<32x128xbf16>
    %60 = arith.truncf %55 : vector<8x32xf32> to vector<8x32xbf16>
    %cst_67 = arith.constant dense<0.000000e+00> : vector<8x128xf32>
    %61 = tpu.matmul %60, %59, %cst_67 {dimension_numbers = #tpu.dot_dimension_numbers<[1], [0], [0], [1], [0, 0, 1, 1], [], []>} : vector<8x32xbf16>, vector<32x128xbf16>, vector<8x128xf32> -> vector<8x128xf32>
    %62 = arith.addf %58, %61 : vector<8x128xf32>
    %63 = vector.extract_strided_slice %62 {offsets = [0, 0], sizes = [8, 32], strides = [1, 1]} : vector<8x128xf32> to vector<8x32xf32>
    %64 = arith.negf %63 : vector<8x32xf32>
    %65 = math.exp %64 : vector<8x32xf32>
    %cst_68 = arith.constant 1.000000e+00 : f32
    %66 = vector.broadcast %cst_68 : f32 to vector<8x32xf32>
    %67 = arith.addf %66, %65 : vector<8x32xf32>
    %68 = arith.divf %66, %67 : vector<8x32xf32>
    %69 = vector.extract_strided_slice %62 {offsets = [0, 32], sizes = [8, 32], strides = [1, 1]} : vector<8x128xf32> to vector<8x32xf32>
    %70 = arith.negf %69 : vector<8x32xf32>
    %71 = math.exp %70 : vector<8x32xf32>
    %cst_69 = arith.constant 1.000000e+00 : f32
    %72 = vector.broadcast %cst_69 : f32 to vector<8x32xf32>
    %73 = arith.addf %72, %71 : vector<8x32xf32>
    %74 = arith.divf %72, %73 : vector<8x32xf32>
    %75 = vector.extract_strided_slice %62 {offsets = [0, 64], sizes = [8, 32], strides = [1, 1]} : vector<8x128xf32> to vector<8x32xf32>
    %76 = math.tanh %75 : vector<8x32xf32>
    %77 = vector.extract_strided_slice %62 {offsets = [0, 96], sizes = [8, 32], strides = [1, 1]} : vector<8x128xf32> to vector<8x32xf32>
    %78 = arith.negf %77 : vector<8x32xf32>
    %79 = math.exp %78 : vector<8x32xf32>
    %cst_70 = arith.constant 1.000000e+00 : f32
    %80 = vector.broadcast %cst_70 : f32 to vector<8x32xf32>
    %81 = arith.addf %80, %79 : vector<8x32xf32>
    %82 = arith.divf %80, %81 : vector<8x32xf32>
    %83 = arith.mulf %74, %56 : vector<8x32xf32>
    %84 = arith.mulf %68, %76 : vector<8x32xf32>
    %85 = arith.addf %83, %84 : vector<8x32xf32>
    %86 = math.tanh %85 : vector<8x32xf32>
    %87 = arith.mulf %82, %86 : vector<8x32xf32>
    %c0_71 = arith.constant 0 : index
    %c0_72 = arith.constant 0 : index
    %c0_73 = arith.constant 0 : index
    %88 = vector.load %arg33[%c0_71, %c0_72, %c0_73] : memref<8x8x32xf32, #tpu.memory_space<vmem>>, vector<1x8x32xf32>
    %89 = vector.shape_cast %88 : vector<1x8x32xf32> to vector<8x32xf32>
    %90 = vector.shape_cast %87 : vector<8x32xf32> to vector<1x8x32xf32>
    tpu.vector_store %arg33[%c0_71, %c0_72, %c0_73], %90 {strides = array<i32>} : memref<8x8x32xf32, #tpu.memory_space<vmem>>, vector<1x8x32xf32>,
    %91 = vector.extract_strided_slice %54 {offsets = [0, 1, 0], sizes = [8, 1, 128], strides = [1, 1, 1]} : vector<8x8x128xf32> to vector<8x1x128xf32>
    %92 = vector.shape_cast %91 : vector<8x1x128xf32> to vector<8x128xf32>
    %c0_74 = arith.constant 0 : index
    %c0_75 = arith.constant 0 : index
    %93 = vector.load %arg7[%c0_74, %c0_75] : memref<32x128xbf16, #tpu.memory_space<vmem>>, vector<32x128xbf16>
    %94 = arith.truncf %87 : vector<8x32xf32> to vector<8x32xbf16>
    %cst_76 = arith.constant dense<0.000000e+00> : vector<8x128xf32>
    %95 = tpu.matmul %94, %93, %cst_76 {dimension_numbers = #tpu.dot_dimension_numbers<[1], [0], [0], [1], [0, 0, 1, 1], [], []>} : vector<8x32xbf16>, vector<32x128xbf16>, vector<8x128xf32> -> vector<8x128xf32>
    %96 = arith.addf %92, %95 : vector<8x128xf32>
    %97 = vector.extract_strided_slice %96 {offsets = [0, 0], sizes = [8, 32], strides = [1, 1]} : vector<8x128xf32> to vector<8x32xf32>
    %98 = arith.negf %97 : vector<8x32xf32>
    %99 = math.exp %98 : vector<8x32xf32>
    %cst_77 = arith.constant 1.000000e+00 : f32
    %100 = vector.broadcast %cst_77 : f32 to vector<8x32xf32>
    %101 = arith.addf %100, %99 : vector<8x32xf32>
    %102 = arith.divf %100, %101 : vector<8x32xf32>
    %103 = vector.extract_strided_slice %96 {offsets = [0, 32], sizes = [8, 32], strides = [1, 1]} : vector<8x128xf32> to vector<8x32xf32>
    %104 = arith.negf %103 : vector<8x32xf32>
    %105 = math.exp %104 : vector<8x32xf32>
    %cst_78 = arith.constant 1.000000e+00 : f32
    %106 = vector.broadcast %cst_78 : f32 to vector<8x32xf32>
    %107 = arith.addf %106, %105 : vector<8x32xf32>
    %108 = arith.divf %106, %107 : vector<8x32xf32>
    %109 = vector.extract_strided_slice %96 {offsets = [0, 64], sizes = [8, 32], strides = [1, 1]} : vector<8x128xf32> to vector<8x32xf32>
    %110 = math.tanh %109 : vector<8x32xf32>
    %111 = vector.extract_strided_slice %96 {offsets = [0, 96], sizes = [8, 32], strides = [1, 1]} : vector<8x128xf32> to vector<8x32xf32>
    %112 = arith.negf %111 : vector<8x32xf32>
    %113 = math.exp %112 : vector<8x32xf32>
    %cst_79 = arith.constant 1.000000e+00 : f32
    %114 = vector.broadcast %cst_79 : f32 to vector<8x32xf32>
    %115 = arith.addf %114, %113 : vector<8x32xf32>
    %116 = arith.divf %114, %115 : vector<8x32xf32>
    %117 = arith.mulf %108, %85 : vector<8x32xf32>
    %118 = arith.mulf %102, %110 : vector<8x32xf32>
    %119 = arith.addf %117, %118 : vector<8x32xf32>
    %120 = math.tanh %119 : vector<8x32xf32>
    %121 = arith.mulf %116, %120 : vector<8x32xf32>
    %c1_80 = arith.constant 1 : index
    %c0_81 = arith.constant 0 : index
    %c0_82 = arith.constant 0 : index
    %122 = vector.load %arg33[%c1_80, %c0_81, %c0_82] : memref<8x8x32xf32, #tpu.memory_space<vmem>>, vector<1x8x32xf32>
    %123 = vector.shape_cast %122 : vector<1x8x32xf32> to vector<8x32xf32>
    %124 = vector.shape_cast %121 : vector<8x32xf32> to vector<1x8x32xf32>
    tpu.vector_store %arg33[%c1_80, %c0_81, %c0_82], %124 {strides = array<i32>} : memref<8x8x32xf32, #tpu.memory_space<vmem>>, vector<1x8x32xf32>,
    %125 = vector.extract_strided_slice %54 {offsets = [0, 2, 0], sizes = [8, 1, 128], strides = [1, 1, 1]} : vector<8x8x128xf32> to vector<8x1x128xf32>
    %126 = vector.shape_cast %125 : vector<8x1x128xf32> to vector<8x128xf32>
    %c0_83 = arith.constant 0 : index
    %c0_84 = arith.constant 0 : index
    %127 = vector.load %arg7[%c0_83, %c0_84] : memref<32x128xbf16, #tpu.memory_space<vmem>>, vector<32x128xbf16>
    %128 = arith.truncf %121 : vector<8x32xf32> to vector<8x32xbf16>
    %cst_85 = arith.constant dense<0.000000e+00> : vector<8x128xf32>
    %129 = tpu.matmul %128, %127, %cst_85 {dimension_numbers = #tpu.dot_dimension_numbers<[1], [0], [0], [1], [0, 0, 1, 1], [], []>} : vector<8x32xbf16>, vector<32x128xbf16>, vector<8x128xf32> -> vector<8x128xf32>
    %130 = arith.addf %126, %129 : vector<8x128xf32>
    %131 = vector.extract_strided_slice %130 {offsets = [0, 0], sizes = [8, 32], strides = [1, 1]} : vector<8x128xf32> to vector<8x32xf32>
    %132 = arith.negf %131 : vector<8x32xf32>
    %133 = math.exp %132 : vector<8x32xf32>
    %cst_86 = arith.constant 1.000000e+00 : f32
    %134 = vector.broadcast %cst_86 : f32 to vector<8x32xf32>
    %135 = arith.addf %134, %133 : vector<8x32xf32>
    %136 = arith.divf %134, %135 : vector<8x32xf32>
    %137 = vector.extract_strided_slice %130 {offsets = [0, 32], sizes = [8, 32], strides = [1, 1]} : vector<8x128xf32> to vector<8x32xf32>
    %138 = arith.negf %137 : vector<8x32xf32>
    %139 = math.exp %138 : vector<8x32xf32>
    %cst_87 = arith.constant 1.000000e+00 : f32
    %140 = vector.broadcast %cst_87 : f32 to vector<8x32xf32>
    %141 = arith.addf %140, %139 : vector<8x32xf32>
    %142 = arith.divf %140, %141 : vector<8x32xf32>
    %143 = vector.extract_strided_slice %130 {offsets = [0, 64], sizes = [8, 32], strides = [1, 1]} : vector<8x128xf32> to vector<8x32xf32>
    %144 = math.tanh %143 : vector<8x32xf32>
    %145 = vector.extract_strided_slice %130 {offsets = [0, 96], sizes = [8, 32], strides = [1, 1]} : vector<8x128xf32> to vector<8x32xf32>
    %146 = arith.negf %145 : vector<8x32xf32>
    %147 = math.exp %146 : vector<8x32xf32>
    %cst_88 = arith.constant 1.000000e+00 : f32
    %148 = vector.broadcast %cst_88 : f32 to vector<8x32xf32>
    %149 = arith.addf %148, %147 : vector<8x32xf32>
    %150 = arith.divf %148, %149 : vector<8x32xf32>
    %151 = arith.mulf %142, %119 : vector<8x32xf32>
    %152 = arith.mulf %136, %144 : vector<8x32xf32>
    %153 = arith.addf %151, %152 : vector<8x32xf32>
    %154 = math.tanh %153 : vector<8x32xf32>
    %155 = arith.mulf %150, %154 : vector<8x32xf32>
    %c2_89 = arith.constant 2 : index
    %c0_90 = arith.constant 0 : index
    %c0_91 = arith.constant 0 : index
    %156 = vector.load %arg33[%c2_89, %c0_90, %c0_91] : memref<8x8x32xf32, #tpu.memory_space<vmem>>, vector<1x8x32xf32>
    %157 = vector.shape_cast %156 : vector<1x8x32xf32> to vector<8x32xf32>
    %158 = vector.shape_cast %155 : vector<8x32xf32> to vector<1x8x32xf32>
    tpu.vector_store %arg33[%c2_89, %c0_90, %c0_91], %158 {strides = array<i32>} : memref<8x8x32xf32, #tpu.memory_space<vmem>>, vector<1x8x32xf32>,
    %159 = vector.extract_strided_slice %54 {offsets = [0, 3, 0], sizes = [8, 1, 128], strides = [1, 1, 1]} : vector<8x8x128xf32> to vector<8x1x128xf32>
    %160 = vector.shape_cast %159 : vector<8x1x128xf32> to vector<8x128xf32>
    %c0_92 = arith.constant 0 : index
    %c0_93 = arith.constant 0 : index
    %161 = vector.load %arg7[%c0_92, %c0_93] : memref<32x128xbf16, #tpu.memory_space<vmem>>, vector<32x128xbf16>
    %162 = arith.truncf %155 : vector<8x32xf32> to vector<8x32xbf16>
    %cst_94 = arith.constant dense<0.000000e+00> : vector<8x128xf32>
    %163 = tpu.matmul %162, %161, %cst_94 {dimension_numbers = #tpu.dot_dimension_numbers<[1], [0], [0], [1], [0, 0, 1, 1], [], []>} : vector<8x32xbf16>, vector<32x128xbf16>, vector<8x128xf32> -> vector<8x128xf32>
    %164 = arith.addf %160, %163 : vector<8x128xf32>
    %165 = vector.extract_strided_slice %164 {offsets = [0, 0], sizes = [8, 32], strides = [1, 1]} : vector<8x128xf32> to vector<8x32xf32>
    %166 = arith.negf %165 : vector<8x32xf32>
    %167 = math.exp %166 : vector<8x32xf32>
    %cst_95 = arith.constant 1.000000e+00 : f32
    %168 = vector.broadcast %cst_95 : f32 to vector<8x32xf32>
    %169 = arith.addf %168, %167 : vector<8x32xf32>
    %170 = arith.divf %168, %169 : vector<8x32xf32>
    %171 = vector.extract_strided_slice %164 {offsets = [0, 32], sizes = [8, 32], strides = [1, 1]} : vector<8x128xf32> to vector<8x32xf32>
    %172 = arith.negf %171 : vector<8x32xf32>
    %173 = math.exp %172 : vector<8x32xf32>
    %cst_96 = arith.constant 1.000000e+00 : f32
    %174 = vector.broadcast %cst_96 : f32 to vector<8x32xf32>
    %175 = arith.addf %174, %173 : vector<8x32xf32>
    %176 = arith.divf %174, %175 : vector<8x32xf32>
    %177 = vector.extract_strided_slice %164 {offsets = [0, 64], sizes = [8, 32], strides = [1, 1]} : vector<8x128xf32> to vector<8x32xf32>
    %178 = math.tanh %177 : vector<8x32xf32>
    %179 = vector.extract_strided_slice %164 {offsets = [0, 96], sizes = [8, 32], strides = [1, 1]} : vector<8x128xf32> to vector<8x32xf32>
    %180 = arith.negf %179 : vector<8x32xf32>
    %181 = math.exp %180 : vector<8x32xf32>
    %cst_97 = arith.constant 1.000000e+00 : f32
    %182 = vector.broadcast %cst_97 : f32 to vector<8x32xf32>
    %183 = arith.addf %182, %181 : vector<8x32xf32>
    %184 = arith.divf %182, %183 : vector<8x32xf32>
    %185 = arith.mulf %176, %153 : vector<8x32xf32>
    %186 = arith.mulf %170, %178 : vector<8x32xf32>
    %187 = arith.addf %185, %186 : vector<8x32xf32>
    %188 = math.tanh %187 : vector<8x32xf32>
    %189 = arith.mulf %184, %188 : vector<8x32xf32>
    %c3 = arith.constant 3 : index
    %c0_98 = arith.constant 0 : index
    %c0_99 = arith.constant 0 : index
    %190 = vector.load %arg33[%c3, %c0_98, %c0_99] : memref<8x8x32xf32, #tpu.memory_space<vmem>>, vector<1x8x32xf32>
    %191 = vector.shape_cast %190 : vector<1x8x32xf32> to vector<8x32xf32>
    %192 = vector.shape_cast %189 : vector<8x32xf32> to vector<1x8x32xf32>
    tpu.vector_store %arg33[%c3, %c0_98, %c0_99], %192 {strides = array<i32>} : memref<8x8x32xf32, #tpu.memory_space<vmem>>, vector<1x8x32xf32>,
    %193 = vector.extract_strided_slice %54 {offsets = [0, 4, 0], sizes = [8, 1, 128], strides = [1, 1, 1]} : vector<8x8x128xf32> to vector<8x1x128xf32>
    %194 = vector.shape_cast %193 : vector<8x1x128xf32> to vector<8x128xf32>
    %c0_100 = arith.constant 0 : index
    %c0_101 = arith.constant 0 : index
    %195 = vector.load %arg7[%c0_100, %c0_101] : memref<32x128xbf16, #tpu.memory_space<vmem>>, vector<32x128xbf16>
    %196 = arith.truncf %189 : vector<8x32xf32> to vector<8x32xbf16>
    %cst_102 = arith.constant dense<0.000000e+00> : vector<8x128xf32>
    %197 = tpu.matmul %196, %195, %cst_102 {dimension_numbers = #tpu.dot_dimension_numbers<[1], [0], [0], [1], [0, 0, 1, 1], [], []>} : vector<8x32xbf16>, vector<32x128xbf16>, vector<8x128xf32> -> vector<8x128xf32>
    %198 = arith.addf %194, %197 : vector<8x128xf32>
    %199 = vector.extract_strided_slice %198 {offsets = [0, 0], sizes = [8, 32], strides = [1, 1]} : vector<8x128xf32> to vector<8x32xf32>
    %200 = arith.negf %199 : vector<8x32xf32>
    %201 = math.exp %200 : vector<8x32xf32>
    %cst_103 = arith.constant 1.000000e+00 : f32
    %202 = vector.broadcast %cst_103 : f32 to vector<8x32xf32>
    %203 = arith.addf %202, %201 : vector<8x32xf32>
    %204 = arith.divf %202, %203 : vector<8x32xf32>
    %205 = vector.extract_strided_slice %198 {offsets = [0, 32], sizes = [8, 32], strides = [1, 1]} : vector<8x128xf32> to vector<8x32xf32>
    %206 = arith.negf %205 : vector<8x32xf32>
    %207 = math.exp %206 : vector<8x32xf32>
    %cst_104 = arith.constant 1.000000e+00 : f32
    %208 = vector.broadcast %cst_104 : f32 to vector<8x32xf32>
    %209 = arith.addf %208, %207 : vector<8x32xf32>
    %210 = arith.divf %208, %209 : vector<8x32xf32>
    %211 = vector.extract_strided_slice %198 {offsets = [0, 64], sizes = [8, 32], strides = [1, 1]} : vector<8x128xf32> to vector<8x32xf32>
    %212 = math.tanh %211 : vector<8x32xf32>
    %213 = vector.extract_strided_slice %198 {offsets = [0, 96], sizes = [8, 32], strides = [1, 1]} : vector<8x128xf32> to vector<8x32xf32>
    %214 = arith.negf %213 : vector<8x32xf32>
    %215 = math.exp %214 : vector<8x32xf32>
    %cst_105 = arith.constant 1.000000e+00 : f32
    %216 = vector.broadcast %cst_105 : f32 to vector<8x32xf32>
    %217 = arith.addf %216, %215 : vector<8x32xf32>
    %218 = arith.divf %216, %217 : vector<8x32xf32>
    %219 = arith.mulf %210, %187 : vector<8x32xf32>
    %220 = arith.mulf %204, %212 : vector<8x32xf32>
    %221 = arith.addf %219, %220 : vector<8x32xf32>
    %222 = math.tanh %221 : vector<8x32xf32>
    %223 = arith.mulf %218, %222 : vector<8x32xf32>
    %c4 = arith.constant 4 : index
    %c0_106 = arith.constant 0 : index
    %c0_107 = arith.constant 0 : index
    %224 = vector.load %arg33[%c4, %c0_106, %c0_107] : memref<8x8x32xf32, #tpu.memory_space<vmem>>, vector<1x8x32xf32>
    %225 = vector.shape_cast %224 : vector<1x8x32xf32> to vector<8x32xf32>
    %226 = vector.shape_cast %223 : vector<8x32xf32> to vector<1x8x32xf32>
    tpu.vector_store %arg33[%c4, %c0_106, %c0_107], %226 {strides = array<i32>} : memref<8x8x32xf32, #tpu.memory_space<vmem>>, vector<1x8x32xf32>,
    %227 = vector.extract_strided_slice %54 {offsets = [0, 5, 0], sizes = [8, 1, 128], strides = [1, 1, 1]} : vector<8x8x128xf32> to vector<8x1x128xf32>
    %228 = vector.shape_cast %227 : vector<8x1x128xf32> to vector<8x128xf32>
    %c0_108 = arith.constant 0 : index
    %c0_109 = arith.constant 0 : index
    %229 = vector.load %arg7[%c0_108, %c0_109] : memref<32x128xbf16, #tpu.memory_space<vmem>>, vector<32x128xbf16>
    %230 = arith.truncf %223 : vector<8x32xf32> to vector<8x32xbf16>
    %cst_110 = arith.constant dense<0.000000e+00> : vector<8x128xf32>
    %231 = tpu.matmul %230, %229, %cst_110 {dimension_numbers = #tpu.dot_dimension_numbers<[1], [0], [0], [1], [0, 0, 1, 1], [], []>} : vector<8x32xbf16>, vector<32x128xbf16>, vector<8x128xf32> -> vector<8x128xf32>
    %232 = arith.addf %228, %231 : vector<8x128xf32>
    %233 = vector.extract_strided_slice %232 {offsets = [0, 0], sizes = [8, 32], strides = [1, 1]} : vector<8x128xf32> to vector<8x32xf32>
    %234 = arith.negf %233 : vector<8x32xf32>
    %235 = math.exp %234 : vector<8x32xf32>
    %cst_111 = arith.constant 1.000000e+00 : f32
    %236 = vector.broadcast %cst_111 : f32 to vector<8x32xf32>
    %237 = arith.addf %236, %235 : vector<8x32xf32>
    %238 = arith.divf %236, %237 : vector<8x32xf32>
    %239 = vector.extract_strided_slice %232 {offsets = [0, 32], sizes = [8, 32], strides = [1, 1]} : vector<8x128xf32> to vector<8x32xf32>
    %240 = arith.negf %239 : vector<8x32xf32>
    %241 = math.exp %240 : vector<8x32xf32>
    %cst_112 = arith.constant 1.000000e+00 : f32
    %242 = vector.broadcast %cst_112 : f32 to vector<8x32xf32>
    %243 = arith.addf %242, %241 : vector<8x32xf32>
    %244 = arith.divf %242, %243 : vector<8x32xf32>
    %245 = vector.extract_strided_slice %232 {offsets = [0, 64], sizes = [8, 32], strides = [1, 1]} : vector<8x128xf32> to vector<8x32xf32>
    %246 = math.tanh %245 : vector<8x32xf32>
    %247 = vector.extract_strided_slice %232 {offsets = [0, 96], sizes = [8, 32], strides = [1, 1]} : vector<8x128xf32> to vector<8x32xf32>
    %248 = arith.negf %247 : vector<8x32xf32>
    %249 = math.exp %248 : vector<8x32xf32>
    %cst_113 = arith.constant 1.000000e+00 : f32
    %250 = vector.broadcast %cst_113 : f32 to vector<8x32xf32>
    %251 = arith.addf %250, %249 : vector<8x32xf32>
    %252 = arith.divf %250, %251 : vector<8x32xf32>
    %253 = arith.mulf %244, %221 : vector<8x32xf32>
    %254 = arith.mulf %238, %246 : vector<8x32xf32>
    %255 = arith.addf %253, %254 : vector<8x32xf32>
    %256 = math.tanh %255 : vector<8x32xf32>
    %257 = arith.mulf %252, %256 : vector<8x32xf32>
    %c5 = arith.constant 5 : index
    %c0_114 = arith.constant 0 : index
    %c0_115 = arith.constant 0 : index
    %258 = vector.load %arg33[%c5, %c0_114, %c0_115] : memref<8x8x32xf32, #tpu.memory_space<vmem>>, vector<1x8x32xf32>
    %259 = vector.shape_cast %258 : vector<1x8x32xf32> to vector<8x32xf32>
    %260 = vector.shape_cast %257 : vector<8x32xf32> to vector<1x8x32xf32>
    tpu.vector_store %arg33[%c5, %c0_114, %c0_115], %260 {strides = array<i32>} : memref<8x8x32xf32, #tpu.memory_space<vmem>>, vector<1x8x32xf32>,
    %261 = vector.extract_strided_slice %54 {offsets = [0, 6, 0], sizes = [8, 1, 128], strides = [1, 1, 1]} : vector<8x8x128xf32> to vector<8x1x128xf32>
    %262 = vector.shape_cast %261 : vector<8x1x128xf32> to vector<8x128xf32>
    %c0_116 = arith.constant 0 : index
    %c0_117 = arith.constant 0 : index
    %263 = vector.load %arg7[%c0_116, %c0_117] : memref<32x128xbf16, #tpu.memory_space<vmem>>, vector<32x128xbf16>
    %264 = arith.truncf %257 : vector<8x32xf32> to vector<8x32xbf16>
    %cst_118 = arith.constant dense<0.000000e+00> : vector<8x128xf32>
    %265 = tpu.matmul %264, %263, %cst_118 {dimension_numbers = #tpu.dot_dimension_numbers<[1], [0], [0], [1], [0, 0, 1, 1], [], []>} : vector<8x32xbf16>, vector<32x128xbf16>, vector<8x128xf32> -> vector<8x128xf32>
    %266 = arith.addf %262, %265 : vector<8x128xf32>
    %267 = vector.extract_strided_slice %266 {offsets = [0, 0], sizes = [8, 32], strides = [1, 1]} : vector<8x128xf32> to vector<8x32xf32>
    %268 = arith.negf %267 : vector<8x32xf32>
    %269 = math.exp %268 : vector<8x32xf32>
    %cst_119 = arith.constant 1.000000e+00 : f32
    %270 = vector.broadcast %cst_119 : f32 to vector<8x32xf32>
    %271 = arith.addf %270, %269 : vector<8x32xf32>
    %272 = arith.divf %270, %271 : vector<8x32xf32>
    %273 = vector.extract_strided_slice %266 {offsets = [0, 32], sizes = [8, 32], strides = [1, 1]} : vector<8x128xf32> to vector<8x32xf32>
    %274 = arith.negf %273 : vector<8x32xf32>
    %275 = math.exp %274 : vector<8x32xf32>
    %cst_120 = arith.constant 1.000000e+00 : f32
    %276 = vector.broadcast %cst_120 : f32 to vector<8x32xf32>
    %277 = arith.addf %276, %275 : vector<8x32xf32>
    %278 = arith.divf %276, %277 : vector<8x32xf32>
    %279 = vector.extract_strided_slice %266 {offsets = [0, 64], sizes = [8, 32], strides = [1, 1]} : vector<8x128xf32> to vector<8x32xf32>
    %280 = math.tanh %279 : vector<8x32xf32>
    %281 = vector.extract_strided_slice %266 {offsets = [0, 96], sizes = [8, 32], strides = [1, 1]} : vector<8x128xf32> to vector<8x32xf32>
    %282 = arith.negf %281 : vector<8x32xf32>
    %283 = math.exp %282 : vector<8x32xf32>
    %cst_121 = arith.constant 1.000000e+00 : f32
    %284 = vector.broadcast %cst_121 : f32 to vector<8x32xf32>
    %285 = arith.addf %284, %283 : vector<8x32xf32>
    %286 = arith.divf %284, %285 : vector<8x32xf32>
    %287 = arith.mulf %278, %255 : vector<8x32xf32>
    %288 = arith.mulf %272, %280 : vector<8x32xf32>
    %289 = arith.addf %287, %288 : vector<8x32xf32>
    %290 = math.tanh %289 : vector<8x32xf32>
    %291 = arith.mulf %286, %290 : vector<8x32xf32>
    %c6_122 = arith.constant 6 : index
    %c0_123 = arith.constant 0 : index
    %c0_124 = arith.constant 0 : index
    %292 = vector.load %arg33[%c6_122, %c0_123, %c0_124] : memref<8x8x32xf32, #tpu.memory_space<vmem>>, vector<1x8x32xf32>
    %293 = vector.shape_cast %292 : vector<1x8x32xf32> to vector<8x32xf32>
    %294 = vector.shape_cast %291 : vector<8x32xf32> to vector<1x8x32xf32>
    tpu.vector_store %arg33[%c6_122, %c0_123, %c0_124], %294 {strides = array<i32>} : memref<8x8x32xf32, #tpu.memory_space<vmem>>, vector<1x8x32xf32>,
    %295 = vector.extract_strided_slice %54 {offsets = [0, 7, 0], sizes = [8, 1, 128], strides = [1, 1, 1]} : vector<8x8x128xf32> to vector<8x1x128xf32>
    %296 = vector.shape_cast %295 : vector<8x1x128xf32> to vector<8x128xf32>
    %c0_125 = arith.constant 0 : index
    %c0_126 = arith.constant 0 : index
    %297 = vector.load %arg7[%c0_125, %c0_126] : memref<32x128xbf16, #tpu.memory_space<vmem>>, vector<32x128xbf16>
    %298 = arith.truncf %291 : vector<8x32xf32> to vector<8x32xbf16>
    %cst_127 = arith.constant dense<0.000000e+00> : vector<8x128xf32>
    %299 = tpu.matmul %298, %297, %cst_127 {dimension_numbers = #tpu.dot_dimension_numbers<[1], [0], [0], [1], [0, 0, 1, 1], [], []>} : vector<8x32xbf16>, vector<32x128xbf16>, vector<8x128xf32> -> vector<8x128xf32>
    %300 = arith.addf %296, %299 : vector<8x128xf32>
    %301 = vector.extract_strided_slice %300 {offsets = [0, 0], sizes = [8, 32], strides = [1, 1]} : vector<8x128xf32> to vector<8x32xf32>
    %302 = arith.negf %301 : vector<8x32xf32>
    %303 = math.exp %302 : vector<8x32xf32>
    %cst_128 = arith.constant 1.000000e+00 : f32
    %304 = vector.broadcast %cst_128 : f32 to vector<8x32xf32>
    %305 = arith.addf %304, %303 : vector<8x32xf32>
    %306 = arith.divf %304, %305 : vector<8x32xf32>
    %307 = vector.extract_strided_slice %300 {offsets = [0, 32], sizes = [8, 32], strides = [1, 1]} : vector<8x128xf32> to vector<8x32xf32>
    %308 = arith.negf %307 : vector<8x32xf32>
    %309 = math.exp %308 : vector<8x32xf32>
    %cst_129 = arith.constant 1.000000e+00 : f32
    %310 = vector.broadcast %cst_129 : f32 to vector<8x32xf32>
    %311 = arith.addf %310, %309 : vector<8x32xf32>
    %312 = arith.divf %310, %311 : vector<8x32xf32>
    %313 = vector.extract_strided_slice %300 {offsets = [0, 64], sizes = [8, 32], strides = [1, 1]} : vector<8x128xf32> to vector<8x32xf32>
    %314 = math.tanh %313 : vector<8x32xf32>
    %315 = vector.extract_strided_slice %300 {offsets = [0, 96], sizes = [8, 32], strides = [1, 1]} : vector<8x128xf32> to vector<8x32xf32>
    %316 = arith.negf %315 : vector<8x32xf32>
    %317 = math.exp %316 : vector<8x32xf32>
    %cst_130 = arith.constant 1.000000e+00 : f32
    %318 = vector.broadcast %cst_130 : f32 to vector<8x32xf32>
    %319 = arith.addf %318, %317 : vector<8x32xf32>
    %320 = arith.divf %318, %319 : vector<8x32xf32>
    %321 = arith.mulf %312, %289 : vector<8x32xf32>
    %322 = arith.mulf %306, %314 : vector<8x32xf32>
    %323 = arith.addf %321, %322 : vector<8x32xf32>
    %324 = math.tanh %323 : vector<8x32xf32>
    %325 = arith.mulf %320, %324 : vector<8x32xf32>
    %c7_131 = arith.constant 7 : index
    %c0_132 = arith.constant 0 : index
    %c0_133 = arith.constant 0 : index
    %326 = vector.load %arg33[%c7_131, %c0_132, %c0_133] : memref<8x8x32xf32, #tpu.memory_space<vmem>>, vector<1x8x32xf32>
    %327 = vector.shape_cast %326 : vector<1x8x32xf32> to vector<8x32xf32>
    %328 = vector.shape_cast %325 : vector<8x32xf32> to vector<1x8x32xf32>
    tpu.vector_store %arg33[%c7_131, %c0_132, %c0_133], %328 {strides = array<i32>} : memref<8x8x32xf32, #tpu.memory_space<vmem>>, vector<1x8x32xf32>,
    %c0_134 = arith.constant 0 : index
    %c0_135 = arith.constant 0 : index
    %c0_136 = arith.constant 0 : index
    %329 = vector.load %arg33[%c0_134, %c0_135, %c0_136] : memref<8x8x32xf32, #tpu.memory_space<vmem>>, vector<8x8x32xf32>
    %330 = vector.shape_cast %329 : vector<8x8x32xf32> to vector<64x32xf32>
    %c0_137 = arith.constant 0 : index
    %c0_138 = arith.constant 0 : index
    %331 = vector.load %arg9[%c0_137, %c0_138] : memref<32x128xbf16, #tpu.memory_space<vmem>>, vector<32x128xbf16>
    %332 = arith.truncf %330 : vector<64x32xf32> to vector<64x32xbf16>
    %cst_139 = arith.constant dense<0.000000e+00> : vector<64x128xf32>
    %333 = tpu.matmul %332, %331, %cst_139 {dimension_numbers = #tpu.dot_dimension_numbers<[1], [0], [0], [1], [0, 0, 1, 1], [], []>} : vector<64x32xbf16>, vector<32x128xbf16>, vector<64x128xf32> -> vector<64x128xf32>
    %c0_140 = arith.constant 0 : index
    %c0_141 = arith.constant 0 : index
    %334 = vector.load %arg11[%c0_140, %c0_141] : memref<1x128xf32, #tpu.memory_space<vmem>>, vector<1x128xf32>
    %335 = vector.broadcast %334 : vector<1x128xf32> to vector<64x128xf32>
    %336 = arith.addf %333, %335 : vector<64x128xf32>
    %337 = vector.shape_cast %336 : vector<64x128xf32> to vector<8x8x128xf32>
    %cst_142 = arith.constant 0.000000e+00 : f32
    %338 = vector.broadcast %cst_142 : f32 to vector<8x32xf32>
    %cst_143 = arith.constant 0.000000e+00 : f32
    %339 = vector.broadcast %cst_143 : f32 to vector<8x32xf32>
    %340 = vector.extract_strided_slice %337 {offsets = [0, 0, 0], sizes = [1, 8, 128], strides = [1, 1, 1]} : vector<8x8x128xf32> to vector<1x8x128xf32>
    %341 = vector.shape_cast %340 : vector<1x8x128xf32> to vector<8x128xf32>
    %c0_144 = arith.constant 0 : index
    %c0_145 = arith.constant 0 : index
    %342 = vector.load %arg10[%c0_144, %c0_145] : memref<32x128xbf16, #tpu.memory_space<vmem>>, vector<32x128xbf16>
    %343 = arith.truncf %338 : vector<8x32xf32> to vector<8x32xbf16>
    %cst_146 = arith.constant dense<0.000000e+00> : vector<8x128xf32>
    %344 = tpu.matmul %343, %342, %cst_146 {dimension_numbers = #tpu.dot_dimension_numbers<[1], [0], [0], [1], [0, 0, 1, 1], [], []>} : vector<8x32xbf16>, vector<32x128xbf16>, vector<8x128xf32> -> vector<8x128xf32>
    %345 = arith.addf %341, %344 : vector<8x128xf32>
    %346 = vector.extract_strided_slice %345 {offsets = [0, 0], sizes = [8, 32], strides = [1, 1]} : vector<8x128xf32> to vector<8x32xf32>
    %347 = arith.negf %346 : vector<8x32xf32>
    %348 = math.exp %347 : vector<8x32xf32>
    %cst_147 = arith.constant 1.000000e+00 : f32
    %349 = vector.broadcast %cst_147 : f32 to vector<8x32xf32>
    %350 = arith.addf %349, %348 : vector<8x32xf32>
    %351 = arith.divf %349, %350 : vector<8x32xf32>
    %352 = vector.extract_strided_slice %345 {offsets = [0, 32], sizes = [8, 32], strides = [1, 1]} : vector<8x128xf32> to vector<8x32xf32>
    %353 = arith.negf %352 : vector<8x32xf32>
    %354 = math.exp %353 : vector<8x32xf32>
    %cst_148 = arith.constant 1.000000e+00 : f32
    %355 = vector.broadcast %cst_148 : f32 to vector<8x32xf32>
    %356 = arith.addf %355, %354 : vector<8x32xf32>
    %357 = arith.divf %355, %356 : vector<8x32xf32>
    %358 = vector.extract_strided_slice %345 {offsets = [0, 64], sizes = [8, 32], strides = [1, 1]} : vector<8x128xf32> to vector<8x32xf32>
    %359 = math.tanh %358 : vector<8x32xf32>
    %360 = vector.extract_strided_slice %345 {offsets = [0, 96], sizes = [8, 32], strides = [1, 1]} : vector<8x128xf32> to vector<8x32xf32>
    %361 = arith.negf %360 : vector<8x32xf32>
    %362 = math.exp %361 : vector<8x32xf32>
    %cst_149 = arith.constant 1.000000e+00 : f32
    %363 = vector.broadcast %cst_149 : f32 to vector<8x32xf32>
    %364 = arith.addf %363, %362 : vector<8x32xf32>
    %365 = arith.divf %363, %364 : vector<8x32xf32>
    %366 = arith.mulf %357, %339 : vector<8x32xf32>
    %367 = arith.mulf %351, %359 : vector<8x32xf32>
    %368 = arith.addf %366, %367 : vector<8x32xf32>
    %369 = math.tanh %368 : vector<8x32xf32>
    %370 = arith.mulf %365, %369 : vector<8x32xf32>
    %c0_150 = arith.constant 0 : index
    %c0_151 = arith.constant 0 : index
    %c0_152 = arith.constant 0 : index
    %371 = vector.load %arg34[%c0_150, %c0_151, %c0_152] : memref<8x8x32xf32, #tpu.memory_space<vmem>>, vector<1x8x32xf32>
    %372 = vector.shape_cast %371 : vector<1x8x32xf32> to vector<8x32xf32>
    %373 = vector.shape_cast %370 : vector<8x32xf32> to vector<1x8x32xf32>
    tpu.vector_store %arg34[%c0_150, %c0_151, %c0_152], %373 {strides = array<i32>} : memref<8x8x32xf32, #tpu.memory_space<vmem>>, vector<1x8x32xf32>,
    %374 = vector.extract_strided_slice %337 {offsets = [1, 0, 0], sizes = [1, 8, 128], strides = [1, 1, 1]} : vector<8x8x128xf32> to vector<1x8x128xf32>
    %375 = vector.shape_cast %374 : vector<1x8x128xf32> to vector<8x128xf32>
    %c0_153 = arith.constant 0 : index
    %c0_154 = arith.constant 0 : index
    %376 = vector.load %arg10[%c0_153, %c0_154] : memref<32x128xbf16, #tpu.memory_space<vmem>>, vector<32x128xbf16>
    %377 = arith.truncf %370 : vector<8x32xf32> to vector<8x32xbf16>
    %cst_155 = arith.constant dense<0.000000e+00> : vector<8x128xf32>
    %378 = tpu.matmul %377, %376, %cst_155 {dimension_numbers = #tpu.dot_dimension_numbers<[1], [0], [0], [1], [0, 0, 1, 1], [], []>} : vector<8x32xbf16>, vector<32x128xbf16>, vector<8x128xf32> -> vector<8x128xf32>
    %379 = arith.addf %375, %378 : vector<8x128xf32>
    %380 = vector.extract_strided_slice %379 {offsets = [0, 0], sizes = [8, 32], strides = [1, 1]} : vector<8x128xf32> to vector<8x32xf32>
    %381 = arith.negf %380 : vector<8x32xf32>
    %382 = math.exp %381 : vector<8x32xf32>
    %cst_156 = arith.constant 1.000000e+00 : f32
    %383 = vector.broadcast %cst_156 : f32 to vector<8x32xf32>
    %384 = arith.addf %383, %382 : vector<8x32xf32>
    %385 = arith.divf %383, %384 : vector<8x32xf32>
    %386 = vector.extract_strided_slice %379 {offsets = [0, 32], sizes = [8, 32], strides = [1, 1]} : vector<8x128xf32> to vector<8x32xf32>
    %387 = arith.negf %386 : vector<8x32xf32>
    %388 = math.exp %387 : vector<8x32xf32>
    %cst_157 = arith.constant 1.000000e+00 : f32
    %389 = vector.broadcast %cst_157 : f32 to vector<8x32xf32>
    %390 = arith.addf %389, %388 : vector<8x32xf32>
    %391 = arith.divf %389, %390 : vector<8x32xf32>
    %392 = vector.extract_strided_slice %379 {offsets = [0, 64], sizes = [8, 32], strides = [1, 1]} : vector<8x128xf32> to vector<8x32xf32>
    %393 = math.tanh %392 : vector<8x32xf32>
    %394 = vector.extract_strided_slice %379 {offsets = [0, 96], sizes = [8, 32], strides = [1, 1]} : vector<8x128xf32> to vector<8x32xf32>
    %395 = arith.negf %394 : vector<8x32xf32>
    %396 = math.exp %395 : vector<8x32xf32>
    %cst_158 = arith.constant 1.000000e+00 : f32
    %397 = vector.broadcast %cst_158 : f32 to vector<8x32xf32>
    %398 = arith.addf %397, %396 : vector<8x32xf32>
    %399 = arith.divf %397, %398 : vector<8x32xf32>
    %400 = arith.mulf %391, %368 : vector<8x32xf32>
    %401 = arith.mulf %385, %393 : vector<8x32xf32>
    %402 = arith.addf %400, %401 : vector<8x32xf32>
    %403 = math.tanh %402 : vector<8x32xf32>
    %404 = arith.mulf %399, %403 : vector<8x32xf32>
    %c1_159 = arith.constant 1 : index
    %c0_160 = arith.constant 0 : index
    %c0_161 = arith.constant 0 : index
    %405 = vector.load %arg34[%c1_159, %c0_160, %c0_161] : memref<8x8x32xf32, #tpu.memory_space<vmem>>, vector<1x8x32xf32>
    %406 = vector.shape_cast %405 : vector<1x8x32xf32> to vector<8x32xf32>
    %407 = vector.shape_cast %404 : vector<8x32xf32> to vector<1x8x32xf32>
    tpu.vector_store %arg34[%c1_159, %c0_160, %c0_161], %407 {strides = array<i32>} : memref<8x8x32xf32, #tpu.memory_space<vmem>>, vector<1x8x32xf32>,
    %408 = vector.extract_strided_slice %337 {offsets = [2, 0, 0], sizes = [1, 8, 128], strides = [1, 1, 1]} : vector<8x8x128xf32> to vector<1x8x128xf32>
    %409 = vector.shape_cast %408 : vector<1x8x128xf32> to vector<8x128xf32>
    %c0_162 = arith.constant 0 : index
    %c0_163 = arith.constant 0 : index
    %410 = vector.load %arg10[%c0_162, %c0_163] : memref<32x128xbf16, #tpu.memory_space<vmem>>, vector<32x128xbf16>
    %411 = arith.truncf %404 : vector<8x32xf32> to vector<8x32xbf16>
    %cst_164 = arith.constant dense<0.000000e+00> : vector<8x128xf32>
    %412 = tpu.matmul %411, %410, %cst_164 {dimension_numbers = #tpu.dot_dimension_numbers<[1], [0], [0], [1], [0, 0, 1, 1], [], []>} : vector<8x32xbf16>, vector<32x128xbf16>, vector<8x128xf32> -> vector<8x128xf32>
    %413 = arith.addf %409, %412 : vector<8x128xf32>
    %414 = vector.extract_strided_slice %413 {offsets = [0, 0], sizes = [8, 32], strides = [1, 1]} : vector<8x128xf32> to vector<8x32xf32>
    %415 = arith.negf %414 : vector<8x32xf32>
    %416 = math.exp %415 : vector<8x32xf32>
    %cst_165 = arith.constant 1.000000e+00 : f32
    %417 = vector.broadcast %cst_165 : f32 to vector<8x32xf32>
    %418 = arith.addf %417, %416 : vector<8x32xf32>
    %419 = arith.divf %417, %418 : vector<8x32xf32>
    %420 = vector.extract_strided_slice %413 {offsets = [0, 32], sizes = [8, 32], strides = [1, 1]} : vector<8x128xf32> to vector<8x32xf32>
    %421 = arith.negf %420 : vector<8x32xf32>
    %422 = math.exp %421 : vector<8x32xf32>
    %cst_166 = arith.constant 1.000000e+00 : f32
    %423 = vector.broadcast %cst_166 : f32 to vector<8x32xf32>
    %424 = arith.addf %423, %422 : vector<8x32xf32>
    %425 = arith.divf %423, %424 : vector<8x32xf32>
    %426 = vector.extract_strided_slice %413 {offsets = [0, 64], sizes = [8, 32], strides = [1, 1]} : vector<8x128xf32> to vector<8x32xf32>
    %427 = math.tanh %426 : vector<8x32xf32>
    %428 = vector.extract_strided_slice %413 {offsets = [0, 96], sizes = [8, 32], strides = [1, 1]} : vector<8x128xf32> to vector<8x32xf32>
    %429 = arith.negf %428 : vector<8x32xf32>
    %430 = math.exp %429 : vector<8x32xf32>
    %cst_167 = arith.constant 1.000000e+00 : f32
    %431 = vector.broadcast %cst_167 : f32 to vector<8x32xf32>
    %432 = arith.addf %431, %430 : vector<8x32xf32>
    %433 = arith.divf %431, %432 : vector<8x32xf32>
    %434 = arith.mulf %425, %402 : vector<8x32xf32>
    %435 = arith.mulf %419, %427 : vector<8x32xf32>
    %436 = arith.addf %434, %435 : vector<8x32xf32>
    %437 = math.tanh %436 : vector<8x32xf32>
    %438 = arith.mulf %433, %437 : vector<8x32xf32>
    %c2_168 = arith.constant 2 : index
    %c0_169 = arith.constant 0 : index
    %c0_170 = arith.constant 0 : index
    %439 = vector.load %arg34[%c2_168, %c0_169, %c0_170] : memref<8x8x32xf32, #tpu.memory_space<vmem>>, vector<1x8x32xf32>
    %440 = vector.shape_cast %439 : vector<1x8x32xf32> to vector<8x32xf32>
    %441 = vector.shape_cast %438 : vector<8x32xf32> to vector<1x8x32xf32>
    tpu.vector_store %arg34[%c2_168, %c0_169, %c0_170], %441 {strides = array<i32>} : memref<8x8x32xf32, #tpu.memory_space<vmem>>, vector<1x8x32xf32>,
    %442 = vector.extract_strided_slice %337 {offsets = [3, 0, 0], sizes = [1, 8, 128], strides = [1, 1, 1]} : vector<8x8x128xf32> to vector<1x8x128xf32>
    %443 = vector.shape_cast %442 : vector<1x8x128xf32> to vector<8x128xf32>
    %c0_171 = arith.constant 0 : index
    %c0_172 = arith.constant 0 : index
    %444 = vector.load %arg10[%c0_171, %c0_172] : memref<32x128xbf16, #tpu.memory_space<vmem>>, vector<32x128xbf16>
    %445 = arith.truncf %438 : vector<8x32xf32> to vector<8x32xbf16>
    %cst_173 = arith.constant dense<0.000000e+00> : vector<8x128xf32>
    %446 = tpu.matmul %445, %444, %cst_173 {dimension_numbers = #tpu.dot_dimension_numbers<[1], [0], [0], [1], [0, 0, 1, 1], [], []>} : vector<8x32xbf16>, vector<32x128xbf16>, vector<8x128xf32> -> vector<8x128xf32>
    %447 = arith.addf %443, %446 : vector<8x128xf32>
    %448 = vector.extract_strided_slice %447 {offsets = [0, 0], sizes = [8, 32], strides = [1, 1]} : vector<8x128xf32> to vector<8x32xf32>
    %449 = arith.negf %448 : vector<8x32xf32>
    %450 = math.exp %449 : vector<8x32xf32>
    %cst_174 = arith.constant 1.000000e+00 : f32
    %451 = vector.broadcast %cst_174 : f32 to vector<8x32xf32>
    %452 = arith.addf %451, %450 : vector<8x32xf32>
    %453 = arith.divf %451, %452 : vector<8x32xf32>
    %454 = vector.extract_strided_slice %447 {offsets = [0, 32], sizes = [8, 32], strides = [1, 1]} : vector<8x128xf32> to vector<8x32xf32>
    %455 = arith.negf %454 : vector<8x32xf32>
    %456 = math.exp %455 : vector<8x32xf32>
    %cst_175 = arith.constant 1.000000e+00 : f32
    %457 = vector.broadcast %cst_175 : f32 to vector<8x32xf32>
    %458 = arith.addf %457, %456 : vector<8x32xf32>
    %459 = arith.divf %457, %458 : vector<8x32xf32>
    %460 = vector.extract_strided_slice %447 {offsets = [0, 64], sizes = [8, 32], strides = [1, 1]} : vector<8x128xf32> to vector<8x32xf32>
    %461 = math.tanh %460 : vector<8x32xf32>
    %462 = vector.extract_strided_slice %447 {offsets = [0, 96], sizes = [8, 32], strides = [1, 1]} : vector<8x128xf32> to vector<8x32xf32>
    %463 = arith.negf %462 : vector<8x32xf32>
    %464 = math.exp %463 : vector<8x32xf32>
    %cst_176 = arith.constant 1.000000e+00 : f32
    %465 = vector.broadcast %cst_176 : f32 to vector<8x32xf32>
    %466 = arith.addf %465, %464 : vector<8x32xf32>
    %467 = arith.divf %465, %466 : vector<8x32xf32>
    %468 = arith.mulf %459, %436 : vector<8x32xf32>
    %469 = arith.mulf %453, %461 : vector<8x32xf32>
    %470 = arith.addf %468, %469 : vector<8x32xf32>
    %471 = math.tanh %470 : vector<8x32xf32>
    %472 = arith.mulf %467, %471 : vector<8x32xf32>
    %c3_177 = arith.constant 3 : index
    %c0_178 = arith.constant 0 : index
    %c0_179 = arith.constant 0 : index
    %473 = vector.load %arg34[%c3_177, %c0_178, %c0_179] : memref<8x8x32xf32, #tpu.memory_space<vmem>>, vector<1x8x32xf32>
    %474 = vector.shape_cast %473 : vector<1x8x32xf32> to vector<8x32xf32>
    %475 = vector.shape_cast %472 : vector<8x32xf32> to vector<1x8x32xf32>
    tpu.vector_store %arg34[%c3_177, %c0_178, %c0_179], %475 {strides = array<i32>} : memref<8x8x32xf32, #tpu.memory_space<vmem>>, vector<1x8x32xf32>,
    %476 = vector.extract_strided_slice %337 {offsets = [4, 0, 0], sizes = [1, 8, 128], strides = [1, 1, 1]} : vector<8x8x128xf32> to vector<1x8x128xf32>
    %477 = vector.shape_cast %476 : vector<1x8x128xf32> to vector<8x128xf32>
    %c0_180 = arith.constant 0 : index
    %c0_181 = arith.constant 0 : index
    %478 = vector.load %arg10[%c0_180, %c0_181] : memref<32x128xbf16, #tpu.memory_space<vmem>>, vector<32x128xbf16>
    %479 = arith.truncf %472 : vector<8x32xf32> to vector<8x32xbf16>
    %cst_182 = arith.constant dense<0.000000e+00> : vector<8x128xf32>
    %480 = tpu.matmul %479, %478, %cst_182 {dimension_numbers = #tpu.dot_dimension_numbers<[1], [0], [0], [1], [0, 0, 1, 1], [], []>} : vector<8x32xbf16>, vector<32x128xbf16>, vector<8x128xf32> -> vector<8x128xf32>
    %481 = arith.addf %477, %480 : vector<8x128xf32>
    %482 = vector.extract_strided_slice %481 {offsets = [0, 0], sizes = [8, 32], strides = [1, 1]} : vector<8x128xf32> to vector<8x32xf32>
    %483 = arith.negf %482 : vector<8x32xf32>
    %484 = math.exp %483 : vector<8x32xf32>
    %cst_183 = arith.constant 1.000000e+00 : f32
    %485 = vector.broadcast %cst_183 : f32 to vector<8x32xf32>
    %486 = arith.addf %485, %484 : vector<8x32xf32>
    %487 = arith.divf %485, %486 : vector<8x32xf32>
    %488 = vector.extract_strided_slice %481 {offsets = [0, 32], sizes = [8, 32], strides = [1, 1]} : vector<8x128xf32> to vector<8x32xf32>
    %489 = arith.negf %488 : vector<8x32xf32>
    %490 = math.exp %489 : vector<8x32xf32>
    %cst_184 = arith.constant 1.000000e+00 : f32
    %491 = vector.broadcast %cst_184 : f32 to vector<8x32xf32>
    %492 = arith.addf %491, %490 : vector<8x32xf32>
    %493 = arith.divf %491, %492 : vector<8x32xf32>
    %494 = vector.extract_strided_slice %481 {offsets = [0, 64], sizes = [8, 32], strides = [1, 1]} : vector<8x128xf32> to vector<8x32xf32>
    %495 = math.tanh %494 : vector<8x32xf32>
    %496 = vector.extract_strided_slice %481 {offsets = [0, 96], sizes = [8, 32], strides = [1, 1]} : vector<8x128xf32> to vector<8x32xf32>
    %497 = arith.negf %496 : vector<8x32xf32>
    %498 = math.exp %497 : vector<8x32xf32>
    %cst_185 = arith.constant 1.000000e+00 : f32
    %499 = vector.broadcast %cst_185 : f32 to vector<8x32xf32>
    %500 = arith.addf %499, %498 : vector<8x32xf32>
    %501 = arith.divf %499, %500 : vector<8x32xf32>
    %502 = arith.mulf %493, %470 : vector<8x32xf32>
    %503 = arith.mulf %487, %495 : vector<8x32xf32>
    %504 = arith.addf %502, %503 : vector<8x32xf32>
    %505 = math.tanh %504 : vector<8x32xf32>
    %506 = arith.mulf %501, %505 : vector<8x32xf32>
    %c4_186 = arith.constant 4 : index
    %c0_187 = arith.constant 0 : index
    %c0_188 = arith.constant 0 : index
    %507 = vector.load %arg34[%c4_186, %c0_187, %c0_188] : memref<8x8x32xf32, #tpu.memory_space<vmem>>, vector<1x8x32xf32>
    %508 = vector.shape_cast %507 : vector<1x8x32xf32> to vector<8x32xf32>
    %509 = vector.shape_cast %506 : vector<8x32xf32> to vector<1x8x32xf32>
    tpu.vector_store %arg34[%c4_186, %c0_187, %c0_188], %509 {strides = array<i32>} : memref<8x8x32xf32, #tpu.memory_space<vmem>>, vector<1x8x32xf32>,
    %510 = vector.extract_strided_slice %337 {offsets = [5, 0, 0], sizes = [1, 8, 128], strides = [1, 1, 1]} : vector<8x8x128xf32> to vector<1x8x128xf32>
    %511 = vector.shape_cast %510 : vector<1x8x128xf32> to vector<8x128xf32>
    %c0_189 = arith.constant 0 : index
    %c0_190 = arith.constant 0 : index
    %512 = vector.load %arg10[%c0_189, %c0_190] : memref<32x128xbf16, #tpu.memory_space<vmem>>, vector<32x128xbf16>
    %513 = arith.truncf %506 : vector<8x32xf32> to vector<8x32xbf16>
    %cst_191 = arith.constant dense<0.000000e+00> : vector<8x128xf32>
    %514 = tpu.matmul %513, %512, %cst_191 {dimension_numbers = #tpu.dot_dimension_numbers<[1], [0], [0], [1], [0, 0, 1, 1], [], []>} : vector<8x32xbf16>, vector<32x128xbf16>, vector<8x128xf32> -> vector<8x128xf32>
    %515 = arith.addf %511, %514 : vector<8x128xf32>
    %516 = vector.extract_strided_slice %515 {offsets = [0, 0], sizes = [8, 32], strides = [1, 1]} : vector<8x128xf32> to vector<8x32xf32>
    %517 = arith.negf %516 : vector<8x32xf32>
    %518 = math.exp %517 : vector<8x32xf32>
    %cst_192 = arith.constant 1.000000e+00 : f32
    %519 = vector.broadcast %cst_192 : f32 to vector<8x32xf32>
    %520 = arith.addf %519, %518 : vector<8x32xf32>
    %521 = arith.divf %519, %520 : vector<8x32xf32>
    %522 = vector.extract_strided_slice %515 {offsets = [0, 32], sizes = [8, 32], strides = [1, 1]} : vector<8x128xf32> to vector<8x32xf32>
    %523 = arith.negf %522 : vector<8x32xf32>
    %524 = math.exp %523 : vector<8x32xf32>
    %cst_193 = arith.constant 1.000000e+00 : f32
    %525 = vector.broadcast %cst_193 : f32 to vector<8x32xf32>
    %526 = arith.addf %525, %524 : vector<8x32xf32>
    %527 = arith.divf %525, %526 : vector<8x32xf32>
    %528 = vector.extract_strided_slice %515 {offsets = [0, 64], sizes = [8, 32], strides = [1, 1]} : vector<8x128xf32> to vector<8x32xf32>
    %529 = math.tanh %528 : vector<8x32xf32>
    %530 = vector.extract_strided_slice %515 {offsets = [0, 96], sizes = [8, 32], strides = [1, 1]} : vector<8x128xf32> to vector<8x32xf32>
    %531 = arith.negf %530 : vector<8x32xf32>
    %532 = math.exp %531 : vector<8x32xf32>
    %cst_194 = arith.constant 1.000000e+00 : f32
    %533 = vector.broadcast %cst_194 : f32 to vector<8x32xf32>
    %534 = arith.addf %533, %532 : vector<8x32xf32>
    %535 = arith.divf %533, %534 : vector<8x32xf32>
    %536 = arith.mulf %527, %504 : vector<8x32xf32>
    %537 = arith.mulf %521, %529 : vector<8x32xf32>
    %538 = arith.addf %536, %537 : vector<8x32xf32>
    %539 = math.tanh %538 : vector<8x32xf32>
    %540 = arith.mulf %535, %539 : vector<8x32xf32>
    %c5_195 = arith.constant 5 : index
    %c0_196 = arith.constant 0 : index
    %c0_197 = arith.constant 0 : index
    %541 = vector.load %arg34[%c5_195, %c0_196, %c0_197] : memref<8x8x32xf32, #tpu.memory_space<vmem>>, vector<1x8x32xf32>
    %542 = vector.shape_cast %541 : vector<1x8x32xf32> to vector<8x32xf32>
    %543 = vector.shape_cast %540 : vector<8x32xf32> to vector<1x8x32xf32>
    tpu.vector_store %arg34[%c5_195, %c0_196, %c0_197], %543 {strides = array<i32>} : memref<8x8x32xf32, #tpu.memory_space<vmem>>, vector<1x8x32xf32>,
    %544 = vector.extract_strided_slice %337 {offsets = [6, 0, 0], sizes = [1, 8, 128], strides = [1, 1, 1]} : vector<8x8x128xf32> to vector<1x8x128xf32>
    %545 = vector.shape_cast %544 : vector<1x8x128xf32> to vector<8x128xf32>
    %c0_198 = arith.constant 0 : index
    %c0_199 = arith.constant 0 : index
    %546 = vector.load %arg10[%c0_198, %c0_199] : memref<32x128xbf16, #tpu.memory_space<vmem>>, vector<32x128xbf16>
    %547 = arith.truncf %540 : vector<8x32xf32> to vector<8x32xbf16>
    %cst_200 = arith.constant dense<0.000000e+00> : vector<8x128xf32>
    %548 = tpu.matmul %547, %546, %cst_200 {dimension_numbers = #tpu.dot_dimension_numbers<[1], [0], [0], [1], [0, 0, 1, 1], [], []>} : vector<8x32xbf16>, vector<32x128xbf16>, vector<8x128xf32> -> vector<8x128xf32>
    %549 = arith.addf %545, %548 : vector<8x128xf32>
    %550 = vector.extract_strided_slice %549 {offsets = [0, 0], sizes = [8, 32], strides = [1, 1]} : vector<8x128xf32> to vector<8x32xf32>
    %551 = arith.negf %550 : vector<8x32xf32>
    %552 = math.exp %551 : vector<8x32xf32>
    %cst_201 = arith.constant 1.000000e+00 : f32
    %553 = vector.broadcast %cst_201 : f32 to vector<8x32xf32>
    %554 = arith.addf %553, %552 : vector<8x32xf32>
    %555 = arith.divf %553, %554 : vector<8x32xf32>
    %556 = vector.extract_strided_slice %549 {offsets = [0, 32], sizes = [8, 32], strides = [1, 1]} : vector<8x128xf32> to vector<8x32xf32>
    %557 = arith.negf %556 : vector<8x32xf32>
    %558 = math.exp %557 : vector<8x32xf32>
    %cst_202 = arith.constant 1.000000e+00 : f32
    %559 = vector.broadcast %cst_202 : f32 to vector<8x32xf32>
    %560 = arith.addf %559, %558 : vector<8x32xf32>
    %561 = arith.divf %559, %560 : vector<8x32xf32>
    %562 = vector.extract_strided_slice %549 {offsets = [0, 64], sizes = [8, 32], strides = [1, 1]} : vector<8x128xf32> to vector<8x32xf32>
    %563 = math.tanh %562 : vector<8x32xf32>
    %564 = vector.extract_strided_slice %549 {offsets = [0, 96], sizes = [8, 32], strides = [1, 1]} : vector<8x128xf32> to vector<8x32xf32>
    %565 = arith.negf %564 : vector<8x32xf32>
    %566 = math.exp %565 : vector<8x32xf32>
    %cst_203 = arith.constant 1.000000e+00 : f32
    %567 = vector.broadcast %cst_203 : f32 to vector<8x32xf32>
    %568 = arith.addf %567, %566 : vector<8x32xf32>
    %569 = arith.divf %567, %568 : vector<8x32xf32>
    %570 = arith.mulf %561, %538 : vector<8x32xf32>
    %571 = arith.mulf %555, %563 : vector<8x32xf32>
    %572 = arith.addf %570, %571 : vector<8x32xf32>
    %573 = math.tanh %572 : vector<8x32xf32>
    %574 = arith.mulf %569, %573 : vector<8x32xf32>
    %c6_204 = arith.constant 6 : index
    %c0_205 = arith.constant 0 : index
    %c0_206 = arith.constant 0 : index
    %575 = vector.load %arg34[%c6_204, %c0_205, %c0_206] : memref<8x8x32xf32, #tpu.memory_space<vmem>>, vector<1x8x32xf32>
    %576 = vector.shape_cast %575 : vector<1x8x32xf32> to vector<8x32xf32>
    %577 = vector.shape_cast %574 : vector<8x32xf32> to vector<1x8x32xf32>
    tpu.vector_store %arg34[%c6_204, %c0_205, %c0_206], %577 {strides = array<i32>} : memref<8x8x32xf32, #tpu.memory_space<vmem>>, vector<1x8x32xf32>,
    %578 = vector.extract_strided_slice %337 {offsets = [7, 0, 0], sizes = [1, 8, 128], strides = [1, 1, 1]} : vector<8x8x128xf32> to vector<1x8x128xf32>
    %579 = vector.shape_cast %578 : vector<1x8x128xf32> to vector<8x128xf32>
    %c0_207 = arith.constant 0 : index
    %c0_208 = arith.constant 0 : index
    %580 = vector.load %arg10[%c0_207, %c0_208] : memref<32x128xbf16, #tpu.memory_space<vmem>>, vector<32x128xbf16>
    %581 = arith.truncf %574 : vector<8x32xf32> to vector<8x32xbf16>
    %cst_209 = arith.constant dense<0.000000e+00> : vector<8x128xf32>
    %582 = tpu.matmul %581, %580, %cst_209 {dimension_numbers = #tpu.dot_dimension_numbers<[1], [0], [0], [1], [0, 0, 1, 1], [], []>} : vector<8x32xbf16>, vector<32x128xbf16>, vector<8x128xf32> -> vector<8x128xf32>
    %583 = arith.addf %579, %582 : vector<8x128xf32>
    %584 = vector.extract_strided_slice %583 {offsets = [0, 0], sizes = [8, 32], strides = [1, 1]} : vector<8x128xf32> to vector<8x32xf32>
    %585 = arith.negf %584 : vector<8x32xf32>
    %586 = math.exp %585 : vector<8x32xf32>
    %cst_210 = arith.constant 1.000000e+00 : f32
    %587 = vector.broadcast %cst_210 : f32 to vector<8x32xf32>
    %588 = arith.addf %587, %586 : vector<8x32xf32>
    %589 = arith.divf %587, %588 : vector<8x32xf32>
    %590 = vector.extract_strided_slice %583 {offsets = [0, 32], sizes = [8, 32], strides = [1, 1]} : vector<8x128xf32> to vector<8x32xf32>
    %591 = arith.negf %590 : vector<8x32xf32>
    %592 = math.exp %591 : vector<8x32xf32>
    %cst_211 = arith.constant 1.000000e+00 : f32
    %593 = vector.broadcast %cst_211 : f32 to vector<8x32xf32>
    %594 = arith.addf %593, %592 : vector<8x32xf32>
    %595 = arith.divf %593, %594 : vector<8x32xf32>
    %596 = vector.extract_strided_slice %583 {offsets = [0, 64], sizes = [8, 32], strides = [1, 1]} : vector<8x128xf32> to vector<8x32xf32>
    %597 = math.tanh %596 : vector<8x32xf32>
    %598 = vector.extract_strided_slice %583 {offsets = [0, 96], sizes = [8, 32], strides = [1, 1]} : vector<8x128xf32> to vector<8x32xf32>
    %599 = arith.negf %598 : vector<8x32xf32>
    %600 = math.exp %599 : vector<8x32xf32>
    %cst_212 = arith.constant 1.000000e+00 : f32
    %601 = vector.broadcast %cst_212 : f32 to vector<8x32xf32>
    %602 = arith.addf %601, %600 : vector<8x32xf32>
    %603 = arith.divf %601, %602 : vector<8x32xf32>
    %604 = arith.mulf %595, %572 : vector<8x32xf32>
    %605 = arith.mulf %589, %597 : vector<8x32xf32>
    %606 = arith.addf %604, %605 : vector<8x32xf32>
    %607 = math.tanh %606 : vector<8x32xf32>
    %608 = arith.mulf %603, %607 : vector<8x32xf32>
    %c7_213 = arith.constant 7 : index
    %c0_214 = arith.constant 0 : index
    %c0_215 = arith.constant 0 : index
    %609 = vector.load %arg34[%c7_213, %c0_214, %c0_215] : memref<8x8x32xf32, #tpu.memory_space<vmem>>, vector<1x8x32xf32>
    %610 = vector.shape_cast %609 : vector<1x8x32xf32> to vector<8x32xf32>
    %611 = vector.shape_cast %608 : vector<8x32xf32> to vector<1x8x32xf32>
    tpu.vector_store %arg34[%c7_213, %c0_214, %c0_215], %611 {strides = array<i32>} : memref<8x8x32xf32, #tpu.memory_space<vmem>>, vector<1x8x32xf32>,
    %c0_216 = arith.constant 0 : index
    %c0_217 = arith.constant 0 : index
    %c0_218 = arith.constant 0 : index
    %612 = vector.load %arg34[%c0_216, %c0_217, %c0_218] : memref<8x8x32xf32, #tpu.memory_space<vmem>>, vector<8x8x32xf32>
    %613 = vector.shape_cast %612 : vector<8x8x32xf32> to vector<64x32xf32>
    %c0_219 = arith.constant 0 : index
    %c0_220 = arith.constant 0 : index
    %614 = vector.load %arg12[%c0_219, %c0_220] : memref<32x96xbf16, #tpu.memory_space<vmem>>, vector<32x96xbf16>
    %615 = arith.truncf %613 : vector<64x32xf32> to vector<64x32xbf16>
    %cst_221 = arith.constant dense<0.000000e+00> : vector<64x96xf32>
    %616 = tpu.matmul %615, %614, %cst_221 {dimension_numbers = #tpu.dot_dimension_numbers<[1], [0], [0], [1], [0, 0, 1, 1], [], []>} : vector<64x32xbf16>, vector<32x96xbf16>, vector<64x96xf32> -> vector<64x96xf32>
    %c0_222 = arith.constant 0 : index
    %c0_223 = arith.constant 0 : index
    %617 = vector.load %arg13[%c0_222, %c0_223] : memref<1x96xf32, #tpu.memory_space<vmem>>, vector<1x96xf32>
    %618 = vector.broadcast %617 : vector<1x96xf32> to vector<64x96xf32>
    %619 = arith.addf %616, %618 : vector<64x96xf32>
    %620 = vector.shape_cast %619 : vector<64x96xf32> to vector<8x8x96xf32>
    %621 = vector.extract_strided_slice %620 {offsets = [7, 0, 0], sizes = [1, 8, 32], strides = [1, 1, 1]} : vector<8x8x96xf32> to vector<1x8x32xf32>
    %622 = vector.shape_cast %621 : vector<1x8x32xf32> to vector<8x32xf32>
    %623 = vector.extract_strided_slice %620 {offsets = [0, 0, 32], sizes = [8, 8, 32], strides = [1, 1, 1]} : vector<8x8x96xf32> to vector<8x8x32xf32>
    %624 = vector.extract_strided_slice %620 {offsets = [0, 0, 64], sizes = [8, 8, 32], strides = [1, 1, 1]} : vector<8x8x96xf32> to vector<8x8x32xf32>
    %c0_224 = arith.constant 0 : index
    %c0_225 = arith.constant 0 : index
    %625 = vector.load %arg16[%c0_224, %c0_225] : memref<32x8xf32, #tpu.memory_space<vmem>>, vector<32x8xf32>
    %626 = vector.shape_cast %622 : vector<8x32xf32> to vector<1x8x32xf32>
    %627 = vector.broadcast %626 : vector<1x8x32xf32> to vector<8x8x32xf32>
    %628 = arith.mulf %627, %623 : vector<8x8x32xf32>
    %629 = vector.shape_cast %628 : vector<8x8x32xf32> to vector<64x32xf32>
    %cst_226 = arith.constant dense<0.000000e+00> : vector<64x8xf32>
    %630 = tpu.matmul %629, %625, %cst_226 {dimension_numbers = #tpu.dot_dimension_numbers<[1], [0], [0], [1], [0, 0, 1, 1], [], []>} : vector<64x32xf32>, vector<32x8xf32>, vector<64x8xf32> -> vector<64x8xf32>
    %cst_227 = arith.constant 5.000000e-01 : f32
    %631 = vector.broadcast %cst_227 : f32 to vector<64x8xf32>
    %632 = arith.mulf %630, %631 : vector<64x8xf32>
    %633 = vector.shape_cast %632 : vector<64x8xf32> to vector<8x8x8xf32>
    %cst_228 = arith.constant dense<0xFF800000> : vector<8x8xf32>
    %634 = vector.multi_reduction <maximumf>, %633, %cst_228 [0] : vector<8x8x8xf32> to vector<8x8xf32>
    %635 = vector.shape_cast %634 : vector<8x8xf32> to vector<1x8x8xf32>
    %636 = vector.broadcast %635 : vector<1x8x8xf32> to vector<8x8x8xf32>
    %637 = arith.subf %633, %636 : vector<8x8x8xf32>
    %638 = math.exp %637 : vector<8x8x8xf32>
    %cst_229 = arith.constant dense<0.000000e+00> : vector<8x8xf32>
    %639 = vector.multi_reduction <add>, %638, %cst_229 [0] : vector<8x8x8xf32> to vector<8x8xf32>
    %640 = vector.shape_cast %639 : vector<8x8xf32> to vector<1x8x8xf32>
    %641 = vector.broadcast %640 : vector<1x8x8xf32> to vector<8x8x8xf32>
    %642 = arith.divf %638, %641 : vector<8x8x8xf32>
    %643 = vector.shape_cast %642 : vector<8x8x8xf32> to vector<64x8xf32>
    %cst_230 = arith.constant dense<0.000000e+00> : vector<64x32xf32>
    %644 = tpu.matmul %643, %625, %cst_230 {dimension_numbers = #tpu.dot_dimension_numbers<[1], [1], [0], [0], [0, 0, 1, 0], [], []>} : vector<64x8xf32>, vector<32x8xf32>, vector<64x32xf32> -> vector<64x32xf32>
    %645 = vector.shape_cast %644 : vector<64x32xf32> to vector<8x8x32xf32>
    %646 = arith.mulf %645, %624 : vector<8x8x32xf32>
    %cst_231 = arith.constant dense<0.000000e+00> : vector<8x32xf32>
    %647 = vector.multi_reduction <add>, %646, %cst_231 [0] : vector<8x8x32xf32> to vector<8x32xf32>
    %c0_232 = arith.constant 0 : index
    %c0_233 = arith.constant 0 : index
    %648 = vector.load %arg14[%c0_232, %c0_233] : memref<32x32xbf16, #tpu.memory_space<vmem>>, vector<32x32xbf16>
    %649 = arith.truncf %647 : vector<8x32xf32> to vector<8x32xbf16>
    %cst_234 = arith.constant dense<0.000000e+00> : vector<8x32xf32>
    %650 = tpu.matmul %649, %648, %cst_234 {dimension_numbers = #tpu.dot_dimension_numbers<[1], [0], [0], [1], [0, 0, 1, 1], [], []>} : vector<8x32xbf16>, vector<32x32xbf16>, vector<8x32xf32> -> vector<8x32xf32>
    %c0_235 = arith.constant 0 : index
    %c0_236 = arith.constant 0 : index
    %651 = vector.load %arg15[%c0_235, %c0_236] : memref<1x32xf32, #tpu.memory_space<vmem>>, vector<1x32xf32>
    %652 = vector.broadcast %651 : vector<1x32xf32> to vector<8x32xf32>
    %653 = arith.addf %650, %652 : vector<8x32xf32>
    %c0_237 = arith.constant 0 : index
    %c0_238 = arith.constant 0 : index
    %654 = vector.load %arg17[%c0_237, %c0_238] : memref<32x64xbf16, #tpu.memory_space<vmem>>, vector<32x64xbf16>
    %655 = arith.truncf %653 : vector<8x32xf32> to vector<8x32xbf16>
    %cst_239 = arith.constant dense<0.000000e+00> : vector<8x64xf32>
    %656 = tpu.matmul %655, %654, %cst_239 {dimension_numbers = #tpu.dot_dimension_numbers<[1], [0], [0], [1], [0, 0, 1, 1], [], []>} : vector<8x32xbf16>, vector<32x64xbf16>, vector<8x64xf32> -> vector<8x64xf32>
    %c0_240 = arith.constant 0 : index
    %c0_241 = arith.constant 0 : index
    %657 = vector.load %arg18[%c0_240, %c0_241] : memref<1x64xf32, #tpu.memory_space<vmem>>, vector<1x64xf32>
    %658 = vector.broadcast %657 : vector<1x64xf32> to vector<8x64xf32>
    %659 = arith.addf %656, %658 : vector<8x64xf32>
    %660 = vector.extract_strided_slice %659 {offsets = [0, 0], sizes = [8, 32], strides = [1, 1]} : vector<8x64xf32> to vector<8x32xf32>
    %c0_242 = arith.constant 0 : index
    %c0_243 = arith.constant 0 : index
    %661 = vector.load %arg19[%c0_242, %c0_243] : memref<1x32xf32, #tpu.memory_space<vmem>>, vector<1x32xf32>
    %c0_244 = arith.constant 0 : index
    %c0_245 = arith.constant 0 : index
    %662 = vector.load %arg20[%c0_244, %c0_245] : memref<1x32xf32, #tpu.memory_space<vmem>>, vector<1x32xf32>
    %cst_246 = arith.constant dense<0.000000e+00> : vector<8xf32>
    %663 = vector.multi_reduction <add>, %660, %cst_246 [1] : vector<8x32xf32> to vector<8xf32>
    %664 = vector.shape_cast %663 : vector<8xf32> to vector<8x1xf32>
    %cst_247 = arith.constant 3.200000e+01 : f32
    %665 = vector.broadcast %cst_247 : f32 to vector<8x1xf32>
    %666 = arith.divf %664, %665 : vector<8x1xf32>
    %667 = vector.broadcast %666 : vector<8x1xf32> to vector<8x32xf32>
    %668 = arith.subf %660, %667 : vector<8x32xf32>
    %669 = arith.mulf %668, %668 : vector<8x32xf32>
    %cst_248 = arith.constant dense<0.000000e+00> : vector<8xf32>
    %670 = vector.multi_reduction <add>, %669, %cst_248 [1] : vector<8x32xf32> to vector<8xf32>
    %671 = vector.shape_cast %670 : vector<8xf32> to vector<8x1xf32>
    %cst_249 = arith.constant 3.200000e+01 : f32
    %672 = vector.broadcast %cst_249 : f32 to vector<8x1xf32>
    %673 = arith.divf %671, %672 : vector<8x1xf32>
    %cst_250 = arith.constant 9.99999974E-6 : f32
    %674 = vector.broadcast %cst_250 : f32 to vector<8x1xf32>
    %675 = arith.addf %673, %674 : vector<8x1xf32>
    %676 = math.rsqrt %675 : vector<8x1xf32>
    %677 = vector.broadcast %676 : vector<8x1xf32> to vector<8x32xf32>
    %678 = arith.mulf %668, %677 : vector<8x32xf32>
    %679 = vector.broadcast %661 : vector<1x32xf32> to vector<8x32xf32>
    %680 = arith.mulf %678, %679 : vector<8x32xf32>
    %681 = vector.broadcast %662 : vector<1x32xf32> to vector<8x32xf32>
    %682 = arith.addf %680, %681 : vector<8x32xf32>
    %cst_251 = arith.constant 0.000000e+00 : f32
    %683 = vector.broadcast %cst_251 : f32 to vector<8x32xf32>
    %684 = arith.maximumf %682, %683 : vector<8x32xf32>
    %c0_252 = arith.constant 0 : index
    %c0_253 = arith.constant 0 : index
    %685 = vector.load %arg21[%c0_252, %c0_253] : memref<32x16xbf16, #tpu.memory_space<vmem>>, vector<32x16xbf16>
    %686 = arith.truncf %684 : vector<8x32xf32> to vector<8x32xbf16>
    %cst_254 = arith.constant dense<0.000000e+00> : vector<8x16xf32>
    %687 = tpu.matmul %686, %685, %cst_254 {dimension_numbers = #tpu.dot_dimension_numbers<[1], [0], [0], [1], [0, 0, 1, 1], [], []>} : vector<8x32xbf16>, vector<32x16xbf16>, vector<8x16xf32> -> vector<8x16xf32>
    %c0_255 = arith.constant 0 : index
    %c0_256 = arith.constant 0 : index
    %688 = vector.load %arg22[%c0_255, %c0_256] : memref<1x16xf32, #tpu.memory_space<vmem>>, vector<1x16xf32>
    %689 = vector.broadcast %688 : vector<1x16xf32> to vector<8x16xf32>
    %690 = arith.addf %687, %689 : vector<8x16xf32>
    %cst_257 = arith.constant 0.000000e+00 : f32
    %691 = vector.broadcast %cst_257 : f32 to vector<8x16xf32>
    %692 = arith.maximumf %690, %691 : vector<8x16xf32>
    %c0_258 = arith.constant 0 : index
    %c0_259 = arith.constant 0 : index
    %693 = vector.load %arg23[%c0_258, %c0_259] : memref<16x128xbf16, #tpu.memory_space<vmem>>, vector<16x128xbf16>
    %694 = arith.truncf %692 : vector<8x16xf32> to vector<8x16xbf16>
    %cst_260 = arith.constant dense<0.000000e+00> : vector<8x128xf32>
    %695 = tpu.matmul %694, %693, %cst_260 {dimension_numbers = #tpu.dot_dimension_numbers<[1], [0], [0], [1], [0, 0, 1, 1], [], []>} : vector<8x16xbf16>, vector<16x128xbf16>, vector<8x128xf32> -> vector<8x128xf32>
    %c0_261 = arith.constant 0 : index
    %c0_262 = arith.constant 0 : index
    %696 = vector.load %arg24[%c0_261, %c0_262] : memref<1x128xf32, #tpu.memory_space<vmem>>, vector<1x128xf32>
    %697 = vector.broadcast %696 : vector<1x128xf32> to vector<8x128xf32>
    %698 = arith.addf %695, %697 : vector<8x128xf32>
    %c0_263 = arith.constant 0 : index
    %c0_264 = arith.constant 0 : index
    %699 = vector.load %arg29[%c0_263, %c0_264] : memref<8x128xf32, #tpu.memory_space<vmem>>, vector<8x128xf32>
    tpu.vector_store %arg29[%c0_263, %c0_264], %698 {strides = array<i32>} : memref<8x128xf32, #tpu.memory_space<vmem>>, vector<8x128xf32>,
    %700 = vector.extract_strided_slice %659 {offsets = [0, 32], sizes = [8, 32], strides = [1, 1]} : vector<8x64xf32> to vector<8x32xf32>
    %c0_265 = arith.constant 0 : index
    %c0_266 = arith.constant 0 : index
    %701 = vector.load %arg25[%c0_265, %c0_266] : memref<1x32xf32, #tpu.memory_space<vmem>>, vector<1x32xf32>
    %c0_267 = arith.constant 0 : index
    %c0_268 = arith.constant 0 : index
    %702 = vector.load %arg26[%c0_267, %c0_268] : memref<1x32xf32, #tpu.memory_space<vmem>>, vector<1x32xf32>
    %cst_269 = arith.constant dense<0.000000e+00> : vector<8xf32>
    %703 = vector.multi_reduction <add>, %700, %cst_269 [1] : vector<8x32xf32> to vector<8xf32>
    %704 = vector.shape_cast %703 : vector<8xf32> to vector<8x1xf32>
    %cst_270 = arith.constant 3.200000e+01 : f32
    %705 = vector.broadcast %cst_270 : f32 to vector<8x1xf32>
    %706 = arith.divf %704, %705 : vector<8x1xf32>
    %707 = vector.broadcast %706 : vector<8x1xf32> to vector<8x32xf32>
    %708 = arith.subf %700, %707 : vector<8x32xf32>
    %709 = arith.mulf %708, %708 : vector<8x32xf32>
    %cst_271 = arith.constant dense<0.000000e+00> : vector<8xf32>
    %710 = vector.multi_reduction <add>, %709, %cst_271 [1] : vector<8x32xf32> to vector<8xf32>
    %711 = vector.shape_cast %710 : vector<8xf32> to vector<8x1xf32>
    %cst_272 = arith.constant 3.200000e+01 : f32
    %712 = vector.broadcast %cst_272 : f32 to vector<8x1xf32>
    %713 = arith.divf %711, %712 : vector<8x1xf32>
    %cst_273 = arith.constant 9.99999974E-6 : f32
    %714 = vector.broadcast %cst_273 : f32 to vector<8x1xf32>
    %715 = arith.addf %713, %714 : vector<8x1xf32>
    %716 = math.rsqrt %715 : vector<8x1xf32>
    %717 = vector.broadcast %716 : vector<8x1xf32> to vector<8x32xf32>
    %718 = arith.mulf %708, %717 : vector<8x32xf32>
    %719 = vector.broadcast %701 : vector<1x32xf32> to vector<8x32xf32>
    %720 = arith.mulf %718, %719 : vector<8x32xf32>
    %721 = vector.broadcast %702 : vector<1x32xf32> to vector<8x32xf32>
    %722 = arith.addf %720, %721 : vector<8x32xf32>
    %cst_274 = arith.constant 0.000000e+00 : f32
    %723 = vector.broadcast %cst_274 : f32 to vector<8x32xf32>
    %724 = arith.maximumf %722, %723 : vector<8x32xf32>
    %c0_275 = arith.constant 0 : index
    %c0_276 = arith.constant 0 : index
    %725 = vector.load %arg27[%c0_275, %c0_276] : memref<32x128xbf16, #tpu.memory_space<vmem>>, vector<32x128xbf16>
    %726 = arith.truncf %724 : vector<8x32xf32> to vector<8x32xbf16>
    %cst_277 = arith.constant dense<0.000000e+00> : vector<8x128xf32>
    %727 = tpu.matmul %726, %725, %cst_277 {dimension_numbers = #tpu.dot_dimension_numbers<[1], [0], [0], [1], [0, 0, 1, 1], [], []>} : vector<8x32xbf16>, vector<32x128xbf16>, vector<8x128xf32> -> vector<8x128xf32>
    %c0_278 = arith.constant 0 : index
    %c0_279 = arith.constant 0 : index
    %728 = vector.load %arg28[%c0_278, %c0_279] : memref<1x128xf32, #tpu.memory_space<vmem>>, vector<1x128xf32>
    %729 = vector.broadcast %728 : vector<1x128xf32> to vector<8x128xf32>
    %730 = arith.addf %727, %729 : vector<8x128xf32>
    %c0_280 = arith.constant 0 : index
    %c0_281 = arith.constant 0 : index
    %731 = vector.load %arg30[%c0_280, %c0_281] : memref<8x128xf32, #tpu.memory_space<vmem>>, vector<8x128xf32>
    tpu.vector_store %arg30[%c0_280, %c0_281], %730 {strides = array<i32>} : memref<8x128xf32, #tpu.memory_space<vmem>>, vector<8x128xf32>,
    return
  }
  func.func @transform_0(%arg0: i32) -> (i32, i32, i32) {
    %c0_i32 = arith.constant 0 : i32
    %c0_i32_0 = arith.constant 0 : i32
    %c0_i32_1 = arith.constant 0 : i32
    return %arg0, %c0_i32, %c0_i32_0 : i32, i32, i32
  }
  func.func @transform_1(%arg0: i32) -> (i32, i32) {
    %c0_i32 = arith.constant 0 : i32
    %c0_i32_0 = arith.constant 0 : i32
    %c0_i32_1 = arith.constant 0 : i32
    return %c0_i32, %c0_i32_0 : i32, i32
  }
  func.func @transform_2(%arg0: i32) -> (i32, i32) {
    %c0_i32 = arith.constant 0 : i32
    %c0_i32_0 = arith.constant 0 : i32
    %c0_i32_1 = arith.constant 0 : i32
    return %c0_i32, %c0_i32_0 : i32, i32
  }
  func.func @transform_3(%arg0: i32) -> (i32, i32) {
    %c0_i32 = arith.constant 0 : i32
    %c0_i32_0 = arith.constant 0 : i32
    %c0_i32_1 = arith.constant 0 : i32
    return %c0_i32, %c0_i32_0 : i32, i32
  }
  func.func @transform_4(%arg0: i32) -> (i32, i32) {
    %c0_i32 = arith.constant 0 : i32
    %c0_i32_0 = arith.constant 0 : i32
    %c0_i32_1 = arith.constant 0 : i32
    return %c0_i32, %c0_i32_0 : i32, i32
  }
  func.func @transform_5(%arg0: i32) -> (i32, i32) {
    %c0_i32 = arith.constant 0 : i32
    %c0_i32_0 = arith.constant 0 : i32
    %c0_i32_1 = arith.constant 0 : i32
    return %c0_i32, %c0_i32_0 : i32, i32
  }
  func.func @transform_6(%arg0: i32) -> (i32, i32) {
    %c0_i32 = arith.constant 0 : i32
    %c0_i32_0 = arith.constant 0 : i32
    %c0_i32_1 = arith.constant 0 : i32
    return %c0_i32, %c0_i32_0 : i32, i32
  }
  func.func @transform_7(%arg0: i32) -> (i32, i32) {
    %c0_i32 = arith.constant 0 : i32
    %c0_i32_0 = arith.constant 0 : i32
    %c0_i32_1 = arith.constant 0 : i32
    return %c0_i32, %c0_i32_0 : i32, i32
  }
  func.func @transform_8(%arg0: i32) -> (i32, i32) {
    %c0_i32 = arith.constant 0 : i32
    %c0_i32_0 = arith.constant 0 : i32
    %c0_i32_1 = arith.constant 0 : i32
    return %c0_i32, %c0_i32_0 : i32, i32
  }
  func.func @transform_9(%arg0: i32) -> (i32, i32) {
    %c0_i32 = arith.constant 0 : i32
    %c0_i32_0 = arith.constant 0 : i32
    %c0_i32_1 = arith.constant 0 : i32
    return %c0_i32, %c0_i32_0 : i32, i32
  }
  func.func @transform_10(%arg0: i32) -> (i32, i32) {
    %c0_i32 = arith.constant 0 : i32
    %c0_i32_0 = arith.constant 0 : i32
    %c0_i32_1 = arith.constant 0 : i32
    return %c0_i32, %c0_i32_0 : i32, i32
  }
  func.func @transform_11(%arg0: i32) -> (i32, i32) {
    %c0_i32 = arith.constant 0 : i32
    %c0_i32_0 = arith.constant 0 : i32
    %c0_i32_1 = arith.constant 0 : i32
    return %c0_i32, %c0_i32_0 : i32, i32
  }
  func.func @transform_12(%arg0: i32) -> (i32, i32) {
    %c0_i32 = arith.constant 0 : i32
    %c0_i32_0 = arith.constant 0 : i32
    %c0_i32_1 = arith.constant 0 : i32
    return %c0_i32, %c0_i32_0 : i32, i32
  }
  func.func @transform_13(%arg0: i32) -> (i32, i32) {
    %c0_i32 = arith.constant 0 : i32
    %c0_i32_0 = arith.constant 0 : i32
    %c0_i32_1 = arith.constant 0 : i32
    return %c0_i32, %c0_i32_0 : i32, i32
  }
  func.func @transform_14(%arg0: i32) -> (i32, i32) {
    %c0_i32 = arith.constant 0 : i32
    %c0_i32_0 = arith.constant 0 : i32
    %c0_i32_1 = arith.constant 0 : i32
    return %c0_i32, %c0_i32_0 : i32, i32
  }
  func.func @transform_15(%arg0: i32) -> (i32, i32) {
    %c0_i32 = arith.constant 0 : i32
    %c0_i32_0 = arith.constant 0 : i32
    %c0_i32_1 = arith.constant 0 : i32
    return %c0_i32, %c0_i32_0 : i32, i32
  }
  func.func @transform_16(%arg0: i32) -> (i32, i32) {
    %c0_i32 = arith.constant 0 : i32
    %c0_i32_0 = arith.constant 0 : i32
    %c0_i32_1 = arith.constant 0 : i32
    return %c0_i32, %c0_i32_0 : i32, i32
  }
  func.func @transform_17(%arg0: i32) -> (i32, i32) {
    %c0_i32 = arith.constant 0 : i32
    %c0_i32_0 = arith.constant 0 : i32
    %c0_i32_1 = arith.constant 0 : i32
    return %c0_i32, %c0_i32_0 : i32, i32
  }
  func.func @transform_18(%arg0: i32) -> (i32, i32) {
    %c0_i32 = arith.constant 0 : i32
    %c0_i32_0 = arith.constant 0 : i32
    %c0_i32_1 = arith.constant 0 : i32
    return %c0_i32, %c0_i32_0 : i32, i32
  }
  func.func @transform_19(%arg0: i32) -> (i32, i32) {
    %c0_i32 = arith.constant 0 : i32
    %c0_i32_0 = arith.constant 0 : i32
    %c0_i32_1 = arith.constant 0 : i32
    return %c0_i32, %c0_i32_0 : i32, i32
  }
  func.func @transform_20(%arg0: i32) -> (i32, i32) {
    %c0_i32 = arith.constant 0 : i32
    %c0_i32_0 = arith.constant 0 : i32
    %c0_i32_1 = arith.constant 0 : i32
    return %c0_i32, %c0_i32_0 : i32, i32
  }
  func.func @transform_21(%arg0: i32) -> (i32, i32) {
    %c0_i32 = arith.constant 0 : i32
    %c0_i32_0 = arith.constant 0 : i32
    %c0_i32_1 = arith.constant 0 : i32
    return %c0_i32, %c0_i32_0 : i32, i32
  }
  func.func @transform_22(%arg0: i32) -> (i32, i32) {
    %c0_i32 = arith.constant 0 : i32
    %c0_i32_0 = arith.constant 0 : i32
    %c0_i32_1 = arith.constant 0 : i32
    return %c0_i32, %c0_i32_0 : i32, i32
  }
  func.func @transform_23(%arg0: i32) -> (i32, i32) {
    %c0_i32 = arith.constant 0 : i32
    %c0_i32_0 = arith.constant 0 : i32
    %c0_i32_1 = arith.constant 0 : i32
    return %c0_i32, %c0_i32_0 : i32, i32
  }
  func.func @transform_24(%arg0: i32) -> (i32, i32) {
    %c0_i32 = arith.constant 0 : i32
    %c0_i32_0 = arith.constant 0 : i32
    %c0_i32_1 = arith.constant 0 : i32
    return %c0_i32, %c0_i32_0 : i32, i32
  }
  func.func @transform_25(%arg0: i32) -> (i32, i32) {
    %c0_i32 = arith.constant 0 : i32
    %c0_i32_0 = arith.constant 0 : i32
    %c0_i32_1 = arith.constant 0 : i32
    return %c0_i32, %c0_i32_0 : i32, i32
  }
  func.func @transform_26(%arg0: i32) -> (i32, i32) {
    %c0_i32 = arith.constant 0 : i32
    %c0_i32_0 = arith.constant 0 : i32
    %c0_i32_1 = arith.constant 0 : i32
    return %c0_i32, %c0_i32_0 : i32, i32
  }
  func.func @transform_27(%arg0: i32) -> (i32, i32) {
    %c0_i32 = arith.constant 0 : i32
    %c0_i32_0 = arith.constant 0 : i32
    %c0_i32_1 = arith.constant 0 : i32
    return %c0_i32, %c0_i32_0 : i32, i32
  }
  func.func @transform_28(%arg0: i32) -> (i32, i32) {
    %c0_i32 = arith.constant 0 : i32
    %c0_i32_0 = arith.constant 0 : i32
    return %arg0, %c0_i32 : i32, i32
  }
  func.func @transform_29(%arg0: i32) -> (i32, i32) {
    %c0_i32 = arith.constant 0 : i32
    %c0_i32_0 = arith.constant 0 : i32
    return %arg0, %c0_i32 : i32, i32
  }
}

</mosaic_0001>

<bundles_post_ra>
// kernel: dqn_forward.1
= control target key start
LH: loop header
LB: loop body
LE: loop exit
PB: predicated region body
PF: predicated region fallthrough
CT: control target
= control target key end

     0   :  { %vm130_vm0 = vcmask 40960   ;;  %v6843_v0 = vmov 0.0   ;;  %s6844_s6 = smov 1   ;;  %vm139_vm1 = vcmask 47104   ;;  %s6845_s10 = smov 6   ;;  %vm275_vm2 = vcmask 1040384   ;;  %s8519_s0 = inlined_call_operand.smem [shape: u32[30], index: -1, kind: input, shape index: {}] }
   0x1   :  { %s1_s5 = sld [smem:[%s8519_s0]]   ;;  %133 = vst.msk [vmem:[#allocation2 + $0x10] sm:$0x1] %vm130_vm0, %v6843_v0  ;;  %131 = vst.msk [vmem:[#allocation2] sm:$0x1] %vm130_vm0, %v6843_v0  ;;  %s6846_s14 = smov 12   ;;  %vm180_vm3 = vcmask 97328  }
   0x2   :  { %132 = vst.msk [vmem:[#allocation2 + $0x8] sm:$0x1] %vm130_vm0, %v6843_v0  ;;  %134 = vst.msk [vmem:[#allocation2 + $0x18] sm:$0x1] %vm130_vm0, %v6843_v0  ;;  %s5515_s9 = sld [smem:[%s8519_s0 + %s6844_s6]]   ;;  %vm189_vm4 = vcmask 139360   ;;  %vm222_vm5 = vcmask 146529  }
   0x3   :  { %135 = vst.msk [vmem:[#allocation2 + $0x20] sm:$0x1] %vm130_vm0, %v6843_v0  ;;  %136 = vst.msk [vmem:[#allocation2 + $0x28] sm:$0x1] %vm130_vm0, %v6843_v0  ;;  %s6902_s13 = sld [smem:[%s8519_s0 + %s6845_s10]]   ;;  %vm262_vm6 = vcmask 146432   ;;  %vm352_vm7 = vcmask 123904  }
   0x4   :  { %137 = vst.msk [vmem:[#allocation2 + $0x30] sm:$0x1] %vm130_vm0, %v6843_v0  ;;  %138 = vst.msk [vmem:[#allocation2 + $0x38] sm:$0x1] %vm130_vm0, %v6843_v0  ;;  %s6847_s15 = smov 2   ;;  %vm370_vm8 = vcmask 254080  }
   0x5   :  { %355 = vst.msk [vmem:[#allocation3 + $0x10] sm:$0x3] %vm352_vm7, %v6843_v0  ;;  %353 = vst.msk [vmem:[#allocation3] sm:$0x3] %vm352_vm7, %v6843_v0  ;;  %s5516_s18 = sld [smem:[%s8519_s0 + %s6847_s15]]   ;;  %vm361_vm9 = vcmask 128000   ;;  %s6848_s19 = smov 16  }
   0x6   :  { %354 = vst.msk [vmem:[#allocation3 + $0x8] sm:$0x3] %vm352_vm7, %v6843_v0  ;;  %356 = vst.msk [vmem:[#allocation3 + $0x18] sm:$0x3] %vm352_vm7, %v6843_v0  ;;  %s6849_s20 = smov 3   ;;  %s6850_s24 = smov 32  }
   0x7   :  { %v124_v1 = vld [vmem:[%s1_s5 + $0x10] sm:$0xff]  ;;  %v122_v2 = vld [vmem:[%s1_s5] sm:$0xff]  ;;  %v125_v3 = vld [vmem:[%s1_s5 + $0x18] sm:$0xff]  ;;  %357 = vst.msk [vmem:[#allocation3 + $0x20] sm:$0x3] %vm352_vm7, %v6843_v0  ;;  %s6988_s23 = sld [smem:[%s8519_s0 + %s6849_s20]]   ;;  %s6851_s25 = smov 48  }
   0x8   :  { %160 = vrot.lane.b32.xlu1 %v124_v1, %s6845_s10  ;;  %142 = vst.msk [vmem:[#allocation2 + $0x11] sm:$0x7f] %vm139_vm1, %v124_v1  ;;  %156 = vrot.lane.b32.xlu0 %v122_v2, %s6845_s10  ;;  %140 = vst.msk [vmem:[#allocation2 + $0x1] sm:$0x7f] %vm139_vm1, %v122_v2  ;;  %v123_v4 = vld [vmem:[%s1_s5 + $0x8] sm:$0xff]  ;;  %v126_v6 = vld [vmem:[%s1_s5 + $0x20] sm:$0xff]  ;;  %s8440_s11 = sld [smem:[%s8519_s0 + %s6848_s19]]  }
   0x9   :  { %143 = vst.msk [vmem:[#allocation2 + $0x19] sm:$0x7f] %vm139_vm1, %v125_v3  ;;  %v127_v5 = vld [vmem:[%s1_s5 + $0x28] sm:$0xff]  ;;  %141 = vst.msk [vmem:[#allocation2 + $0x9] sm:$0x7f] %vm139_vm1, %v123_v4  ;;  %v129_v7 = vld [vmem:[%s1_s5 + $0x38] sm:$0xff] }
   0xa   :  { %145 = vst.msk [vmem:[#allocation2 + $0x29] sm:$0x7f] %vm139_vm1, %v127_v5  ;;  %v128_v8 = vld [vmem:[%s1_s5 + $0x30] sm:$0xff]  ;;  %144 = vst.msk [vmem:[#allocation2 + $0x21] sm:$0x7f] %vm139_vm1, %v126_v6  ;;  %v6191_v9 = vld [vmem:[%s5515_s9] sm:$0xff]  }
   0xb   :  { %147 = vst.msk [vmem:[#allocation2 + $0x39] sm:$0x7f] %vm139_vm1, %v129_v7  ;;  %146 = vst.msk [vmem:[#allocation2 + $0x31] sm:$0x7f] %vm139_vm1, %v128_v8  ;;  %5862 = vmatprep.subr.bf16.mxu0 %v6191_v9  ;;  %v5544_v40 = vld [vmem:[%s5516_s18] ss:$0 sm:$0xff] }
   0xc   :  { %v6192_v10 = vld [vmem:[%s5515_s9 + $0x8] ss:$0 sps:$4 sm:$0x11]   ;;  %162 = vrot.lane.b32.xlu1 %v125_v3, %s6845_s10  ;;  %158 = vrot.lane.b32.xlu0 %v123_v4, %s6845_s10  ;;  %358 = vst.msk [vmem:[#allocation3 + $0x28] sm:$0x3] %vm352_vm7, %v6843_v0  ;;  %s6852_s26 = smov 64  }
   0xd   :  { %v277_v11 = vsel %vm275_vm2, %v6192_v10, 0  ;;  %5863 = vmatpush3.bf16.msra.mxu0 %v6191_v9  ;;  %359 = vst.msk [vmem:[#allocation3 + $0x30] sm:$0x3] %vm352_vm7, %v6843_v0  ;;  %360 = vst.msk [vmem:[#allocation3 + $0x38] sm:$0x3] %vm352_vm7, %v6843_v0  ;;  %v6193_v53 = vld [vmem:[%s6988_s23] sm:$0xff]  }
   0xe   :  { %6154 = vmatprep.subr.msk.bf16.mxu0 %vm275_vm2, %v6192_v10  ;;  %373 = vst.msk [vmem:[#allocation3 + $0x10] sm:$0x1] %vm370_vm8, %v6843_v0  ;;  %371 = vst.msk [vmem:[#allocation3] sm:$0x1] %vm370_vm8, %v6843_v0  ;;  %5874 = vmatprep.subr.bf16.mxu1 %v6193_v53  ;;  %v6194_v54 = vld [vmem:[%s6988_s23 + $0x8] sm:$0xff]   ;;  %v6195_v63 = vld [vmem:[%s6988_s23 + $0x10] sm:$0xff]  }
   0xf   :  { %372 = vst.msk [vmem:[#allocation3 + $0x8] sm:$0x1] %vm370_vm8, %v6843_v0  ;;  %374 = vst.msk [vmem:[#allocation3 + $0x18] sm:$0x1] %vm370_vm8, %v6843_v0  ;;  %5875 = vmatpush3.bf16.msra.mxu1 %v6193_v53  ;;  %vm411_vm10 = vcmask 260224   ;;  %vm444_vm11 = vcmask 392448  }
  0x10   :  { %200 = vrot.lane.b32.xlu1 %v123_v4, %s6846_s14  ;;  %198 = vrot.lane.b32.xlu0 %v122_v2, %s6846_s14  ;;  %375 = vst.msk [vmem:[#allocation3 + $0x20] sm:$0x1] %vm370_vm8, %v6843_v0  ;;  %376 = vst.msk [vmem:[#allocation3 + $0x28] sm:$0x1] %vm370_vm8, %v6843_v0  ;;  %vm453_vm12 = vcmask 516480   ;;  %vm486_vm13 = vcmask 523649  }
  0x11   :  { %5865 = vmatpush3.bf16.msra.mxu0 %v277_v11  ;;  %377 = vst.msk [vmem:[#allocation3 + $0x30] sm:$0x1] %vm370_vm8, %v6843_v0  ;;  %378 = vst.msk [vmem:[#allocation3 + $0x38] sm:$0x1] %vm370_vm8, %v6843_v0  ;;  %5876 = vmatprep.subr.bf16.mxu1 %v6194_v54  ;;  %vm495_vm14 = vcmask 648704   ;;  %vm528_vm15 = vcmask 654850  }
  0x12   :  { %vm596_vm0 = vcmask 654336   ;;  %s6853_s27 = smov 5   ;;  %vm6854_vm1 = vmmov 0   ;;  %s6856_s1 = smov 4   ;;  %vm709_vm2 = vcmask 261120   ;;  %vm1083_vm7 = vcmask 1045509  }
  0x13   :  { %5877 = vmatpush3.bf16.msra.mxu1 %v6194_v54  ;;  %s5519_s30 = sld [smem:[%s8519_s0 + %s6853_s27]]   ;;  %v6201_v54 = vld [vmem:[%s6902_s13 + $0x8] sm:$0xff]   ;;  %s6857_s5 = smov 7   ;;  %vm1086_vm8 = vcmask 1046534  }
  0x14   :  { %204 = vrot.lane.b32.xlu1 %v125_v3, %s6846_s14  ;;  %202 = vrot.lane.b32.xlu0 %v124_v1, %s6846_s14  ;;  %s5518_s4 = sld [smem:[%s8519_s0 + %s6856_s1]]   ;;  %s6858_s9 = smov 8  }
  0x15   :  { %5878 = vmatprep.subr.bf16.mxu1 %v6195_v63  ;;  %s5521_s8 = sld [smem:[%s8519_s0 + %s6857_s5]]   ;;  %s6860_s18 = smov 10  }
  0x16   :  { %s5522_s12 = sld [smem:[%s8519_s0 + %s6858_s9]]   ;;  %s6862_s29 = smov 15  }
  0x17   :  { %5879 = vmatpush3.bf16.msra.mxu1 %v6195_v63  ;;  %s5524_s22 = sld [smem:[%s8519_s0 + %s6860_s18]]   ;;  %s6866_s16 = smov 17  }
  0x18   :  { %166 = vrot.lane.b32.xlu1 %v127_v5, %s6845_s10  ;;  %164 = vrot.lane.b32.xlu0 %v126_v6, %s6845_s10  ;;  %s5529_s2 = sld [smem:[%s8519_s0 + %s6862_s29]]   ;;  %s6867_s21 = smov 20  }
  0x19   :  { %v6200_v53 = vld [vmem:[%s5519_s30 + $0x8] sm:$0xff]   ;;  %s5526_s5 = sld [smem:[%s8519_s0 + %s6846_s14]]   ;;  %s6868_s27 = smov 25  }
  0x1a   :  { %s5531_s20 = sld [smem:[%s8519_s0 + %s6866_s16]]   ;;  %s6869_s1 = smov 18  }
  0x1b   :  { %s6873_s16 = smov 26   ;;  %s6878_s6 = smov 29  }
  0x1c   :  { %170 = vrot.lane.b32.xlu1 %v129_v7, %s6845_s10  ;;  %168 = vrot.lane.b32.xlu0 %v128_v8, %s6845_s10  ;;  %s5543_s9 = sld [smem:[%s8519_s0 + %s6878_s6]]  }
  0x20   :  { %208 = vrot.lane.b32.xlu1 %v127_v5, %s6846_s14  ;;  %206 = vrot.lane.b32.xlu0 %v126_v6, %s6846_s14  ;;  %v6196_v5 = vld [vmem:[%s6988_s23 + $0x18] sm:$0xff]   ;;  %v6197_v6 = vld [vmem:[%s6988_s23 + $0x20] sm:$0xff]   ;;  %s6861_s23 = smov 11  }
  0x21   :  { %5880 = vmatprep.subr.bf16.mxu1 %v6196_v5  ;;  %s5525_s28 = sld [smem:[%s8519_s0 + %s6861_s23]]  }
  0x22   :  { %5881 = vmatpush3.bf16.msra.mxu1 %v6196_v5 }
  0x23   :  { %5882 = vmatprep.subr.bf16.mxu1 %v6197_v6 }
  0x24   :  { %212 = vrot.lane.b32.xlu1 %v129_v7, %s6846_s14  ;;  %210 = vrot.lane.b32.xlu0 %v128_v8, %s6846_s14  ;;  %s6863_s14 = smov 96  }
  0x26   :  { %5883 = vmatpush3.bf16.msra.mxu1 %v6197_v6 }
  0x27   :  { %5904 = vmatprep.subr.bf16.mxu1 %v6843_v0 }
  0x7a   :  { %v161_v12 = vpop.permute.xlu1 %160  ;;  %v157_v13 = vpop.permute.xlu0 %156 }
  0x7b   :  { %183 = vst.msk [vmem:[#allocation2 + $0x10] sm:$0xff] %vm180_vm3, %v161_v12  ;;  %181 = vst.msk [vmem:[#allocation2] sm:$0xff] %vm180_vm3, %v157_v13 }
  0x7c   :  { %192 = vst.msk [vmem:[#allocation2 + $0x17] sm:$0x1] %vm189_vm4, %v6843_v0  ;;  %190 = vst.msk [vmem:[#allocation2 + $0x7] sm:$0x1] %vm189_vm4, %v6843_v0 }
  0x7e   :  { %v163_v14 = vpop.permute.xlu1 %162  ;;  %v159_v15 = vpop.permute.xlu0 %158 }
  0x7f   :  { %184 = vst.msk [vmem:[#allocation2 + $0x18] sm:$0xff] %vm180_vm3, %v163_v14  ;;  %182 = vst.msk [vmem:[#allocation2 + $0x8] sm:$0xff] %vm180_vm3, %v159_v15 }
  0x80   :  { %193 = vst.msk [vmem:[#allocation2 + $0x1f] sm:$0x1] %vm189_vm4, %v6843_v0  ;;  %191 = vst.msk [vmem:[#allocation2 + $0xf] sm:$0x1] %vm189_vm4, %v6843_v0 }
  0x82   :  { %v201_v16 = vpop.permute.xlu1 %200  ;;  %v199_v17 = vpop.permute.xlu0 %198 }
  0x83   :  { %224 = vst.msk [vmem:[#allocation2 + $0x7] sm:$0xfe] %vm222_vm5, %v201_v16  ;;  %223 = vst.msk [vmem:[#allocation2 - $0x1] sm:$0xfe] %vm222_vm5, %v199_v17 }
  0x86   :  { %v205_v18 = vpop.permute.xlu1 %204  ;;  %v203_v19 = vpop.permute.xlu0 %202 }
  0x87   :  { %226 = vst.msk [vmem:[#allocation2 + $0x17] sm:$0xfe] %vm222_vm5, %v205_v18  ;;  %225 = vst.msk [vmem:[#allocation2 + $0xf] sm:$0xfe] %vm222_vm5, %v203_v19 }
  0x8a   :  { %v231_v20 = vld [vmem:[#allocation2] sm:$0xff]  ;;  %v232_v21 = vld [vmem:[#allocation2 + $0x8] sm:$0xff]  ;;  %v167_v22 = vpop.permute.xlu1 %166  ;;  %v165_v23 = vpop.permute.xlu0 %164 }
  0x8b   :  { %v242_v24 = vpack.c.bf16 %v232_v21, %v231_v20  ;;  %186 = vst.msk [vmem:[#allocation2 + $0x28] sm:$0xff] %vm180_vm3, %v167_v22  ;;  %185 = vst.msk [vmem:[#allocation2 + $0x20] sm:$0xff] %vm180_vm3, %v165_v23 }
  0x8c   :  { %195 = vst.msk [vmem:[#allocation2 + $0x2f] sm:$0x1] %vm189_vm4, %v6843_v0  ;;  %194 = vst.msk [vmem:[#allocation2 + $0x27] sm:$0x1] %vm189_vm4, %v6843_v0 }
  0x8d   :  { %5866 = vmatprep.mubr.msk.bf16.mxu0 %vm262_vm6, %v242_v24 }
  0x8e   :  { %v233_v25 = vld [vmem:[#allocation2 + $0x10] sm:$0xff]  ;;  %v234_v26 = vld [vmem:[#allocation2 + $0x18] sm:$0xff]  ;;  %v171_v27 = vpop.permute.xlu1 %170  ;;  %v169_v28 = vpop.permute.xlu0 %168 }
  0x8f   :  { %v243_v29 = vpack.c.bf16 %v234_v26, %v233_v25  ;;  %188 = vst.msk [vmem:[#allocation2 + $0x38] sm:$0xff] %vm180_vm3, %v171_v27  ;;  %187 = vst.msk [vmem:[#allocation2 + $0x30] sm:$0xff] %vm180_vm3, %v169_v28  ;;  %vm1071_vm3 = vcmask 1041409  }
  0x90   :  { %197 = vst.msk [vmem:[#allocation2 + $0x3f] sm:$0x1] %vm189_vm4, %v6843_v0  ;;  %196 = vst.msk [vmem:[#allocation2 + $0x37] sm:$0x1] %vm189_vm4, %v6843_v0  ;;  %vm1074_vm4 = vcmask 1042434  }
  0x91   :  { %5867 = vmatmul.mubr.msk.bf16.vlgmr.msra.gmra.mrb[0].mxu0 %vm262_vm6, %v243_v29 }
  0x92   :  { %v209_v30 = vpop.permute.xlu1 %208  ;;  %v207_v31 = vpop.permute.xlu0 %206 }
  0x93   :  { %228 = vst.msk [vmem:[#allocation2 + $0x27] sm:$0xfe] %vm222_vm5, %v209_v30  ;;  %227 = vst.msk [vmem:[#allocation2 + $0x1f] sm:$0xfe] %vm222_vm5, %v207_v31 }
  0x96   :  { %v213_v32 = vpop.permute.xlu1 %212  ;;  %v211_v33 = vpop.permute.xlu0 %210 }
  0x97   :  { %230 = vst.msk [vmem:[#allocation2 + $0x37] sm:$0xfe] %vm222_vm5, %v213_v32  ;;  %229 = vst.msk [vmem:[#allocation2 + $0x2f] sm:$0xfe] %vm222_vm5, %v211_v33  ;;  %vm1077_vm5 = vcmask 1043459  }
  0x9a   :  { %v235_v34 = vld [vmem:[#allocation2 + $0x20] sm:$0xff]  ;;  %v236_v35 = vld [vmem:[#allocation2 + $0x28] sm:$0xff] }
  0x9b   :  { %v244_v36 = vpack.c.bf16 %v236_v35, %v235_v34 }
  0x9d   :  { %5870 = vmatprep.mubr.msk.bf16.mxu0 %vm262_vm6, %v244_v36 }
  0x9e   :  { %v237_v37 = vld [vmem:[#allocation2 + $0x30] sm:$0xff]  ;;  %v238_v38 = vld [vmem:[#allocation2 + $0x38] sm:$0xff] }
  0x9f   :  { %v245_v39 = vpack.c.bf16 %v238_v38, %v237_v37 }
  0xa1   :  { %5871 = vmatmul.mubr.msk.bf16.gmra.mrb[4].mxu0 %vm262_vm6, %v245_v39  ;;  %vm1080_vm6 = vcmask 1044484  }
 0x164   :  { %v5868_v41 = vpop.f32.mrb[0].mxu0 }
 0x165   :  { %v322_v42 = vadd.f32 %v5868_v41, %v5544_v40  ;;  %v313_v43 = vpop.f32.mrb[1].mxu0 }
 0x166   :  { %v314_v44 = vadd.f32 %v5544_v40, %v313_v43  ;;  %v5869_v45 = vpop.f32.mrb[2].mxu0 }
 0x167   :  { %v346_v46 = vmax.f32 %v322_v42, 0.0  ;;  %v325_v47 = vadd.f32 %v5869_v45, %v5544_v40  ;;  %v316_v48 = vpop.f32.mrb[3].mxu0 }
 0x168   :  { %v344_v49 = vmax.f32 %v314_v44, 0.0  ;;  %v317_v50 = vadd.f32 %v5544_v40, %v316_v48 }
 0x169   :  { %v347_v51 = vmax.f32 %v325_v47, 0.0  ;;  %391 = vrot.lane.b32.xlu0 %v346_v46, %s6848_s19  ;;  %364 = vst.msk [vmem:[#allocation3 + $0x12] sm:$0x3f] %vm361_vm9, %v346_v46 }
 0x16a   :  { %v345_v52 = vmax.f32 %v317_v50, 0.0  ;;  %362 = vst.msk [vmem:[#allocation3 + $0x2] sm:$0x3f] %vm361_vm9, %v344_v49 }
 0x16b   :  { %393 = vrot.lane.b32.xlu1 %v347_v51, %s6848_s19  ;;  %365 = vst.msk [vmem:[#allocation3 + $0x1a] sm:$0x3f] %vm361_vm9, %v347_v51 }
 0x16c   :  { %363 = vst.msk [vmem:[#allocation3 + $0xa] sm:$0x3f] %vm361_vm9, %v345_v52 }
 0x16d   :  { %424 = vrot.lane.b32.xlu0 %v346_v46, %s6850_s24 }
 0x16f   :  { %426 = vrot.lane.b32.xlu1 %v347_v51, %s6850_s24 }
 0x171   :  { %466 = vrot.lane.b32.xlu0 %v346_v46, %s6851_s25 }
 0x173   :  { %468 = vrot.lane.b32.xlu1 %v347_v51, %s6851_s25 }
 0x174   :  { %v5872_v55 = vpop.f32.mrb[4].mxu0 }
 0x175   :  { %508 = vrot.lane.b32.xlu0 %v346_v46, %s6852_s26  ;;  %v338_v56 = vadd.f32 %v5872_v55, %v5544_v40  ;;  %v329_v57 = vpop.f32.mrb[5].mxu0  ;;  %v6855_v55 = vmov 0  }
 0x176   :  { %v330_v58 = vadd.f32 %v5544_v40, %v329_v57  ;;  %v5873_v59 = vpop.f32.mrb[6].mxu0 }
 0x177   :  { %510 = vrot.lane.b32.xlu1 %v347_v51, %s6852_s26  ;;  %v350_v60 = vmax.f32 %v338_v56, 0.0  ;;  %v341_v61 = vadd.f32 %v5873_v59, %v5544_v40  ;;  %v332_v62 = vpop.f32.mrb[7].mxu0  ;;  %v6198_v51 = vld [vmem:[%s5519_s30] sm:$0xff]   ;;  %s5539_s30 = sld [smem:[%s8519_s0 + %s6868_s27]]  }
 0x178   :  { %v348_v1 = vmax.f32 %v330_v58, 0.0  ;;  %v333_v2 = vadd.f32 %v5544_v40, %v332_v62  ;;  %5892 = vmatprep.subr.bf16.mxu0 %v6198_v51  ;;  %v5551_v56 = vld [vmem:[%s5518_s4] ss:$0 sm:$0xff]  ;;  %s5532_s4 = sld [smem:[%s8519_s0 + %s6869_s1]]  }
 0x179   :  { %387 = vrot.lane.b32.xlu0 %v344_v49, %s6848_s19  ;;  %v351_v3 = vmax.f32 %v341_v61, 0.0  ;;  %368 = vst.msk [vmem:[#allocation3 + $0x32] sm:$0x3f] %vm361_vm9, %v350_v60  ;;  %5893 = vmatpush3.bf16.msra.mxu0 %v6198_v51 }
 0x17a   :  { %v349_v4 = vmax.f32 %v333_v2, 0.0  ;;  %366 = vst.msk [vmem:[#allocation3 + $0x22] sm:$0x3f] %vm361_vm9, %v348_v1  ;;  %5894 = vmatprep.subr.bf16.mxu0 %v6200_v53 }
 0x17b   :  { %389 = vrot.lane.b32.xlu1 %v345_v52, %s6848_s19  ;;  %369 = vst.msk [vmem:[#allocation3 + $0x3a] sm:$0x3f] %vm361_vm9, %v351_v3 }
 0x17c   :  { %367 = vst.msk [vmem:[#allocation3 + $0x2a] sm:$0x3f] %vm361_vm9, %v349_v4  ;;  %vm1089_vm9 = vcmask 1047559  }
 0x17d   :  { %420 = vrot.lane.b32.xlu0 %v344_v49, %s6850_s24  ;;  %5895 = vmatpush3.bf16.msra.mxu0 %v6200_v53 }
 0x17e   :  { %5912 = vmatprep.subr.bf16.mxu0 %v6843_v0 }
 0x17f   :  { %422 = vrot.lane.b32.xlu1 %v345_v52, %s6850_s24 }
 0x181   :  { %462 = vrot.lane.b32.xlu0 %v344_v49, %s6851_s25 }
 0x183   :  { %464 = vrot.lane.b32.xlu1 %v345_v52, %s6851_s25 }
 0x185   :  { %504 = vrot.lane.b32.xlu0 %v344_v49, %s6852_s26 }
 0x187   :  { %506 = vrot.lane.b32.xlu1 %v345_v52, %s6852_s26  ;;  %v6199_v52 = vld [vmem:[%s6902_s13] sm:$0xff]  }
 0x189   :  { %399 = vrot.lane.b32.xlu0 %v350_v60, %s6848_s19 }
 0x18b   :  { %401 = vrot.lane.b32.xlu1 %v351_v3, %s6848_s19 }
 0x18d   :  { %432 = vrot.lane.b32.xlu0 %v350_v60, %s6850_s24 }
 0x18f   :  { %434 = vrot.lane.b32.xlu1 %v351_v3, %s6850_s24 }
 0x191   :  { %474 = vrot.lane.b32.xlu0 %v350_v60, %s6851_s25 }
 0x193   :  { %476 = vrot.lane.b32.xlu1 %v351_v3, %s6851_s25 }
 0x195   :  { %395 = vrot.lane.b32.xlu0 %v348_v1, %s6848_s19 }
 0x197   :  { %397 = vrot.lane.b32.xlu1 %v349_v4, %s6848_s19  ;;  %s6865_s19 = smov 14  }
 0x198   :  { %s5528_s15 = sld [smem:[%s8519_s0 + %s6865_s19]]   ;;  %s6872_s19 = smov 22  }
 0x199   :  { %428 = vrot.lane.b32.xlu0 %v348_v1, %s6850_s24 }
 0x19b   :  { %430 = vrot.lane.b32.xlu1 %v349_v4, %s6850_s24 }
 0x19d   :  { %470 = vrot.lane.b32.xlu0 %v348_v1, %s6851_s25 }
 0x19f   :  { %472 = vrot.lane.b32.xlu1 %v349_v4, %s6851_s25  ;;  %s5534_s25 = sld [smem:[%s8519_s0 + %s6867_s21]]   ;;  %s6874_s21 = smov 21  }
 0x1a0   :  { %s5535_s23 = sld [smem:[%s8519_s0 + %s6874_s21]]  }
 0x1a1   :  { %512 = vrot.lane.b32.xlu0 %v348_v1, %s6852_s26 }
 0x1a3   :  { %514 = vrot.lane.b32.xlu1 %v349_v4, %s6852_s26 }
 0x1a5   :  { %516 = vrot.lane.b32.xlu0 %v350_v60, %s6852_s26 }
 0x1a7   :  { %518 = vrot.lane.b32.xlu1 %v351_v3, %s6852_s26 }
 0x1db   :  { %v392_v7 = vpop.permute.xlu0 %391 }
 0x1dc   :  { %414 = vst.msk [vmem:[#allocation3 + $0x11] sm:$0x7f] %vm411_vm10, %v392_v7 }
 0x1dd   :  { %v394_v8 = vpop.permute.xlu1 %393 }
 0x1de   :  { %415 = vst.msk [vmem:[#allocation3 + $0x19] sm:$0x7f] %vm411_vm10, %v394_v8 }
 0x1df   :  { %v425_v9 = vpop.permute.xlu0 %424 }
 0x1e0   :  { %447 = vst.msk [vmem:[#allocation3 + $0x10] sm:$0xff] %vm444_vm11, %v425_v9 }
 0x1e1   :  { %456 = vst.msk [vmem:[#allocation3 + $0x17] sm:$0x1] %vm453_vm12, %v6843_v0  ;;  %v427_v10 = vpop.permute.xlu1 %426 }
 0x1e2   :  { %448 = vst.msk [vmem:[#allocation3 + $0x18] sm:$0xff] %vm444_vm11, %v427_v10 }
 0x1e3   :  { %457 = vst.msk [vmem:[#allocation3 + $0x1f] sm:$0x1] %vm453_vm12, %v6843_v0  ;;  %v467_v11 = vpop.permute.xlu0 %466 }
 0x1e4   :  { %489 = vst.msk [vmem:[#allocation3 + $0xf] sm:$0xfe] %vm486_vm13, %v467_v11 }
 0x1e5   :  { %498 = vst.msk [vmem:[#allocation3 + $0x16] sm:$0x3] %vm495_vm14, %v6843_v0  ;;  %v469_v12 = vpop.permute.xlu1 %468 }
 0x1e6   :  { %490 = vst.msk [vmem:[#allocation3 + $0x17] sm:$0xfe] %vm486_vm13, %v469_v12 }
 0x1e7   :  { %499 = vst.msk [vmem:[#allocation3 + $0x1e] sm:$0x3] %vm495_vm14, %v6843_v0  ;;  %v509_v13 = vpop.permute.xlu0 %508 }
 0x1e8   :  { %531 = vst.msk [vmem:[#allocation3 + $0xe] sm:$0xfc] %vm528_vm15, %v509_v13 }
 0x1e9   :  { %v511_v14 = vpop.permute.xlu1 %510 }
 0x1ea   :  { %532 = vst.msk [vmem:[#allocation3 + $0x16] sm:$0xfc] %vm528_vm15, %v511_v14 }
 0x1eb   :  { %v388_v15 = vpop.permute.xlu0 %387 }
 0x1ec   :  { %412 = vst.msk [vmem:[#allocation3 + $0x1] sm:$0x7f] %vm411_vm10, %v388_v15 }
 0x1ed   :  { %v390_v16 = vpop.permute.xlu1 %389 }
 0x1ee   :  { %413 = vst.msk [vmem:[#allocation3 + $0x9] sm:$0x7f] %vm411_vm10, %v390_v16 }
 0x1ef   :  { %v421_v17 = vpop.permute.xlu0 %420  ;;  %v539_v31 = vld [vmem:[#allocation3 + $0x10] sm:$0xff] }
 0x1f0   :  { %445 = vst.msk [vmem:[#allocation3] sm:$0xff] %vm444_vm11, %v421_v17 }
 0x1f1   :  { %454 = vst.msk [vmem:[#allocation3 + $0x7] sm:$0x1] %vm453_vm12, %v6843_v0  ;;  %v423_v18 = vpop.permute.xlu1 %422  ;;  %v540_v26 = vld [vmem:[#allocation3 + $0x18] sm:$0xff] }
 0x1f2   :  { %446 = vst.msk [vmem:[#allocation3 + $0x8] sm:$0xff] %vm444_vm11, %v423_v18  ;;  %v556_v33 = vpack.c.bf16 %v540_v26, %v539_v31  ;;  %v5561_v26 = vld [vmem:[%s5521_s8] ss:$0 sm:$0xff] }
 0x1f3   :  { %455 = vst.msk [vmem:[#allocation3 + $0xf] sm:$0x1] %vm453_vm12, %v6843_v0  ;;  %v463_v19 = vpop.permute.xlu0 %462 }
 0x1f4   :  { %487 = vst.msk [vmem:[#allocation3 - $0x1] sm:$0xfe] %vm486_vm13, %v463_v19 }
 0x1f5   :  { %496 = vst.msk [vmem:[#allocation3 + $0x6] sm:$0x3] %vm495_vm14, %v6843_v0  ;;  %v465_v20 = vpop.permute.xlu1 %464 }
 0x1f6   :  { %488 = vst.msk [vmem:[#allocation3 + $0x7] sm:$0xfe] %vm486_vm13, %v465_v20 }
 0x1f7   :  { %497 = vst.msk [vmem:[#allocation3 + $0xe] sm:$0x3] %vm495_vm14, %v6843_v0  ;;  %v505_v21 = vpop.permute.xlu0 %504 }
 0x1f8   :  { %529 = vst.msk [vmem:[#allocation3 - $0x2] sm:$0xfc] %vm528_vm15, %v505_v21 }
 0x1f9   :  { %v507_v22 = vpop.permute.xlu1 %506 }
 0x1fa   :  { %530 = vst.msk [vmem:[#allocation3 + $0x6] sm:$0xfc] %vm528_vm15, %v507_v22 }
 0x1fb   :  { %v400_v23 = vpop.permute.xlu0 %399 }
 0x1fc   :  { %418 = vst.msk [vmem:[#allocation3 + $0x31] sm:$0x7f] %vm411_vm10, %v400_v23 }
 0x1fd   :  { %v402_v24 = vpop.permute.xlu1 %401 }
 0x1fe   :  { %419 = vst.msk [vmem:[#allocation3 + $0x39] sm:$0x7f] %vm411_vm10, %v402_v24 }
 0x1ff   :  { %v433_v25 = vpop.permute.xlu0 %432  ;;  %v537_v28 = vld [vmem:[#allocation3] sm:$0xff] }
 0x200   :  { %451 = vst.msk [vmem:[#allocation3 + $0x30] sm:$0xff] %vm444_vm11, %v433_v25 }
 0x201   :  { %460 = vst.msk [vmem:[#allocation3 + $0x37] sm:$0x1] %vm453_vm12, %v6843_v0  ;;  %v435_v27 = vpop.permute.xlu1 %434  ;;  %v538_v29 = vld [vmem:[#allocation3 + $0x8] sm:$0xff] }
 0x202   :  { %452 = vst.msk [vmem:[#allocation3 + $0x38] sm:$0xff] %vm444_vm11, %v435_v27  ;;  %v555_v30 = vpack.c.bf16 %v538_v29, %v537_v28 }
 0x203   :  { %461 = vst.msk [vmem:[#allocation3 + $0x3f] sm:$0x1] %vm453_vm12, %v6843_v0  ;;  %v475_v32 = vpop.permute.xlu0 %474 }
 0x204   :  { %493 = vst.msk [vmem:[#allocation3 + $0x2f] sm:$0xfe] %vm486_vm13, %v475_v32  ;;  %5884 = vmatprep.mubr.msk.bf16.mxu1 %vm596_vm0, %v555_v30 }
 0x205   :  { %502 = vst.msk [vmem:[#allocation3 + $0x36] sm:$0x3] %vm495_vm14, %v6843_v0  ;;  %v477_v34 = vpop.permute.xlu1 %476  ;;  %5885 = vmatmul.mubr.msk.bf16.vlgmr.msra.gmra.mrb[0].mxu1 %vm596_vm0, %v556_v33 }
 0x206   :  { %494 = vst.msk [vmem:[#allocation3 + $0x37] sm:$0xfe] %vm486_vm13, %v477_v34  ;;  %5905 = vmatpush3.bf16.msra.mxu1 %v6199_v52 }
 0x207   :  { %503 = vst.msk [vmem:[#allocation3 + $0x3e] sm:$0x3] %vm495_vm14, %v6843_v0  ;;  %v396_v35 = vpop.permute.xlu0 %395  ;;  %5906 = vmatprep.subr.bf16.mxu1 %v6843_v0 }
 0x208   :  { %416 = vst.msk [vmem:[#allocation3 + $0x21] sm:$0x7f] %vm411_vm10, %v396_v35 }
 0x209   :  { %v398_v36 = vpop.permute.xlu1 %397 }
 0x20a   :  { %417 = vst.msk [vmem:[#allocation3 + $0x29] sm:$0x7f] %vm411_vm10, %v398_v36  ;;  %5907 = vmatpush3.bf16.msra.mxu1 %v6201_v54  ;;  %vm1463_vm10 = vcmask 261121  }
 0x20b   :  { %v429_v37 = vpop.permute.xlu0 %428  ;;  %5920 = vmatprep.subr.bf16.mxu1 %v6843_v0 }
 0x20c   :  { %449 = vst.msk [vmem:[#allocation3 + $0x20] sm:$0xff] %vm444_vm11, %v429_v37 }
 0x20d   :  { %458 = vst.msk [vmem:[#allocation3 + $0x27] sm:$0x1] %vm453_vm12, %v6843_v0  ;;  %v431_v38 = vpop.permute.xlu1 %430 }
 0x20e   :  { %450 = vst.msk [vmem:[#allocation3 + $0x28] sm:$0xff] %vm444_vm11, %v431_v38  ;;  %vm1465_vm11 = vcmask 253952  }
 0x20f   :  { %459 = vst.msk [vmem:[#allocation3 + $0x2f] sm:$0x1] %vm453_vm12, %v6843_v0  ;;  %v471_v39 = vpop.permute.xlu0 %470  ;;  %vm1835_vm12 = vcmask 261122  }
 0x210   :  { %491 = vst.msk [vmem:[#allocation3 + $0x1f] sm:$0xfe] %vm486_vm13, %v471_v39 }
 0x211   :  { %500 = vst.msk [vmem:[#allocation3 + $0x26] sm:$0x3] %vm495_vm14, %v6843_v0  ;;  %v473_v40 = vpop.permute.xlu1 %472 }
 0x212   :  { %492 = vst.msk [vmem:[#allocation3 + $0x27] sm:$0xfe] %vm486_vm13, %v473_v40  ;;  %vm1837_vm13 = vcmask 254976  }
 0x213   :  { %501 = vst.msk [vmem:[#allocation3 + $0x2e] sm:$0x3] %vm495_vm14, %v6843_v0  ;;  %v513_v41 = vpop.permute.xlu0 %512  ;;  %vm2207_vm14 = vcmask 261123  }
 0x214   :  { %533 = vst.msk [vmem:[#allocation3 + $0x1e] sm:$0xfc] %vm528_vm15, %v513_v41 }
 0x215   :  { %v515_v42 = vpop.permute.xlu1 %514 }
 0x216   :  { %534 = vst.msk [vmem:[#allocation3 + $0x26] sm:$0xfc] %vm528_vm15, %v515_v42 }
 0x217   :  { %v517_v43 = vpop.permute.xlu0 %516 }
 0x218   :  { %535 = vst.msk [vmem:[#allocation3 + $0x2e] sm:$0xfc] %vm528_vm15, %v517_v43 }
 0x219   :  { %v519_v44 = vpop.permute.xlu1 %518 }
 0x21a   :  { %536 = vst.msk [vmem:[#allocation3 + $0x36] sm:$0xfc] %vm528_vm15, %v519_v44  ;;  %vm2209_vm15 = vcmask 256000  }
 0x21b   :  { %v541_v45 = vld [vmem:[#allocation3 + $0x20] sm:$0xff] }
 0x21d   :  { %v542_v46 = vld [vmem:[#allocation3 + $0x28] sm:$0xff] }
 0x21e   :  { %v557_v47 = vpack.c.bf16 %v542_v46, %v541_v45 }
 0x21f   :  { %v543_v48 = vld [vmem:[#allocation3 + $0x30] sm:$0xff] }
 0x220   :  { %5888 = vmatprep.mubr.msk.bf16.mxu1 %vm596_vm0, %v557_v47 }
 0x221   :  { %v544_v49 = vld [vmem:[#allocation3 + $0x38] sm:$0xff] }
 0x222   :  { %v558_v50 = vpack.c.bf16 %v544_v49, %v543_v48 }
 0x224   :  { %5889 = vmatmul.mubr.msk.bf16.gmra.mrb[4].mxu1 %vm596_vm0, %v558_v50  ;;  %vm2579_vm0 = vcmask 261124  }
 0x225   :  { %5908 = vmatprep.mubr.msk.bf16.mxu1 %vm6854_vm1, %v6843_v0 }
 0x22c   :  { %5909 = vmatmul.mubr.bf16.vlgmr.msra.gmra.mrb[8].mxu1 %v6855_v55 }
 0x22d   :  { %5924 = vmatprep.mubr.msk.bf16.mxu1 %vm6854_vm1, %v6843_v0 }
 0x2d8   :  { %v5886_v57 = vpop.f32.mrb[0].mxu1 }
 0x2d9   :  { %v652_v58 = vadd.f32 %v5886_v57, %v5551_v56  ;;  %v643_v59 = vpop.f32.mrb[1].mxu1 }
 0x2da   :  { %v644_v60 = vadd.f32 %v5551_v56, %v643_v59  ;;  %v5887_v61 = vpop.f32.mrb[2].mxu1 }
 0x2db   :  { %v655_v62 = vadd.f32 %v5887_v61, %v5551_v56  ;;  %v646_v63 = vpop.f32.mrb[3].mxu1  ;;  %v676_v2 = vmax.f32 %v652_v58, 0.0 }
 0x2dc   :  { %v647_v1 = vadd.f32 %v5551_v56, %v646_v63  ;;  %v674_v4 = vmax.f32 %v644_v60, 0.0 }
 0x2dd   :  { %v677_v3 = vmax.f32 %v655_v62, 0.0 }
 0x2de   :  { %v675_v5 = vmax.f32 %v647_v1, 0.0 }
 0x2df   :  { %v687_v6 = vpack.c.bf16 %v677_v3, %v676_v2 }
 0x2e0   :  { %v686_v7 = vpack.c.bf16 %v675_v5, %v674_v4 }
 0x2e2   :  { %5896 = vmatprep.mubr.msk.bf16.mxu0 %vm709_vm2, %v686_v7 }
 0x2e3   :  { %5897 = vmatmul.mubr.msk.bf16.vlgmr.msra.gmra.mrb[8].mxu0 %vm709_vm2, %v687_v6 }
 0x2f7   :  { %v5890_v8 = vpop.f32.mrb[4].mxu1 }
 0x2f8   :  { %v668_v9 = vadd.f32 %v5890_v8, %v5551_v56  ;;  %v659_v10 = vpop.f32.mrb[5].mxu1 }
 0x2f9   :  { %v660_v11 = vadd.f32 %v5551_v56, %v659_v10  ;;  %v5891_v12 = vpop.f32.mrb[6].mxu1 }
 0x2fa   :  { %v671_v13 = vadd.f32 %v5891_v12, %v5551_v56  ;;  %v662_v14 = vpop.f32.mrb[7].mxu1  ;;  %v680_v16 = vmax.f32 %v668_v9, 0.0 }
 0x2fb   :  { %v663_v15 = vadd.f32 %v5551_v56, %v662_v14  ;;  %v678_v18 = vmax.f32 %v660_v11, 0.0 }
 0x2fc   :  { %v681_v17 = vmax.f32 %v671_v13, 0.0 }
 0x2fd   :  { %v679_v19 = vmax.f32 %v663_v15, 0.0 }
 0x2fe   :  { %v689_v20 = vpack.c.bf16 %v681_v17, %v680_v16 }
 0x2ff   :  { %v688_v21 = vpack.c.bf16 %v679_v19, %v678_v18  ;;  %v840_v22 = vpop.f32.mrb[8].mxu1 }
 0x300   :  { %v5910_v23 = vpop.f32.mrb[9].mxu1  ;;  %v848_v27 = vrot.slane %v840_v22, 2  ;;  %v849_v30 = vrot.slane %v840_v22, 3  ;;  %v847_v37 = vrot.slane %v840_v22, 1  ;;  %v850_v48 = vrot.slane %v840_v22, 4 }
 0x301   :  { %5900 = vmatprep.mubr.msk.bf16.mxu0 %vm709_vm2, %v688_v21  ;;  %v843_v24 = vpop.f32.mrb[10].mxu1  ;;  %v851_v53 = vrot.slane %v840_v22, 5  ;;  %v852_v54 = vrot.slane %v840_v22, 6  ;;  %v853_v61 = vrot.slane %v840_v22, 7 }
 0x302   :  { %5901 = vmatmul.mubr.msk.bf16.gmra.mrb[12].mxu0 %vm709_vm2, %v689_v20  ;;  %v5911_v25 = vpop.f32.mrb[11].mxu1 }
 0x303   :  { %5916 = vmatprep.mubr.msk.bf16.mxu0 %vm6854_vm1, %v6843_v0 }
 0x3b6   :  { %v5898_v28 = vpop.f32.mrb[8].mxu0 }
 0x3b7   :  { %v7127_v29 = vadd.f32 %v5898_v28, %v5561_v26  ;;  %v756_v31 = vpop.f32.mrb[9].mxu0 }
 0x3b8   :  { %v7129_v32 = vadd.f32 %v5561_v26, %v756_v31  ;;  %v5899_v33 = vpop.f32.mrb[10].mxu0 }
 0x3b9   :  { %v864_v34 = vadd.f32 %v848_v27, %v7127_v29  ;;  %v7132_v35 = vadd.f32 %v5899_v33, %v5561_v26  ;;  %v759_v36 = vpop.f32.mrb[11].mxu0 }
 0x3ba   :  { %v7134_v38 = vadd.f32 %v5561_v26, %v759_v36  ;;  %v862_v39 = vadd.f32 %v840_v22, %v7129_v32 }
 0x3bb   :  { %6245 = vtanh.f32 %v864_v34  ;;  %v865_v40 = vadd.f32 %v849_v30, %v7132_v35  ;;  %v5572_v4 = vmul.f32 -1.442695, %v864_v34 }
 0x3bc   :  { %6247 = vtanh.f32 %v862_v39  ;;  %v863_v41 = vadd.f32 %v847_v37, %v7134_v38  ;;  %v5570_v5 = vmul.f32 -1.442695, %v862_v39 }
 0x3bd   :  { %6249 = vtanh.f32 %v865_v40  ;;  %v5573_v6 = vmul.f32 -1.442695, %v865_v40 }
 0x3be   :  { %6251 = vtanh.f32 %v863_v41  ;;  %v5571_v7 = vmul.f32 -1.442695, %v863_v41 }
 0x3c5   :  { %v6246_v42 = vpop.eup %6245 }
 0x3c6   :  { %v6248_v43 = vpop.eup %6247  ;;  %946 = vrot.lane.b32.xlu1 %v6246_v42, %s6852_s26 }
 0x3c7   :  { %942 = vrot.lane.b32.xlu0 %v6248_v43, %s6852_s26  ;;  %v6250_v44 = vpop.eup %6249 }
 0x3c8   :  { %v6252_v45 = vpop.eup %6251 }
 0x3ca   :  { %948 = vrot.lane.b32.xlu1 %v6250_v44, %s6852_s26 }
 0x3cb   :  { %944 = vrot.lane.b32.xlu0 %v6252_v45, %s6852_s26 }
 0x3d5   :  { %v5902_v46 = vpop.f32.mrb[12].mxu0 }
 0x3d6   :  { %v772_v47 = vpop.f32.mrb[13].mxu0  ;;  %v7143_v49 = vadd.f32 %v5902_v46, %v5561_v26 }
 0x3d7   :  { %v7145_v50 = vadd.f32 %v5561_v26, %v772_v47  ;;  %v5903_v51 = vpop.f32.mrb[14].mxu0 }
 0x3d8   :  { %v775_v52 = vpop.f32.mrb[15].mxu0  ;;  %v7150_v58 = vadd.f32 %v5903_v51, %v5561_v26  ;;  %v868_v60 = vadd.f32 %v852_v54, %v7143_v49 }
 0x3d9   :  { %v7147_v56 = vadd.f32 %v5561_v26, %v775_v52  ;;  %v866_v57 = vadd.f32 %v850_v48, %v7145_v50 }
 0x3da   :  { %v869_v62 = vadd.f32 %v853_v61, %v7150_v58  ;;  %v5576_v26 = vmul.f32 -1.442695, %v868_v60 }
 0x3db   :  { %6253 = vtanh.f32 %v866_v57  ;;  %v867_v59 = vadd.f32 %v851_v53, %v7147_v56  ;;  %v5574_v19 = vmul.f32 -1.442695, %v866_v57 }
 0x3dc   :  { %v5577_v31 = vmul.f32 -1.442695, %v869_v62 }
 0x3dd   :  { %6255 = vtanh.f32 %v867_v59  ;;  %v5575_v24 = vmul.f32 -1.442695, %v867_v59 }
 0x3de   :  { %6257 = vtanh.f32 %v868_v60 }
 0x3df   :  { %6259 = vtanh.f32 %v869_v62 }
 0x3e0   :  { %6261 = vpow2.f32 %v5572_v4 }
 0x3e1   :  { %6263 = vpow2.f32 %v5570_v5 }
 0x3e2   :  { %6265 = vpow2.f32 %v5573_v6 }
 0x3e3   :  { %6267 = vpow2.f32 %v5571_v7 }
 0x3e5   :  { %v6254_v63 = vpop.eup %6253 }
 0x3e6   :  { %950 = vrot.lane.b32.xlu0 %v6254_v63, %s6852_s26 }
 0x3e7   :  { %v6256_v1 = vpop.eup %6255 }
 0x3e8   :  { %v6258_v2 = vpop.eup %6257  ;;  %952 = vrot.lane.b32.xlu1 %v6256_v1, %s6852_s26 }
 0x3e9   :  { %v6260_v3 = vpop.eup %6259 }
 0x3ea   :  { %954 = vrot.lane.b32.xlu0 %v6258_v2, %s6852_s26  ;;  %v6262_v8 = vpop.eup %6261 }
 0x3eb   :  { %v6264_v9 = vpop.eup %6263  ;;  %v896_v10 = vadd.f32 1.0, %v6262_v8 }
 0x3ec   :  { %956 = vrot.lane.b32.xlu1 %v6260_v3, %s6852_s26  ;;  %v6266_v11 = vpop.eup %6265  ;;  %v894_v12 = vadd.f32 1.0, %v6264_v9 }
 0x3ed   :  { %v6268_v13 = vpop.eup %6267  ;;  %6269 = vrcp.f32 %v896_v10  ;;  %v897_v14 = vadd.f32 1.0, %v6266_v11 }
 0x3ee   :  { %6271 = vrcp.f32 %v894_v12  ;;  %v895_v15 = vadd.f32 1.0, %v6268_v13 }
 0x3ef   :  { %6273 = vrcp.f32 %v897_v14 }
 0x3f0   :  { %6275 = vrcp.f32 %v895_v15 }
 0x3f1   :  { %6277 = vpow2.f32 %v5574_v19 }
 0x3f2   :  { %6279 = vpow2.f32 %v5575_v24 }
 0x3f3   :  { %6281 = vpow2.f32 %v5576_v26 }
 0x3f4   :  { %6283 = vpow2.f32 %v5577_v31 }
 0x3f7   :  { %v7159_v16 = vpop.eup %6269 }
 0x3f8   :  { %v7161_v18 = vpop.eup %6271  ;;  %v928_v61 = vmul.f32 0.0, %v7159_v16 }
 0x3f9   :  { %v7166_v23 = vpop.eup %6273  ;;  %v926_v63 = vmul.f32 0.0, %v7161_v18 }
 0x3fa   :  { %v7170_v28 = vpop.eup %6275  ;;  %v929_v4 = vmul.f32 0.0, %v7166_v23 }
 0x3fb   :  { %v6278_v34 = vpop.eup %6277  ;;  %v927_v7 = vmul.f32 0.0, %v7170_v28 }
 0x3fc   :  { %v6280_v36 = vpop.eup %6279  ;;  %v898_v37 = vadd.f32 1.0, %v6278_v34 }
 0x3fd   :  { %v6282_v39 = vpop.eup %6281  ;;  %v899_v40 = vadd.f32 1.0, %v6280_v36  ;;  %v6202_v36 = vld [vmem:[%s6902_s13] sm:$0xff]  }
 0x3fe   :  { %v6284_v41 = vpop.eup %6283  ;;  %6285 = vrcp.f32 %v898_v37  ;;  %v900_v42 = vadd.f32 1.0, %v6282_v39  ;;  %5913 = vmatpush3.bf16.msra.mxu0 %v6202_v36  ;;  %v6203_v39 = vld [vmem:[%s6902_s13 + $0x8] sm:$0xff]  }
 0x3ff   :  { %6287 = vrcp.f32 %v899_v40  ;;  %v901_v43 = vadd.f32 1.0, %v6284_v41  ;;  %5914 = vmatprep.subr.bf16.mxu0 %v6843_v0 }
 0x400   :  { %6289 = vrcp.f32 %v900_v42 }
 0x401   :  { %6291 = vrcp.f32 %v901_v43 }
 0x402   :  { %5915 = vmatpush3.bf16.msra.mxu0 %v6203_v39 }
 0x403   :  { %5928 = vmatprep.subr.bf16.mxu0 %v6843_v0 }
 0x408   :  { %v7175_v44 = vpop.eup %6285 }
 0x409   :  { %v7178_v47 = vpop.eup %6287  ;;  %v930_v14 = vmul.f32 0.0, %v7175_v44 }
 0x40a   :  { %v7181_v51 = vpop.eup %6289  ;;  %v931_v19 = vmul.f32 0.0, %v7178_v47 }
 0x40b   :  { %v7186_v57 = vpop.eup %6291 }
 0x40c   :  { %v933_v26 = vmul.f32 0.0, %v7186_v57 }
 0x438   :  { %v947_v17 = vpop.permute.xlu1 %946 }
 0x439   :  { %v968_v20 = vmul.f32 %v7159_v16, %v947_v17  ;;  %v943_v21 = vpop.permute.xlu0 %942 }
 0x43a   :  { %v966_v22 = vmul.f32 %v7161_v18, %v943_v21  ;;  %v932_v21 = vmul.f32 0.0, %v7181_v51 }
 0x43b   :  { %986 = vrot.lane.b32.xlu1 %v968_v20, %s6850_s24 }
 0x43c   :  { %v949_v25 = vpop.permute.xlu1 %948  ;;  %982 = vrot.lane.b32.xlu0 %v966_v22, %s6850_s24 }
 0x43d   :  { %v969_v27 = vmul.f32 %v7166_v23, %v949_v25  ;;  %v945_v30 = vpop.permute.xlu0 %944 }
 0x43e   :  { %v967_v33 = vmul.f32 %v7170_v28, %v945_v30 }
 0x43f   :  { %988 = vrot.lane.b32.xlu1 %v969_v27, %s6850_s24 }
 0x440   :  { %984 = vrot.lane.b32.xlu0 %v967_v33, %s6850_s24 }
 0x458   :  { %v951_v45 = vpop.permute.xlu0 %950 }
 0x459   :  { %v970_v46 = vmul.f32 %v7175_v44, %v951_v45 }
 0x45a   :  { %v953_v48 = vpop.permute.xlu1 %952 }
 0x45b   :  { %990 = vrot.lane.b32.xlu0 %v970_v46, %s6850_s24  ;;  %v971_v52 = vmul.f32 %v7178_v47, %v953_v48 }
 0x45c   :  { %v955_v53 = vpop.permute.xlu0 %954 }
 0x45d   :  { %v972_v54 = vmul.f32 %v7181_v51, %v955_v53  ;;  %992 = vrot.lane.b32.xlu1 %v971_v52, %s6850_s24 }
 0x45e   :  { %v957_v59 = vpop.permute.xlu1 %956 }
 0x45f   :  { %994 = vrot.lane.b32.xlu0 %v972_v54, %s6850_s24  ;;  %v973_v60 = vmul.f32 %v7186_v57, %v957_v59 }
 0x461   :  { %996 = vrot.lane.b32.xlu1 %v973_v60, %s6850_s24 }
 0x4ad   :  { %v987_v62 = vpop.permute.xlu1 %986 }
 0x4ae   :  { %v7193_v1 = vadd.f32 %v987_v62, %v928_v61  ;;  %v983_v2 = vpop.permute.xlu0 %982 }
 0x4af   :  { %v7195_v3 = vadd.f32 %v983_v2, %v926_v63 }
 0x4b0   :  { %6293 = vtanh.f32 %v7193_v1 }
 0x4b1   :  { %6295 = vtanh.f32 %v7195_v3  ;;  %v989_v5 = vpop.permute.xlu1 %988 }
 0x4b2   :  { %v7200_v6 = vadd.f32 %v989_v5, %v929_v4  ;;  %v985_v8 = vpop.permute.xlu0 %984 }
 0x4b3   :  { %v7204_v9 = vadd.f32 %v985_v8, %v927_v7 }
 0x4b4   :  { %6297 = vtanh.f32 %v7200_v6 }
 0x4b5   :  { %6299 = vtanh.f32 %v7204_v9 }
 0x4ba   :  { %v6294_v10 = vpop.eup %6293 }
 0x4bb   :  { %v6296_v11 = vpop.eup %6295  ;;  %1034 = vrot.lane.b32.xlu1 %v6294_v10, %s6852_s26 }
 0x4bc   :  { %1030 = vrot.lane.b32.xlu0 %v6296_v11, %s6852_s26 }
 0x4be   :  { %v6298_v12 = vpop.eup %6297 }
 0x4bf   :  { %1036 = vrot.lane.b32.xlu1 %v6298_v12, %s6852_s26  ;;  %v6300_v13 = vpop.eup %6299 }
 0x4c0   :  { %1032 = vrot.lane.b32.xlu0 %v6300_v13, %s6852_s26 }
 0x4cd   :  { %v991_v15 = vpop.permute.xlu0 %990 }
 0x4ce   :  { %v7212_v17 = vadd.f32 %v991_v15, %v930_v14 }
 0x4cf   :  { %v993_v20 = vpop.permute.xlu1 %992 }
 0x4d0   :  { %6301 = vtanh.f32 %v7212_v17  ;;  %v7217_v22 = vadd.f32 %v993_v20, %v931_v19 }
 0x4d1   :  { %v995_v24 = vpop.permute.xlu0 %994 }
 0x4d2   :  { %v7219_v25 = vadd.f32 %v995_v24, %v932_v21  ;;  %6303 = vtanh.f32 %v7217_v22 }
 0x4d3   :  { %v997_v27 = vpop.permute.xlu1 %996 }
 0x4d4   :  { %6305 = vtanh.f32 %v7219_v25  ;;  %v7224_v30 = vadd.f32 %v997_v27, %v933_v26 }
 0x4d6   :  { %6307 = vtanh.f32 %v7224_v30 }
 0x4da   :  { %v6302_v31 = vpop.eup %6301 }
 0x4db   :  { %1038 = vrot.lane.b32.xlu0 %v6302_v31, %s6852_s26 }
 0x4dc   :  { %v6304_v33 = vpop.eup %6303 }
 0x4dd   :  { %1040 = vrot.lane.b32.xlu1 %v6304_v33, %s6852_s26 }
 0x4de   :  { %v6306_v34 = vpop.eup %6305 }
 0x4df   :  { %1042 = vrot.lane.b32.xlu0 %v6306_v34, %s6852_s26 }
 0x4e0   :  { %v6308_v37 = vpop.eup %6307 }
 0x4e1   :  { %1044 = vrot.lane.b32.xlu1 %v6308_v37, %s6852_s26 }
 0x52d   :  { %v1035_v40 = vpop.permute.xlu1 %1034 }
 0x52e   :  { %v1031_v41 = vpop.permute.xlu0 %1030  ;;  %v1056_v43 = vmul.f32 %v7159_v16, %v1035_v40 }
 0x52f   :  { %v1054_v52 = vmul.f32 %v7161_v18, %v1031_v41 }
 0x530   :  { %v1073_v54 = vrot.slane %v1056_v43, 6  ;;  %v1101_v2 = vpack.c.bf16 %v1056_v43, %v1056_v43 }
 0x531   :  { %v1037_v42 = vpop.permute.xlu1 %1036 }
 0x532   :  { %v1033_v45 = vpop.permute.xlu0 %1032  ;;  %v1057_v46 = vmul.f32 %v7166_v23, %v1037_v42  ;;  %v1099_v23 = vpack.c.bf16 %v1054_v52, %v1054_v52  ;;  %v1117_v5 = vunpack.c.l.b16 %v1101_v2 }
 0x533   :  { %v1055_v48 = vmul.f32 %v7170_v28, %v1033_v45 }
 0x534   :  { %v1076_v59 = vrot.slane %v1057_v46, 5  ;;  %v1102_v4 = vpack.c.bf16 %v1057_v46, %v1057_v46  ;;  %v1115_v7 = vunpack.c.l.b16 %v1099_v23  ;;  %v1125_v12 = vrot.slane %v1117_v5, 6 }
 0x535   :  { %v1070_v53 = vrot.slane %v1055_v48, 7  ;;  %v1100_v16 = vpack.c.bf16 %v1055_v48, %v1055_v48 }
 0x536   :  { %v1118_v10 = vunpack.c.l.b16 %v1102_v4 }
 0x537   :  { %v1072_v60 = vsel %vm1071_vm3, %v1070_v53, %v1054_v52  ;;  %v1116_v63 = vunpack.c.l.b16 %v1100_v16 }
 0x538   :  { %v1075_v61 = vsel %vm1074_vm4, %v1073_v54, %v1072_v60 }
 0x539   :  { %v1078_v62 = vsel %vm1077_vm5, %v1076_v59, %v1075_v61  ;;  %v1123_v28 = vrot.slane %v1116_v63, 7 }
 0x53b   :  { %v1124_v11 = vsel %vm1071_vm3, %v1123_v28, %v1115_v7 }
 0x53c   :  { %v1126_v21 = vsel %vm1074_vm4, %v1125_v12, %v1124_v11 }
 0x54d   :  { %v1039_v18 = vpop.permute.xlu0 %1038 }
 0x54e   :  { %v1058_v8 = vmul.f32 %v7175_v44, %v1039_v18  ;;  %v1127_v44 = vrot.slane %v1118_v10, 5 }
 0x54f   :  { %v1041_v15 = vpop.permute.xlu1 %1040 }
 0x550   :  { %v1079_v13 = vrot.slane %v1058_v8, 4  ;;  %v1103_v14 = vpack.c.bf16 %v1058_v8, %v1058_v8  ;;  %v1059_v19 = vmul.f32 %v7178_v47, %v1041_v15  ;;  %v1128_v40 = vsel %vm1077_vm5, %v1127_v44, %v1126_v21 }
 0x551   :  { %v1043_v20 = vpop.permute.xlu0 %1042 }
 0x552   :  { %v1081_v24 = vsel %vm1080_vm6, %v1079_v13, %v1078_v62  ;;  %v1119_v26 = vunpack.c.l.b16 %v1103_v14  ;;  %v1060_v27 = vmul.f32 %v7181_v51, %v1043_v20  ;;  %v1082_v31 = vrot.slane %v1059_v19, 3 }
 0x553   :  { %v1104_v33 = vpack.c.bf16 %v1059_v19, %v1059_v19  ;;  %v1045_v39 = vpop.permute.xlu1 %1044 }
 0x554   :  { %v1129_v34 = vrot.slane %v1119_v26, 4  ;;  %v1085_v36 = vrot.slane %v1060_v27, 2  ;;  %v1105_v37 = vpack.c.bf16 %v1060_v27, %v1060_v27  ;;  %v1061_v41 = vmul.f32 %v7186_v57, %v1045_v39 }
 0x555   :  { %v1120_v47 = vunpack.c.l.b16 %v1104_v33  ;;  %v1084_v42 = vsel %vm1083_vm7, %v1082_v31, %v1081_v24 }
 0x556   :  { %v1130_v43 = vsel %vm1080_vm6, %v1129_v34, %v1128_v40  ;;  %v1121_v45 = vunpack.c.l.b16 %v1105_v37  ;;  %v1087_v51 = vsel %vm1086_vm8, %v1085_v36, %v1084_v42  ;;  %v1088_v48 = vrot.slane %v1061_v41, 1 }
 0x557   :  { %v1131_v46 = vrot.slane %v1120_v47, 3  ;;  %v1106_v52 = vpack.c.bf16 %v1061_v41, %v1061_v41 }
 0x558   :  { %v1133_v53 = vrot.slane %v1121_v45, 2  ;;  %v7255_v60 = vsel %vm1089_vm9, %v1088_v48, %v1087_v51 }
 0x559   :  { %v1122_v54 = vunpack.c.l.b16 %v1106_v52  ;;  %v1132_v59 = vsel %vm1083_vm7, %v1131_v46, %v1130_v43 }
 0x55a   :  { %v1134_v57 = vsel %vm1086_vm8, %v1133_v53, %v1132_v59 }
 0x55b   :  { %v1135_v61 = vrot.slane %v1122_v54, 1 }
 0x55d   :  { %v1136_v62 = vsel %vm1089_vm9, %v1135_v61, %v1134_v57 }
 0x55e   :  { %v1137_v16 = vpack.c.b16 %v1136_v62, %v1136_v62 }
 0x560   :  { %1138 = vrot.lane.b32.xlu0 %v1137_v16, %s6850_s24 }
 0x5d2   :  { %v1139_v63 = vpop.permute.xlu0 %1138 }
 0x5d3   :  { %5917 = vmatmul.mubr.msk.bf16.vlgmr.msra.gmra.mrb[16].mxu0 %vm709_vm2, %v1139_v63 }
 0x5d4   :  { %5932 = vmatprep.mubr.msk.bf16.mxu0 %vm6854_vm1, %v6843_v0 }
 0x6a6   :  { %v1189_v2 = vpop.f32.mrb[16].mxu0 }
 0x6a7   :  { %v5918_v23 = vpop.f32.mrb[17].mxu0  ;;  %v1197_v5 = vrot.slane %v1189_v2, 1  ;;  %v1196_v7 = vrot.slane %v1189_v2, 7  ;;  %v1212_v18 = vadd.f32 %v1189_v2, %v7134_v38  ;;  %v1198_v8 = vrot.slane %v1189_v2, 2 }
 0x6a8   :  { %v1192_v4 = vpop.f32.mrb[18].mxu0  ;;  %v1199_v11 = vrot.slane %v1189_v2, 3  ;;  %v1200_v13 = vrot.slane %v1189_v2, 4  ;;  %v1201_v15 = vrot.slane %v1189_v2, 5  ;;  %v1202_v20 = vrot.slane %v1189_v2, 6 }
 0x6a9   :  { %v5919_v28 = vpop.f32.mrb[19].mxu0  ;;  %v1213_v10 = vadd.f32 %v1197_v5, %v7127_v29  ;;  %v1211_v12 = vadd.f32 %v1196_v7, %v7129_v32  ;;  %6309 = vtanh.f32 %v1212_v18  ;;  %v1214_v14 = vadd.f32 %v1198_v8, %v7132_v35 }
 0x6aa   :  { %v1215_v19 = vadd.f32 %v1199_v11, %v7145_v50  ;;  %v1216_v21 = vadd.f32 %v1200_v13, %v7147_v56  ;;  %v1217_v24 = vadd.f32 %v1201_v15, %v7143_v49  ;;  %v1218_v26 = vadd.f32 %v1202_v20, %v7150_v58 }
 0x6ab   :  { %6311 = vtanh.f32 %v1213_v10  ;;  %v5582_v40 = vmul.f32 -1.442695, %v1212_v18  ;;  %v5583_v47 = vmul.f32 -1.442695, %v1213_v10  ;;  %v5581_v41 = vmul.f32 -1.442695, %v1211_v12 }
 0x6ac   :  { %6313 = vtanh.f32 %v1211_v12  ;;  %v5584_v42 = vmul.f32 -1.442695, %v1214_v14  ;;  %v5585_v43 = vmul.f32 -1.442695, %v1215_v19  ;;  %v5586_v45 = vmul.f32 -1.442695, %v1216_v21 }
 0x6ad   :  { %6315 = vtanh.f32 %v1214_v14  ;;  %v5587_v51 = vmul.f32 -1.442695, %v1217_v24  ;;  %v5588_v46 = vmul.f32 -1.442695, %v1218_v26 }
 0x6ae   :  { %6317 = vtanh.f32 %v1215_v19 }
 0x6af   :  { %6319 = vtanh.f32 %v1216_v21 }
 0x6b0   :  { %6321 = vtanh.f32 %v1217_v24 }
 0x6b1   :  { %6323 = vtanh.f32 %v1218_v26 }
 0x6b2   :  { %6325 = vpow2.f32 %v5582_v40 }
 0x6b3   :  { %v6310_v27 = vpop.eup %6309  ;;  %6327 = vpow2.f32 %v5583_v47 }
 0x6b4   :  { %1317 = vrot.lane.b32.xlu1 %v6310_v27, %s6852_s26  ;;  %6329 = vpow2.f32 %v5581_v41 }
 0x6b5   :  { %v6312_v44 = vpop.eup %6311  ;;  %6331 = vpow2.f32 %v5584_v42  ;;  %v1284_v42 = vrot.slane %v7204_v9, 7 }
 0x6b6   :  { %1319 = vrot.lane.b32.xlu0 %v6312_v44, %s6852_s26  ;;  %v6314_v31 = vpop.eup %6313  ;;  %6333 = vpow2.f32 %v5585_v43  ;;  %v1285_v43 = vrot.slane %v7193_v1, 7 }
 0x6b7   :  { %v6316_v33 = vpop.eup %6315  ;;  %6335 = vpow2.f32 %v5586_v45 }
 0x6b8   :  { %1315 = vrot.lane.b32.xlu1 %v6314_v31, %s6852_s26  ;;  %v6318_v34 = vpop.eup %6317  ;;  %6337 = vpow2.f32 %v5587_v51 }
 0x6b9   :  { %v6320_v36 = vpop.eup %6319  ;;  %6339 = vpow2.f32 %v5588_v46 }
 0x6ba   :  { %1321 = vrot.lane.b32.xlu0 %v6316_v33, %s6852_s26  ;;  %v6322_v37 = vpop.eup %6321 }
 0x6bb   :  { %v6324_v39 = vpop.eup %6323 }
 0x6bc   :  { %1323 = vrot.lane.b32.xlu1 %v6318_v34, %s6852_s26  ;;  %v6326_v48 = vpop.eup %6325 }
 0x6bd   :  { %v6328_v52 = vpop.eup %6327  ;;  %v1244_v53 = vadd.f32 1.0, %v6326_v48  ;;  %v1283_v48 = vrot.slane %v7195_v3, 7 }
 0x6be   :  { %1325 = vrot.lane.b32.xlu0 %v6320_v36, %s6852_s26  ;;  %v6330_v54 = vpop.eup %6329  ;;  %v1245_v59 = vadd.f32 1.0, %v6328_v52 }
 0x6bf   :  { %v6332_v57 = vpop.eup %6331  ;;  %6341 = vrcp.f32 %v1244_v53  ;;  %v1243_v61 = vadd.f32 1.0, %v6330_v54  ;;  %v1286_v54 = vrot.slane %v7200_v6, 7 }
 0x6c0   :  { %1327 = vrot.lane.b32.xlu1 %v6322_v37, %s6852_s26  ;;  %v6334_v62 = vpop.eup %6333  ;;  %6343 = vrcp.f32 %v1245_v59  ;;  %v1246_v16 = vadd.f32 1.0, %v6332_v57 }
 0x6c1   :  { %v6336_v63 = vpop.eup %6335  ;;  %6345 = vrcp.f32 %v1243_v61  ;;  %v1247_v2 = vadd.f32 1.0, %v6334_v62  ;;  %v1287_v61 = vrot.slane %v7212_v17, 7 }
 0x6c2   :  { %1329 = vrot.lane.b32.xlu0 %v6324_v39, %s6852_s26  ;;  %v6338_v23 = vpop.eup %6337  ;;  %6347 = vrcp.f32 %v1246_v16  ;;  %v1248_v4 = vadd.f32 1.0, %v6336_v63  ;;  %v1288_v16 = vrot.slane %v7217_v22, 7 }
 0x6c3   :  { %v6340_v28 = vpop.eup %6339  ;;  %6349 = vrcp.f32 %v1247_v2  ;;  %v1249_v5 = vadd.f32 1.0, %v6338_v23 }
 0x6c4   :  { %6351 = vrcp.f32 %v1248_v4  ;;  %v1250_v7 = vadd.f32 1.0, %v6340_v28  ;;  %v1289_v4 = vrot.slane %v7219_v25, 7 }
 0x6c5   :  { %6353 = vrcp.f32 %v1249_v5  ;;  %v1290_v5 = vrot.slane %v7224_v30, 7 }
 0x6c6   :  { %6355 = vrcp.f32 %v1250_v7 }
 0x6c9   :  { %v7279_v18 = vpop.eup %6341 }
 0x6ca   :  { %v7281_v10 = vpop.eup %6343  ;;  %v1300_v45 = vmul.f32 %v7279_v18, %v1284_v42 }
 0x6cb   :  { %v7286_v14 = vpop.eup %6345  ;;  %v1301_v46 = vmul.f32 %v7281_v10, %v1285_v43 }
 0x6cc   :  { %v7289_v19 = vpop.eup %6347  ;;  %v1299_v9 = vmul.f32 %v7286_v14, %v1283_v48 }
 0x6cd   :  { %v7294_v26 = vpop.eup %6349  ;;  %v1302_v57 = vmul.f32 %v7289_v19, %v1286_v54 }
 0x6ce   :  { %v7297_v44 = vpop.eup %6351  ;;  %v1303_v6 = vmul.f32 %v7294_v26, %v1287_v61 }
 0x6cf   :  { %v7302_v36 = vpop.eup %6353  ;;  %v1304_v23 = vmul.f32 %v7297_v44, %v1288_v16 }
 0x6d0   :  { %v7305_v39 = vpop.eup %6355  ;;  %v1305_v22 = vmul.f32 %v7302_v36, %v1289_v4 }
 0x726   :  { %v1318_v8 = vpop.permute.xlu1 %1317 }
 0x727   :  { %v1340_v11 = vmul.f32 %v7279_v18, %v1318_v8 }
 0x728   :  { %v1320_v12 = vpop.permute.xlu0 %1319 }
 0x729   :  { %v1341_v13 = vmul.f32 %v7281_v10, %v1320_v12  ;;  %1357 = vrot.lane.b32.xlu1 %v1340_v11, %s6850_s24  ;;  %v1306_v11 = vmul.f32 %v7305_v39, %v1290_v5 }
 0x72a   :  { %v1316_v15 = vpop.permute.xlu1 %1315 }
 0x72b   :  { %1359 = vrot.lane.b32.xlu0 %v1341_v13, %s6850_s24  ;;  %v1339_v20 = vmul.f32 %v7286_v14, %v1316_v15 }
 0x72c   :  { %v1322_v21 = vpop.permute.xlu0 %1321 }
 0x72d   :  { %v1342_v24 = vmul.f32 %v7289_v19, %v1322_v21  ;;  %1355 = vrot.lane.b32.xlu1 %v1339_v20, %s6850_s24 }
 0x72e   :  { %v1324_v27 = vpop.permute.xlu1 %1323 }
 0x72f   :  { %1361 = vrot.lane.b32.xlu0 %v1342_v24, %s6850_s24  ;;  %v1343_v31 = vmul.f32 %v7294_v26, %v1324_v27 }
 0x730   :  { %v1326_v33 = vpop.permute.xlu0 %1325 }
 0x731   :  { %v1344_v34 = vmul.f32 %v7297_v44, %v1326_v33  ;;  %1363 = vrot.lane.b32.xlu1 %v1343_v31, %s6850_s24  ;;  %v6204_v33 = vld [vmem:[%s6902_s13] sm:$0xff]  }
 0x732   :  { %v1328_v37 = vpop.permute.xlu1 %1327  ;;  %5921 = vmatpush3.bf16.msra.mxu1 %v6204_v33 }
 0x733   :  { %1365 = vrot.lane.b32.xlu0 %v1344_v34, %s6850_s24  ;;  %v1345_v40 = vmul.f32 %v7302_v36, %v1328_v37  ;;  %v6205_v37 = vld [vmem:[%s6902_s13 + $0x8] sm:$0xff]   ;;  %5922 = vmatprep.subr.bf16.mxu1 %v6843_v0 }
 0x734   :  { %v1330_v47 = vpop.permute.xlu0 %1329 }
 0x735   :  { %v1346_v41 = vmul.f32 %v7305_v39, %v1330_v47  ;;  %1367 = vrot.lane.b32.xlu1 %v1345_v40, %s6850_s24 }
 0x736   :  { %5923 = vmatpush3.bf16.msra.mxu1 %v6205_v37 }
 0x737   :  { %1369 = vrot.lane.b32.xlu0 %v1346_v41, %s6850_s24  ;;  %5936 = vmatprep.subr.bf16.mxu1 %v6843_v0 }
 0x79b   :  { %v1358_v51 = vpop.permute.xlu1 %1357 }
 0x79c   :  { %v7316_v52 = vadd.f32 %v1358_v51, %v1300_v45 }
 0x79d   :  { %v1360_v53 = vpop.permute.xlu0 %1359 }
 0x79e   :  { %v7319_v59 = vadd.f32 %v1360_v53, %v1301_v46  ;;  %6357 = vtanh.f32 %v7316_v52 }
 0x79f   :  { %v1356_v1 = vpop.permute.xlu1 %1355 }
 0x7a0   :  { %6359 = vtanh.f32 %v7319_v59  ;;  %v7326_v62 = vadd.f32 %v1356_v1, %v1299_v9 }
 0x7a1   :  { %v1362_v3 = vpop.permute.xlu0 %1361 }
 0x7a2   :  { %v7329_v63 = vadd.f32 %v1362_v3, %v1302_v57  ;;  %6361 = vtanh.f32 %v7326_v62 }
 0x7a3   :  { %v1364_v2 = vpop.permute.xlu1 %1363 }
 0x7a4   :  { %6363 = vtanh.f32 %v7329_v63  ;;  %v7336_v28 = vadd.f32 %v1364_v2, %v1303_v6 }
 0x7a5   :  { %v1366_v17 = vpop.permute.xlu0 %1365 }
 0x7a6   :  { %v7339_v7 = vadd.f32 %v1366_v17, %v1304_v23  ;;  %6365 = vtanh.f32 %v7336_v28 }
 0x7a7   :  { %v1368_v8 = vpop.permute.xlu1 %1367 }
 0x7a8   :  { %6367 = vtanh.f32 %v7339_v7  ;;  %v6358_v12 = vpop.eup %6357  ;;  %v7345_v13 = vadd.f32 %v1368_v8, %v1305_v22 }
 0x7a9   :  { %v1370_v25 = vpop.permute.xlu0 %1369  ;;  %1405 = vrot.lane.b32.xlu1 %v6358_v12, %s6852_s26 }
 0x7aa   :  { %v6360_v15 = vpop.eup %6359  ;;  %v7347_v20 = vadd.f32 %v1370_v25, %v1306_v11  ;;  %6369 = vtanh.f32 %v7345_v13 }
 0x7ab   :  { %1407 = vrot.lane.b32.xlu0 %v6360_v15, %s6852_s26 }
 0x7ac   :  { %6371 = vtanh.f32 %v7347_v20  ;;  %v6362_v30 = vpop.eup %6361 }
 0x7ad   :  { %1403 = vrot.lane.b32.xlu1 %v6362_v30, %s6852_s26 }
 0x7ae   :  { %v6364_v21 = vpop.eup %6363 }
 0x7af   :  { %1409 = vrot.lane.b32.xlu0 %v6364_v21, %s6852_s26 }
 0x7b0   :  { %v6366_v24 = vpop.eup %6365 }
 0x7b1   :  { %1411 = vrot.lane.b32.xlu1 %v6366_v24, %s6852_s26 }
 0x7b2   :  { %v6368_v27 = vpop.eup %6367 }
 0x7b3   :  { %1413 = vrot.lane.b32.xlu0 %v6368_v27, %s6852_s26 }
 0x7b4   :  { %v6370_v31 = vpop.eup %6369 }
 0x7b5   :  { %1415 = vrot.lane.b32.xlu1 %v6370_v31, %s6852_s26 }
 0x7b6   :  { %v6372_v34 = vpop.eup %6371 }
 0x7b7   :  { %1417 = vrot.lane.b32.xlu0 %v6372_v34, %s6852_s26 }
 0x81b   :  { %v1406_v40 = vpop.permute.xlu1 %1405 }
 0x81c   :  { %v1428_v47 = vmul.f32 %v7279_v18, %v1406_v40 }
 0x81d   :  { %v1408_v41 = vpop.permute.xlu0 %1407 }
 0x81e   :  { %v1429_v42 = vmul.f32 %v7281_v10, %v1408_v41  ;;  %v1443_v46 = vrot.slane %v1428_v47, 7  ;;  %v1472_v9 = vpack.c.bf16 %v1428_v47, %v1428_v47 }
 0x81f   :  { %v1404_v51 = vpop.permute.xlu1 %1403 }
 0x820   :  { %v1445_v43 = vrot.slane %v1429_v42, 6  ;;  %v1473_v45 = vpack.c.bf16 %v1429_v42, %v1429_v42  ;;  %v1427_v48 = vmul.f32 %v7286_v14, %v1404_v51 }
 0x821   :  { %v1410_v53 = vpop.permute.xlu0 %1409 }
 0x822   :  { %v1430_v54 = vmul.f32 %v7289_v19, %v1410_v53  ;;  %v1444_v1 = vsel %vm1074_vm4, %v1443_v46, %v1427_v48  ;;  %v1471_v57 = vpack.c.bf16 %v1427_v48, %v1427_v48  ;;  %v1489_v61 = vunpack.c.l.b16 %v1473_v45 }
 0x823   :  { %v1446_v3 = vsel %vm1077_vm5, %v1445_v43, %v1444_v1  ;;  %v1412_v6 = vpop.permute.xlu1 %1411  ;;  %v1488_v19 = vunpack.c.l.b16 %v1472_v9 }
 0x824   :  { %v1447_v18 = vrot.slane %v1430_v54, 5  ;;  %v1474_v16 = vpack.c.bf16 %v1430_v54, %v1430_v54  ;;  %v1487_v10 = vunpack.c.l.b16 %v1471_v57  ;;  %v1431_v2 = vmul.f32 %v7294_v26, %v1412_v6 }
 0x825   :  { %v1414_v23 = vpop.permute.xlu0 %1413  ;;  %v1497_v11 = vrot.slane %v1489_v61, 7 }
 0x826   :  { %v1448_v4 = vsel %vm1080_vm6, %v1447_v18, %v1446_v3  ;;  %v1490_v14 = vunpack.c.l.b16 %v1474_v16  ;;  %v1432_v17 = vmul.f32 %v7297_v44, %v1414_v23  ;;  %v1495_v5 = vrot.slane %v1487_v10, 1 }
 0x827   :  { %v1449_v22 = vrot.slane %v1431_v2, 4  ;;  %v1475_v8 = vpack.c.bf16 %v1431_v2, %v1431_v2  ;;  %v1416_v30 = vpop.permute.xlu1 %1415 }
 0x828   :  { %v1499_v12 = vrot.slane %v1490_v14, 6  ;;  %v1451_v25 = vrot.slane %v1432_v17, 3  ;;  %v1476_v15 = vpack.c.bf16 %v1432_v17, %v1432_v17  ;;  %v1496_v21 = vsel %vm1071_vm3, %v1488_v19, %v1495_v5 }
 0x829   :  { %v1491_v24 = vunpack.c.l.b16 %v1475_v8  ;;  %v1433_v26 = vmul.f32 %v7302_v36, %v1416_v30  ;;  %v1418_v27 = vpop.permute.xlu0 %1417  ;;  %v1450_v31 = vsel %vm1083_vm7, %v1449_v22, %v1448_v4  ;;  %v1498_v33 = vsel %vm1074_vm4, %v1497_v11, %v1496_v21 }
 0x82a   :  { %v1492_v44 = vunpack.c.l.b16 %v1476_v15  ;;  %v7377_v34 = vmul.f32 %v7305_v39, %v1418_v27  ;;  %v1452_v37 = vsel %vm1086_vm8, %v1451_v25, %v1450_v31  ;;  %v1500_v40 = vsel %vm1077_vm5, %v1499_v12, %v1498_v33 }
 0x82b   :  { %v1501_v47 = vrot.slane %v1491_v24, 5  ;;  %v1453_v41 = vrot.slane %v1433_v26, 2  ;;  %v1477_v42 = vpack.c.bf16 %v1433_v26, %v1433_v26 }
 0x82c   :  { %v1503_v43 = vrot.slane %v1492_v44, 4  ;;  %v1478_v36 = vpack.c.bf16 %v7377_v34, %v7377_v34 }
 0x82d   :  { %v1502_v45 = vsel %vm1080_vm6, %v1501_v47, %v1500_v40  ;;  %v1493_v51 = vunpack.c.l.b16 %v1477_v42  ;;  %v7385_v46 = vsel %vm1089_vm9, %v1453_v41, %v1452_v37 }
 0x82e   :  { %v1494_v48 = vunpack.c.l.b16 %v1478_v36  ;;  %v1504_v39 = vsel %vm1083_vm7, %v1503_v43, %v1502_v45 }
 0x82f   :  { %v1505_v53 = vrot.slane %v1493_v51, 3 }
 0x830   :  { %v1507_v54 = vrot.slane %v1494_v48, 2 }
 0x831   :  { %v1506_v9 = vsel %vm1086_vm8, %v1505_v53, %v1504_v39 }
 0x832   :  { %v1508_v1 = vsel %vm1089_vm9, %v1507_v54, %v1506_v9 }
 0x833   :  { %v1509_v57 = vpack.c.b16 %v1508_v1, %v1508_v1 }
 0x835   :  { %1510 = vrot.lane.b32.xlu1 %v1509_v57, %s6850_s24 }
 0x8a7   :  { %v1511_v61 = vpop.permute.xlu1 %1510 }
 0x8a8   :  { %5925 = vmatmul.mubr.msk.bf16.vlgmr.msra.gmra.mrb[12].mxu1 %vm709_vm2, %v1511_v61 }
 0x8a9   :  { %5940 = vmatprep.mubr.msk.bf16.mxu1 %vm6854_vm1, %v6843_v0 }
 0x97b   :  { %v1561_v3 = vpop.f32.mrb[12].mxu1 }
 0x97c   :  { %v1568_v18 = vrot.slane %v1561_v3, 6  ;;  %v5926_v16 = vpop.f32.mrb[13].mxu1  ;;  %v1570_v23 = vrot.slane %v1561_v3, 1  ;;  %v1569_v4 = vrot.slane %v1561_v3, 7  ;;  %v1585_v14 = vadd.f32 %v1561_v3, %v7127_v29 }
 0x97d   :  { %v1564_v6 = vpop.f32.mrb[14].mxu1  ;;  %v1571_v17 = vrot.slane %v1561_v3, 2  ;;  %v1572_v22 = vrot.slane %v1561_v3, 3  ;;  %v1573_v11 = vrot.slane %v1561_v3, 4  ;;  %v1574_v25 = vrot.slane %v1561_v3, 5 }
 0x97e   :  { %v1583_v10 = vadd.f32 %v1568_v18, %v7129_v32  ;;  %v5927_v2 = vpop.f32.mrb[15].mxu1  ;;  %v1586_v19 = vadd.f32 %v1570_v23, %v7132_v35  ;;  %v1584_v8 = vadd.f32 %v1569_v4, %v7134_v38  ;;  %v5594_v47 = vmul.f32 -1.442695, %v1585_v14 }
 0x97f   :  { %v1587_v12 = vadd.f32 %v1571_v17, %v7145_v50  ;;  %v1588_v15 = vadd.f32 %v1572_v22, %v7147_v56  ;;  %v1589_v30 = vadd.f32 %v1573_v11, %v7143_v49  ;;  %v1590_v21 = vadd.f32 %v1574_v25, %v7150_v58 }
 0x980   :  { %6373 = vtanh.f32 %v1583_v10  ;;  %v5592_v40 = vmul.f32 -1.442695, %v1583_v10  ;;  %v5595_v41 = vmul.f32 -1.442695, %v1586_v19  ;;  %v5593_v43 = vmul.f32 -1.442695, %v1584_v8 }
 0x981   :  { %6375 = vtanh.f32 %v1585_v14  ;;  %v5596_v36 = vmul.f32 -1.442695, %v1587_v12  ;;  %v5597_v51 = vmul.f32 -1.442695, %v1588_v15  ;;  %v5598_v48 = vmul.f32 -1.442695, %v1589_v30 }
 0x982   :  { %6377 = vtanh.f32 %v1586_v19  ;;  %v5599_v39 = vmul.f32 -1.442695, %v1590_v21 }
 0x983   :  { %6379 = vtanh.f32 %v1584_v8 }
 0x984   :  { %6381 = vtanh.f32 %v1587_v12 }
 0x985   :  { %6383 = vtanh.f32 %v1588_v15 }
 0x986   :  { %6385 = vtanh.f32 %v1589_v30 }
 0x987   :  { %6387 = vtanh.f32 %v1590_v21 }
 0x988   :  { %6389 = vpow2.f32 %v5592_v40 }
 0x989   :  { %6391 = vpow2.f32 %v5594_v47 }
 0x98a   :  { %v6374_v5 = vpop.eup %6373  ;;  %6393 = vpow2.f32 %v5595_v41 }
 0x98b   :  { %1687 = vrot.lane.b32.xlu0 %v6374_v5, %s6852_s26  ;;  %v6376_v24 = vpop.eup %6375  ;;  %6395 = vpow2.f32 %v5593_v43 }
 0x98c   :  { %v6378_v26 = vpop.eup %6377  ;;  %1691 = vrot.lane.b32.xlu1 %v6376_v24, %s6852_s26  ;;  %6397 = vpow2.f32 %v5596_v36  ;;  %v1655_v36 = vrot.slane %v7326_v62, 7 }
 0x98d   :  { %v6380_v27 = vpop.eup %6379 }
 0x98e   :  { %v6382_v31 = vpop.eup %6381 }
 0x98f   :  { %1693 = vrot.lane.b32.xlu0 %v6378_v26, %s6852_s26  ;;  %v6384_v33 = vpop.eup %6383 }
 0x990   :  { %1689 = vrot.lane.b32.xlu1 %v6380_v27, %s6852_s26  ;;  %v6386_v44 = vpop.eup %6385 }
 0x991   :  { %v6388_v37 = vpop.eup %6387 }
 0x992   :  { %v6390_v42 = vpop.eup %6389 }
 0x993   :  { %1695 = vrot.lane.b32.xlu0 %v6382_v31, %s6852_s26  ;;  %v1615_v45 = vadd.f32 1.0, %v6390_v42  ;;  %v6392_v53 = vpop.eup %6391 }
 0x994   :  { %1697 = vrot.lane.b32.xlu1 %v6384_v33, %s6852_s26  ;;  %v6394_v54 = vpop.eup %6393  ;;  %v1617_v9 = vadd.f32 1.0, %v6392_v53  ;;  %v1658_v53 = vrot.slane %v7329_v63, 7 }
 0x995   :  { %6399 = vrcp.f32 %v1615_v45  ;;  %v6396_v1 = vpop.eup %6395  ;;  %v1618_v57 = vadd.f32 1.0, %v6394_v54 }
 0x996   :  { %6401 = vpow2.f32 %v5597_v51  ;;  %v6398_v61 = vpop.eup %6397  ;;  %v1616_v16 = vadd.f32 1.0, %v6396_v1 }
 0x997   :  { %1699 = vrot.lane.b32.xlu0 %v6386_v44, %s6852_s26  ;;  %6403 = vpow2.f32 %v5598_v48  ;;  %v1619_v2 = vadd.f32 1.0, %v6398_v61 }
 0x998   :  { %1701 = vrot.lane.b32.xlu1 %v6388_v37, %s6852_s26  ;;  %6405 = vpow2.f32 %v5599_v39  ;;  %v1657_v39 = vrot.slane %v7319_v59, 7 }
 0x999   :  { %6407 = vrcp.f32 %v1617_v9 }
 0x99a   :  { %6409 = vrcp.f32 %v1618_v57  ;;  %v1656_v57 = vrot.slane %v7316_v52, 7  ;;  %v1660_v52 = vrot.slane %v7339_v7, 7 }
 0x99b   :  { %6411 = vrcp.f32 %v1616_v16 }
 0x99c   :  { %6413 = vrcp.f32 %v1619_v2 }
 0x99f   :  { %v7410_v3 = vpop.eup %6399 }
 0x9a0   :  { %v6402_v6 = vpop.eup %6401  ;;  %v1671_v45 = vmul.f32 %v7410_v3, %v1655_v36 }
 0x9a1   :  { %v6404_v23 = vpop.eup %6403  ;;  %v1620_v4 = vadd.f32 1.0, %v6402_v6 }
 0x9a2   :  { %v6406_v14 = vpop.eup %6405  ;;  %v1621_v17 = vadd.f32 1.0, %v6404_v23 }
 0x9a3   :  { %6415 = vrcp.f32 %v1620_v4  ;;  %v1622_v19 = vadd.f32 1.0, %v6406_v14  ;;  %v7414_v5 = vpop.eup %6407 }
 0x9a4   :  { %6417 = vrcp.f32 %v1621_v17  ;;  %v7416_v8 = vpop.eup %6409  ;;  %v1673_v54 = vmul.f32 %v7414_v5, %v1657_v39 }
 0x9a5   :  { %6419 = vrcp.f32 %v1622_v19  ;;  %v7421_v15 = vpop.eup %6411  ;;  %v1674_v1 = vmul.f32 %v7416_v8, %v1658_v53 }
 0x9a6   :  { %v7424_v21 = vpop.eup %6413  ;;  %v1672_v59 = vmul.f32 %v7421_v15, %v1656_v57 }
 0x9ad   :  { %v7429_v31 = vpop.eup %6415 }
 0x9ae   :  { %v7432_v44 = vpop.eup %6417  ;;  %v1676_v14 = vmul.f32 %v7429_v31, %v1660_v52 }
 0x9af   :  { %v7437_v41 = vpop.eup %6419 }
 0x9fd   :  { %v1688_v18 = vpop.permute.xlu0 %1687 }
 0x9fe   :  { %v1711_v10 = vmul.f32 %v7410_v3, %v1688_v18  ;;  %v1692_v22 = vpop.permute.xlu1 %1691  ;;  %v1659_v18 = vrot.slane %v7336_v28, 7  ;;  %v1661_v28 = vrot.slane %v7345_v13, 7 }
 0x9ff   :  { %v1713_v11 = vmul.f32 %v7414_v5, %v1692_v22  ;;  %v1662_v22 = vrot.slane %v7347_v20, 7 }
 0xa00   :  { %1727 = vrot.lane.b32.xlu0 %v1711_v10, %s6850_s24  ;;  %v1675_v10 = vmul.f32 %v7424_v21, %v1659_v18  ;;  %v1677_v19 = vmul.f32 %v7432_v44, %v1661_v28 }
 0xa01   :  { %v1694_v12 = vpop.permute.xlu0 %1693  ;;  %1731 = vrot.lane.b32.xlu1 %v1713_v11, %s6850_s24  ;;  %v1678_v13 = vmul.f32 %v7437_v41, %v1662_v22 }
 0xa02   :  { %v1714_v25 = vmul.f32 %v7416_v8, %v1694_v12  ;;  %v1690_v30 = vpop.permute.xlu1 %1689 }
 0xa03   :  { %v1712_v24 = vmul.f32 %v7421_v15, %v1690_v30 }
 0xa04   :  { %1733 = vrot.lane.b32.xlu0 %v1714_v25, %s6850_s24 }
 0xa05   :  { %v1696_v26 = vpop.permute.xlu0 %1695  ;;  %1729 = vrot.lane.b32.xlu1 %v1712_v24, %s6850_s24 }
 0xa06   :  { %v1715_v27 = vmul.f32 %v7424_v21, %v1696_v26  ;;  %v1698_v33 = vpop.permute.xlu1 %1697 }
 0xa07   :  { %v1716_v37 = vmul.f32 %v7429_v31, %v1698_v33 }
 0xa08   :  { %1735 = vrot.lane.b32.xlu0 %v1715_v27, %s6850_s24 }
 0xa09   :  { %v1700_v40 = vpop.permute.xlu0 %1699  ;;  %1737 = vrot.lane.b32.xlu1 %v1716_v37, %s6850_s24 }
 0xa0a   :  { %v1717_v47 = vmul.f32 %v7432_v44, %v1700_v40  ;;  %v1702_v42 = vpop.permute.xlu1 %1701  ;;  %v6206_v40 = vld [vmem:[%s6902_s13] sm:$0xff]  }
 0xa0b   :  { %v1718_v43 = vmul.f32 %v7437_v41, %v1702_v42  ;;  %5929 = vmatpush3.bf16.msra.mxu0 %v6206_v40  ;;  %v6207_v42 = vld [vmem:[%s6902_s13 + $0x8] sm:$0xff]  }
 0xa0c   :  { %1739 = vrot.lane.b32.xlu0 %v1717_v47, %s6850_s24  ;;  %5930 = vmatprep.subr.bf16.mxu0 %v6843_v0 }
 0xa0d   :  { %1741 = vrot.lane.b32.xlu1 %v1718_v43, %s6850_s24 }
 0xa0f   :  { %5931 = vmatpush3.bf16.msra.mxu0 %v6207_v42 }
 0xa10   :  { %5944 = vmatprep.subr.bf16.mxu0 %v6843_v0 }
 0xa72   :  { %v1728_v51 = vpop.permute.xlu0 %1727 }
 0xa73   :  { %v7444_v48 = vadd.f32 %v1728_v51, %v1671_v45  ;;  %v1732_v9 = vpop.permute.xlu1 %1731 }
 0xa74   :  { %v7452_v61 = vadd.f32 %v1732_v9, %v1673_v54 }
 0xa75   :  { %6421 = vtanh.f32 %v7444_v48 }
 0xa76   :  { %v1734_v62 = vpop.permute.xlu0 %1733  ;;  %6423 = vtanh.f32 %v7452_v61 }
 0xa77   :  { %v7455_v16 = vadd.f32 %v1734_v62, %v1674_v1  ;;  %v1730_v63 = vpop.permute.xlu1 %1729 }
 0xa78   :  { %v7463_v2 = vadd.f32 %v1730_v63, %v1672_v59 }
 0xa79   :  { %6425 = vtanh.f32 %v7455_v16 }
 0xa7a   :  { %v1736_v23 = vpop.permute.xlu0 %1735  ;;  %6427 = vtanh.f32 %v7463_v2 }
 0xa7b   :  { %v7466_v4 = vadd.f32 %v1736_v23, %v1675_v10  ;;  %v1738_v17 = vpop.permute.xlu1 %1737 }
 0xa7c   :  { %v7473_v11 = vadd.f32 %v1738_v17, %v1676_v14 }
 0xa7d   :  { %6429 = vtanh.f32 %v7466_v4 }
 0xa7e   :  { %v1740_v7 = vpop.permute.xlu0 %1739  ;;  %6431 = vtanh.f32 %v7473_v11 }
 0xa7f   :  { %v6422_v6 = vpop.eup %6421  ;;  %v7475_v12 = vadd.f32 %v1740_v7, %v1677_v19  ;;  %v1742_v25 = vpop.permute.xlu1 %1741 }
 0xa80   :  { %1775 = vrot.lane.b32.xlu0 %v6422_v6, %s6852_s26  ;;  %v6424_v30 = vpop.eup %6423  ;;  %v7480_v24 = vadd.f32 %v1742_v25, %v1678_v13 }
 0xa81   :  { %6433 = vtanh.f32 %v7475_v12  ;;  %1779 = vrot.lane.b32.xlu1 %v6424_v30, %s6852_s26 }
 0xa82   :  { %6435 = vtanh.f32 %v7480_v24 }
 0xa83   :  { %v6426_v26 = vpop.eup %6425 }
 0xa84   :  { %1781 = vrot.lane.b32.xlu0 %v6426_v26, %s6852_s26  ;;  %v6428_v20 = vpop.eup %6427 }
 0xa85   :  { %1777 = vrot.lane.b32.xlu1 %v6428_v20, %s6852_s26 }
 0xa87   :  { %v6430_v27 = vpop.eup %6429 }
 0xa88   :  { %1783 = vrot.lane.b32.xlu0 %v6430_v27, %s6852_s26  ;;  %v6432_v33 = vpop.eup %6431 }
 0xa89   :  { %1785 = vrot.lane.b32.xlu1 %v6432_v33, %s6852_s26 }
 0xa8b   :  { %v6434_v37 = vpop.eup %6433 }
 0xa8c   :  { %1787 = vrot.lane.b32.xlu0 %v6434_v37, %s6852_s26  ;;  %v6436_v47 = vpop.eup %6435 }
 0xa8d   :  { %1789 = vrot.lane.b32.xlu1 %v6436_v47, %s6852_s26 }
 0xaf2   :  { %v1776_v43 = vpop.permute.xlu0 %1775 }
 0xaf3   :  { %v1799_v36 = vmul.f32 %v7410_v3, %v1776_v43  ;;  %v1780_v45 = vpop.permute.xlu1 %1779 }
 0xaf4   :  { %v1801_v39 = vmul.f32 %v7414_v5, %v1780_v45 }
 0xaf5   :  { %v1843_v51 = vpack.c.bf16 %v1799_v36, %v1799_v36 }
 0xaf6   :  { %v1782_v53 = vpop.permute.xlu0 %1781  ;;  %v1845_v62 = vpack.c.bf16 %v1801_v39, %v1801_v39  ;;  %v1817_v23 = vrot.slane %v1801_v39, 6 }
 0xaf7   :  { %v1802_v54 = vmul.f32 %v7416_v8, %v1782_v53  ;;  %v1859_v9 = vunpack.c.l.b16 %v1843_v51  ;;  %v1778_v1 = vpop.permute.xlu1 %1777 }
 0xaf8   :  { %v1800_v18 = vmul.f32 %v7421_v15, %v1778_v1  ;;  %v1861_v19 = vunpack.c.l.b16 %v1845_v62 }
 0xaf9   :  { %v1846_v57 = vpack.c.bf16 %v1802_v54, %v1802_v54  ;;  %v1819_v3 = vrot.slane %v1802_v54, 5  ;;  %v1867_v28 = vrot.slane %v1859_v9, 2 }
 0xafa   :  { %v1784_v6 = vpop.permute.xlu0 %1783  ;;  %v1815_v10 = vrot.slane %v1800_v18, 7  ;;  %v1844_v52 = vpack.c.bf16 %v1800_v18, %v1800_v18 }
 0xafb   :  { %v1862_v59 = vunpack.c.l.b16 %v1846_v57  ;;  %v1803_v63 = vmul.f32 %v7424_v21, %v1784_v6  ;;  %v1786_v14 = vpop.permute.xlu1 %1785 }
 0xafc   :  { %v1816_v8 = vsel %vm1077_vm5, %v1815_v10, %v1799_v36  ;;  %v1860_v22 = vunpack.c.l.b16 %v1844_v52  ;;  %v1804_v7 = vmul.f32 %v7429_v31, %v1786_v14 }
 0xafd   :  { %v1821_v5 = vrot.slane %v1803_v63, 4  ;;  %v1847_v17 = vpack.c.bf16 %v1803_v63, %v1803_v63  ;;  %v1871_v15 = vrot.slane %v1862_v59, 7  ;;  %v1818_v21 = vsel %vm1080_vm6, %v1817_v23, %v1816_v8 }
 0xafe   :  { %v1788_v13 = vpop.permute.xlu0 %1787  ;;  %v1868_v26 = vrot.slane %v1860_v22, 1  ;;  %v1823_v20 = vrot.slane %v1804_v7, 3  ;;  %v1848_v27 = vpack.c.bf16 %v1804_v7, %v1804_v7  ;;  %v1820_v33 = vsel %vm1083_vm7, %v1819_v3, %v1818_v21 }
 0xaff   :  { %v1863_v25 = vunpack.c.l.b16 %v1847_v17  ;;  %v1805_v30 = vmul.f32 %v7432_v44, %v1788_v13  ;;  %v1790_v40 = vpop.permute.xlu1 %1789  ;;  %v1822_v43 = vsel %vm1086_vm8, %v1821_v5, %v1820_v33 }
 0xb00   :  { %v1869_v31 = vsel %vm1071_vm3, %v1868_v26, %v1867_v28  ;;  %v1864_v36 = vunpack.c.l.b16 %v1848_v27  ;;  %v1806_v45 = vmul.f32 %v7437_v41, %v1790_v40  ;;  %v7508_v44 = vsel %vm1089_vm9, %v1823_v20, %v1822_v43 }
 0xb01   :  { %v1873_v37 = vrot.slane %v1863_v25, 6  ;;  %v1825_v47 = vrot.slane %v1805_v30, 2  ;;  %v1849_v42 = vpack.c.bf16 %v1805_v30, %v1805_v30  ;;  %v1870_v51 = vsel %vm1074_vm4, %v1861_v19, %v1869_v31 }
 0xb02   :  { %v1872_v53 = vsel %vm1077_vm5, %v1871_v15, %v1870_v51  ;;  %v1875_v54 = vrot.slane %v1864_v36, 5  ;;  %v1826_v9 = vrot.slane %v1806_v45, 1  ;;  %v1850_v1 = vpack.c.bf16 %v1806_v45, %v1806_v45 }
 0xb03   :  { %v1865_v39 = vunpack.c.l.b16 %v1849_v42  ;;  %v1874_v57 = vsel %vm1080_vm6, %v1873_v37, %v1872_v53 }
 0xb04   :  { %v1866_v18 = vunpack.c.l.b16 %v1850_v1  ;;  %v1876_v6 = vsel %vm1083_vm7, %v1875_v54, %v1874_v57  ;;  %v7515_v59 = vsel %vm1071_vm3, %v1826_v9, %v1825_v47 }
 0xb05   :  { %v1877_v62 = vrot.slane %v1865_v39, 4 }
 0xb06   :  { %v1879_v63 = vrot.slane %v1866_v18, 3 }
 0xb07   :  { %v1878_v41 = vsel %vm1086_vm8, %v1877_v62, %v1876_v6 }
 0xb08   :  { %v1880_v10 = vsel %vm1089_vm9, %v1879_v63, %v1878_v41 }
 0xb09   :  { %v1881_v52 = vpack.c.b16 %v1880_v10, %v1880_v10 }
 0xb0b   :  { %1882 = vrot.lane.b32.xlu0 %v1881_v52, %s6850_s24 }
 0xb7d   :  { %v1883_v3 = vpop.permute.xlu0 %1882 }
 0xb7e   :  { %5933 = vmatmul.mubr.msk.bf16.vlgmr.msra.gmra.mrb[20].mxu0 %vm709_vm2, %v1883_v3 }
 0xb7f   :  { %5948 = vmatprep.mubr.msk.bf16.mxu0 %vm6854_vm1, %v6843_v0 }
 0xc51   :  { %v1933_v23 = vpop.f32.mrb[20].mxu0 }
 0xc52   :  { %v5934_v28 = vpop.f32.mrb[21].mxu0  ;;  %v1941_v17 = vrot.slane %v1933_v23, 6  ;;  %v1943_v19 = vrot.slane %v1933_v23, 1  ;;  %v1940_v22 = vrot.slane %v1933_v23, 5  ;;  %v1958_v7 = vadd.f32 %v1933_v23, %v7132_v35 }
 0xc53   :  { %v1936_v14 = vpop.f32.mrb[22].mxu0  ;;  %v1944_v13 = vrot.slane %v1933_v23, 2  ;;  %v1942_v25 = vrot.slane %v1933_v23, 7  ;;  %v1946_v21 = vrot.slane %v1933_v23, 4  ;;  %v1945_v20 = vrot.slane %v1933_v23, 3 }
 0xc54   :  { %v5935_v5 = vpop.f32.mrb[23].mxu0  ;;  %v1956_v8 = vadd.f32 %v1941_v17, %v7134_v38  ;;  %v1959_v15 = vadd.f32 %v1943_v19, %v7145_v50  ;;  %v1955_v30 = vadd.f32 %v1940_v22, %v7129_v32  ;;  %v5606_v53 = vmul.f32 -1.442695, %v1958_v7 }
 0xc55   :  { %v1960_v26 = vadd.f32 %v1944_v13, %v7147_v56  ;;  %v1957_v27 = vadd.f32 %v1942_v25, %v7127_v29  ;;  %v1962_v33 = vadd.f32 %v1946_v21, %v7150_v58  ;;  %v1961_v40 = vadd.f32 %v1945_v20, %v7143_v49 }
 0xc56   :  { %6437 = vtanh.f32 %v1956_v8  ;;  %v5604_v39 = vmul.f32 -1.442695, %v1956_v8  ;;  %v5607_v54 = vmul.f32 -1.442695, %v1959_v15  ;;  %v5603_v9 = vmul.f32 -1.442695, %v1955_v30 }
 0xc57   :  { %6439 = vtanh.f32 %v1958_v7  ;;  %v5608_v1 = vmul.f32 -1.442695, %v1960_v26  ;;  %v5605_v57 = vmul.f32 -1.442695, %v1957_v27  ;;  %v5610_v62 = vmul.f32 -1.442695, %v1962_v33 }
 0xc58   :  { %6441 = vtanh.f32 %v1959_v15  ;;  %v5609_v6 = vmul.f32 -1.442695, %v1961_v40 }
 0xc59   :  { %6443 = vtanh.f32 %v1955_v30 }
 0xc5a   :  { %6445 = vtanh.f32 %v1960_v26 }
 0xc5b   :  { %6447 = vtanh.f32 %v1957_v27 }
 0xc5c   :  { %6449 = vtanh.f32 %v1962_v33 }
 0xc5d   :  { %6451 = vtanh.f32 %v1961_v40 }
 0xc5e   :  { %6453 = vpow2.f32 %v5604_v39 }
 0xc5f   :  { %6455 = vpow2.f32 %v5606_v53 }
 0xc60   :  { %v6438_v37 = vpop.eup %6437  ;;  %6457 = vpow2.f32 %v5607_v54 }
 0xc61   :  { %2061 = vrot.lane.b32.xlu0 %v6438_v37, %s6852_s26  ;;  %v6440_v47 = vpop.eup %6439  ;;  %6459 = vpow2.f32 %v5603_v9 }
 0xc62   :  { %2065 = vrot.lane.b32.xlu1 %v6440_v47, %s6852_s26  ;;  %v6442_v42 = vpop.eup %6441  ;;  %6461 = vpow2.f32 %v5608_v1 }
 0xc63   :  { %v6444_v43 = vpop.eup %6443  ;;  %6463 = vpow2.f32 %v5605_v57 }
 0xc64   :  { %v6446_v31 = vpop.eup %6445  ;;  %6465 = vpow2.f32 %v5610_v62 }
 0xc65   :  { %2067 = vrot.lane.b32.xlu0 %v6442_v42, %s6852_s26  ;;  %v6448_v36 = vpop.eup %6447  ;;  %6467 = vpow2.f32 %v5609_v6  ;;  %v2030_v6 = vrot.slane %v7455_v16, 7  ;;  %v2032_v16 = vrot.slane %v7473_v11, 7 }
 0xc66   :  { %2059 = vrot.lane.b32.xlu1 %v6444_v43, %s6852_s26  ;;  %v6450_v45 = vpop.eup %6449 }
 0xc67   :  { %v6452_v51 = vpop.eup %6451 }
 0xc68   :  { %v6454_v18 = vpop.eup %6453 }
 0xc69   :  { %2069 = vrot.lane.b32.xlu0 %v6446_v31, %s6852_s26  ;;  %v6456_v41 = vpop.eup %6455  ;;  %v1988_v63 = vadd.f32 1.0, %v6454_v18  ;;  %v2028_v18 = vrot.slane %v7463_v2, 7 }
 0xc6a   :  { %2063 = vrot.lane.b32.xlu1 %v6448_v36, %s6852_s26  ;;  %v6458_v10 = vpop.eup %6457  ;;  %v1990_v52 = vadd.f32 1.0, %v6456_v41 }
 0xc6b   :  { %v6460_v3 = vpop.eup %6459  ;;  %6469 = vrcp.f32 %v1988_v63  ;;  %v1991_v23 = vadd.f32 1.0, %v6458_v10  ;;  %v2031_v10 = vrot.slane %v7466_v4, 7 }
 0xc6c   :  { %v6462_v28 = vpop.eup %6461  ;;  %6471 = vrcp.f32 %v1990_v52  ;;  %v1987_v14 = vadd.f32 1.0, %v6460_v3 }
 0xc6d   :  { %2073 = vrot.lane.b32.xlu0 %v6450_v45, %s6852_s26  ;;  %v6464_v5 = vpop.eup %6463  ;;  %6473 = vrcp.f32 %v1991_v23  ;;  %v1992_v17 = vadd.f32 1.0, %v6462_v28  ;;  %v2027_v28 = vrot.slane %v7444_v48, 7 }
 0xc6e   :  { %2071 = vrot.lane.b32.xlu1 %v6452_v51, %s6852_s26  ;;  %v6466_v19 = vpop.eup %6465  ;;  %6475 = vrcp.f32 %v1987_v14  ;;  %v1989_v8 = vadd.f32 1.0, %v6464_v5 }
 0xc6f   :  { %v6468_v22 = vpop.eup %6467  ;;  %6477 = vrcp.f32 %v1992_v17  ;;  %v1994_v7 = vadd.f32 1.0, %v6466_v19 }
 0xc70   :  { %6479 = vrcp.f32 %v1989_v8  ;;  %v1993_v25 = vadd.f32 1.0, %v6468_v22  ;;  %v2029_v8 = vrot.slane %v7452_v61, 7 }
 0xc71   :  { %6481 = vrcp.f32 %v1994_v7 }
 0xc72   :  { %6483 = vrcp.f32 %v1993_v25 }
 0xc75   :  { %v7539_v13 = vpop.eup %6469 }
 0xc76   :  { %v7542_v21 = vpop.eup %6471  ;;  %v2044_v41 = vmul.f32 %v7539_v13, %v2028_v18  ;;  %v6209_v18 = vld [vmem:[%s6902_s13 + $0x8] sm:$0xff]  }
 0xc77   :  { %v7546_v27 = vpop.eup %6473  ;;  %v2046_v52 = vmul.f32 %v7542_v21, %v2030_v6 }
 0xc78   :  { %v7550_v40 = vpop.eup %6475  ;;  %v2047_v2 = vmul.f32 %v7546_v27, %v2031_v10 }
 0xc79   :  { %v7554_v43 = vpop.eup %6477  ;;  %v2043_v4 = vmul.f32 %v7550_v40, %v2027_v28 }
 0xc7a   :  { %v7558_v45 = vpop.eup %6479  ;;  %v2048_v48 = vmul.f32 %v7554_v43, %v2032_v16 }
 0xc7b   :  { %v7562_v53 = vpop.eup %6481  ;;  %v2045_v11 = vmul.f32 %v7558_v45, %v2029_v8 }
 0xc7c   :  { %v7566_v1 = vpop.eup %6483 }
 0xcd3   :  { %v2062_v15 = vpop.permute.xlu0 %2061 }
 0xcd4   :  { %v2084_v30 = vmul.f32 %v7539_v13, %v2062_v15  ;;  %v2066_v26 = vpop.permute.xlu1 %2065  ;;  %v2034_v15 = vrot.slane %v7480_v24, 7 }
 0xcd5   :  { %v2086_v20 = vmul.f32 %v7542_v21, %v2066_v26  ;;  %v2033_v26 = vrot.slane %v7475_v12, 7 }
 0xcd6   :  { %2101 = vrot.lane.b32.xlu0 %v2084_v30, %s6850_s24  ;;  %v2050_v61 = vmul.f32 %v7562_v53, %v2034_v15 }
 0xcd7   :  { %v2068_v33 = vpop.permute.xlu0 %2067  ;;  %2105 = vrot.lane.b32.xlu1 %v2086_v20, %s6850_s24  ;;  %v2049_v24 = vmul.f32 %v7566_v1, %v2033_v26 }
 0xcd8   :  { %v2087_v37 = vmul.f32 %v7546_v27, %v2068_v33  ;;  %v2060_v47 = vpop.permute.xlu1 %2059 }
 0xcd9   :  { %v2083_v42 = vmul.f32 %v7550_v40, %v2060_v47 }
 0xcda   :  { %2107 = vrot.lane.b32.xlu0 %v2087_v37, %s6850_s24 }
 0xcdb   :  { %v2070_v31 = vpop.permute.xlu0 %2069  ;;  %2099 = vrot.lane.b32.xlu1 %v2083_v42, %s6850_s24 }
 0xcdc   :  { %v2088_v36 = vmul.f32 %v7554_v43, %v2070_v31  ;;  %v2064_v51 = vpop.permute.xlu1 %2063 }
 0xcdd   :  { %v2085_v39 = vmul.f32 %v7558_v45, %v2064_v51 }
 0xcde   :  { %2109 = vrot.lane.b32.xlu0 %v2088_v36, %s6850_s24 }
 0xcdf   :  { %v2074_v54 = vpop.permute.xlu0 %2073  ;;  %2103 = vrot.lane.b32.xlu1 %v2085_v39, %s6850_s24 }
 0xce0   :  { %v2090_v9 = vmul.f32 %v7562_v53, %v2074_v54  ;;  %v2072_v57 = vpop.permute.xlu1 %2071 }
 0xce1   :  { %v2089_v62 = vmul.f32 %v7566_v1, %v2072_v57 }
 0xce2   :  { %2113 = vrot.lane.b32.xlu0 %v2090_v9, %s6850_s24 }
 0xce3   :  { %2111 = vrot.lane.b32.xlu1 %v2089_v62, %s6850_s24  ;;  %v6208_v62 = vld [vmem:[%s6902_s13] sm:$0xff]  }
 0xce4   :  { %5937 = vmatpush3.bf16.msra.mxu1 %v6208_v62 }
 0xce5   :  { %5938 = vmatprep.subr.bf16.mxu1 %v6843_v0 }
 0xce8   :  { %5939 = vmatpush3.bf16.msra.mxu1 %v6209_v18 }
 0xce9   :  { %5952 = vmatprep.subr.bf16.mxu1 %v6843_v0 }
 0xd48   :  { %v2102_v63 = vpop.permute.xlu0 %2101 }
 0xd49   :  { %v7576_v3 = vadd.f32 %v2102_v63, %v2044_v41  ;;  %v2106_v23 = vpop.permute.xlu1 %2105 }
 0xd4a   :  { %v7579_v14 = vadd.f32 %v2106_v23, %v2046_v52 }
 0xd4b   :  { %6485 = vtanh.f32 %v7576_v3 }
 0xd4c   :  { %v2108_v5 = vpop.permute.xlu0 %2107  ;;  %6487 = vtanh.f32 %v7579_v14 }
 0xd4d   :  { %v7586_v17 = vadd.f32 %v2108_v5, %v2047_v2  ;;  %v2100_v19 = vpop.permute.xlu1 %2099 }
 0xd4e   :  { %v7589_v22 = vadd.f32 %v2100_v19, %v2043_v4 }
 0xd4f   :  { %6489 = vtanh.f32 %v7586_v17 }
 0xd50   :  { %v2110_v7 = vpop.permute.xlu0 %2109  ;;  %6491 = vtanh.f32 %v7589_v22 }
 0xd51   :  { %v7596_v25 = vadd.f32 %v2110_v7, %v2048_v48  ;;  %v2104_v30 = vpop.permute.xlu1 %2103 }
 0xd52   :  { %v7599_v20 = vadd.f32 %v2104_v30, %v2045_v11 }
 0xd53   :  { %6493 = vtanh.f32 %v7596_v25 }
 0xd54   :  { %v2114_v33 = vpop.permute.xlu0 %2113  ;;  %6495 = vtanh.f32 %v7599_v20 }
 0xd55   :  { %v6486_v37 = vpop.eup %6485  ;;  %v7605_v47 = vadd.f32 %v2114_v33, %v2050_v61  ;;  %v2112_v42 = vpop.permute.xlu1 %2111 }
 0xd56   :  { %2149 = vrot.lane.b32.xlu0 %v6486_v37, %s6852_s26  ;;  %v6488_v31 = vpop.eup %6487  ;;  %v7608_v12 = vadd.f32 %v2112_v42, %v2049_v24 }
 0xd57   :  { %6497 = vtanh.f32 %v7605_v47  ;;  %2153 = vrot.lane.b32.xlu1 %v6488_v31, %s6852_s26 }
 0xd58   :  { %6499 = vtanh.f32 %v7608_v12 }
 0xd59   :  { %v6490_v36 = vpop.eup %6489 }
 0xd5a   :  { %2155 = vrot.lane.b32.xlu0 %v6490_v36, %s6852_s26  ;;  %v6492_v51 = vpop.eup %6491 }
 0xd5b   :  { %2147 = vrot.lane.b32.xlu1 %v6492_v51, %s6852_s26 }
 0xd5d   :  { %v6494_v39 = vpop.eup %6493 }
 0xd5e   :  { %2157 = vrot.lane.b32.xlu0 %v6494_v39, %s6852_s26  ;;  %v6496_v54 = vpop.eup %6495 }
 0xd5f   :  { %2151 = vrot.lane.b32.xlu1 %v6496_v54, %s6852_s26 }
 0xd61   :  { %v6498_v9 = vpop.eup %6497 }
 0xd62   :  { %2161 = vrot.lane.b32.xlu0 %v6498_v9, %s6852_s26  ;;  %v6500_v57 = vpop.eup %6499 }
 0xd63   :  { %2159 = vrot.lane.b32.xlu1 %v6500_v57, %s6852_s26 }
 0xdc8   :  { %v2150_v6 = vpop.permute.xlu0 %2149 }
 0xdc9   :  { %v2172_v41 = vmul.f32 %v7539_v13, %v2150_v6  ;;  %v2154_v63 = vpop.permute.xlu1 %2153 }
 0xdca   :  { %v2174_v52 = vmul.f32 %v7542_v21, %v2154_v63 }
 0xdcb   :  { %v2187_v23 = vrot.slane %v2172_v41, 7  ;;  %v2216_v28 = vpack.c.bf16 %v2172_v41, %v2172_v41 }
 0xdcc   :  { %v2156_v10 = vpop.permute.xlu0 %2155  ;;  %v2218_v19 = vpack.c.bf16 %v2174_v52, %v2174_v52  ;;  %v2191_v33 = vrot.slane %v2174_v52, 5 }
 0xdcd   :  { %v2148_v2 = vpop.permute.xlu1 %2147  ;;  %v2175_v16 = vmul.f32 %v7546_v27, %v2156_v10  ;;  %v2232_v15 = vunpack.c.l.b16 %v2216_v28 }
 0xdce   :  { %v2171_v5 = vmul.f32 %v7550_v40, %v2148_v2  ;;  %v2234_v37 = vunpack.c.l.b16 %v2218_v19 }
 0xdcf   :  { %v2219_v30 = vpack.c.bf16 %v2175_v16, %v2175_v16  ;;  %v2240_v27 = vrot.slane %v2232_v15, 2  ;;  %v2193_v39 = vrot.slane %v2175_v16, 4 }
 0xdd0   :  { %v2158_v4 = vpop.permute.xlu0 %2157  ;;  %v2188_v8 = vsel %vm1080_vm6, %v2187_v23, %v2171_v5  ;;  %v2215_v48 = vpack.c.bf16 %v2171_v5, %v2171_v5 }
 0xdd1   :  { %v2176_v7 = vmul.f32 %v7554_v43, %v2158_v4  ;;  %v2152_v13 = vpop.permute.xlu1 %2151  ;;  %v2235_v43 = vunpack.c.l.b16 %v2219_v30 }
 0xdd2   :  { %v2231_v11 = vunpack.c.l.b16 %v2215_v48  ;;  %v2173_v21 = vmul.f32 %v7558_v45, %v2152_v13 }
 0xdd3   :  { %v2220_v26 = vpack.c.bf16 %v2176_v7, %v2176_v7  ;;  %v2195_v57 = vrot.slane %v2176_v7, 3  ;;  %v2245_v2 = vrot.slane %v2235_v43, 7 }
 0xdd4   :  { %v2162_v61 = vpop.permute.xlu0 %2161  ;;  %v2189_v40 = vrot.slane %v2173_v21, 6  ;;  %v2217_v24 = vpack.c.bf16 %v2173_v21, %v2173_v21  ;;  %v2239_v42 = vrot.slane %v2231_v11, 3 }
 0xdd5   :  { %v2236_v31 = vunpack.c.l.b16 %v2220_v26  ;;  %v2160_v36 = vpop.permute.xlu1 %2159  ;;  %v2178_v51 = vmul.f32 %v7562_v53, %v2162_v61 }
 0xdd6   :  { %v2233_v54 = vunpack.c.l.b16 %v2217_v24  ;;  %v2177_v9 = vmul.f32 %v7566_v1, %v2160_v36  ;;  %v2190_v18 = vsel %vm1083_vm7, %v2189_v40, %v2188_v8  ;;  %v2241_v52 = vsel %vm1071_vm3, %v2240_v27, %v2239_v42 }
 0xdd7   :  { %v2198_v62 = vrot.slane %v2178_v51, 1  ;;  %v2222_v45 = vpack.c.bf16 %v2178_v51, %v2178_v51  ;;  %v2192_v10 = vsel %vm1086_vm8, %v2191_v33, %v2190_v18  ;;  %v2247_v23 = vrot.slane %v2236_v31, 6 }
 0xdd8   :  { %v2242_v6 = vrot.slane %v2233_v54, 1  ;;  %v2196_v41 = vrot.slane %v2177_v9, 2  ;;  %v2221_v63 = vpack.c.bf16 %v2177_v9, %v2177_v9  ;;  %v7636_v53 = vsel %vm1089_vm9, %v2193_v39, %v2192_v10 }
 0xdd9   :  { %v2238_v28 = vunpack.c.l.b16 %v2222_v45 }
 0xdda   :  { %v2243_v1 = vsel %vm1074_vm4, %v2242_v6, %v2241_v52  ;;  %v2237_v5 = vunpack.c.l.b16 %v2221_v63  ;;  %v2197_v16 = vsel %vm1071_vm3, %v2196_v41, %v2195_v57 }
 0xddb   :  { %v2244_v4 = vsel %vm1077_vm5, %v2234_v37, %v2243_v1  ;;  %v2251_v19 = vrot.slane %v2238_v28, 4  ;;  %v7642_v8 = vsel %vm1074_vm4, %v2198_v62, %v2197_v16 }
 0xddc   :  { %v2246_v48 = vsel %vm1080_vm6, %v2245_v2, %v2244_v4  ;;  %v2249_v7 = vrot.slane %v2237_v5, 5 }
 0xddd   :  { %v2248_v15 = vsel %vm1083_vm7, %v2247_v23, %v2246_v48 }
 0xdde   :  { %v2250_v13 = vsel %vm1086_vm8, %v2249_v7, %v2248_v15 }
 0xddf   :  { %v2252_v11 = vsel %vm1089_vm9, %v2251_v19, %v2250_v13 }
 0xde0   :  { %v2253_v30 = vpack.c.b16 %v2252_v11, %v2252_v11 }
 0xde2   :  { %2254 = vrot.lane.b32.xlu1 %v2253_v30, %s6850_s24 }
 0xe54   :  { %v2255_v21 = vpop.permute.xlu1 %2254 }
 0xe55   :  { %5941 = vmatmul.mubr.msk.bf16.vlgmr.msra.gmra.mrb[16].mxu1 %vm709_vm2, %v2255_v21 }
 0xe56   :  { %5956 = vmatprep.mubr.msk.bf16.mxu1 %vm6854_vm1, %v6843_v0 }
 0xf28   :  { %v2305_v26 = vpop.f32.mrb[16].mxu1 }
 0xf29   :  { %v2312_v61 = vrot.slane %v2305_v26, 4  ;;  %v5942_v33 = vpop.f32.mrb[17].mxu1  ;;  %v2314_v27 = vrot.slane %v2305_v26, 6  ;;  %v2316_v42 = vrot.slane %v2305_v26, 1  ;;  %v2313_v36 = vrot.slane %v2305_v26, 5 }
 0xf2a   :  { %v2308_v37 = vpop.f32.mrb[18].mxu1  ;;  %v2331_v51 = vadd.f32 %v2305_v26, %v7145_v50  ;;  %v2317_v43 = vrot.slane %v2305_v26, 2  ;;  %v2315_v9 = vrot.slane %v2305_v26, 7  ;;  %v2318_v45 = vrot.slane %v2305_v26, 3 }
 0xf2b   :  { %v2327_v40 = vadd.f32 %v2312_v61, %v7129_v32  ;;  %v5943_v24 = vpop.f32.mrb[19].mxu1  ;;  %v2329_v31 = vadd.f32 %v2314_v27, %v7127_v29  ;;  %v2332_v54 = vadd.f32 %v2316_v42, %v7147_v56  ;;  %v2328_v57 = vadd.f32 %v2313_v36, %v7134_v38 }
 0xf2c   :  { %v2333_v62 = vadd.f32 %v2317_v43, %v7143_v49  ;;  %v2330_v18 = vadd.f32 %v2315_v9, %v7132_v35  ;;  %v2334_v41 = vadd.f32 %v2318_v45, %v7150_v58  ;;  %v5618_v16 = vmul.f32 -1.442695, %v2331_v51 }
 0xf2d   :  { %6501 = vtanh.f32 %v2327_v40  ;;  %v5614_v1 = vmul.f32 -1.442695, %v2327_v40  ;;  %v5616_v5 = vmul.f32 -1.442695, %v2329_v31  ;;  %v5619_v19 = vmul.f32 -1.442695, %v2332_v54 }
 0xf2e   :  { %6503 = vtanh.f32 %v2329_v31  ;;  %v5615_v48 = vmul.f32 -1.442695, %v2328_v57  ;;  %v5620_v15 = vmul.f32 -1.442695, %v2333_v62  ;;  %v5617_v13 = vmul.f32 -1.442695, %v2330_v18 }
 0xf2f   :  { %6505 = vtanh.f32 %v2331_v51  ;;  %v5621_v30 = vmul.f32 -1.442695, %v2334_v41 }
 0xf30   :  { %6507 = vtanh.f32 %v2332_v54 }
 0xf31   :  { %6509 = vtanh.f32 %v2328_v57 }
 0xf32   :  { %6511 = vtanh.f32 %v2333_v62 }
 0xf33   :  { %6513 = vtanh.f32 %v2330_v18 }
 0xf34   :  { %6515 = vtanh.f32 %v2334_v41 }
 0xf35   :  { %6517 = vpow2.f32 %v5614_v1 }
 0xf36   :  { %6519 = vpow2.f32 %v5616_v5 }
 0xf37   :  { %v6502_v39 = vpop.eup %6501  ;;  %6521 = vpow2.f32 %v5618_v16 }
 0xf38   :  { %2431 = vrot.lane.b32.xlu0 %v6502_v39, %s6852_s26  ;;  %v6504_v6 = vpop.eup %6503  ;;  %6523 = vpow2.f32 %v5619_v19 }
 0xf39   :  { %v6506_v63 = vpop.eup %6505  ;;  %6525 = vpow2.f32 %v5615_v48 }
 0xf3a   :  { %2439 = vrot.lane.b32.xlu1 %v6506_v63, %s6852_s26  ;;  %v6508_v10 = vpop.eup %6507 }
 0xf3b   :  { %v6510_v52 = vpop.eup %6509 }
 0xf3c   :  { %2435 = vrot.lane.b32.xlu0 %v6504_v6, %s6852_s26  ;;  %v6512_v23 = vpop.eup %6511 }
 0xf3d   :  { %v6514_v28 = vpop.eup %6513 }
 0xf3e   :  { %2433 = vrot.lane.b32.xlu1 %v6510_v52, %s6852_s26  ;;  %v6516_v2 = vpop.eup %6515 }
 0xf3f   :  { %v6518_v4 = vpop.eup %6517 }
 0xf40   :  { %2441 = vrot.lane.b32.xlu0 %v6508_v10, %s6852_s26  ;;  %v2359_v7 = vadd.f32 1.0, %v6518_v4  ;;  %v6520_v11 = vpop.eup %6519 }
 0xf41   :  { %v6522_v21 = vpop.eup %6521  ;;  %v2361_v26 = vadd.f32 1.0, %v6520_v11  ;;  %v2399_v11 = vrot.slane %v7589_v22, 7 }
 0xf42   :  { %2437 = vrot.lane.b32.xlu1 %v6514_v28, %s6852_s26  ;;  %6527 = vrcp.f32 %v2359_v7  ;;  %v6524_v61 = vpop.eup %6523  ;;  %v2363_v33 = vadd.f32 1.0, %v6522_v21 }
 0xf43   :  { %6529 = vpow2.f32 %v5620_v15  ;;  %v6526_v37 = vpop.eup %6525  ;;  %v2364_v27 = vadd.f32 1.0, %v6524_v61  ;;  %v2401_v61 = vrot.slane %v7599_v20, 7 }
 0xf44   :  { %2443 = vrot.lane.b32.xlu0 %v6512_v23, %s6852_s26  ;;  %6531 = vpow2.f32 %v5617_v13  ;;  %v2360_v36 = vadd.f32 1.0, %v6526_v37 }
 0xf45   :  { %6533 = vpow2.f32 %v5621_v30 }
 0xf46   :  { %2445 = vrot.lane.b32.xlu1 %v6516_v2, %s6852_s26  ;;  %6535 = vrcp.f32 %v2361_v26 }
 0xf47   :  { %6537 = vrcp.f32 %v2363_v33  ;;  %v2403_v33 = vrot.slane %v7586_v17, 7 }
 0xf48   :  { %6539 = vrcp.f32 %v2364_v27  ;;  %v2404_v27 = vrot.slane %v7596_v25, 7 }
 0xf49   :  { %6541 = vrcp.f32 %v2360_v36 }
 0xf4c   :  { %v7668_v40 = vpop.eup %6527 }
 0xf4d   :  { %v6530_v42 = vpop.eup %6529  ;;  %v2415_v30 = vmul.f32 %v7668_v40, %v2399_v11  ;;  %v6210_v11 = vld [vmem:[%s6902_s13] sm:$0xff]  }
 0xf4e   :  { %v6532_v51 = vpop.eup %6531  ;;  %v2365_v39 = vadd.f32 1.0, %v6530_v42  ;;  %5945 = vmatpush3.bf16.msra.mxu0 %v6210_v11 }
 0xf4f   :  { %v2362_v43 = vadd.f32 1.0, %v6532_v51  ;;  %v6534_v54 = vpop.eup %6533  ;;  %v2400_v51 = vrot.slane %v7576_v3, 7  ;;  %v2402_v3 = vrot.slane %v7579_v14, 7  ;;  %5946 = vmatprep.subr.bf16.mxu0 %v6843_v0 }
 0xf50   :  { %6543 = vrcp.f32 %v2365_v39  ;;  %v7672_v9 = vpop.eup %6535  ;;  %v2366_v62 = vadd.f32 1.0, %v6534_v54 }
 0xf51   :  { %6545 = vrcp.f32 %v2362_v43  ;;  %v7675_v18 = vpop.eup %6537  ;;  %v2417_v37 = vmul.f32 %v7672_v9, %v2401_v61  ;;  %v2405_v43 = vrot.slane %v7608_v12, 7 }
 0xf52   :  { %v7679_v63 = vpop.eup %6539  ;;  %6547 = vrcp.f32 %v2366_v62  ;;  %v2419_v42 = vmul.f32 %v7675_v18, %v2403_v33 }
 0xf53   :  { %v7683_v23 = vpop.eup %6541  ;;  %v2420_v20 = vmul.f32 %v7679_v63, %v2404_v27 }
 0xf54   :  { %v2416_v25 = vmul.f32 %v7683_v23, %v2400_v51 }
 0xf5a   :  { %v7687_v1 = vpop.eup %6543 }
 0xf5b   :  { %v7691_v4 = vpop.eup %6545 }
 0xf5c   :  { %v7696_v7 = vpop.eup %6547  ;;  %v2418_v12 = vmul.f32 %v7691_v4, %v2402_v3 }
 0xfaa   :  { %v2432_v24 = vpop.permute.xlu0 %2431 }
 0xfab   :  { %v2455_v31 = vmul.f32 %v7668_v40, %v2432_v24 }
 0xfac   :  { %v2440_v6 = vpop.permute.xlu1 %2439 }
 0xfad   :  { %2471 = vrot.lane.b32.xlu0 %v2455_v31, %s6850_s24  ;;  %v2459_v41 = vmul.f32 %v7675_v18, %v2440_v6 }
 0xfae   :  { %v2436_v57 = vpop.permute.xlu0 %2435 }
 0xfaf   :  { %v2457_v45 = vmul.f32 %v7672_v9, %v2436_v57  ;;  %2479 = vrot.lane.b32.xlu1 %v2459_v41, %s6850_s24 }
 0xfb0   :  { %v2434_v28 = vpop.permute.xlu1 %2433 }
 0xfb1   :  { %2475 = vrot.lane.b32.xlu0 %v2457_v45, %s6850_s24  ;;  %v2456_v2 = vmul.f32 %v7683_v23, %v2434_v28  ;;  %v2421_v45 = vmul.f32 %v7687_v1, %v2405_v43 }
 0xfb2   :  { %v2442_v10 = vpop.permute.xlu0 %2441 }
 0xfb3   :  { %v2460_v52 = vmul.f32 %v7679_v63, %v2442_v10  ;;  %2473 = vrot.lane.b32.xlu1 %v2456_v2, %s6850_s24 }
 0xfb4   :  { %v2438_v19 = vpop.permute.xlu1 %2437 }
 0xfb5   :  { %2481 = vrot.lane.b32.xlu0 %v2460_v52, %s6850_s24  ;;  %v2458_v48 = vmul.f32 %v7691_v4, %v2438_v19  ;;  %v2406_v52 = vrot.slane %v7605_v47, 7 }
 0xfb6   :  { %v2444_v5 = vpop.permute.xlu0 %2443 }
 0xfb7   :  { %v2461_v16 = vmul.f32 %v7687_v1, %v2444_v5  ;;  %2477 = vrot.lane.b32.xlu1 %v2458_v48, %s6850_s24  ;;  %v2422_v2 = vmul.f32 %v7696_v7, %v2406_v52 }
 0xfb8   :  { %v2446_v15 = vpop.permute.xlu1 %2445 }
 0xfb9   :  { %2483 = vrot.lane.b32.xlu0 %v2461_v16, %s6850_s24  ;;  %v2462_v13 = vmul.f32 %v7696_v7, %v2446_v15 }
 0xfbb   :  { %2485 = vrot.lane.b32.xlu1 %v2462_v13, %s6850_s24 }
0x101f   :  { %v2472_v21 = vpop.permute.xlu0 %2471 }
0x1020   :  { %v7702_v26 = vadd.f32 %v2472_v21, %v2415_v30  ;;  %v6211_v21 = vld [vmem:[%s6902_s13 + $0x8] sm:$0xff]  }
0x1021   :  { %v2480_v22 = vpop.permute.xlu1 %2479  ;;  %5947 = vmatpush3.bf16.msra.mxu0 %v6211_v21 }
0x1022   :  { %6549 = vtanh.f32 %v7702_v26  ;;  %v7713_v39 = vadd.f32 %v2480_v22, %v2419_v42  ;;  %5960 = vmatprep.subr.bf16.mxu0 %v6843_v0 }
0x1023   :  { %v2476_v24 = vpop.permute.xlu0 %2475 }
0x1024   :  { %v7710_v31 = vadd.f32 %v2476_v24, %v2417_v37 }
0x1025   :  { %v2474_v57 = vpop.permute.xlu1 %2473 }
0x1026   :  { %6551 = vtanh.f32 %v7710_v31  ;;  %v7724_v62 = vadd.f32 %v2474_v57, %v2416_v25 }
0x1027   :  { %v2482_v17 = vpop.permute.xlu0 %2481  ;;  %6553 = vtanh.f32 %v7713_v39 }
0x1028   :  { %v7721_v54 = vadd.f32 %v2482_v17, %v2420_v20 }
0x1029   :  { %v2478_v10 = vpop.permute.xlu1 %2477 }
0x102a   :  { %6555 = vtanh.f32 %v7721_v54  ;;  %v7733_v28 = vadd.f32 %v2478_v10, %v2418_v12 }
0x102b   :  { %v2484_v6 = vpop.permute.xlu0 %2483  ;;  %6557 = vtanh.f32 %v7724_v62 }
0x102c   :  { %v6550_v36 = vpop.eup %6549  ;;  %v7730_v41 = vadd.f32 %v2484_v6, %v2421_v45 }
0x102d   :  { %2519 = vrot.lane.b32.xlu0 %v6550_v36, %s6852_s26  ;;  %v2486_v5 = vpop.permute.xlu1 %2485 }
0x102e   :  { %6559 = vtanh.f32 %v7730_v41  ;;  %v7739_v19 = vadd.f32 %v2486_v5, %v2422_v2 }
0x102f   :  { %6561 = vtanh.f32 %v7733_v28 }
0x1030   :  { %v6552_v14 = vpop.eup %6551  ;;  %6563 = vtanh.f32 %v7739_v19 }
0x1031   :  { %2523 = vrot.lane.b32.xlu0 %v6552_v14, %s6852_s26  ;;  %v6554_v16 = vpop.eup %6553 }
0x1032   :  { %2527 = vrot.lane.b32.xlu1 %v6554_v16, %s6852_s26 }
0x1034   :  { %v6556_v47 = vpop.eup %6555 }
0x1035   :  { %2529 = vrot.lane.b32.xlu0 %v6556_v47, %s6852_s26  ;;  %v6558_v48 = vpop.eup %6557 }
0x1036   :  { %2521 = vrot.lane.b32.xlu1 %v6558_v48, %s6852_s26 }
0x1038   :  { %v6560_v15 = vpop.eup %6559 }
0x1039   :  { %2531 = vrot.lane.b32.xlu0 %v6560_v15, %s6852_s26  ;;  %v6562_v13 = vpop.eup %6561 }
0x103a   :  { %2525 = vrot.lane.b32.xlu1 %v6562_v13, %s6852_s26  ;;  %v6564_v30 = vpop.eup %6563 }
0x103e   :  { %2533 = vrot.lane.b32.xlu1 %v6564_v30, %s6852_s26 }
0x109f   :  { %v2520_v61 = vpop.permute.xlu0 %2519 }
0x10a0   :  { %v2543_v33 = vmul.f32 %v7668_v40, %v2520_v61 }
0x10a2   :  { %v2587_v22 = vpack.c.bf16 %v2543_v33, %v2543_v33 }
0x10a3   :  { %v2524_v37 = vpop.permute.xlu0 %2523 }
0x10a4   :  { %v2545_v24 = vmul.f32 %v7672_v9, %v2524_v37  ;;  %v2528_v27 = vpop.permute.xlu1 %2527  ;;  %v2603_v3 = vunpack.c.l.b16 %v2587_v22 }
0x10a5   :  { %v2547_v42 = vmul.f32 %v7675_v18, %v2528_v27 }
0x10a6   :  { %v2589_v36 = vpack.c.bf16 %v2545_v24, %v2545_v24  ;;  %v2561_v52 = vrot.slane %v2545_v24, 6  ;;  %v2611_v47 = vrot.slane %v2603_v3, 4 }
0x10a7   :  { %v2530_v51 = vpop.permute.xlu0 %2529  ;;  %v2565_v43 = vrot.slane %v2547_v42, 4  ;;  %v2591_v21 = vpack.c.bf16 %v2547_v42, %v2547_v42 }
0x10a8   :  { %v2548_v20 = vmul.f32 %v7679_v63, %v2530_v51  ;;  %v2522_v17 = vpop.permute.xlu1 %2521  ;;  %v2605_v45 = vunpack.c.l.b16 %v2589_v36 }
0x10a9   :  { %v2544_v25 = vmul.f32 %v7683_v23, %v2522_v17 }
0x10aa   :  { %v2566_v57 = vrot.slane %v2548_v20, 3  ;;  %v2592_v6 = vpack.c.bf16 %v2548_v20, %v2548_v20  ;;  %v2614_v23 = vrot.slane %v2605_v45, 2 }
0x10ab   :  { %v2532_v40 = vpop.permute.xlu0 %2531  ;;  %v2559_v12 = vrot.slane %v2544_v25, 7  ;;  %v2588_v10 = vpack.c.bf16 %v2544_v25, %v2544_v25 }
0x10ac   :  { %v2549_v9 = vmul.f32 %v7687_v1, %v2532_v40  ;;  %v2567_v18 = vsel %vm1071_vm3, %v2566_v57, %v2565_v43  ;;  %v2526_v14 = vpop.permute.xlu1 %2525  ;;  %v2608_v30 = vunpack.c.l.b16 %v2592_v6  ;;  %v2607_v43 = vunpack.c.l.b16 %v2591_v21 }
0x10ad   :  { %v2604_v2 = vunpack.c.l.b16 %v2588_v10  ;;  %v2546_v63 = vmul.f32 %v7691_v4, %v2526_v14  ;;  %v2560_v48 = vsel %vm1083_vm7, %v2559_v12, %v2543_v33 }
0x10ae   :  { %v2568_v5 = vrot.slane %v2549_v9, 2  ;;  %v2593_v16 = vpack.c.bf16 %v2549_v9, %v2549_v9  ;;  %v2562_v37 = vsel %vm1086_vm8, %v2561_v52, %v2560_v48  ;;  %v2619_v20 = vrot.slane %v2608_v30, 7 }
0x10af   :  { %v2612_v15 = vrot.slane %v2604_v2, 3  ;;  %v2563_v13 = vrot.slane %v2546_v63, 5  ;;  %v2590_v11 = vpack.c.bf16 %v2546_v63, %v2546_v63 }
0x10b0   :  { %v2534_v61 = vpop.permute.xlu1 %2533  ;;  %v2609_v1 = vunpack.c.l.b16 %v2593_v16  ;;  %v2569_v24 = vsel %vm1074_vm4, %v2568_v5, %v2567_v18 }
0x10b1   :  { %v2613_v27 = vsel %vm1071_vm3, %v2612_v15, %v2611_v47  ;;  %v2606_v4 = vunpack.c.l.b16 %v2590_v11  ;;  %v2550_v22 = vmul.f32 %v7696_v7, %v2534_v61  ;;  %v7767_v33 = vsel %vm1089_vm9, %v2563_v13, %v2562_v37 }
0x10b2   :  { %v2615_v36 = vsel %vm1074_vm4, %v2614_v23, %v2613_v27  ;;  %v2621_v25 = vrot.slane %v2609_v1, 6 }
0x10b3   :  { %v2616_v51 = vrot.slane %v2606_v4, 1  ;;  %v2570_v17 = vrot.slane %v2550_v22, 1  ;;  %v2594_v42 = vpack.c.bf16 %v2550_v22, %v2550_v22 }
0x10b5   :  { %v2617_v57 = vsel %vm1077_vm5, %v2616_v51, %v2615_v36  ;;  %v2610_v3 = vunpack.c.l.b16 %v2594_v42  ;;  %v7771_v45 = vsel %vm1077_vm5, %v2570_v17, %v2569_v24 }
0x10b6   :  { %v2618_v6 = vsel %vm1080_vm6, %v2607_v43, %v2617_v57 }
0x10b7   :  { %v2620_v7 = vsel %vm1083_vm7, %v2619_v20, %v2618_v6  ;;  %v2623_v40 = vrot.slane %v2610_v3, 5 }
0x10b8   :  { %v2622_v12 = vsel %vm1086_vm8, %v2621_v25, %v2620_v7 }
0x10b9   :  { %v2624_v10 = vsel %vm1089_vm9, %v2623_v40, %v2622_v12 }
0x10ba   :  { %v2625_v9 = vpack.c.b16 %v2624_v10, %v2624_v10 }
0x10bc   :  { %2626 = vrot.lane.b32.xlu0 %v2625_v9, %s6850_s24 }
0x112e   :  { %v2627_v18 = vpop.permute.xlu0 %2626 }
0x112f   :  { %5949 = vmatmul.mubr.msk.bf16.vlgmr.msra.gmra.mrb[24].mxu0 %vm709_vm2, %v2627_v18 }
0x1130   :  { %5964 = vmatprep.mubr.msk.bf16.mxu0 %vm6854_vm1, %v6843_v0 }
0x1202   :  { %v2677_v52 = vpop.f32.mrb[24].mxu0 }
0x1203   :  { %v2684_v14 = vrot.slane %v2677_v52, 3  ;;  %v5950_v2 = vpop.f32.mrb[25].mxu0  ;;  %v2685_v47 = vrot.slane %v2677_v52, 4  ;;  %v2686_v23 = vrot.slane %v2677_v52, 5  ;;  %v2687_v48 = vrot.slane %v2677_v52, 6 }
0x1204   :  { %v2680_v63 = vpop.f32.mrb[26].mxu0  ;;  %v2688_v13 = vrot.slane %v2677_v52, 7  ;;  %v2689_v30 = vrot.slane %v2677_v52, 1  ;;  %v2690_v37 = vrot.slane %v2677_v52, 2  ;;  %v2704_v27 = vadd.f32 %v2677_v52, %v7147_v56 }
0x1205   :  { %v2699_v5 = vadd.f32 %v2684_v14, %v7129_v32  ;;  %v5951_v16 = vpop.f32.mrb[27].mxu0  ;;  %v2700_v15 = vadd.f32 %v2685_v47, %v7134_v38  ;;  %v2701_v11 = vadd.f32 %v2686_v23, %v7127_v29  ;;  %v2702_v21 = vadd.f32 %v2687_v48, %v7132_v35 }
0x1206   :  { %v2703_v1 = vadd.f32 %v2688_v13, %v7145_v50  ;;  %v2705_v24 = vadd.f32 %v2689_v30, %v7143_v49  ;;  %v2706_v4 = vadd.f32 %v2690_v37, %v7150_v58  ;;  %v5630_v9 = vmul.f32 -1.442695, %v2704_v27 }
0x1207   :  { %6565 = vtanh.f32 %v2699_v5  ;;  %v5625_v25 = vmul.f32 -1.442695, %v2699_v5  ;;  %v5626_v57 = vmul.f32 -1.442695, %v2700_v15  ;;  %v5627_v3 = vmul.f32 -1.442695, %v2701_v11 }
0x1208   :  { %6567 = vtanh.f32 %v2700_v15  ;;  %v5628_v6 = vmul.f32 -1.442695, %v2702_v21  ;;  %v5629_v40 = vmul.f32 -1.442695, %v2703_v1  ;;  %v5631_v12 = vmul.f32 -1.442695, %v2705_v24 }
0x1209   :  { %6569 = vtanh.f32 %v2701_v11  ;;  %v5632_v18 = vmul.f32 -1.442695, %v2706_v4 }
0x120a   :  { %6571 = vtanh.f32 %v2702_v21 }
0x120b   :  { %6573 = vtanh.f32 %v2703_v1 }
0x120c   :  { %6575 = vtanh.f32 %v2705_v24 }
0x120d   :  { %6577 = vtanh.f32 %v2704_v27 }
0x120e   :  { %6579 = vtanh.f32 %v2706_v4 }
0x120f   :  { %6581 = vpow2.f32 %v5625_v25 }
0x1210   :  { %6583 = vpow2.f32 %v5626_v57 }
0x1211   :  { %v6566_v61 = vpop.eup %6565  ;;  %6585 = vpow2.f32 %v5627_v3 }
0x1212   :  { %2803 = vrot.lane.b32.xlu1 %v6566_v61, %s6852_s26  ;;  %v6568_v22 = vpop.eup %6567  ;;  %6587 = vpow2.f32 %v5628_v6 }
0x1213   :  { %v6570_v36 = vpop.eup %6569  ;;  %2805 = vrot.lane.b32.xlu0 %v6568_v22, %s6852_s26  ;;  %6589 = vpow2.f32 %v5629_v40 }
0x1214   :  { %v6572_v51 = vpop.eup %6571  ;;  %6591 = vpow2.f32 %v5631_v12 }
0x1215   :  { %v6574_v20 = vpop.eup %6573 }
0x1216   :  { %2807 = vrot.lane.b32.xlu1 %v6570_v36, %s6852_s26  ;;  %v6576_v17 = vpop.eup %6575 }
0x1217   :  { %2809 = vrot.lane.b32.xlu0 %v6572_v51, %s6852_s26  ;;  %v6578_v42 = vpop.eup %6577 }
0x1218   :  { %v6580_v43 = vpop.eup %6579 }
0x1219   :  { %v6582_v7 = vpop.eup %6581 }
0x121a   :  { %2811 = vrot.lane.b32.xlu1 %v6574_v20, %s6852_s26  ;;  %v2731_v10 = vadd.f32 1.0, %v6582_v7  ;;  %v6584_v52 = vpop.eup %6583 }
0x121b   :  { %2815 = vrot.lane.b32.xlu0 %v6576_v17, %s6852_s26  ;;  %v6586_v14 = vpop.eup %6585  ;;  %v2732_v2 = vadd.f32 1.0, %v6584_v52 }
0x121c   :  { %6593 = vrcp.f32 %v2731_v10  ;;  %v6588_v63 = vpop.eup %6587  ;;  %v2733_v5 = vadd.f32 1.0, %v6586_v14  ;;  %v2771_v14 = vrot.slane %v7702_v26, 7 }
0x121d   :  { %6595 = vpow2.f32 %v5630_v9  ;;  %v6590_v16 = vpop.eup %6589  ;;  %v2734_v23 = vadd.f32 1.0, %v6588_v63 }
0x121e   :  { %2813 = vrot.lane.b32.xlu1 %v6578_v42, %s6852_s26  ;;  %6597 = vpow2.f32 %v5632_v18  ;;  %v6592_v47 = vpop.eup %6591  ;;  %v2735_v13 = vadd.f32 1.0, %v6590_v16  ;;  %v2772_v16 = vrot.slane %v7724_v62, 7 }
0x121f   :  { %2817 = vrot.lane.b32.xlu0 %v6580_v43, %s6852_s26  ;;  %6599 = vrcp.f32 %v2732_v2  ;;  %v2737_v21 = vadd.f32 1.0, %v6592_v47  ;;  %v2773_v47 = vrot.slane %v7710_v31, 7 }
0x1220   :  { %6601 = vrcp.f32 %v2733_v5 }
0x1221   :  { %6603 = vrcp.f32 %v2734_v23 }
0x1222   :  { %6605 = vrcp.f32 %v2735_v13 }
0x1223   :  { %6607 = vrcp.f32 %v2737_v21  ;;  %v2775_v21 = vrot.slane %v7713_v39, 7  ;;  %v2776_v39 = vrot.slane %v7721_v54, 7 }
0x1226   :  { %v7797_v48 = vpop.eup %6593 }
0x1227   :  { %v6596_v11 = vpop.eup %6595  ;;  %v2787_v2 = vmul.f32 %v7797_v48, %v2771_v14 }
0x1228   :  { %v6598_v61 = vpop.eup %6597  ;;  %v2736_v1 = vadd.f32 1.0, %v6596_v11  ;;  %v2774_v11 = vrot.slane %v7733_v28, 7 }
0x1229   :  { %v2738_v37 = vadd.f32 1.0, %v6598_v61  ;;  %v7801_v24 = vpop.eup %6599 }
0x122a   :  { %6609 = vrcp.f32 %v2736_v1  ;;  %v7803_v4 = vpop.eup %6601  ;;  %v2788_v23 = vmul.f32 %v7801_v24, %v2772_v16 }
0x122b   :  { %6611 = vrcp.f32 %v2738_v37  ;;  %v7808_v20 = vpop.eup %6603  ;;  %v2789_v13 = vmul.f32 %v7803_v4, %v2773_v47  ;;  %v6213_v47 = vld [vmem:[%s6902_s13 + $0x8] sm:$0xff]  }
0x122c   :  { %v7811_v42 = vpop.eup %6605  ;;  %v2790_v62 = vmul.f32 %v7808_v20, %v2774_v11 }
0x122d   :  { %v7816_v3 = vpop.eup %6607  ;;  %v2791_v37 = vmul.f32 %v7811_v42, %v2775_v21 }
0x1234   :  { %v7819_v7 = vpop.eup %6609 }
0x1235   :  { %v7824_v9 = vpop.eup %6611 }
0x1284   :  { %v2804_v15 = vpop.permute.xlu1 %2803 }
0x1285   :  { %v2827_v30 = vmul.f32 %v7797_v48, %v2804_v15  ;;  %v2806_v27 = vpop.permute.xlu0 %2805 }
0x1286   :  { %v2828_v22 = vmul.f32 %v7801_v24, %v2806_v27  ;;  %v2777_v27 = vrot.slane %v7730_v41, 7  ;;  %v2778_v41 = vrot.slane %v7739_v19, 7 }
0x1287   :  { %2843 = vrot.lane.b32.xlu1 %v2827_v30, %s6850_s24 }
0x1288   :  { %v2808_v36 = vpop.permute.xlu1 %2807  ;;  %2845 = vrot.lane.b32.xlu0 %v2828_v22, %s6850_s24  ;;  %v2794_v54 = vmul.f32 %v7824_v9, %v2778_v41 }
0x1289   :  { %v2829_v51 = vmul.f32 %v7803_v4, %v2808_v36  ;;  %v2810_v17 = vpop.permute.xlu0 %2809 }
0x128a   :  { %v2830_v43 = vmul.f32 %v7808_v20, %v2810_v17 }
0x128b   :  { %2847 = vrot.lane.b32.xlu1 %v2829_v51, %s6850_s24  ;;  %v2793_v51 = vmul.f32 %v7816_v3, %v2777_v27 }
0x128c   :  { %v2812_v25 = vpop.permute.xlu1 %2811  ;;  %2849 = vrot.lane.b32.xlu0 %v2830_v43, %s6850_s24  ;;  %v2792_v43 = vmul.f32 %v7819_v7, %v2776_v39 }
0x128d   :  { %v2831_v57 = vmul.f32 %v7811_v42, %v2812_v25  ;;  %v2816_v6 = vpop.permute.xlu0 %2815 }
0x128e   :  { %v2833_v40 = vmul.f32 %v7816_v3, %v2816_v6 }
0x128f   :  { %2851 = vrot.lane.b32.xlu1 %v2831_v57, %s6850_s24 }
0x1290   :  { %v2814_v12 = vpop.permute.xlu1 %2813  ;;  %2855 = vrot.lane.b32.xlu0 %v2833_v40, %s6850_s24 }
0x1291   :  { %v2832_v10 = vmul.f32 %v7819_v7, %v2814_v12  ;;  %v2818_v18 = vpop.permute.xlu0 %2817 }
0x1292   :  { %v2834_v52 = vmul.f32 %v7824_v9, %v2818_v18 }
0x1293   :  { %2853 = vrot.lane.b32.xlu1 %v2832_v10, %s6850_s24 }
0x1294   :  { %2857 = vrot.lane.b32.xlu0 %v2834_v52, %s6850_s24 }
0x12f9   :  { %v2844_v63 = vpop.permute.xlu1 %2843 }
0x12fa   :  { %v7831_v5 = vadd.f32 %v2844_v63, %v2787_v2  ;;  %v2846_v15 = vpop.permute.xlu0 %2845  ;;  %v6212_v63 = vld [vmem:[%s6902_s13] sm:$0xff]  }
0x12fb   :  { %v7839_v30 = vadd.f32 %v2846_v15, %v2788_v23  ;;  %5953 = vmatpush3.bf16.msra.mxu1 %v6212_v63 }
0x12fc   :  { %6613 = vtanh.f32 %v7831_v5  ;;  %5954 = vmatprep.subr.bf16.mxu1 %v6843_v0 }
0x12fd   :  { %v2848_v26 = vpop.permute.xlu1 %2847  ;;  %6615 = vtanh.f32 %v7839_v30 }
0x12fe   :  { %v7842_v61 = vadd.f32 %v2848_v26, %v2789_v13  ;;  %v2850_v31 = vpop.permute.xlu0 %2849 }
0x12ff   :  { %v7849_v28 = vadd.f32 %v2850_v31, %v2790_v62  ;;  %5955 = vmatpush3.bf16.msra.mxu1 %v6213_v47 }
0x1300   :  { %6617 = vtanh.f32 %v7842_v61 }
0x1301   :  { %v2852_v22 = vpop.permute.xlu1 %2851  ;;  %6619 = vtanh.f32 %v7849_v28 }
0x1302   :  { %v7853_v36 = vadd.f32 %v2852_v22, %v2791_v37  ;;  %v2856_v17 = vpop.permute.xlu0 %2855 }
0x1303   :  { %v7860_v25 = vadd.f32 %v2856_v17, %v2793_v51 }
0x1304   :  { %6621 = vtanh.f32 %v7853_v36 }
0x1305   :  { %v2854_v57 = vpop.permute.xlu1 %2853  ;;  %6623 = vtanh.f32 %v7860_v25 }
0x1306   :  { %v6614_v1 = vpop.eup %6613  ;;  %v7862_v6 = vadd.f32 %v2854_v57, %v2792_v43  ;;  %v2858_v40 = vpop.permute.xlu0 %2857 }
0x1307   :  { %2891 = vrot.lane.b32.xlu1 %v6614_v1, %s6852_s26  ;;  %v6616_v12 = vpop.eup %6615  ;;  %v7867_v10 = vadd.f32 %v2858_v40, %v2794_v54 }
0x1308   :  { %6625 = vtanh.f32 %v7862_v6  ;;  %2893 = vrot.lane.b32.xlu0 %v6616_v12, %s6852_s26 }
0x1309   :  { %6627 = vtanh.f32 %v7867_v10 }
0x130a   :  { %v6618_v18 = vpop.eup %6617 }
0x130b   :  { %2895 = vrot.lane.b32.xlu1 %v6618_v18, %s6852_s26  ;;  %v6620_v19 = vpop.eup %6619 }
0x130c   :  { %2897 = vrot.lane.b32.xlu0 %v6620_v19, %s6852_s26 }
0x130e   :  { %v6622_v52 = vpop.eup %6621 }
0x130f   :  { %2899 = vrot.lane.b32.xlu1 %v6622_v52, %s6852_s26  ;;  %v6624_v14 = vpop.eup %6623 }
0x1310   :  { %2903 = vrot.lane.b32.xlu0 %v6624_v14, %s6852_s26 }
0x1312   :  { %v6626_v2 = vpop.eup %6625 }
0x1313   :  { %2901 = vrot.lane.b32.xlu1 %v6626_v2, %s6852_s26  ;;  %v6628_v16 = vpop.eup %6627 }
0x1314   :  { %2905 = vrot.lane.b32.xlu0 %v6628_v16, %s6852_s26 }
0x1379   :  { %v2892_v23 = vpop.permute.xlu1 %2891 }
0x137a   :  { %v2915_v15 = vmul.f32 %v7797_v48, %v2892_v23  ;;  %v2894_v11 = vpop.permute.xlu0 %2893 }
0x137b   :  { %v2916_v26 = vmul.f32 %v7801_v24, %v2894_v11 }
0x137c   :  { %v2959_v13 = vpack.c.bf16 %v2915_v15, %v2915_v15 }
0x137d   :  { %v2896_v62 = vpop.permute.xlu1 %2895  ;;  %v2931_v31 = vrot.slane %v2916_v26, 7  ;;  %v2960_v37 = vpack.c.bf16 %v2916_v26, %v2916_v26 }
0x137e   :  { %v2975_v21 = vunpack.c.l.b16 %v2959_v13  ;;  %v2917_v1 = vmul.f32 %v7803_v4, %v2896_v62  ;;  %v2898_v27 = vpop.permute.xlu0 %2897 }
0x137f   :  { %v2976_v51 = vunpack.c.l.b16 %v2960_v37  ;;  %v2918_v43 = vmul.f32 %v7808_v20, %v2898_v27  ;;  %v2932_v48 = vsel %vm1086_vm8, %v2931_v31, %v2915_v15 }
0x1380   :  { %v2933_v22 = vrot.slane %v2917_v1, 6  ;;  %v2961_v39 = vpack.c.bf16 %v2917_v1, %v2917_v1  ;;  %v2983_v17 = vrot.slane %v2975_v21, 5 }
0x1381   :  { %v2900_v41 = vpop.permute.xlu1 %2899  ;;  %v2984_v40 = vrot.slane %v2976_v51, 4  ;;  %v2962_v4 = vpack.c.bf16 %v2918_v43, %v2918_v43  ;;  %v2935_v12 = vrot.slane %v2918_v43, 5 }
0x1382   :  { %v2977_v57 = vunpack.c.l.b16 %v2961_v39  ;;  %v2919_v54 = vmul.f32 %v7811_v42, %v2900_v41  ;;  %v7887_v24 = vsel %vm1089_vm9, %v2933_v22, %v2932_v48  ;;  %v2904_v19 = vpop.permute.xlu0 %2903 }
0x1383   :  { %v2985_v2 = vsel %vm1071_vm3, %v2984_v40, %v2983_v17  ;;  %v2978_v63 = vunpack.c.l.b16 %v2962_v4  ;;  %v2921_v20 = vmul.f32 %v7816_v3, %v2904_v19 }
0x1384   :  { %v2986_v18 = vrot.slane %v2977_v57, 3  ;;  %v2936_v52 = vrot.slane %v2919_v54, 4  ;;  %v2963_v14 = vpack.c.bf16 %v2919_v54, %v2919_v54 }
0x1385   :  { %v2902_v16 = vpop.permute.xlu1 %2901  ;;  %v2988_v13 = vrot.slane %v2978_v63, 2  ;;  %v2965_v11 = vpack.c.bf16 %v2921_v20, %v2921_v20  ;;  %v2940_v31 = vrot.slane %v2921_v20, 2 }
0x1386   :  { %v2987_v47 = vsel %vm1074_vm4, %v2986_v18, %v2985_v2  ;;  %v2937_v42 = vsel %vm1071_vm3, %v2936_v52, %v2935_v12  ;;  %v2979_v23 = vunpack.c.l.b16 %v2963_v14  ;;  %v2920_v15 = vmul.f32 %v7819_v7, %v2902_v16  ;;  %v2906_v21 = vpop.permute.xlu0 %2905 }
0x1387   :  { %v2981_v37 = vunpack.c.l.b16 %v2965_v11  ;;  %v2989_v27 = vsel %vm1077_vm5, %v2988_v13, %v2987_v47  ;;  %v2922_v3 = vmul.f32 %v7824_v9, %v2906_v21 }
0x1388   :  { %v2990_v26 = vrot.slane %v2979_v23, 1  ;;  %v2938_v62 = vrot.slane %v2920_v15, 3  ;;  %v2964_v1 = vpack.c.bf16 %v2920_v15, %v2920_v15 }
0x1389   :  { %v2942_v17 = vrot.slane %v2922_v3, 1  ;;  %v2966_v43 = vpack.c.bf16 %v2922_v3, %v2922_v3  ;;  %v2993_v41 = vrot.slane %v2981_v37, 7 }
0x138a   :  { %v2991_v22 = vsel %vm1080_vm6, %v2990_v26, %v2989_v27  ;;  %v2980_v39 = vunpack.c.l.b16 %v2964_v1  ;;  %v2939_v51 = vsel %vm1074_vm4, %v2938_v62, %v2937_v42 }
0x138b   :  { %v2941_v7 = vsel %vm1077_vm5, %v2940_v31, %v2939_v51  ;;  %v2982_v57 = vunpack.c.l.b16 %v2966_v43 }
0x138c   :  { %v2992_v48 = vsel %vm1083_vm7, %v2980_v39, %v2991_v22  ;;  %v7901_v54 = vsel %vm1080_vm6, %v2942_v17, %v2941_v7 }
0x138d   :  { %v2994_v40 = vsel %vm1086_vm8, %v2993_v41, %v2992_v48  ;;  %v2995_v4 = vrot.slane %v2982_v57, 6 }
0x138f   :  { %v2996_v9 = vsel %vm1089_vm9, %v2995_v4, %v2994_v40 }
0x1390   :  { %v2997_v12 = vpack.c.b16 %v2996_v9, %v2996_v9 }
0x1392   :  { %2998 = vrot.lane.b32.xlu1 %v2997_v12, %s6850_s24 }
0x1404   :  { %v2999_v18 = vpop.permute.xlu1 %2998 }
0x1405   :  { %5957 = vmatmul.mubr.msk.bf16.vlgmr.msra.gmra.mrb[20].mxu1 %vm709_vm2, %v2999_v18 }
0x14d8   :  { %v3049_v19 = vpop.f32.mrb[20].mxu1 }
0x14d9   :  { %v3056_v52 = vrot.slane %v3049_v19, 2  ;;  %v5958_v14 = vpop.f32.mrb[21].mxu1  ;;  %v3057_v16 = vrot.slane %v3049_v19, 3  ;;  %v3058_v47 = vrot.slane %v3049_v19, 4  ;;  %v3059_v42 = vrot.slane %v3049_v19, 5 }
0x14da   :  { %v3052_v2 = vpop.f32.mrb[22].mxu1  ;;  %v3060_v15 = vrot.slane %v3049_v19, 6  ;;  %v3061_v11 = vrot.slane %v3049_v19, 7  ;;  %v3062_v62 = vrot.slane %v3049_v19, 1  ;;  %v3077_v27 = vadd.f32 %v3049_v19, %v7143_v49 }
0x14db   :  { %v3071_v63 = vadd.f32 %v3056_v52, %v7129_v32  ;;  %v5959_v20 = vpop.f32.mrb[23].mxu1  ;;  %v3072_v23 = vadd.f32 %v3057_v16, %v7134_v38  ;;  %v3073_v13 = vadd.f32 %v3058_v47, %v7127_v29  ;;  %v3074_v26 = vadd.f32 %v3059_v42, %v7132_v35 }
0x14dc   :  { %v3075_v1 = vadd.f32 %v3060_v15, %v7145_v50  ;;  %v3076_v31 = vadd.f32 %v3061_v11, %v7147_v56  ;;  %v3078_v37 = vadd.f32 %v3062_v62, %v7150_v58  ;;  %v5642_v52 = vmul.f32 -1.442695, %v3077_v27 }
0x14dd   :  { %6629 = vtanh.f32 %v3071_v63  ;;  %v5636_v41 = vmul.f32 -1.442695, %v3071_v63  ;;  %v5637_v48 = vmul.f32 -1.442695, %v3072_v23  ;;  %v5638_v57 = vmul.f32 -1.442695, %v3073_v13 }
0x14de   :  { %6631 = vtanh.f32 %v3072_v23  ;;  %v5639_v40 = vmul.f32 -1.442695, %v3074_v26  ;;  %v5640_v9 = vmul.f32 -1.442695, %v3075_v1  ;;  %v5641_v12 = vmul.f32 -1.442695, %v3076_v31 }
0x14df   :  { %6633 = vtanh.f32 %v3073_v13  ;;  %v5643_v19 = vmul.f32 -1.442695, %v3078_v37 }
0x14e0   :  { %6635 = vtanh.f32 %v3074_v26 }
0x14e1   :  { %6637 = vtanh.f32 %v3075_v1 }
0x14e2   :  { %6639 = vtanh.f32 %v3076_v31 }
0x14e3   :  { %6641 = vtanh.f32 %v3078_v37 }
0x14e4   :  { %6643 = vtanh.f32 %v3077_v27 }
0x14e5   :  { %6645 = vpow2.f32 %v5636_v41 }
0x14e6   :  { %6647 = vpow2.f32 %v5637_v48 }
0x14e7   :  { %v6630_v21 = vpop.eup %6629  ;;  %6649 = vpow2.f32 %v5638_v57 }
0x14e8   :  { %3175 = vrot.lane.b32.xlu0 %v6630_v21, %s6852_s26  ;;  %v6632_v3 = vpop.eup %6631  ;;  %6651 = vpow2.f32 %v5639_v40 }
0x14e9   :  { %v6634_v22 = vpop.eup %6633  ;;  %3177 = vrot.lane.b32.xlu1 %v6632_v3, %s6852_s26  ;;  %6653 = vpow2.f32 %v5640_v9 }
0x14ea   :  { %v6636_v39 = vpop.eup %6635  ;;  %6655 = vpow2.f32 %v5641_v12 }
0x14eb   :  { %v6638_v51 = vpop.eup %6637 }
0x14ec   :  { %3179 = vrot.lane.b32.xlu0 %v6634_v22, %s6852_s26  ;;  %v6640_v17 = vpop.eup %6639 }
0x14ed   :  { %3181 = vrot.lane.b32.xlu1 %v6636_v39, %s6852_s26  ;;  %v6642_v43 = vpop.eup %6641 }
0x14ee   :  { %v6644_v7 = vpop.eup %6643 }
0x14ef   :  { %v6646_v4 = vpop.eup %6645 }
0x14f0   :  { %3183 = vrot.lane.b32.xlu0 %v6638_v51, %s6852_s26  ;;  %v3103_v18 = vadd.f32 1.0, %v6646_v4  ;;  %v6648_v14 = vpop.eup %6647 }
0x14f1   :  { %3185 = vrot.lane.b32.xlu1 %v6640_v17, %s6852_s26  ;;  %v6650_v2 = vpop.eup %6649  ;;  %v3104_v63 = vadd.f32 1.0, %v6648_v14 }
0x14f2   :  { %6657 = vrcp.f32 %v3103_v18  ;;  %v6652_v20 = vpop.eup %6651  ;;  %v3105_v16 = vadd.f32 1.0, %v6650_v2 }
0x14f3   :  { %6659 = vpow2.f32 %v5643_v19  ;;  %v6654_v47 = vpop.eup %6653  ;;  %v3106_v23 = vadd.f32 1.0, %v6652_v20  ;;  %v3143_v20 = vrot.slane %v7831_v5, 7 }
0x14f4   :  { %3189 = vrot.lane.b32.xlu0 %v6642_v43, %s6852_s26  ;;  %6661 = vpow2.f32 %v5642_v52  ;;  %v6656_v42 = vpop.eup %6655  ;;  %v3107_v11 = vadd.f32 1.0, %v6654_v47 }
0x14f5   :  { %3187 = vrot.lane.b32.xlu1 %v6644_v7, %s6852_s26  ;;  %6663 = vrcp.f32 %v3104_v63  ;;  %v3108_v62 = vadd.f32 1.0, %v6656_v42 }
0x14f6   :  { %6665 = vrcp.f32 %v3105_v16 }
0x14f7   :  { %6667 = vrcp.f32 %v3106_v23  ;;  %v3144_v23 = vrot.slane %v7839_v30, 7 }
0x14f8   :  { %6669 = vrcp.f32 %v3107_v11 }
0x14f9   :  { %6671 = vrcp.f32 %v3108_v62  ;;  %v3146_v62 = vrot.slane %v7849_v28, 7 }
0x14fc   :  { %v7923_v15 = vpop.eup %6657 }
0x14fd   :  { %v6660_v26 = vpop.eup %6659  ;;  %v3159_v16 = vmul.f32 %v7923_v15, %v3143_v20 }
0x14fe   :  { %v6662_v1 = vpop.eup %6661  ;;  %v3110_v31 = vadd.f32 1.0, %v6660_v26 }
0x14ff   :  { %v3109_v37 = vadd.f32 1.0, %v6662_v1  ;;  %v7927_v27 = vpop.eup %6663 }
0x1500   :  { %6673 = vrcp.f32 %v3110_v31  ;;  %v7929_v22 = vpop.eup %6665  ;;  %v3160_v11 = vmul.f32 %v7927_v27, %v3144_v23  ;;  %v3147_v31 = vrot.slane %v7853_v36, 7  ;;  %v3150_v36 = vrot.slane %v7867_v10, 7 }
0x1501   :  { %6675 = vrcp.f32 %v3109_v37  ;;  %v7934_v43 = vpop.eup %6667 }
0x1502   :  { %v7937_v41 = vpop.eup %6669  ;;  %v3162_v30 = vmul.f32 %v7934_v43, %v3146_v62 }
0x1503   :  { %v7942_v4 = vpop.eup %6671 }
0x150a   :  { %v7945_v12 = vpop.eup %6673 }
0x150b   :  { %v7950_v14 = vpop.eup %6675 }
0x155a   :  { %v3176_v13 = vpop.permute.xlu0 %3175 }
0x155b   :  { %v3199_v21 = vmul.f32 %v7923_v15, %v3176_v13  ;;  %v3178_v3 = vpop.permute.xlu1 %3177  ;;  %v3145_v13 = vrot.slane %v7842_v61, 7 }
0x155c   :  { %v3200_v39 = vmul.f32 %v7927_v27, %v3178_v3 }
0x155d   :  { %3215 = vrot.lane.b32.xlu0 %v3199_v21, %s6850_s24  ;;  %v3161_v21 = vmul.f32 %v7929_v22, %v3145_v13 }
0x155e   :  { %v3180_v51 = vpop.permute.xlu0 %3179  ;;  %3217 = vrot.lane.b32.xlu1 %v3200_v39, %s6850_s24  ;;  %v3163_v39 = vmul.f32 %v7937_v41, %v3147_v31 }
0x155f   :  { %v3201_v17 = vmul.f32 %v7929_v22, %v3180_v51  ;;  %v3182_v7 = vpop.permute.xlu1 %3181  ;;  %v3148_v51 = vrot.slane %v7862_v6, 7  ;;  %v3149_v6 = vrot.slane %v7860_v25, 7 }
0x1560   :  { %v3202_v48 = vmul.f32 %v7934_v43, %v3182_v7 }
0x1561   :  { %3219 = vrot.lane.b32.xlu0 %v3201_v17, %s6850_s24  ;;  %v3165_v10 = vmul.f32 %v7950_v14, %v3149_v6 }
0x1562   :  { %v3184_v57 = vpop.permute.xlu0 %3183  ;;  %3221 = vrot.lane.b32.xlu1 %v3202_v48, %s6850_s24  ;;  %v3164_v48 = vmul.f32 %v7942_v4, %v3148_v51 }
0x1563   :  { %v3203_v40 = vmul.f32 %v7937_v41, %v3184_v57  ;;  %v3186_v9 = vpop.permute.xlu1 %3185 }
0x1564   :  { %v3204_v18 = vmul.f32 %v7942_v4, %v3186_v9 }
0x1565   :  { %3223 = vrot.lane.b32.xlu0 %v3203_v40, %s6850_s24  ;;  %v3166_v40 = vmul.f32 %v7945_v12, %v3150_v36 }
0x1566   :  { %v3190_v19 = vpop.permute.xlu0 %3189  ;;  %3225 = vrot.lane.b32.xlu1 %v3204_v18, %s6850_s24 }
0x1567   :  { %v3206_v52 = vmul.f32 %v7945_v12, %v3190_v19  ;;  %v3188_v2 = vpop.permute.xlu1 %3187 }
0x1568   :  { %v3205_v63 = vmul.f32 %v7950_v14, %v3188_v2 }
0x1569   :  { %3229 = vrot.lane.b32.xlu0 %v3206_v52, %s6850_s24 }
0x156a   :  { %3227 = vrot.lane.b32.xlu1 %v3205_v63, %s6850_s24 }
0x15cf   :  { %v3216_v47 = vpop.permute.xlu0 %3215 }
0x15d0   :  { %v7957_v42 = vadd.f32 %v3216_v47, %v3159_v16  ;;  %v3218_v26 = vpop.permute.xlu1 %3217 }
0x15d1   :  { %v7965_v1 = vadd.f32 %v3218_v26, %v3160_v11  ;;  %v1455_v11 = vrot.slane %v7377_v34, 1  ;;  %v6214_v26 = vld [vmem:[%s5522_s12] sm:$0xff]   ;;  %v6217_v34 = vld [vmem:[%s6902_s13 + $0x8] sm:$0xff]  }
0x15d2   :  { %6677 = vtanh.f32 %v7957_v42  ;;  %5968 = vmatprep.subr.bf16.mxu1 %v6214_v26 }
0x15d3   :  { %v3220_v5 = vpop.permute.xlu0 %3219  ;;  %6679 = vtanh.f32 %v7965_v1  ;;  %5969 = vmatpush3.bf16.msra.mxu1 %v6214_v26 }
0x15d4   :  { %v7968_v37 = vadd.f32 %v3220_v5, %v3161_v21  ;;  %v3222_v61 = vpop.permute.xlu1 %3221  ;;  %v6215_v21 = vld [vmem:[%s5522_s12 + $0x8] sm:$0xff]  }
0x15d5   :  { %v7975_v28 = vadd.f32 %v3222_v61, %v3162_v30  ;;  %5970 = vmatprep.subr.bf16.mxu1 %v6215_v21 }
0x15d6   :  { %6681 = vtanh.f32 %v7968_v37 }
0x15d7   :  { %v3224_v17 = vpop.permute.xlu0 %3223  ;;  %6683 = vtanh.f32 %v7975_v28  ;;  %5971 = vmatpush3.bf16.msra.mxu1 %v6215_v21 }
0x15d8   :  { %v7979_v7 = vadd.f32 %v3224_v17, %v3163_v39  ;;  %v3226_v57 = vpop.permute.xlu1 %3225  ;;  %5996 = vmatprep.subr.bf16.mxu1 %v6843_v0 }
0x15d9   :  { %v7986_v9 = vadd.f32 %v3226_v57, %v3164_v48 }
0x15da   :  { %6685 = vtanh.f32 %v7979_v7 }
0x15db   :  { %v3230_v18 = vpop.permute.xlu0 %3229  ;;  %6687 = vtanh.f32 %v7986_v9 }
0x15dc   :  { %v6678_v3 = vpop.eup %6677  ;;  %v7988_v19 = vadd.f32 %v3230_v18, %v3166_v40  ;;  %v3228_v52 = vpop.permute.xlu1 %3227 }
0x15dd   :  { %3263 = vrot.lane.b32.xlu0 %v6678_v3, %s6852_s26  ;;  %v6680_v2 = vpop.eup %6679  ;;  %v7993_v63 = vadd.f32 %v3228_v52, %v3165_v10 }
0x15de   :  { %6689 = vtanh.f32 %v7988_v19  ;;  %3265 = vrot.lane.b32.xlu1 %v6680_v2, %s6852_s26 }
0x15df   :  { %6691 = vtanh.f32 %v7993_v63 }
0x15e0   :  { %v6682_v20 = vpop.eup %6681 }
0x15e1   :  { %3267 = vrot.lane.b32.xlu0 %v6682_v20, %s6852_s26  ;;  %v6684_v25 = vpop.eup %6683 }
0x15e2   :  { %3269 = vrot.lane.b32.xlu1 %v6684_v25, %s6852_s26 }
0x15e4   :  { %v6686_v16 = vpop.eup %6685 }
0x15e5   :  { %3271 = vrot.lane.b32.xlu0 %v6686_v16, %s6852_s26  ;;  %v6688_v47 = vpop.eup %6687 }
0x15e6   :  { %3273 = vrot.lane.b32.xlu1 %v6688_v47, %s6852_s26 }
0x15e8   :  { %v6690_v23 = vpop.eup %6689 }
0x15e9   :  { %3277 = vrot.lane.b32.xlu0 %v6690_v23, %s6852_s26  ;;  %v6692_v13 = vpop.eup %6691 }
0x15ea   :  { %3275 = vrot.lane.b32.xlu1 %v6692_v13, %s6852_s26 }
0x15ed   :  { %1091 = vrot.lane.b32.xlu0 %v7255_v60, %s6850_s24  ;;  %v6216_v60 = vld [vmem:[%s6902_s13] sm:$0xff]   ;;  %s6859_s13 = smov 9  }
0x15ee   :  { %1456 = vrot.lane.b32.xlu1 %v7385_v46, %s6850_s24  ;;  %5961 = vmatpush3.bf16.msra.mxu0 %v6216_v60  ;;  %s8042_s17 = sld [smem:[%s8519_s0 + %s6859_s13]]  }
0x15ef   :  { %5962 = vmatprep.subr.bf16.mxu0 %v6843_v0 }
0x15f1   :  { %1458 = vrot.lane.b32.xlu0 %v1455_v11, %s6850_s24 }
0x15f2   :  { %1828 = vrot.lane.b32.xlu1 %v7508_v44, %s6850_s24  ;;  %5963 = vmatpush3.bf16.msra.mxu0 %v6217_v34 }
0x15f3   :  { %5980 = vmatprep.subr.bf16.mxu0 %v6843_v0 }
0x15f5   :  { %1830 = vrot.lane.b32.xlu0 %v7515_v59, %s6850_s24 }
0x15f6   :  { %2200 = vrot.lane.b32.xlu1 %v7636_v53, %s6850_s24 }
0x15f9   :  { %2202 = vrot.lane.b32.xlu0 %v7642_v8, %s6850_s24 }
0x164f   :  { %v3264_v46 = vpop.permute.xlu0 %3263 }
0x1650   :  { %v3287_v44 = vmul.f32 %v7923_v15, %v3264_v46  ;;  %v3266_v62 = vpop.permute.xlu1 %3265 }
0x1651   :  { %v3288_v53 = vmul.f32 %v7927_v27, %v3266_v62 }
0x1652   :  { %v3331_v59 = vpack.c.bf16 %v3287_v44, %v3287_v44 }
0x1653   :  { %v3268_v31 = vpop.permute.xlu0 %3267  ;;  %v3303_v8 = vrot.slane %v3288_v53, 7  ;;  %v3332_v3 = vpack.c.bf16 %v3288_v53, %v3288_v53 }
0x1654   :  { %v3347_v5 = vunpack.c.l.b16 %v3331_v59  ;;  %v3289_v30 = vmul.f32 %v7929_v22, %v3268_v31  ;;  %v3270_v39 = vpop.permute.xlu1 %3269 }
0x1655   :  { %v3348_v17 = vunpack.c.l.b16 %v3332_v3  ;;  %v3290_v36 = vmul.f32 %v7934_v43, %v3270_v39  ;;  %v8030_v15 = vsel %vm1089_vm9, %v3303_v8, %v3287_v44 }
0x1656   :  { %v3355_v61 = vrot.slane %v3347_v5, 6  ;;  %v3333_v51 = vpack.c.bf16 %v3289_v30, %v3289_v30  ;;  %v3305_v48 = vrot.slane %v3289_v30, 6 }
0x1657   :  { %v3272_v57 = vpop.permute.xlu0 %3271  ;;  %v3356_v27 = vrot.slane %v3348_v17, 5  ;;  %v3306_v18 = vrot.slane %v3290_v36, 5  ;;  %v3334_v10 = vpack.c.bf16 %v3290_v36, %v3290_v36 }
0x1658   :  { %v3349_v40 = vunpack.c.l.b16 %v3333_v51  ;;  %v3291_v6 = vmul.f32 %v7937_v41, %v3272_v57  ;;  %v3274_v52 = vpop.permute.xlu1 %3273 }
0x1659   :  { %v3357_v25 = vsel %vm1071_vm3, %v3356_v27, %v3355_v61  ;;  %v3350_v16 = vunpack.c.l.b16 %v3334_v10  ;;  %v3307_v43 = vsel %vm1071_vm3, %v3306_v18, %v3305_v48  ;;  %v3292_v47 = vmul.f32 %v7942_v4, %v3274_v52 }
0x165a   :  { %v3358_v22 = vrot.slane %v3349_v40, 4  ;;  %v3308_v2 = vrot.slane %v3291_v6, 4  ;;  %v3335_v20 = vpack.c.bf16 %v3291_v6, %v3291_v6 }
0x165b   :  { %v3278_v23 = vpop.permute.xlu0 %3277  ;;  %v3360_v21 = vrot.slane %v3350_v16, 3  ;;  %v3310_v60 = vrot.slane %v3292_v47, 3  ;;  %v3336_v34 = vpack.c.bf16 %v3292_v47, %v3292_v47 }
0x165c   :  { %v3359_v13 = vsel %vm1074_vm4, %v3358_v22, %v3357_v25  ;;  %v3309_v11 = vsel %vm1074_vm4, %v3308_v2, %v3307_v43  ;;  %v3351_v41 = vunpack.c.l.b16 %v3335_v20  ;;  %v3294_v26 = vmul.f32 %v7945_v12, %v3278_v23  ;;  %v3276_v44 = vpop.permute.xlu1 %3275 }
0x165d   :  { %v3352_v59 = vunpack.c.l.b16 %v3336_v34  ;;  %v3361_v62 = vsel %vm1077_vm5, %v3360_v21, %v3359_v13  ;;  %v3293_v5 = vmul.f32 %v7950_v14, %v3276_v44  ;;  %v3311_v12 = vsel %vm1077_vm5, %v3310_v60, %v3309_v11  ;;  %v6218_v13 = vld [vmem:[%s8042_s17] sm:$0xff]  }
0x165e   :  { %v3362_v46 = vrot.slane %v3351_v41, 2  ;;  %v3338_v4 = vpack.c.bf16 %v3294_v26, %v3294_v26  ;;  %v3314_v30 = vrot.slane %v3294_v26, 1  ;;  %v6219_v41 = vld [vmem:[%s8042_s17 + $0x8] sm:$0xff]  }
0x165f   :  { %v1092_v53 = vpop.permute.xlu0 %1091  ;;  %v3364_v3 = vrot.slane %v3352_v59, 1  ;;  %v3312_v61 = vrot.slane %v3293_v5, 2  ;;  %v3337_v39 = vpack.c.bf16 %v3293_v5, %v3293_v5  ;;  %v8080_v59 = vld [vmem:[%s5524_s22] ss:$0 sm:$0xff] }
0x1660   :  { %v3363_v31 = vsel %vm1080_vm6, %v3362_v46, %v3361_v62  ;;  %v3354_v8 = vunpack.c.l.b16 %v3338_v4  ;;  %1094 = vst.msk [vmem:[#allocation4] sm:$0xff] %vm709_vm2, %v1092_v53  ;;  %v1457_v17 = vpop.permute.xlu1 %1456 }
0x1661   :  { %v3353_v36 = vunpack.c.l.b16 %v3337_v39  ;;  %v3365_v48 = vsel %vm1083_vm7, %v3364_v3, %v3363_v31  ;;  %1464 = vst.msk [vmem:[#allocation4 + $0x7] sm:$0xfe] %vm1463_vm10, %v1457_v17  ;;  %v3313_v57 = vsel %vm1080_vm6, %v3312_v61, %v3311_v12  ;;  %vm4848_vm10 = vcmask 64512  }
0x1662   :  { %v3367_v51 = vrot.slane %v3354_v8, 7  ;;  %v8052_v40 = vsel %vm1083_vm7, %v3314_v30, %v3313_v57 }
0x1663   :  { %v1459_v14 = vpop.permute.xlu0 %1458  ;;  %v3366_v6 = vsel %vm1086_vm8, %v3353_v36, %v3365_v48 }
0x1664   :  { %1466 = vst.msk [vmem:[#allocation4 + $0xf] sm:$0x1] %vm1465_vm11, %v1459_v14  ;;  %v1829_v27 = vpop.permute.xlu1 %1828  ;;  %v3368_v18 = vsel %vm1089_vm9, %v3367_v51, %v3366_v6  ;;  %vm3697_vm9 = vcmask 260096   ;;  %vm6143_vm11 = vmpackc.low %vm4848_vm10, %vm4848_vm10 }
0x1665   :  { %1836 = vst.msk [vmem:[#allocation4 + $0xe] sm:$0xfc] %vm1835_vm12, %v1829_v27  ;;  %v3369_v10 = vpack.c.b16 %v3368_v18, %v3368_v18 }
0x1667   :  { %v1831_v22 = vpop.permute.xlu0 %1830  ;;  %3370 = vrot.lane.b32.xlu1 %v3369_v10, %s6850_s24  ;;  %v3699_v52 = vld [vmem:[#allocation4] sm:$0xff] }
0x1668   :  { %1838 = vst.msk [vmem:[#allocation4 + $0x16] sm:$0x3] %vm1837_vm13, %v1831_v22  ;;  %v2201_v2 = vpop.permute.xlu1 %2200 }
0x1669   :  { %2208 = vst.msk [vmem:[#allocation4 + $0x15] sm:$0xf8] %vm2207_vm14, %v2201_v2 }
0x166b   :  { %v2203_v20 = vpop.permute.xlu0 %2202  ;;  %v3700_v25 = vld [vmem:[#allocation4 + $0x8] sm:$0xff] }
0x166c   :  { %2210 = vst.msk [vmem:[#allocation4 + $0x1d] sm:$0x7] %vm2209_vm15, %v2203_v20  ;;  %v3711_v16 = vpack.c.bf16 %v3700_v25, %v3699_v52 }
0x166e   :  { %5972 = vmatprep.mubr.msk.bf16.mxu1 %vm709_vm2, %v3711_v16  ;;  %v6220_v16 = vld [vmem:[%s8042_s17] sm:$0xff]  }
0x166f   :  { %v3701_v43 = vld [vmem:[#allocation4 + $0x10] sm:$0xff] }
0x1673   :  { %v3702_v47 = vld [vmem:[#allocation4 + $0x18] sm:$0xff] }
0x1674   :  { %v3712_v23 = vpack.c.bf16 %v3702_v47, %v3701_v43  ;;  %v6221_v43 = vld [vmem:[%s8042_s17 + $0x8] sm:$0xff]  }
0x1676   :  { %5973 = vmatmul.mubr.msk.bf16.vlgmr.msra.gmra.mrb[24].mxu1 %vm709_vm2, %v3712_v23 }
0x16d9   :  { %v3371_v11 = vpop.permute.xlu1 %3370 }
0x16da   :  { %5965 = vmatmul.mubr.msk.bf16.vlgmr.msra.gmra.mrb[28].mxu0 %vm709_vm2, %v3371_v11 }
0x16db   :  { %5981 = vmatpush3.bf16.msra.mxu0 %v6218_v13  ;;  %5984 = vmatprep.mubr.msk.bf16.mxu0 %vm6854_vm1, %v6843_v0 }
0x16dc   :  { %5982 = vmatprep.subr.bf16.mxu0 %v6843_v0 }
0x16df   :  { %5983 = vmatpush3.bf16.msra.mxu0 %v6219_v41 }
0x16e0   :  { %5988 = vmatprep.subr.bf16.mxu0 %v6843_v0 }
0x16e2   :  { %5985 = vmatmul.mubr.bf16.vlgmr.msra.gmra.mrb[32].mxu0 %v6855_v55 }
0x16e3   :  { %5992 = vmatprep.mubr.msk.bf16.mxu0 %vm6854_vm1, %v6843_v0  ;;  %5989 = vmatpush3.bf16.msra.mxu0 %v6220_v16 }
0x16e4   :  { %5990 = vmatprep.subr.bf16.mxu0 %v6843_v0 }
0x16e7   :  { %5991 = vmatpush3.bf16.msra.mxu0 %v6221_v43 }
0x16e8   :  { %6004 = vmatprep.subr.bf16.mxu0 %v6843_v0 }
0x1749   :  { %v8069_v26 = vpop.f32.mrb[24].mxu1 }
0x174a   :  { %v3780_v21 = vpop.f32.mrb[25].mxu1 }
0x174b   :  { %v8071_v60 = vpop.f32.mrb[26].mxu1  ;;  %v3781_v62 = vadd.f32 %v8080_v59, %v3780_v21 }
0x174c   :  { %v8073_v34 = vpop.f32.mrb[27].mxu1 }
0x17ad   :  { %v8078_v46 = vpop.f32.mrb[28].mxu0 }
0x17ae   :  { %v5966_v44 = vpop.f32.mrb[29].mxu0  ;;  %v3429_v48 = vrot.slane %v8078_v46, 2  ;;  %v3431_v27 = vrot.slane %v8078_v46, 4  ;;  %v3433_v10 = vrot.slane %v8078_v46, 6  ;;  %v3450_v20 = vadd.f32 %v8078_v46, %v7150_v58 }
0x17af   :  { %v3424_v4 = vpop.f32.mrb[30].mxu0  ;;  %v3430_v58 = vrot.slane %v8078_v46, 3  ;;  %v3432_v23 = vrot.slane %v8078_v46, 5  ;;  %v3434_v41 = vrot.slane %v8078_v46, 7 }
0x17b0   :  { %v5967_v55 = vpop.f32.mrb[31].mxu0  ;;  %v3444_v18 = vadd.f32 %v3429_v48, %v7134_v38  ;;  %v3446_v22 = vadd.f32 %v3431_v27, %v7132_v35  ;;  %v3448_v52 = vadd.f32 %v3433_v10, %v7147_v56 }
0x17b1   :  { %v3445_v13 = vadd.f32 %v3430_v58, %v7127_v29  ;;  %v3447_v21 = vadd.f32 %v3432_v23, %v7145_v50 }
0x17b2   :  { %v5648_v47 = vmul.f32 -1.442695, %v3444_v18  ;;  %v5650_v11 = vmul.f32 -1.442695, %v3446_v22  ;;  %v5652_v44 = vmul.f32 -1.442695, %v3448_v52 }
0x17b3   :  { %v5651_v16 = vmul.f32 -1.442695, %v3447_v21 }
0x17b5   :  { %v3861_v5 = vpop.f32.mrb[32].mxu0 }
0x17b6   :  { %v3867_v53 = vadd.f32 %v3861_v5, %v3781_v62  ;;  %v5986_v12 = vpop.f32.mrb[33].mxu0  ;;  %v3428_v62 = vrot.slane %v8078_v46, 1  ;;  %v3449_v5 = vadd.f32 %v3434_v41, %v7143_v49  ;;  %v3784_v41 = vadd.f32 %v8080_v59, %v8073_v34 }
0x17b7   :  { %v3864_v31 = vpop.f32.mrb[34].mxu0 }
0x17b8   :  { %v5987_v30 = vpop.f32.mrb[35].mxu0  ;;  %6693 = vtanh.f32 %v3867_v53  ;;  %v5664_v3 = vmul.f32 -1.442695, %v3867_v53  ;;  %v5654_v53 = vmul.f32 -1.442695, %v3450_v20  ;;  %v3443_v50 = vadd.f32 %v3428_v62, %v7129_v32 }
0x17b9   :  { %v5653_v43 = vmul.f32 -1.442695, %v3449_v5 }
0x17ba   :  { %6695 = vpow2.f32 %v5664_v3 }
0x17c2   :  { %v6694_v8 = vpop.eup %6693 }
0x17c3   :  { %3877 = vrot.lane.b32.xlu0 %v6694_v8, %s6852_s26 }
0x17c4   :  { %v6696_v61 = vpop.eup %6695 }
0x17c5   :  { %v3871_v39 = vadd.f32 1.0, %v6696_v61 }
0x17c7   :  { %6697 = vrcp.f32 %v3871_v39 }
0x17d1   :  { %v6698_v51 = vpop.eup %6697 }
0x17d2   :  { %v3875_v14 = vmul.f32 0.0, %v6698_v51 }
0x1835   :  { %v3878_v17 = vpop.permute.xlu0 %3877 }
0x1836   :  { %v3880_v36 = vmul.f32 %v6698_v51, %v3878_v17 }
0x1838   :  { %3882 = vrot.lane.b32.xlu1 %v3880_v36, %s6850_s24 }
0x18aa   :  { %v3883_v57 = vpop.permute.xlu1 %3882 }
0x18ab   :  { %v8086_v6 = vadd.f32 %v3883_v57, %v3875_v14 }
0x18ad   :  { %6699 = vtanh.f32 %v8086_v6 }
0x18ae   :  { %6701 = vtanh.f32 %v3444_v18 }
0x18af   :  { %6703 = vtanh.f32 %v3446_v22 }
0x18b0   :  { %6705 = vtanh.f32 %v3448_v52 }
0x18b1   :  { %6707 = vtanh.f32 %v3450_v20 }
0x18b2   :  { %6709 = vpow2.f32 %v5648_v47  ;;  %v5647_v47 = vmul.f32 -1.442695, %v3443_v50 }
0x18b3   :  { %6711 = vtanh.f32 %v3445_v13 }
0x18b4   :  { %6713 = vpow2.f32 %v5650_v11 }
0x18b5   :  { %6715 = vtanh.f32 %v3447_v21 }
0x18b6   :  { %6717 = vpow2.f32 %v5652_v44 }
0x18b7   :  { %v6700_v2 = vpop.eup %6699  ;;  %6719 = vtanh.f32 %v3449_v5 }
0x18b8   :  { %3888 = vrot.lane.b32.xlu0 %v6700_v2, %s6852_s26  ;;  %v6702_v38 = vpop.eup %6701  ;;  %6721 = vpow2.f32 %v5654_v53 }
0x18b9   :  { %v6704_v25 = vpop.eup %6703  ;;  %6723 = vtanh.f32 %v3443_v50 }
0x18ba   :  { %v6706_v35 = vpop.eup %6705 }
0x18bb   :  { %v6708_v56 = vpop.eup %6707 }
0x18bc   :  { %3549 = vrot.lane.b32.xlu0 %v6702_v38, %s6852_s26  ;;  %v6710_v12 = vpop.eup %6709 }
0x18bd   :  { %v6712_v31 = vpop.eup %6711  ;;  %v3476_v30 = vadd.f32 1.0, %v6710_v12 }
0x18be   :  { %v6714_v8 = vpop.eup %6713 }
0x18bf   :  { %v6716_v49 = vpop.eup %6715  ;;  %6725 = vrcp.f32 %v3476_v30  ;;  %v3478_v46 = vadd.f32 1.0, %v6714_v8 }
0x18c0   :  { %3553 = vrot.lane.b32.xlu0 %v6704_v25, %s6852_s26  ;;  %v6718_v3 = vpop.eup %6717 }
0x18c1   :  { %v6720_v39 = vpop.eup %6719  ;;  %6727 = vrcp.f32 %v3478_v46 }
0x18c2   :  { %v6722_v17 = vpop.eup %6721 }
0x18c3   :  { %v6724_v32 = vpop.eup %6723  ;;  %v3482_v36 = vadd.f32 1.0, %v6722_v17 }
0x18c4   :  { %3557 = vrot.lane.b32.xlu0 %v6706_v35, %s6852_s26  ;;  %v5649_v35 = vmul.f32 -1.442695, %v3445_v13 }
0x18c8   :  { %3561 = vrot.lane.b32.xlu0 %v6708_v56, %s6852_s26 }
0x18c9   :  { %v8122_v14 = vpop.eup %6725 }
0x18cb   :  { %v8126_v27 = vpop.eup %6727 }
0x192a   :  { %v3889_v4 = vpop.permute.xlu0 %3888 }
0x192b   :  { %v8110_v55 = vmul.f32 %v6698_v51, %v3889_v4  ;;  %v3480_v51 = vadd.f32 1.0, %v6718_v3  ;;  %v3516_v3 = vrot.slane %v7965_v1, 7 }
0x192d   :  { %v3901_v29 = vpack.c.bf16 %v8110_v55, %v8110_v55  ;;  %6729 = vrcp.f32 %v3480_v51  ;;  %v3532_v51 = vmul.f32 %v8122_v14, %v3516_v3 }
0x192e   :  { %v3550_v61 = vpop.permute.xlu0 %3549  ;;  %6731 = vrcp.f32 %v3482_v36 }
0x192f   :  { %3903 = vrot.lane.b32.xlu1 %v3901_v29, %s6850_s24  ;;  %v3572_v57 = vmul.f32 %v8122_v14, %v3550_v61  ;;  %6733 = vpow2.f32 %v5649_v35 }
0x1930   :  { %6735 = vpow2.f32 %v5651_v16 }
0x1931   :  { %6737 = vpow2.f32 %v5653_v43 }
0x1932   :  { %v3554_v48 = vpop.permute.xlu0 %3553  ;;  %6739 = vpow2.f32 %v5647_v47 }
0x1933   :  { %3551 = vrot.lane.b32.xlu1 %v6712_v31, %s6852_s26  ;;  %v3574_v10 = vmul.f32 %v8126_v27, %v3554_v48 }
0x1936   :  { %v3558_v18 = vpop.permute.xlu0 %3557 }
0x1937   :  { %3555 = vrot.lane.b32.xlu1 %v6716_v49, %s6852_s26  ;;  %v8130_v22 = vpop.eup %6729 }
0x1938   :  { %v3576_v52 = vmul.f32 %v8130_v22, %v3558_v18  ;;  %v8134_v20 = vpop.eup %6731 }
0x1939   :  { %v6734_v23 = vpop.eup %6733 }
0x193a   :  { %v3562_v2 = vpop.permute.xlu0 %3561  ;;  %v3477_v4 = vadd.f32 1.0, %v6734_v23  ;;  %v6736_v29 = vpop.eup %6735 }
0x193b   :  { %3559 = vrot.lane.b32.xlu1 %v6720_v39, %s6852_s26  ;;  %v3578_v38 = vmul.f32 %v8134_v20, %v3562_v2  ;;  %v3479_v5 = vadd.f32 1.0, %v6736_v29  ;;  %v6738_v31 = vpop.eup %6737  ;;  %v3517_v29 = vrot.slane %v7968_v37, 7 }
0x193c   :  { %v3481_v50 = vadd.f32 1.0, %v6738_v31  ;;  %v6740_v30 = vpop.eup %6739 }
0x193d   :  { %v3475_v34 = vadd.f32 1.0, %v6740_v30  ;;  %v3521_v30 = vrot.slane %v7993_v63, 7 }
0x193f   :  { %3547 = vrot.lane.b32.xlu1 %v6724_v32, %s6852_s26  ;;  %v3518_v32 = vrot.slane %v7975_v28, 7 }
0x1943   :  { %3589 = vrot.lane.b32.xlu1 %v3572_v57, %s6850_s24  ;;  %v3534_v57 = vmul.f32 %v8126_v27, %v3518_v32 }
0x1947   :  { %3593 = vrot.lane.b32.xlu1 %v3574_v10, %s6850_s24  ;;  %v3520_v10 = vrot.slane %v7986_v9, 7 }
0x194b   :  { %3597 = vrot.lane.b32.xlu1 %v3576_v52, %s6850_s24 }
0x194f   :  { %3601 = vrot.lane.b32.xlu1 %v3578_v38, %s6850_s24  ;;  %v3536_v38 = vmul.f32 %v8130_v22, %v3520_v10 }
0x19a1   :  { %v3904_v25 = vpop.permute.xlu1 %3903 }
0x19a2   :  { %5993 = vmatmul.mubr.msk.bf16.vlgmr.msra.gmra.mrb[36].mxu0 %vm709_vm2, %v3904_v25  ;;  %v3522_v25 = vrot.slane %v7988_v19, 7 }
0x19a3   :  { %6008 = vmatprep.mubr.msk.bf16.mxu0 %vm6854_vm1, %v6843_v0 }
0x19a4   :  { %v3538_v43 = vmul.f32 %v8134_v20, %v3522_v25 }
0x19a5   :  { %v3552_v56 = vpop.permute.xlu1 %3551 }
0x19a9   :  { %v3556_v58 = vpop.permute.xlu1 %3555 }
0x19ad   :  { %v3560_v11 = vpop.permute.xlu1 %3559 }
0x19b1   :  { %v3548_v21 = vpop.permute.xlu1 %3547 }
0x19b5   :  { %v3590_v8 = vpop.permute.xlu1 %3589 }
0x19b6   :  { %v3612_v36 = vadd.f32 %v3590_v8, %v3532_v51 }
0x19b9   :  { %v3594_v39 = vpop.permute.xlu1 %3593 }
0x19ba   :  { %v3614_v52 = vadd.f32 %v3594_v39, %v3534_v57 }
0x19bd   :  { %v3598_v18 = vpop.permute.xlu1 %3597 }
0x19be   :  { %v3616_v35 = vadd.f32 %v3598_v18, %v3536_v38 }
0x19c1   :  { %v3602_v16 = vpop.permute.xlu1 %3601 }
0x19c2   :  { %v3618_v9 = vadd.f32 %v3602_v16, %v3538_v43 }
0x1a75   :  { %v3954_v44 = vpop.f32.mrb[36].mxu0 }
0x1a76   :  { %v3960_v62 = vadd.f32 %v3954_v44, %v3784_v41  ;;  %v5994_v53 = vpop.f32.mrb[37].mxu0 }
0x1a77   :  { %v3957_v13 = vpop.f32.mrb[38].mxu0 }
0x1a78   :  { %6741 = vtanh.f32 %v3960_v62  ;;  %v5995_v12 = vpop.f32.mrb[39].mxu0 }
0x1a79   :  { %6743 = vrcp.f32 %v3477_v4 }
0x1a7a   :  { %6745 = vrcp.f32 %v3479_v5  ;;  %v3519_v5 = vrot.slane %v7979_v7, 7 }
0x1a7b   :  { %6747 = vrcp.f32 %v3481_v50 }
0x1a7c   :  { %6749 = vrcp.f32 %v3475_v34  ;;  %v3515_v34 = vrot.slane %v7957_v42, 7 }
0x1a7d   :  { %6751 = vtanh.f32 %v3612_v36 }
0x1a7e   :  { %6753 = vtanh.f32 %v3614_v52 }
0x1a7f   :  { %6755 = vtanh.f32 %v3616_v35 }
0x1a80   :  { %6757 = vtanh.f32 %v3618_v9 }
0x1a82   :  { %v6742_v49 = vpop.eup %6741 }
0x1a83   :  { %3970 = vrot.lane.b32.xlu0 %v6742_v49, %s6852_s26  ;;  %v8144_v46 = vpop.eup %6743 }
0x1a84   :  { %v3573_v61 = vmul.f32 %v8144_v46, %v3552_v56  ;;  %v8150_v17 = vpop.eup %6745  ;;  %v3533_v12 = vmul.f32 %v8144_v46, %v3517_v29  ;;  %v6223_v29 = vld [vmem:[%s8042_s17 + $0x8] sm:$0xff]  }
0x1a85   :  { %v3575_v48 = vmul.f32 %v8150_v17, %v3556_v58  ;;  %v8156_v1 = vpop.eup %6747 }
0x1a86   :  { %v3577_v2 = vmul.f32 %v8156_v1, %v3560_v11  ;;  %v8162_v28 = vpop.eup %6749  ;;  %v5668_v11 = vmul.f32 -1.442695, %v3960_v62  ;;  %v3535_v62 = vmul.f32 %v8150_v17, %v3519_v5  ;;  %v3537_v37 = vmul.f32 %v8156_v1, %v3521_v30 }
0x1a87   :  { %3591 = vrot.lane.b32.xlu0 %v3573_v61, %s6850_s24  ;;  %v3571_v56 = vmul.f32 %v8162_v28, %v3548_v21  ;;  %v6752_v58 = vpop.eup %6751  ;;  %v3531_v61 = vmul.f32 %v8162_v28, %v3515_v34 }
0x1a88   :  { %v6754_v47 = vpop.eup %6753  ;;  %6759 = vpow2.f32 %v5668_v11 }
0x1a89   :  { %v6756_v23 = vpop.eup %6755 }
0x1a8a   :  { %v6758_v19 = vpop.eup %6757 }
0x1a8b   :  { %3595 = vrot.lane.b32.xlu0 %v3575_v48, %s6850_s24 }
0x1a8f   :  { %3599 = vrot.lane.b32.xlu0 %v3577_v2, %s6850_s24 }
0x1a92   :  { %v6760_v41 = vpop.eup %6759 }
0x1a93   :  { %3587 = vrot.lane.b32.xlu0 %v3571_v56, %s6850_s24  ;;  %v3964_v44 = vadd.f32 1.0, %v6760_v41 }
0x1a95   :  { %6761 = vrcp.f32 %v3964_v44 }
0x1a97   :  { %3637 = vrot.lane.b32.xlu0 %v6752_v58, %s6852_s26 }
0x1a9b   :  { %3641 = vrot.lane.b32.xlu0 %v6754_v47, %s6852_s26 }
0x1a9f   :  { %3645 = vrot.lane.b32.xlu0 %v6756_v23, %s6852_s26  ;;  %v8172_v4 = vpop.eup %6761 }
0x1aa0   :  { %v3968_v42 = vmul.f32 %v8172_v4, %v8086_v6 }
0x1aa3   :  { %3649 = vrot.lane.b32.xlu0 %v6758_v19, %s6852_s26 }
0x1af5   :  { %v3971_v53 = vpop.permute.xlu0 %3970 }
0x1af6   :  { %v3973_v13 = vmul.f32 %v8172_v4, %v3971_v53 }
0x1af8   :  { %3975 = vrot.lane.b32.xlu1 %v3973_v13, %s6850_s24 }
0x1af9   :  { %v3592_v21 = vpop.permute.xlu0 %3591 }
0x1afa   :  { %v3613_v31 = vadd.f32 %v3592_v21, %v3533_v12 }
0x1afc   :  { %6763 = vtanh.f32 %v3613_v31 }
0x1afd   :  { %v3596_v50 = vpop.permute.xlu0 %3595 }
0x1afe   :  { %v3615_v8 = vadd.f32 %v3596_v50, %v3535_v62 }
0x1b00   :  { %6765 = vtanh.f32 %v3615_v8 }
0x1b01   :  { %v3600_v49 = vpop.permute.xlu0 %3599 }
0x1b02   :  { %v3617_v3 = vadd.f32 %v3600_v49, %v3537_v37 }
0x1b04   :  { %6767 = vtanh.f32 %v3617_v3 }
0x1b05   :  { %v3588_v39 = vpop.permute.xlu0 %3587 }
0x1b06   :  { %v6764_v7 = vpop.eup %6763  ;;  %v3611_v51 = vadd.f32 %v3588_v39, %v3531_v61 }
0x1b07   :  { %3639 = vrot.lane.b32.xlu1 %v6764_v7, %s6852_s26 }
0x1b08   :  { %6769 = vtanh.f32 %v3611_v51 }
0x1b09   :  { %v3638_v18 = vpop.permute.xlu0 %3637 }
0x1b0a   :  { %v6766_v32 = vpop.eup %6765  ;;  %v3660_v2 = vmul.f32 %v8122_v14, %v3638_v18 }
0x1b0b   :  { %3643 = vrot.lane.b32.xlu1 %v6766_v32, %s6852_s26 }
0x1b0c   :  { %v3675_v25 = vrot.slane %v3660_v2, 7 }
0x1b0d   :  { %v3642_v10 = vpop.permute.xlu0 %3641 }
0x1b0e   :  { %v6768_v63 = vpop.eup %6767 }
0x1b0f   :  { %3647 = vrot.lane.b32.xlu1 %v6768_v63, %s6852_s26  ;;  %v3789_v63 = vadd.f32 %v8069_v26, %v8080_v59 }
0x1b12   :  { %v6770_v36 = vpop.eup %6769 }
0x1b13   :  { %3635 = vrot.lane.b32.xlu1 %v6770_v36, %s6852_s26 }
0x1b17   :  { %2572 = vrot.lane.b32.xlu1 %v7767_v33, %s6850_s24  ;;  %v3646_v33 = vpop.permute.xlu0 %3645 }
0x1b18   :  { %v3664_v9 = vmul.f32 %v8130_v22, %v3646_v33 }
0x1b1a   :  { %v3682_v19 = vrot.slane %v3664_v9, 3 }
0x1b1b   :  { %2944 = vrot.lane.b32.xlu1 %v7887_v24, %s6850_s24  ;;  %v3650_v56 = vpop.permute.xlu0 %3649 }
0x1b1f   :  { %3316 = vrot.lane.b32.xlu1 %v8030_v15, %s6850_s24  ;;  %v3662_v15 = vmul.f32 %v8126_v27, %v3642_v10  ;;  %v3666_v27 = vmul.f32 %v8134_v20, %v3650_v56  ;;  %v6224_v56 = vld [vmem:[%s8042_s17] sm:$0xff]  }
0x1b20   :  { %6005 = vmatpush3.bf16.msra.mxu0 %v6224_v56 }
0x1b21   :  { %v3678_v14 = vrot.slane %v3662_v15, 5  ;;  %v3686_v22 = vrot.slane %v3666_v27, 1  ;;  %6006 = vmatprep.subr.bf16.mxu0 %v6843_v0  ;;  %v3792_v27 = vadd.f32 %v8071_v60, %v8080_v59 }
0x1b6a   :  { %v3976_v48 = vpop.permute.xlu1 %3975 }
0x1b6b   :  { %v8196_v57 = vadd.f32 %v3976_v48, %v3968_v42 }
0x1b6d   :  { %6771 = vtanh.f32 %v8196_v57 }
0x1b77   :  { %v6772_v52 = vpop.eup %6771 }
0x1b78   :  { %3981 = vrot.lane.b32.xlu0 %v6772_v52, %s6852_s26 }
0x1b79   :  { %v3640_v24 = vpop.permute.xlu1 %3639 }
0x1b7a   :  { %v3661_v38 = vmul.f32 %v8144_v46, %v3640_v24 }
0x1b7c   :  { %v3676_v6 = vrot.slane %v3661_v38, 6  ;;  %2574 = vrot.lane.b32.xlu0 %v7771_v45, %s6850_s24 }
0x1b7d   :  { %v3644_v35 = vpop.permute.xlu1 %3643 }
0x1b7e   :  { %v3677_v16 = vsel %vm1071_vm3, %v3676_v6, %v3675_v25  ;;  %v3663_v43 = vmul.f32 %v8150_v17, %v3644_v35  ;;  %vm2951_vm3 = vcmask 261125  }
0x1b7f   :  { %v3679_v46 = vsel %vm1074_vm4, %v3678_v14, %v3677_v16  ;;  %vm3323_vm4 = vcmask 261126   ;;  %v6225_v16 = vld [vmem:[%s8042_s17 + $0x8] sm:$0xff]  }
0x1b80   :  { %v3680_v58 = vrot.slane %v3663_v43, 4  ;;  %2946 = vrot.lane.b32.xlu0 %v7901_v54, %s6850_s24  ;;  %v6222_v54 = vld [vmem:[%s8042_s17] sm:$0xff]   ;;  %6007 = vmatpush3.bf16.msra.mxu0 %v6225_v16 }
0x1b81   :  { %v3648_v45 = vpop.permute.xlu1 %3647  ;;  %5997 = vmatpush3.bf16.msra.mxu1 %v6222_v54  ;;  %6020 = vmatprep.subr.bf16.mxu0 %v6843_v0 }
0x1b82   :  { %v3681_v47 = vsel %vm1077_vm5, %v3680_v58, %v3679_v46  ;;  %v3665_v23 = vmul.f32 %v8156_v1, %v3648_v45  ;;  %5998 = vmatprep.subr.bf16.mxu1 %v6843_v0  ;;  %vm2581_vm5 = vcmask 257024  }
0x1b83   :  { %v3683_v11 = vsel %vm1080_vm6, %v3682_v19, %v3681_v47  ;;  %vm2953_vm6 = vcmask 258048  }
0x1b84   :  { %v3684_v17 = vrot.slane %v3665_v23, 2  ;;  %3318 = vrot.lane.b32.xlu0 %v8052_v40, %s6850_s24 }
0x1b85   :  { %v3636_v41 = vpop.permute.xlu1 %3635  ;;  %5999 = vmatpush3.bf16.msra.mxu1 %v6223_v29 }
0x1b86   :  { %v3685_v20 = vsel %vm1083_vm7, %v3684_v17, %v3683_v11  ;;  %v3659_v44 = vmul.f32 %v8162_v28, %v3636_v41  ;;  %6012 = vmatprep.subr.bf16.mxu1 %v6843_v0  ;;  %vm3325_vm7 = vcmask 259072  }
0x1b87   :  { %v3687_v53 = vsel %vm1086_vm8, %v3686_v22, %v3685_v20  ;;  %vm3695_vm8 = vcmask 261127  }
0x1b88   :  { %3688 = vrot.lane.b32.xlu1 %v3659_v44, %s6850_s24  ;;  %3690 = vrot.lane.b32.xlu0 %v3687_v53, %s6850_s24 }
0x1b89   :  { %v2573_v1 = vpop.permute.xlu1 %2572 }
0x1b8a   :  { %2580 = vst.msk [vmem:[#allocation4 + $0x1c] sm:$0xf0] %vm2579_vm0, %v2573_v1  ;;  %v6226_v1 = vld [vmem:[%s8042_s17] sm:$0xff]  }
0x1b8d   :  { %v2945_v40 = vpop.permute.xlu1 %2944 }
0x1b8e   :  { %2952 = vst.msk [vmem:[#allocation4 + $0x23] sm:$0xe0] %vm2951_vm3, %v2945_v40  ;;  %v6227_v40 = vld [vmem:[%s8042_s17 + $0x8] sm:$0xff]  }
0x1b91   :  { %v3317_v28 = vpop.permute.xlu1 %3316 }
0x1b92   :  { %3324 = vst.msk [vmem:[#allocation4 + $0x2a] sm:$0xc0] %vm3323_vm4, %v3317_v28 }
0x1bea   :  { %v3982_v13 = vpop.permute.xlu0 %3981 }
0x1beb   :  { %v8227_v12 = vmul.f32 %v8172_v4, %v3982_v13 }
0x1bed   :  { %v3995_v21 = vpack.c.bf16 %v8227_v12, %v8227_v12 }
0x1bee   :  { %v2575_v5 = vpop.permute.xlu0 %2574 }
0x1bef   :  { %2582 = vst.msk [vmem:[#allocation4 + $0x24] sm:$0xf] %vm2581_vm5, %v2575_v5  ;;  %3997 = vrot.lane.b32.xlu1 %v3995_v21, %s6850_s24 }
0x1bf2   :  { %v2947_v31 = vpop.permute.xlu0 %2946 }
0x1bf3   :  { %2954 = vst.msk [vmem:[#allocation4 + $0x2b] sm:$0x1f] %vm2953_vm6, %v2947_v31 }
0x1bf6   :  { %v3319_v62 = vpop.permute.xlu0 %3318  ;;  %v3703_v4 = vld [vmem:[#allocation4 + $0x20] sm:$0xff] }
0x1bf7   :  { %3326 = vst.msk [vmem:[#allocation4 + $0x32] sm:$0x3f] %vm3325_vm7, %v3319_v62 }
0x1bfa   :  { %v3689_v50 = vpop.permute.xlu1 %3688  ;;  %v3691_v30 = vpop.permute.xlu0 %3690  ;;  %v3704_v8 = vld [vmem:[#allocation4 + $0x28] sm:$0xff] }
0x1bfb   :  { %3696 = vst.msk [vmem:[#allocation4 + $0x31] sm:$0x80] %vm3695_vm8, %v3689_v50  ;;  %v3713_v37 = vpack.c.bf16 %v3704_v8, %v3703_v4 }
0x1bfc   :  { %3698 = vst.msk [vmem:[#allocation4 + $0x39] sm:$0x7f] %vm3697_vm9, %v3691_v30 }
0x1bfd   :  { %5976 = vmatprep.mubr.msk.bf16.mxu1 %vm709_vm2, %v3713_v37 }
0x1bfe   :  { %v3705_v49 = vld [vmem:[#allocation4 + $0x30] sm:$0xff] }
0x1c03   :  { %v3706_v34 = vld [vmem:[#allocation4 + $0x38] sm:$0xff] }
0x1c04   :  { %v3714_v3 = vpack.c.bf16 %v3706_v34, %v3705_v49 }
0x1c06   :  { %5977 = vmatmul.mubr.msk.bf16.gmra.mrb[28].mxu1 %vm709_vm2, %v3714_v3 }
0x1c07   :  { %6000 = vmatprep.mubr.msk.bf16.mxu1 %vm6854_vm1, %v6843_v0 }
0x1c61   :  { %v3998_v61 = vpop.permute.xlu1 %3997 }
0x1c62   :  { %6001 = vmatmul.mubr.msk.bf16.vlgmr.msra.gmra.mrb[32].mxu1 %vm709_vm2, %v3998_v61 }
0x1c63   :  { %6016 = vmatprep.mubr.msk.bf16.mxu1 %vm6854_vm1, %v6843_v0  ;;  %6013 = vmatpush3.bf16.msra.mxu1 %v6226_v1 }
0x1c64   :  { %6014 = vmatprep.subr.bf16.mxu1 %v6843_v0 }
0x1c67   :  { %6015 = vmatpush3.bf16.msra.mxu1 %v6227_v40 }
0x1c68   :  { %6028 = vmatprep.subr.bf16.mxu1 %v6843_v0 }
0x1cd9   :  { %v8239_v39 = vpop.f32.mrb[28].mxu1 }
0x1cda   :  { %v8241_v7 = vpop.f32.mrb[29].mxu1 }
0x1cdb   :  { %v8243_v51 = vpop.f32.mrb[30].mxu1  ;;  %v3797_v62 = vadd.f32 %v8080_v59, %v8241_v7 }
0x1cdc   :  { %v8245_v32 = vpop.f32.mrb[31].mxu1 }
0x1d35   :  { %v4048_v36 = vpop.f32.mrb[32].mxu1 }
0x1d36   :  { %v4054_v42 = vadd.f32 %v4048_v36, %v3789_v63  ;;  %v6002_v48 = vpop.f32.mrb[33].mxu1 }
0x1d37   :  { %v4051_v18 = vpop.f32.mrb[34].mxu1 }
0x1d38   :  { %6773 = vtanh.f32 %v4054_v42  ;;  %v6003_v10 = vpop.f32.mrb[35].mxu1  ;;  %v5672_v2 = vmul.f32 -1.442695, %v4054_v42 }
0x1d39   :  { %v6228_v10 = vld [vmem:[%s8042_s17] sm:$0xff]  }
0x1d3a   :  { %6775 = vpow2.f32 %v5672_v2 }
0x1d42   :  { %v6774_v52 = vpop.eup %6773 }
0x1d43   :  { %4064 = vrot.lane.b32.xlu0 %v6774_v52, %s6852_s26  ;;  %v6229_v52 = vld [vmem:[%s8042_s17 + $0x8] sm:$0xff]  }
0x1d44   :  { %v6776_v33 = vpop.eup %6775 }
0x1d45   :  { %v4058_v24 = vadd.f32 1.0, %v6776_v33 }
0x1d47   :  { %6777 = vrcp.f32 %v4058_v24 }
0x1d51   :  { %v6778_v38 = vpop.eup %6777 }
0x1d52   :  { %v4062_v26 = vmul.f32 %v6778_v38, %v8196_v57 }
0x1db5   :  { %v4065_v15 = vpop.permute.xlu0 %4064 }
0x1db6   :  { %v4067_v25 = vmul.f32 %v6778_v38, %v4065_v15 }
0x1db8   :  { %4069 = vrot.lane.b32.xlu1 %v4067_v25, %s6850_s24  ;;  %v3800_v25 = vadd.f32 %v8080_v59, %v8245_v32 }
0x1e2a   :  { %v4070_v6 = vpop.permute.xlu1 %4069 }
0x1e2b   :  { %v4072_v35 = vadd.f32 %v4070_v6, %v4062_v26 }
0x1e2d   :  { %6779 = vtanh.f32 %v4072_v35 }
0x1e37   :  { %v6780_v43 = vpop.eup %6779 }
0x1e38   :  { %4075 = vrot.lane.b32.xlu0 %v6780_v43, %s6852_s26 }
0x1eaa   :  { %v4076_v14 = vpop.permute.xlu0 %4075 }
0x1eab   :  { %v8257_v9 = vmul.f32 %v6778_v38, %v4076_v14 }
0x1ead   :  { %v4089_v57 = vpack.c.bf16 %v8257_v9, %v8257_v9 }
0x1eaf   :  { %4091 = vrot.lane.b32.xlu1 %v4089_v57, %s6850_s24 }
0x1f21   :  { %v4092_v58 = vpop.permute.xlu1 %4091 }
0x1f22   :  { %6009 = vmatmul.mubr.msk.bf16.vlgmr.msra.gmra.mrb[40].mxu0 %vm709_vm2, %v4092_v58 }
0x1f23   :  { %6024 = vmatprep.mubr.msk.bf16.mxu0 %vm6854_vm1, %v6843_v0  ;;  %6021 = vmatpush3.bf16.msra.mxu0 %v6228_v10 }
0x1f24   :  { %6022 = vmatprep.subr.bf16.mxu0 %v6843_v0 }
0x1f27   :  { %6023 = vmatpush3.bf16.msra.mxu0 %v6229_v52 }
0x1f28   :  { %6036 = vmatprep.subr.bf16.mxu0 %v6843_v0 }
0x1ff5   :  { %v4142_v46 = vpop.f32.mrb[40].mxu0 }
0x1ff6   :  { %v4148_v45 = vadd.f32 %v4142_v46, %v3792_v27  ;;  %v6010_v47 = vpop.f32.mrb[41].mxu0 }
0x1ff7   :  { %v4145_v23 = vpop.f32.mrb[42].mxu0 }
0x1ff8   :  { %6781 = vtanh.f32 %v4148_v45  ;;  %v6011_v19 = vpop.f32.mrb[43].mxu0  ;;  %v5676_v22 = vmul.f32 -1.442695, %v4148_v45 }
0x1ff9   :  { %v6230_v19 = vld [vmem:[%s8042_s17] sm:$0xff]  }
0x1ffa   :  { %6783 = vpow2.f32 %v5676_v22 }
0x2002   :  { %v6782_v17 = vpop.eup %6781 }
0x2003   :  { %4158 = vrot.lane.b32.xlu0 %v6782_v17, %s6852_s26  ;;  %v6231_v17 = vld [vmem:[%s8042_s17 + $0x8] sm:$0xff]  }
0x2004   :  { %v6784_v11 = vpop.eup %6783 }
0x2005   :  { %v4152_v41 = vadd.f32 1.0, %v6784_v11 }
0x2007   :  { %6785 = vrcp.f32 %v4152_v41 }
0x2011   :  { %v6786_v54 = vpop.eup %6785 }
0x2012   :  { %v4156_v60 = vmul.f32 %v6786_v54, %v4072_v35 }
0x2075   :  { %v4159_v20 = vpop.permute.xlu0 %4158 }
0x2076   :  { %v4161_v44 = vmul.f32 %v6786_v54, %v4159_v20 }
0x2078   :  { %4163 = vrot.lane.b32.xlu1 %v4161_v44, %s6850_s24  ;;  %v3805_v44 = vadd.f32 %v8239_v39, %v8080_v59 }
0x20ea   :  { %v4164_v53 = vpop.permute.xlu1 %4163 }
0x20eb   :  { %v4166_v29 = vadd.f32 %v4164_v53, %v4156_v60 }
0x20ed   :  { %6787 = vtanh.f32 %v4166_v29 }
0x20f7   :  { %v6788_v28 = vpop.eup %6787 }
0x20f8   :  { %4169 = vrot.lane.b32.xlu0 %v6788_v28, %s6852_s26 }
0x216a   :  { %v4170_v13 = vpop.permute.xlu0 %4169 }
0x216b   :  { %v8274_v21 = vmul.f32 %v6786_v54, %v4170_v13 }
0x216d   :  { %v4183_v5 = vpack.c.bf16 %v8274_v21, %v8274_v21 }
0x216f   :  { %4185 = vrot.lane.b32.xlu1 %v4183_v5, %s6850_s24 }
0x21e1   :  { %v4186_v31 = vpop.permute.xlu1 %4185 }
0x21e2   :  { %6017 = vmatmul.mubr.msk.bf16.vlgmr.msra.gmra.mrb[36].mxu1 %vm709_vm2, %v4186_v31 }
0x21e3   :  { %6032 = vmatprep.mubr.msk.bf16.mxu1 %vm6854_vm1, %v6843_v0  ;;  %6029 = vmatpush3.bf16.msra.mxu1 %v6230_v19 }
0x21e4   :  { %6030 = vmatprep.subr.bf16.mxu1 %v6843_v0 }
0x21e7   :  { %6031 = vmatpush3.bf16.msra.mxu1 %v6231_v17 }
0x22b5   :  { %v4236_v50 = vpop.f32.mrb[36].mxu1 }
0x22b6   :  { %v4242_v30 = vadd.f32 %v4236_v50, %v3797_v62  ;;  %v6018_v4 = vpop.f32.mrb[37].mxu1 }
0x22b7   :  { %v4239_v8 = vpop.f32.mrb[38].mxu1 }
0x22b8   :  { %6789 = vtanh.f32 %v4242_v30  ;;  %v6019_v37 = vpop.f32.mrb[39].mxu1  ;;  %v5680_v34 = vmul.f32 -1.442695, %v4242_v30 }
0x22b9   :  { %v6232_v37 = vld [vmem:[%s8042_s17] sm:$0xff]  }
0x22ba   :  { %6791 = vpow2.f32 %v5680_v34 }
0x22c2   :  { %v6790_v49 = vpop.eup %6789 }
0x22c3   :  { %4252 = vrot.lane.b32.xlu0 %v6790_v49, %s6852_s26  ;;  %v6233_v49 = vld [vmem:[%s8042_s17 + $0x8] sm:$0xff]  }
0x22c4   :  { %v6792_v3 = vpop.eup %6791 }
0x22c5   :  { %v4246_v61 = vadd.f32 1.0, %v6792_v3 }
0x22c7   :  { %6793 = vrcp.f32 %v4246_v61 }
0x22d1   :  { %v6794_v63 = vpop.eup %6793 }
0x22d2   :  { %v4250_v7 = vmul.f32 %v6794_v63, %v4166_v29 }
0x2335   :  { %v4253_v36 = vpop.permute.xlu0 %4252 }
0x2336   :  { %v4255_v42 = vmul.f32 %v6794_v63, %v4253_v36 }
0x2338   :  { %4257 = vrot.lane.b32.xlu1 %v4255_v42, %s6850_s24  ;;  %v3808_v42 = vadd.f32 %v8243_v51, %v8080_v59 }
0x23aa   :  { %v4258_v48 = vpop.permute.xlu1 %4257 }
0x23ab   :  { %v4260_v18 = vadd.f32 %v4258_v48, %v4250_v7 }
0x23ad   :  { %6795 = vtanh.f32 %v4260_v18 }
0x23b7   :  { %v6796_v2 = vpop.eup %6795 }
0x23b8   :  { %4263 = vrot.lane.b32.xlu0 %v6796_v2, %s6852_s26 }
0x242a   :  { %v4264_v33 = vpop.permute.xlu0 %4263 }
0x242b   :  { %v8291_v24 = vmul.f32 %v6794_v63, %v4264_v33 }
0x242d   :  { %v4277_v38 = vpack.c.bf16 %v8291_v24, %v8291_v24 }
0x242f   :  { %4279 = vrot.lane.b32.xlu1 %v4277_v38, %s6850_s24 }
0x24a1   :  { %v4280_v15 = vpop.permute.xlu1 %4279 }
0x24a2   :  { %6025 = vmatmul.mubr.msk.bf16.vlgmr.msra.gmra.mrb[44].mxu0 %vm709_vm2, %v4280_v15 }
0x24a3   :  { %6040 = vmatprep.mubr.msk.bf16.mxu0 %vm6854_vm1, %v6843_v0  ;;  %6037 = vmatpush3.bf16.msra.mxu0 %v6232_v37 }
0x24a4   :  { %6038 = vmatprep.subr.bf16.mxu0 %v6843_v0 }
0x24a7   :  { %6039 = vmatpush3.bf16.msra.mxu0 %v6233_v49 }
0x2575   :  { %v4330_v26 = vpop.f32.mrb[44].mxu0 }
0x2576   :  { %v4336_v6 = vadd.f32 %v4330_v26, %v3800_v25  ;;  %v6026_v35 = vpop.f32.mrb[45].mxu0 }
0x2577   :  { %v4333_v56 = vpop.f32.mrb[46].mxu0 }
0x2578   :  { %6797 = vtanh.f32 %v4336_v6  ;;  %v6027_v16 = vpop.f32.mrb[47].mxu0  ;;  %v5684_v14 = vmul.f32 -1.442695, %v4336_v6 }
0x257a   :  { %6799 = vpow2.f32 %v5684_v14  ;;  %v6235_v14 = vld [vmem:[%s5525_s28 + $0x8] sm:$0xff]  }
0x2582   :  { %v6798_v43 = vpop.eup %6797 }
0x2583   :  { %4346 = vrot.lane.b32.xlu0 %v6798_v43, %s6852_s26 }
0x2584   :  { %v6800_v57 = vpop.eup %6799 }
0x2585   :  { %v4340_v58 = vadd.f32 1.0, %v6800_v57 }
0x2587   :  { %6801 = vrcp.f32 %v4340_v58 }
0x2591   :  { %v6802_v27 = vpop.eup %6801 }
0x2592   :  { %v4344_v32 = vmul.f32 %v6802_v27, %v4260_v18 }
0x25f5   :  { %v4347_v46 = vpop.permute.xlu0 %4346 }
0x25f6   :  { %v4349_v45 = vmul.f32 %v6802_v27, %v4347_v46 }
0x25f8   :  { %4351 = vrot.lane.b32.xlu1 %v4349_v45, %s6850_s24 }
0x266a   :  { %v4352_v47 = vpop.permute.xlu1 %4351 }
0x266b   :  { %v4354_v23 = vadd.f32 %v4352_v47, %v4344_v32 }
0x266d   :  { %6803 = vtanh.f32 %v4354_v23 }
0x2677   :  { %v6804_v22 = vpop.eup %6803 }
0x2678   :  { %4357 = vrot.lane.b32.xlu0 %v6804_v22, %s6852_s26 }
0x26ea   :  { %v4358_v11 = vpop.permute.xlu0 %4357 }
0x26eb   :  { %v8307_v41 = vmul.f32 %v6802_v27, %v4358_v11 }
0x26ed   :  { %v4371_v54 = vpack.c.bf16 %v8307_v41, %v8307_v41 }
0x26ef   :  { %4373 = vrot.lane.b32.xlu1 %v4371_v54, %s6850_s24 }
0x2761   :  { %v4374_v20 = vpop.permute.xlu1 %4373 }
0x2762   :  { %6033 = vmatmul.mubr.msk.bf16.vlgmr.msra.gmra.mrb[40].mxu1 %vm709_vm2, %v4374_v20 }
0x2835   :  { %v4424_v60 = vpop.f32.mrb[40].mxu1 }
0x2836   :  { %v4430_v53 = vadd.f32 %v4424_v60, %v3805_v44  ;;  %v6034_v29 = vpop.f32.mrb[41].mxu1  ;;  %v4667_v60 = vld [vmem:[%s5529_s2] sm:$0xff] }
0x2837   :  { %v4427_v1 = vpop.f32.mrb[42].mxu1 }
0x2838   :  { %6805 = vtanh.f32 %v4430_v53  ;;  %v6035_v40 = vpop.f32.mrb[43].mxu1  ;;  %v5688_v13 = vmul.f32 -1.442695, %v4430_v53  ;;  %v4668_v53 = vld [vmem:[%s5529_s2 + $0x8] sm:$0xff]  ;;  %v4669_v1 = vld [vmem:[%s5529_s2 + $0x10] sm:$0xff] }
0x2839   :  { %v8364_v29 = vpack.c.bf16 %v4668_v53, %v4667_v60  ;;  %v4670_v40 = vld [vmem:[%s5529_s2 + $0x18] sm:$0xff] }
0x283a   :  { %6807 = vpow2.f32 %v5688_v13  ;;  %v5693_v13 = vld [vmem:[%s5526_s5] ss:$0 sm:$0xff]  ;;  %s6870_s5 = smov 19  }
0x283b   :  { %6135 = vmatprep.subr.bf16.mxu0 %v8364_v29  ;;  %s5533_s7 = sld [smem:[%s8519_s0 + %s6870_s5]]  }
0x2842   :  { %v6806_v28 = vpop.eup %6805 }
0x2843   :  { %4440 = vrot.lane.b32.xlu0 %v6806_v28, %s6852_s26  ;;  %v8366_v28 = vpack.c.bf16 %v4670_v40, %v4669_v1 }
0x2844   :  { %v6808_v5 = vpop.eup %6807 }
0x2845   :  { %v4434_v31 = vadd.f32 1.0, %v6808_v5 }
0x2847   :  { %6809 = vrcp.f32 %v4434_v31 }
0x2851   :  { %v6810_v62 = vpop.eup %6809 }
0x2852   :  { %v4438_v39 = vmul.f32 %v6810_v62, %v4354_v23 }
0x28b5   :  { %v4441_v50 = vpop.permute.xlu0 %4440 }
0x28b6   :  { %v4443_v30 = vmul.f32 %v6810_v62, %v4441_v50 }
0x28b8   :  { %4445 = vrot.lane.b32.xlu1 %v4443_v30, %s6850_s24 }
0x292a   :  { %v4446_v4 = vpop.permute.xlu1 %4445 }
0x292b   :  { %v4448_v8 = vadd.f32 %v4446_v4, %v4438_v39 }
0x292d   :  { %6811 = vtanh.f32 %v4448_v8 }
0x2937   :  { %v6812_v34 = vpop.eup %6811 }
0x2938   :  { %4451 = vrot.lane.b32.xlu0 %v6812_v34, %s6852_s26 }
0x29aa   :  { %v4452_v3 = vpop.permute.xlu0 %4451 }
0x29ab   :  { %v4454_v61 = vmul.f32 %v6810_v62, %v4452_v3 }
0x29ad   :  { %v4465_v63 = vpack.c.bf16 %v4454_v61, %v4454_v61 }
0x29af   :  { %4467 = vrot.lane.b32.xlu1 %v4465_v63, %s6850_s24 }
0x2a21   :  { %v4468_v36 = vpop.permute.xlu1 %4467 }
0x2a22   :  { %6041 = vmatmul.mubr.msk.bf16.vlgmr.msra.gmra.mrb[48].mxu0 %vm709_vm2, %v4468_v36 }
0x2a23   :  { %6137 = vmatpush3.bf16.msra.mxu0 %v8364_v29 }
0x2a24   :  { %6139 = vmatprep.subr.bf16.mxu0 %v8366_v28 }
0x2a27   :  { %6141 = vmatpush3.bf16.msra.mxu0 %v8366_v28 }
0x2a28   :  { %6096 = vmatprep.subr.bf16.mxu0 %v6843_v0 }
0x2af5   :  { %v4518_v7 = vpop.f32.mrb[48].mxu0 }
0x2af6   :  { %v4524_v48 = vadd.f32 %v4518_v7, %v3808_v42  ;;  %v6042_v18 = vpop.f32.mrb[49].mxu0 }
0x2af7   :  { %v4521_v10 = vpop.f32.mrb[50].mxu0 }
0x2af8   :  { %6813 = vtanh.f32 %v4524_v48  ;;  %v6043_v52 = vpop.f32.mrb[51].mxu0  ;;  %v5692_v33 = vmul.f32 -1.442695, %v4524_v48 }
0x2afa   :  { %6815 = vpow2.f32 %v5692_v33 }
0x2b02   :  { %v6814_v2 = vpop.eup %6813 }
0x2b03   :  { %4534 = vrot.lane.b32.xlu0 %v6814_v2, %s6852_s26 }
0x2b04   :  { %v6816_v38 = vpop.eup %6815 }
0x2b05   :  { %v4528_v15 = vadd.f32 1.0, %v6816_v38 }
0x2b07   :  { %6817 = vrcp.f32 %v4528_v15 }
0x2b11   :  { %v6818_v25 = vpop.eup %6817 }
0x2b12   :  { %v4532_v59 = vmul.f32 %v6818_v25, %v4448_v8 }
0x2b75   :  { %v4535_v26 = vpop.permute.xlu0 %4534 }
0x2b76   :  { %v4537_v6 = vmul.f32 %v6818_v25, %v4535_v26 }
0x2b78   :  { %4539 = vrot.lane.b32.xlu1 %v4537_v6, %s6850_s24 }
0x2b7c   :  { %3893 = vrot.lane.b32.xlu1 %v8110_v55, %s6850_s24 }
0x2b80   :  { %4080 = vrot.lane.b32.xlu1 %v8257_v9, %s6850_s24 }
0x2b84   :  { %4268 = vrot.lane.b32.xlu1 %v8291_v24, %s6850_s24  ;;  %v6234_v24 = vld [vmem:[%s5525_s28] sm:$0xff]  }
0x2b85   :  { %6044 = vmatprep.subr.bf16.mxu1 %v6234_v24 }
0x2b86   :  { %6045 = vmatpush3.bf16.msra.mxu1 %v6234_v24 }
0x2b87   :  { %6046 = vmatprep.subr.bf16.mxu1 %v6235_v14 }
0x2b88   :  { %4456 = vrot.lane.b32.xlu1 %v4454_v61, %s6850_s24 }
0x2b8a   :  { %6047 = vmatpush3.bf16.msra.mxu1 %v6235_v14 }
0x2b8b   :  { %6144 = vmatprep.subr.msk.bf16.mxu1 %vm6143_vm11, %v8364_v29 }
0x2bea   :  { %v4540_v51 = vpop.permute.xlu1 %4539 }
0x2beb   :  { %v4542_v35 = vadd.f32 %v4540_v51, %v4532_v59 }
0x2bed   :  { %6819 = vtanh.f32 %v4542_v35 }
0x2bee   :  { %v3894_v56 = vpop.permute.xlu1 %3893 }
0x2bef   :  { %3896 = vst.msk [vmem:[#allocation5] sm:$0xff] %vm709_vm2, %v3894_v56 }
0x2bf2   :  { %v4081_v16 = vpop.permute.xlu1 %4080 }
0x2bf3   :  { %4084 = vst.msk [vmem:[#allocation5 + $0x10] sm:$0xff] %vm709_vm2, %v4081_v16 }
0x2bf6   :  { %v4269_v55 = vpop.permute.xlu1 %4268  ;;  %v4555_v45 = vld [vmem:[#allocation5] sm:$0xff] }
0x2bf7   :  { %v6820_v9 = vpop.eup %6819  ;;  %4272 = vst.msk [vmem:[#allocation5 + $0x20] sm:$0xff] %vm709_vm2, %v4269_v55 }
0x2bf8   :  { %4545 = vrot.lane.b32.xlu0 %v6820_v9, %s6852_s26 }
0x2bfa   :  { %v4457_v43 = vpop.permute.xlu1 %4456  ;;  %v4557_v47 = vld [vmem:[#allocation5 + $0x10] sm:$0xff] }
0x2bfb   :  { %4460 = vst.msk [vmem:[#allocation5 + $0x30] sm:$0xff] %vm709_vm2, %v4457_v43 }
0x2bfc   :  { %3986 = vrot.lane.b32.xlu0 %v8227_v12, %s6850_s24 }
0x2bfe   :  { %v4559_v17 = vld [vmem:[#allocation5 + $0x20] sm:$0xff] }
0x2c00   :  { %4174 = vrot.lane.b32.xlu0 %v8274_v21, %s6850_s24 }
0x2c02   :  { %v4561_v54 = vld [vmem:[#allocation5 + $0x30] sm:$0xff] }
0x2c04   :  { %4362 = vrot.lane.b32.xlu0 %v8307_v41, %s6850_s24 }
0x2c6a   :  { %v4546_v57 = vpop.permute.xlu0 %4545 }
0x2c6b   :  { %v4548_v58 = vmul.f32 %v6818_v25, %v4546_v57 }
0x2c6d   :  { %4550 = vrot.lane.b32.xlu0 %v4548_v58, %s6850_s24 }
0x2c6e   :  { %v3987_v27 = vpop.permute.xlu0 %3986 }
0x2c6f   :  { %3990 = vst.msk [vmem:[#allocation5 + $0x8] sm:$0xff] %vm709_vm2, %v3987_v27 }
0x2c72   :  { %v4175_v46 = vpop.permute.xlu0 %4174 }
0x2c73   :  { %4178 = vst.msk [vmem:[#allocation5 + $0x18] sm:$0xff] %vm709_vm2, %v4175_v46 }
0x2c76   :  { %v4363_v12 = vpop.permute.xlu0 %4362  ;;  %v4556_v32 = vld [vmem:[#allocation5 + $0x8] sm:$0xff] }
0x2c77   :  { %4366 = vst.msk [vmem:[#allocation5 + $0x28] sm:$0xff] %vm709_vm2, %v4363_v12  ;;  %v4567_v21 = vpack.c.bf16 %v4556_v32, %v4555_v45 }
0x2c79   :  { %6048 = vmatprep.mubr.msk.bf16.mxu1 %vm709_vm2, %v4567_v21 }
0x2c7a   :  { %v4558_v23 = vld [vmem:[#allocation5 + $0x18] sm:$0xff] }
0x2c7b   :  { %v4568_v19 = vpack.c.bf16 %v4558_v23, %v4557_v47 }
0x2c7d   :  { %6049 = vmatmul.mubr.msk.bf16.vlgmr.msra.gmra.mrb[44].mxu1 %vm709_vm2, %v4568_v19 }
0x2c7e   :  { %v4560_v22 = vld [vmem:[#allocation5 + $0x28] sm:$0xff]  ;;  %6147 = vmatpush3.bf16.xpose.msk.msra.mxu1 %vm6143_vm11, %v8364_v29 }
0x2c7f   :  { %v4569_v11 = vpack.c.bf16 %v4560_v22, %v4559_v17  ;;  %6150 = vmatprep.subr.msk.bf16.mxu1 %vm6143_vm11, %v8366_v28 }
0x2c81   :  { %6052 = vmatprep.mubr.msk.bf16.mxu1 %vm709_vm2, %v4569_v11 }
0x2c86   :  { %6153 = vmatpush3.bf16.xpose.msk.msra.mxu1 %vm6143_vm11, %v8366_v28 }
0x2c87   :  { %6112 = vmatprep.subr.bf16.mxu1 %v6843_v0 }
0x2cdf   :  { %v4551_v41 = vpop.permute.xlu0 %4550 }
0x2ce0   :  { %4554 = vst.msk [vmem:[#allocation5 + $0x38] sm:$0xff] %vm709_vm2, %v4551_v41 }
0x2ce7   :  { %v4562_v20 = vld [vmem:[#allocation5 + $0x38] sm:$0xff] }
0x2ce8   :  { %v4570_v44 = vpack.c.bf16 %v4562_v20, %v4561_v54 }
0x2cea   :  { %6053 = vmatmul.mubr.msk.bf16.gmra.mrb[48].mxu1 %vm709_vm2, %v4570_v44 }
0x2d50   :  { %v6050_v5 = vpop.f32.mrb[44].mxu1 }
0x2d51   :  { %v4636_v31 = vpop.f32.mrb[45].mxu1  ;;  %v4645_v4 = vadd.f32 %v6050_v5, %v5693_v13 }
0x2d52   :  { %v4637_v62 = vadd.f32 %v5693_v13, %v4636_v31  ;;  %v6051_v50 = vpop.f32.mrb[46].mxu1 }
0x2d53   :  { %v4639_v30 = vpop.f32.mrb[47].mxu1  ;;  %v4648_v8 = vadd.f32 %v6051_v50, %v5693_v13 }
0x2d54   :  { %v4640_v39 = vadd.f32 %v5693_v13, %v4639_v30  ;;  %4679 = vrot.lane.b32.xlu1 %v4637_v62, %s6863_s14 }
0x2d56   :  { %4681 = vrot.lane.b32.xlu0 %v4640_v39, %s6863_s14 }
0x2d58   :  { %4683 = vrot.lane.b32.xlu1 %v4645_v4, %s6863_s14 }
0x2d5a   :  { %4685 = vrot.lane.b32.xlu0 %v4648_v8, %s6863_s14 }
0x2dbd   :  { %v6054_v37 = vpop.f32.mrb[48].mxu1 }
0x2dbe   :  { %v4652_v49 = vpop.f32.mrb[49].mxu1  ;;  %v4661_v36 = vadd.f32 %v6054_v37, %v5693_v13 }
0x2dbf   :  { %v4653_v34 = vadd.f32 %v5693_v13, %v4652_v49  ;;  %v6055_v3 = vpop.f32.mrb[50].mxu1 }
0x2dc0   :  { %v4655_v61 = vpop.f32.mrb[51].mxu1  ;;  %v4664_v42 = vadd.f32 %v6055_v3, %v5693_v13 }
0x2dc1   :  { %v4656_v63 = vadd.f32 %v5693_v13, %v4655_v61  ;;  %4687 = vrot.lane.b32.xlu1 %v4653_v34, %s6863_s14 }
0x2dc3   :  { %4689 = vrot.lane.b32.xlu0 %v4656_v63, %s6863_s14 }
0x2dc5   :  { %4691 = vrot.lane.b32.xlu1 %v4661_v36, %s6863_s14 }
0x2dc6   :  { %v4680_v7 = vpop.permute.xlu1 %4679 }
0x2dc7   :  { %v4703_v48 = vmul.f32 %v4680_v7, %v4664_v42  ;;  %4693 = vrot.lane.b32.xlu0 %v4664_v42, %s6863_s14 }
0x2dc8   :  { %v4682_v18 = vpop.permute.xlu0 %4681 }
0x2dc9   :  { %v4704_v10 = vmul.f32 %v4682_v18, %v4664_v42  ;;  %6064 = vmatprep.mubr.msk.f32.mxu0 %vm709_vm2, %v4703_v48  ;;  %5053 = vrot.lane.b32.xlu1 %v4637_v62, %s6852_s26 }
0x2dca   :  { %v4684_v52 = vpop.permute.xlu1 %4683 }
0x2dcb   :  { %v4705_v2 = vmul.f32 %v4684_v52, %v4664_v42  ;;  %5055 = vrot.lane.b32.xlu0 %v4640_v39, %s6852_s26  ;;  %6065 = vmatmul.mubr.msk.f32.vlgmr.msra.gmra.mrb[52].mxu0 %vm709_vm2, %v4704_v10 }
0x2dcc   :  { %v4686_v33 = vpop.permute.xlu0 %4685 }
0x2dcd   :  { %v4706_v38 = vmul.f32 %v4686_v33, %v4664_v42  ;;  %5057 = vrot.lane.b32.xlu1 %v4645_v4, %s6852_s26  ;;  %6067 = vmatprep.mubr.msk.f32.mxu0 %vm709_vm2, %v4705_v2 }
0x2dcf   :  { %5059 = vrot.lane.b32.xlu0 %v4648_v8, %s6852_s26  ;;  %6068 = vmatmul.mubr.msk.f32.gmra.mrb[54].mxu0 %vm709_vm2, %v4706_v38 }
0x2dd1   :  { %5061 = vrot.lane.b32.xlu1 %v4653_v34, %s6852_s26 }
0x2dd3   :  { %5063 = vrot.lane.b32.xlu0 %v4656_v63, %s6852_s26 }
0x2dd5   :  { %5065 = vrot.lane.b32.xlu1 %v4661_v36, %s6852_s26 }
0x2dd7   :  { %5067 = vrot.lane.b32.xlu0 %v4664_v42, %s6852_s26  ;;  %s6864_s26 = smov 13  }
0x2dd8   :  { %s5527_s8 = sld [smem:[%s8519_s0 + %s6864_s26]]  }
0x2e33   :  { %v4688_v15 = vpop.permute.xlu1 %4687 }
0x2e34   :  { %v4707_v25 = vmul.f32 %v4688_v15, %v4664_v42 }
0x2e35   :  { %v4690_v26 = vpop.permute.xlu0 %4689 }
0x2e36   :  { %v4708_v6 = vmul.f32 %v4690_v26, %v4664_v42  ;;  %6070 = vmatprep.mubr.msk.f32.mxu0 %vm709_vm2, %v4707_v25 }
0x2e37   :  { %v4692_v59 = vpop.permute.xlu1 %4691 }
0x2e38   :  { %v4709_v51 = vmul.f32 %v4692_v59, %v4664_v42  ;;  %6071 = vmatmul.mubr.msk.f32.gmra.mrb[56].mxu0 %vm709_vm2, %v4708_v6 }
0x2e39   :  { %v4694_v35 = vpop.permute.xlu0 %4693 }
0x2e3a   :  { %v4710_v56 = vmul.f32 %v4694_v35, %v4664_v42  ;;  %6073 = vmatprep.mubr.msk.f32.mxu0 %vm709_vm2, %v4709_v51 }
0x2e3c   :  { %6074 = vmatmul.mubr.msk.f32.gmra.mrb[58].mxu0 %vm709_vm2, %v4710_v56 }
0x2e3d   :  { %6100 = vmatprep.mubr.msk.bf16.mxu0 %vm6854_vm1, %v6843_v0 }
0x2e9e   :  { %v6066_v16 = vpop.f32.mrb[52].mxu0 }
0x2e9f   :  { %v4801_v55 = vpop.f32.mrb[53].mxu0  ;;  %v4841_v43 = vmul.f32 0.5, %v6066_v16 }
0x2ea0   :  { %v4840_v14 = vmul.f32 0.5, %v4801_v55 }
0x2ea1   :  { %v4850_v12 = vsel %vm4848_vm10, %v4841_v43, -inf }
0x2ea2   :  { %v6069_v9 = vpop.f32.mrb[54].mxu0  ;;  %v4849_v21 = vsel %vm4848_vm10, %v4840_v14, -inf }
0x2ea3   :  { %v4811_v24 = vpop.f32.mrb[55].mxu0  ;;  %v4843_v45 = vmul.f32 0.5, %v6069_v9 }
0x2ea4   :  { %v4842_v47 = vmul.f32 0.5, %v4811_v24 }
0x2ea5   :  { %v4852_v20 = vsel %vm4848_vm10, %v4843_v45, -inf }
0x2ea6   :  { %v4851_v53 = vsel %vm4848_vm10, %v4842_v47, -inf }
0x2f0b   :  { %v6072_v57 = vpop.f32.mrb[56].mxu0 }
0x2f0c   :  { %v4845_v58 = vmul.f32 0.5, %v6072_v57  ;;  %v4821_v27 = vpop.f32.mrb[57].mxu0 }
0x2f0d   :  { %v4844_v46 = vmul.f32 0.5, %v4821_v27 }
0x2f0e   :  { %v4855_v32 = vsel %vm4848_vm10, %v4845_v58, -inf }
0x2f0f   :  { %v4856_v23 = vmax.f32 %v4850_v12, %v4855_v32  ;;  %v4853_v19 = vsel %vm4848_vm10, %v4844_v46, -inf  ;;  %v6075_v17 = vpop.f32.mrb[58].mxu0 }
0x2f10   :  { %v4854_v22 = vmax.f32 %v4849_v21, %v4853_v19  ;;  %v4847_v11 = vmul.f32 0.5, %v6075_v17  ;;  %v4831_v41 = vpop.f32.mrb[59].mxu0  ;;  %v6236_v19 = vld [vmem:[%s5527_s8] sm:$0xff]   ;;  %v6237_v17 = vld [vmem:[%s5527_s8 + $0x8] sm:$0xff]   ;;  %s6871_s8 = smov 24  }
0x2f11   :  { %v4846_v54 = vmul.f32 0.5, %v4831_v41  ;;  %6097 = vmatpush3.bf16.msra.mxu0 %v6236_v19 }
0x2f12   :  { %v4861_v44 = vmax.f32 %v4854_v22, %v4856_v23  ;;  %v4859_v60 = vsel %vm4848_vm10, %v4847_v11, -inf  ;;  %6098 = vmatprep.subr.bf16.mxu0 %v6843_v0  ;;  %v5054_v22 = vpop.permute.xlu1 %5053 }
0x2f13   :  { %v4860_v29 = vmax.f32 %v4852_v20, %v4859_v60  ;;  %v4857_v1 = vsel %vm4848_vm10, %v4846_v54, -inf }
0x2f14   :  { %v4858_v40 = vmax.f32 %v4851_v53, %v4857_v1 }
0x2f15   :  { %6099 = vmatpush3.bf16.msra.mxu0 %v6237_v17 }
0x2f16   :  { %v4862_v28 = vmax.f32 %v4858_v40, %v4860_v29  ;;  %6104 = vmatprep.subr.bf16.mxu0 %v6843_v0  ;;  %v5058_v41 = vpop.permute.xlu1 %5057 }
0x2f18   :  { %v4863_v13 = vmax.f32 %v4861_v44, %v4862_v28 }
0x2f1a   :  { %v4864_v5 = vsub.f32 %v4840_v14, %v4863_v13  ;;  %v4865_v31 = vsub.f32 %v4841_v43, %v4863_v13  ;;  %v4866_v62 = vsub.f32 %v4842_v47, %v4863_v13  ;;  %v4867_v50 = vsub.f32 %v4843_v45, %v4863_v13 }
0x2f1b   :  { %v4868_v30 = vsub.f32 %v4844_v46, %v4863_v13  ;;  %v4869_v39 = vsub.f32 %v4845_v58, %v4863_v13  ;;  %v4870_v4 = vsub.f32 %v4846_v54, %v4863_v13  ;;  %v4871_v8 = vsub.f32 %v4847_v11, %v4863_v13  ;;  %v5056_v11 = vpop.permute.xlu0 %5055 }
0x2f1c   :  { %v4872_v37 = vmul.f32 1.442695, %v4864_v5  ;;  %v4874_v49 = vmul.f32 1.442695, %v4865_v31  ;;  %v4876_v34 = vmul.f32 1.442695, %v4866_v62  ;;  %v5062_v5 = vpop.permute.xlu1 %5061 }
0x2f1d   :  { %v4878_v3 = vmul.f32 1.442695, %v4867_v50  ;;  %v4880_v61 = vmul.f32 1.442695, %v4868_v30  ;;  %v4882_v63 = vmul.f32 1.442695, %v4869_v39 }
0x2f1e   :  { %6821 = vpow2.f32 %v4872_v37  ;;  %v4884_v36 = vmul.f32 1.442695, %v4870_v4  ;;  %v4886_v42 = vmul.f32 1.442695, %v4871_v8 }
0x2f1f   :  { %6823 = vpow2.f32 %v4874_v49  ;;  %v5060_v20 = vpop.permute.xlu0 %5059 }
0x2f20   :  { %6825 = vpow2.f32 %v4876_v34 }
0x2f21   :  { %6827 = vpow2.f32 %v4878_v3 }
0x2f22   :  { %6829 = vpow2.f32 %v4880_v61  ;;  %v5066_v61 = vpop.permute.xlu1 %5065 }
0x2f23   :  { %6831 = vpow2.f32 %v4882_v63  ;;  %v5064_v50 = vpop.permute.xlu0 %5063 }
0x2f24   :  { %6833 = vpow2.f32 %v4884_v36 }
0x2f25   :  { %6835 = vpow2.f32 %v4886_v42 }
0x2f27   :  { %v5068_v42 = vpop.permute.xlu0 %5067 }
0x2f28   :  { %v6822_v7 = vpop.eup %6821 }
0x2f29   :  { %v6824_v48 = vpop.eup %6823  ;;  %v4888_v18 = vsel %vm4848_vm10, %v6822_v7, 0.0 }
0x2f2a   :  { %v6826_v10 = vpop.eup %6825  ;;  %v4889_v52 = vsel %vm4848_vm10, %v6824_v48, 0.0 }
0x2f2b   :  { %v6828_v2 = vpop.eup %6827  ;;  %v4890_v33 = vadd.f32 %v4889_v52, %v4888_v18  ;;  %v4891_v38 = vsel %vm4848_vm10, %v6826_v10, 0.0 }
0x2f2c   :  { %v6830_v15 = vpop.eup %6829  ;;  %v4893_v26 = vsel %vm4848_vm10, %v6828_v2, 0.0 }
0x2f2d   :  { %v4892_v25 = vadd.f32 %v4891_v38, %v4890_v33  ;;  %v6832_v6 = vpop.eup %6831  ;;  %v4895_v51 = vsel %vm4848_vm10, %v6830_v15, 0.0 }
0x2f2e   :  { %v6834_v35 = vpop.eup %6833  ;;  %v4897_v16 = vsel %vm4848_vm10, %v6832_v6, 0.0 }
0x2f2f   :  { %v4894_v59 = vadd.f32 %v4893_v26, %v4892_v25  ;;  %v6836_v55 = vpop.eup %6835  ;;  %v4899_v24 = vsel %vm4848_vm10, %v6834_v35, 0.0  ;;  %v6238_v26 = vld [vmem:[%s8440_s11] sm:$0xff]  }
0x2f30   :  { %v4901_v14 = vsel %vm4848_vm10, %v6836_v55, 0.0 }
0x2f31   :  { %v4896_v56 = vadd.f32 %v4895_v51, %v4894_v59  ;;  %v6239_v59 = vld [vmem:[%s8440_s11 + $0x8] sm:$0xff]   ;;  %v5720_v51 = vld [vmem:[%s5528_s15] ss:$0 sm:$0xff]  ;;  %s5538_s11 = sld [smem:[%s8519_s0 + %s6871_s8]]  }
0x2f32   :  { %s5536_s15 = sld [smem:[%s8519_s0 + %s6872_s19]]  }
0x2f33   :  { %v4898_v9 = vadd.f32 %v4897_v16, %v4896_v56 }
0x2f35   :  { %v4900_v43 = vadd.f32 %v4899_v24, %v4898_v9 }
0x2f37   :  { %v4902_v57 = vadd.f32 %v4901_v14, %v4900_v43  ;;  %v5724_v43 = vld [vmem:[%s5531_s20] ss:$0 sm:$0xff]  ;;  %s5540_s20 = sld [smem:[%s8519_s0 + %s6873_s16]]  }
0x2f39   :  { %6837 = vrcp.f32 %v4902_v57 }
0x2f43   :  { %v6838_v58 = vpop.eup %6837 }
0x2f44   :  { %v4904_v27 = vmul.f32 %v6838_v58, %v6822_v7  ;;  %v4905_v46 = vmul.f32 %v6838_v58, %v6824_v48  ;;  %v4906_v12 = vmul.f32 %v6838_v58, %v6826_v10  ;;  %v4907_v45 = vmul.f32 %v6838_v58, %v6828_v2 }
0x2f45   :  { %v4908_v32 = vmul.f32 %v6838_v58, %v6830_v15  ;;  %v4909_v21 = vmul.f32 %v6838_v58, %v6832_v6  ;;  %v4910_v47 = vmul.f32 %v6838_v58, %v6834_v35  ;;  %v4911_v23 = vmul.f32 %v6838_v58, %v6836_v55 }
0x2f46   :  { %6084 = vmatprep.mubr.msk.f32.mxu1 %vm4848_vm10, %v4904_v27 }
0x2f47   :  { %6085 = vmatmul.mubr.msk.f32.vlgmr.msra.gmra.mrb[52].mxu1 %vm4848_vm10, %v4905_v46 }
0x2f48   :  { %6087 = vmatprep.mubr.msk.f32.mxu1 %vm4848_vm10, %v4906_v12 }
0x2f4b   :  { %6088 = vmatmul.mubr.msk.f32.gmra.mrb[54].mxu1 %vm4848_vm10, %v4907_v45 }
0x2f4c   :  { %6090 = vmatprep.mubr.msk.f32.mxu1 %vm4848_vm10, %v4908_v32 }
0x2f4f   :  { %6091 = vmatmul.mubr.msk.f32.gmra.mrb[56].mxu1 %vm4848_vm10, %v4909_v21 }
0x2f50   :  { %6093 = vmatprep.mubr.msk.f32.mxu1 %vm4848_vm10, %v4910_v47 }
0x2f53   :  { %6094 = vmatmul.mubr.msk.f32.gmra.mrb[58].mxu1 %vm4848_vm10, %v4911_v23 }
0x2f54   :  { %6116 = vmatprep.mubr.msk.bf16.mxu1 %vm6854_vm1, %v6843_v0 }
0x301a   :  { %v6086_v54 = vpop.f32.mrb[52].mxu1 }
0x301b   :  { %v5078_v44 = vmul.f32 %v6086_v54, %v5056_v11  ;;  %v5014_v60 = vpop.f32.mrb[53].mxu1  ;;  %v6241_v11 = vld [vmem:[%s5534_s25 + $0x8] sm:$0xff]  }
0x301c   :  { %v5077_v53 = vmul.f32 %v5054_v22, %v5014_v60  ;;  %v6240_v22 = vld [vmem:[%s5534_s25] sm:$0xff]   ;;  %s6875_s25 = smov 23  }
0x301d   :  { %v5086_v29 = vsel %vm709_vm2, %v5078_v44, 0.0  ;;  %6113 = vmatpush3.bf16.msra.mxu1 %v6240_v22  ;;  %v5738_v60 = vld [vmem:[%s5539_s30] ss:$0 sm:$0xff]  ;;  %s5537_s29 = sld [smem:[%s8519_s0 + %s6875_s25]]   ;;  %s6876_s30 = smov 28  }
0x301e   :  { %v5085_v1 = vsel %vm709_vm2, %v5077_v53, 0.0  ;;  %v6089_v40 = vpop.f32.mrb[54].mxu1  ;;  %6114 = vmatprep.subr.bf16.mxu1 %v6843_v0  ;;  %s5542_s3 = sld [smem:[%s8519_s0 + %s6876_s30]]  }
0x301f   :  { %v5087_v28 = vadd.f32 %v5086_v29, %v5085_v1  ;;  %v5024_v13 = vpop.f32.mrb[55].mxu1  ;;  %v5080_v31 = vmul.f32 %v6089_v40, %v5060_v20 }
0x3020   :  { %v5079_v62 = vmul.f32 %v5058_v41, %v5024_v13 }
0x3021   :  { %v5090_v37 = vsel %vm709_vm2, %v5080_v31, 0.0  ;;  %6115 = vmatpush3.bf16.msra.mxu1 %v6241_v11 }
0x3022   :  { %v5088_v30 = vsel %vm709_vm2, %v5079_v62, 0.0  ;;  %v6092_v39 = vpop.f32.mrb[56].mxu1  ;;  %6126 = vmatprep.subr.bf16.mxu1 %v6843_v0 }
0x3023   :  { %v5089_v4 = vadd.f32 %v5088_v30, %v5087_v28  ;;  %v5034_v8 = vpop.f32.mrb[57].mxu1  ;;  %v5082_v49 = vmul.f32 %v6092_v39, %v5064_v50  ;;  %v5728_v28 = vld [vmem:[%s5532_s4] ss:$0 sm:$0xff] }
0x3024   :  { %v5081_v34 = vmul.f32 %v5062_v5, %v5034_v8  ;;  %v5729_v5 = vld [vmem:[%s5533_s7] ss:$0 sm:$0xff] }
0x3025   :  { %v5091_v3 = vadd.f32 %v5090_v37, %v5089_v4  ;;  %v5094_v18 = vsel %vm709_vm2, %v5082_v49, 0.0  ;;  %v5737_v8 = vld [vmem:[%s5538_s11] ss:$0 sm:$0xff] }
0x3026   :  { %v5092_v63 = vsel %vm709_vm2, %v5081_v34, 0.0  ;;  %v6095_v36 = vpop.f32.mrb[58].mxu1  ;;  %v6242_v37 = vld [vmem:[%s5536_s15] sm:$0xff]   ;;  %v6244_v34 = vld [vmem:[%s5540_s20 + $0x8] sm:$0xff]  }
0x3027   :  { %v5093_v7 = vadd.f32 %v5092_v63, %v5091_v3  ;;  %v5044_v48 = vpop.f32.mrb[59].mxu1  ;;  %v5084_v10 = vmul.f32 %v6095_v36, %v5068_v42  ;;  %v6243_v49 = vld [vmem:[%s5540_s20] sm:$0xff]  }
0x3028   :  { %v5083_v52 = vmul.f32 %v5066_v61, %v5044_v48  ;;  %v5730_v36 = vld [vmem:[%s5535_s23] ss:$0 sm:$0xff] }
0x3029   :  { %v5095_v2 = vadd.f32 %v5094_v18, %v5093_v7  ;;  %v5098_v15 = vsel %vm709_vm2, %v5084_v10, 0.0 }
0x302a   :  { %v5096_v33 = vsel %vm709_vm2, %v5083_v52, 0.0 }
0x302b   :  { %v5097_v38 = vadd.f32 %v5096_v33, %v5095_v2 }
0x302d   :  { %v5099_v25 = vadd.f32 %v5098_v15, %v5097_v38 }
0x302f   :  { %v5104_v6 = vpack.c.bf16 %v5099_v25, %v5099_v25 }
0x3031   :  { %6101 = vmatmul.mubr.msk.bf16.vlgmr.msra.gmra.mrb[60].mxu0 %vm709_vm2, %v5104_v6 }
0x3032   :  { %6105 = vmatpush3.bf16.msra.mxu0 %v6238_v26  ;;  %6108 = vmatprep.mubr.msk.bf16.mxu0 %vm6854_vm1, %v6843_v0 }
0x3033   :  { %6106 = vmatprep.subr.bf16.mxu0 %v6843_v0 }
0x3036   :  { %6107 = vmatpush3.bf16.msra.mxu0 %v6239_v59 }
0x3037   :  { %6120 = vmatprep.subr.bf16.mxu0 %v6843_v0 }
0x3104   :  { %v5161_v35 = vpop.f32.mrb[60].mxu0 }
0x3105   :  { %v5162_v56 = vadd.f32 %v5720_v51, %v5161_v35  ;;  %v6102_v16 = vpop.f32.mrb[61].mxu0  ;;  %v5734_v35 = vld [vmem:[%s5537_s29] ss:$0 sm:$0xff] }
0x3106   :  { %v5164_v55 = vpop.f32.mrb[62].mxu0 }
0x3107   :  { %v5171_v9 = vpack.c.bf16 %v5162_v56, %v5162_v56  ;;  %v6103_v24 = vpop.f32.mrb[63].mxu0 }
0x3109   :  { %6109 = vmatmul.mubr.msk.bf16.vlgmr.msra.gmra.mrb[64].mxu0 %vm709_vm2, %v5171_v9 }
0x310a   :  { %6122 = vmatprep.mubr.msk.bf16.mxu0 %vm6854_vm1, %v6843_v0  ;;  %6121 = vmatpush3.bf16.msra.mxu0 %v6242_v37 }
0x31dc   :  { %v5228_v14 = vpop.f32.mrb[64].mxu0 }
0x31dd   :  { %v5229_v57 = vadd.f32 %v5724_v43, %v5228_v14  ;;  %v6110_v58 = vpop.f32.mrb[65].mxu0 }
0x31de   :  { %v5231_v27 = vpop.f32.mrb[66].mxu0 }
0x31df   :  { %5397 = vrot.lane.b32.xlu0 %v5229_v57, %s6863_s14  ;;  %v6111_v46 = vpop.f32.mrb[67].mxu0  ;;  %v5236_v12 = vsel %vm709_vm2, %v5229_v57, 0.0 }
0x31e0   :  { %5237 = vadd.xlane.f32.xlu1 %v5236_v12 }
0x3251   :  { %v5398_v45 = vpop.permute.xlu0 %5397 }
0x3252   :  { %v5400_v32 = vsel %vm709_vm2, %v5398_v45, 0.0 }
0x3253   :  { %5401 = vadd.xlane.f32.xlu1 %v5400_v32 }
0x326d   :  { %v5238_v21 = vpop.xlane.xlu1 %5237 }
0x326e   :  { %v5240_v47 = vmul.f32 0.03125, %v5238_v21 }
0x3270   :  { %v5241_v23 = vsub.f32 %v5229_v57, %v5240_v47 }
0x3272   :  { %v5242_v19 = vmul.f32 %v5241_v23, %v5241_v23 }
0x3274   :  { %v5243_v17 = vsel %vm709_vm2, %v5242_v19, 0.0 }
0x3275   :  { %5244 = vadd.xlane.f32.xlu0 %v5243_v17 }
0x32e0   :  { %v5402_v41 = vpop.xlane.xlu1 %5401 }
0x32e1   :  { %v5403_v54 = vmul.f32 0.03125, %v5402_v41 }
0x32e3   :  { %v5404_v20 = vsub.f32 %v5229_v57, %v5403_v54 }
0x32e5   :  { %v5405_v44 = vmul.f32 %v5404_v20, %v5404_v20 }
0x32e7   :  { %5407 = vrot.lane.b32.xlu0 %v5405_v44, %s6863_s14 }
0x32eb   :  { %5431 = vrot.lane.b32.xlu0 %v5738_v60, %s6850_s24 }
0x3302   :  { %v5245_v53 = vpop.xlane.xlu0 %5244 }
0x3303   :  { %v5246_v29 = vmul.f32 0.03125, %v5245_v53 }
0x3305   :  { %v5247_v1 = vadd.f32 1e-05, %v5246_v29 }
0x3307   :  { %6839 = vrsqrt.f32 %v5247_v1 }
0x3311   :  { %v6840_v40 = vpop.eup %6839 }
0x3312   :  { %v5249_v13 = vmul.f32 %v6840_v40, %v5241_v23 }
0x3314   :  { %v5256_v31 = vmul.f32 %v5728_v28, %v5249_v13 }
0x3316   :  { %v5263_v62 = vadd.f32 %v5729_v5, %v5256_v31 }
0x3318   :  { %v5264_v50 = vmax.f32 %v5263_v62, 0.0 }
0x331a   :  { %v5269_v30 = vpack.c.bf16 %v5264_v50, %v5264_v50 }
0x331c   :  { %6117 = vmatmul.mubr.msk.bf16.vlgmr.msra.gmra.mrb[60].mxu1 %vm709_vm2, %v5269_v30 }
0x331d   :  { %6130 = vmatprep.mubr.msk.bf16.mxu1 %vm6854_vm1, %v6843_v0  ;;  %6127 = vmatpush3.bf16.msra.mxu1 %v6243_v49  ;;  %vm5349_vm1 = vcmask 130048  }
0x331e   :  { %6128 = vmatprep.subr.bf16.mxu1 %v6843_v0 }
0x3321   :  { %6129 = vmatpush3.bf16.msra.mxu1 %v6244_v34 }
0x3359   :  { %v5408_v39 = vpop.permute.xlu0 %5407 }
0x335a   :  { %v5410_v4 = vsel %vm709_vm2, %v5408_v39, 0.0 }
0x335b   :  { %5411 = vadd.xlane.f32.xlu1 %v5410_v4 }
0x335d   :  { %v5432_v15 = vpop.permute.xlu0 %5431 }
0x336c   :  { %5422 = vrot.lane.b32.xlu1 %v5737_v8, %s6850_s24 }
0x33e8   :  { %v5412_v3 = vpop.xlane.xlu1 %5411 }
0x33e9   :  { %v5413_v61 = vmul.f32 0.03125, %v5412_v3 }
0x33eb   :  { %v5414_v63 = vadd.f32 1e-05, %v5413_v61 }
0x33ec   :  { %v5423_v33 = vpop.permute.xlu1 %5422 }
0x33ed   :  { %6841 = vrsqrt.f32 %v5414_v63 }
0x33ef   :  { %v5326_v42 = vpop.f32.mrb[60].mxu1 }
0x33f0   :  { %v5327_v7 = vadd.f32 %v5730_v36, %v5326_v42  ;;  %v6118_v48 = vpop.f32.mrb[61].mxu1 }
0x33f1   :  { %v5329_v18 = vpop.f32.mrb[62].mxu1 }
0x33f2   :  { %v5332_v10 = vmax.f32 %v5327_v7, 0.0  ;;  %v6119_v52 = vpop.f32.mrb[63].mxu1 }
0x33f4   :  { %v5335_v2 = vpack.c.bf16 %v5332_v10, %v5332_v10 }
0x33f6   :  { %6123 = vmatmul.mubr.msk.bf16.vlgmr.msra.gmra.mrb[68].mxu0 %vm5349_vm1, %v5335_v2 }
0x33f7   :  { %v6842_v0 = vpop.eup %6841 }
0x33f8   :  { %v5416_v38 = vmul.f32 %v6842_v0, %v5404_v20 }
0x33fa   :  { %v5425_v25 = vmul.f32 %v5423_v33, %v5416_v38 }
0x33fc   :  { %v5434_v26 = vadd.f32 %v5432_v15, %v5425_v25 }
0x33fe   :  { %v5435_v6 = vmax.f32 %v5434_v26, 0.0 }
0x3400   :  { %v5440_v59 = vpack.c.bf16 %v5435_v6, %v5435_v6 }
0x3402   :  { %5449 = vrot.lane.b32.xlu1 %v5440_v59, %s6863_s14  ;;  %s6877_s14 = smov 27  }
0x3403   :  { %s5541_s26 = sld [smem:[%s8519_s0 + %s6877_s14]]  }
0x3409   :  { %v5739_v43 = vld [vmem:[%s5541_s26] ss:$0 sm:$0xff] }
0x3474   :  { %v5450_v51 = vpop.permute.xlu1 %5449 }
0x3475   :  { %6131 = vmatmul.mubr.msk.bf16.vlgmr.msra.gmra.mrb[64].mxu1 %vm709_vm2, %v5450_v51 }
0x34c9   :  { %v5387_v56 = vpop.f32.mrb[68].mxu0 }
0x34ca   :  { %v5388_v16 = vadd.f32 %v5734_v35, %v5387_v56  ;;  %v6124_v55 = vpop.f32.mrb[69].mxu0 }
0x34cb   :  { %v5390_v9 = vpop.f32.mrb[70].mxu0 }
0x34cc   :  { %5393 = vst [vmem:[%s5542_s3] sm:$0xff] %v5388_v16  ;;  %v6125_v24 = vpop.f32.mrb[71].mxu0 }
0x3548   :  { %v5500_v14 = vpop.f32.mrb[64].mxu1 }
0x3549   :  { %v5501_v57 = vadd.f32 %v5739_v43, %v5500_v14  ;;  %v6132_v58 = vpop.f32.mrb[65].mxu1 }
0x354a   :  { %v5503_v27 = vpop.f32.mrb[66].mxu1 }
0x354b   :  { %5506 = vst [vmem:[%s5543_s9] sm:$0xff] %v5501_v57  ;;  %v6133_v46 = vpop.f32.mrb[67].mxu1 }

</bundles_post_ra>
